<compile_context>
chip_gen: v7x
topology: tpu7x:2x2x1
jax: 0.10.0
libtpu: 0.0.40
codegen_flags: <defaults>
</compile_context>

<pallas_src>
import jax
import jax.numpy as jnp
from jax import lax
from jax.experimental import pallas as pl
from jax.experimental.pallas import tpu as pltpu


# ----------------------------------------------------------------------------- utils
def _round_up(x, m):
    return ((x + m - 1) // m) * m


# --------------------------------------------------------------------- weight packing
def _pack_conv1_weight(w1):
    """w1: (18, 16) k-major (row = j*6 + c) -> (288, 256) bf16 block-diagonal weight.

    A conv1 matmul row holds 16 consecutive conv windows (48 input positions x 6 ch,
    position-major / channel-minor).  Window w (0..15) occupies rows [18w, 18w+18);
    even windows write output lanes [16*(w//2), +16) (lanes 0..127), odd windows the
    same offset in lanes 128..255.  max(even_half, odd_half) in the kernel is then
    exactly MaxPool1d(2,2) over conv positions and the output tile is a fully
    lane-dense (rows, 128) = (rows, 8 pooled positions x 16 ch) slab.
    """
    K, N = w1.shape  # (18, 16)
    W = jnp.zeros((16 * K, 16 * N), jnp.float32)
    w1f = w1.astype(jnp.float32)
    for w in range(16):
        col = (w // 2) * N + (0 if w % 2 == 0 else 8 * N)
        W = lax.dynamic_update_slice(W, w1f, (w * K, col))
    return W.astype(jnp.bfloat16)


def _pack_conv2_weight(w2):
    """w2: (160, 8) k-major (row = j*16 + c) -> (160, 24) bf16.

    conv2 (k=10, s=5, p=1) is evaluated on 10-position "deca-chunks" D_r of the padded
    pooled1.  Output position 2r reads only D_r (cols 0..7); position 2r+1 reads the
    last 5 positions of D_r (cols 8..15) plus the first 5 positions of D_{r+1}
    (cols 16..23).  The kernel adds the row-shifted partials and maxes even/odd,
    fusing ReLU + MaxPool1d(2,2) into a single dot per batch.
    """
    W = jnp.zeros((160, 24), jnp.float32)
    w2f = w2.astype(jnp.float32)
    W = lax.dynamic_update_slice(W, w2f, (0, 0))        # even window: k = 0..9 from D_r
    W = lax.dynamic_update_slice(W, w2f[:80], (80, 8))  # odd window:  k = 0..4 from D_r
    W = lax.dynamic_update_slice(W, w2f[80:], (0, 16))  # odd window:  k = 5..9 from D_{r+1}
    return W.astype(jnp.bfloat16)


def prepare_params(params):
    """One-time packing / bf16 cast of the model params into kernel-ready form."""
    return {
        "w1p": _pack_conv1_weight(params["w1"]),                              # (288, 256) bf16
        "b1t": jnp.tile(params["b1"], 8).reshape(1, 128).astype(jnp.float32),  # (1, 128)
        "w2p": _pack_conv2_weight(params["w2"]),                              # (160, 24) bf16
        "b2t": params["b2"].reshape(1, 8).astype(jnp.float32),
        "fw1": params["fw1"].astype(jnp.bfloat16),
        "fb1": params["fb1"].reshape(1, -1).astype(jnp.float32),
        "fw2": params["fw2"].astype(jnp.bfloat16),
        "fb2": params["fb2"].reshape(1, -1).astype(jnp.float32),
        "fw3": params["fw3"].astype(jnp.bfloat16),
        "fb3": params["fb3"].reshape(1, -1).astype(jnp.float32),
    }


# ------------------------------------------------------------------------ conv kernels
def _conv1_kernel(p_ref, w_ref, b_ref, o_ref):
    # p_ref: (1, T, 288) bf16  -- T rows x (16 conv windows = 48 positions x 6 ch)
    # w_ref: (288, 256) bf16   -- block-diagonal packed conv1 weight (even | odd halves)
    # b_ref: (1, 128) f32      -- bias tiled over the 8 pooled positions per row
    # o_ref: (1, T, 128) bf16  -- ReLU(MaxPool(conv1)): 8 pooled positions x 16 ch per row
    r = jnp.dot(p_ref[0], w_ref[...], preferred_element_type=jnp.float32)   # (T, 256)
    h = jnp.maximum(r[:, :128], r[:, 128:]) + b_ref[...]                    # pool + bias
    o_ref[0] = jnp.maximum(h, 0.0).astype(o_ref.dtype)                      # ReLU


def _conv2_kernel(d_ref, w_ref, b_ref, o_ref):
    # d_ref: (1, 834, 160) bf16 -- deca-chunks of padded pooled1 (10 pos x 16 ch each)
    # w_ref: (160, 24) bf16     -- [even win | odd win (from D_r) | odd win (from D_{r+1})]
    # b_ref: (1, 8) f32
    # o_ref: (1, 833, 8) bf16   -- ReLU(MaxPool(conv2)), channels-last
    r = jnp.dot(d_ref[0], w_ref[...], preferred_element_type=jnp.float32)   # (834, 24)
    even = r[:-1, 0:8]
    odd = r[:-1, 8:16] + r[1:, 16:24]
    o_ref[0] = jnp.maximum(jnp.maximum(even, odd) + b_ref[...], 0.0).astype(o_ref.dtype)


# ----------------------------------------------------------- fused classifier stack
def _fc_stack_kernel(x_ref, w1_ref, b1_ref, w2_ref, b2_ref, w3_ref, b3_ref, o_ref):
    h = jnp.dot(x_ref[...], w1_ref[...], preferred_element_type=jnp.float32)
    h = jnp.maximum(h + b1_ref[...], 0.0).astype(w2_ref.dtype)
    h = jnp.dot(h, w2_ref[...], preferred_element_type=jnp.float32)
    h = jnp.maximum(h + b2_ref[...], 0.0).astype(w3_ref.dtype)
    h = jnp.dot(h, w3_ref[...], preferred_element_type=jnp.float32)
    o_ref[...] = (h + b3_ref[...]).astype(o_ref.dtype)


def _fc_stack(x, kp):
    """x: (B, 6664) bf16 -> (B, num_classes). One launch; all weights resident in VMEM."""
    B = x.shape[0]
    Bp = max(8, _round_up(B, 8))
    if Bp != B:
        x = jnp.pad(x, ((0, Bp - B), (0, 0)))
    nc = kp["fw3"].shape[1]
    out = pl.pallas_call(
        _fc_stack_kernel,
        out_shape=jax.ShapeDtypeStruct((Bp, nc), jnp.float32),
    )(x, kp["fw1"], kp["fb1"], kp["fw2"], kp["fb2"], kp["fw3"], kp["fb3"])
    return out[:B]


# ------------------------------------------------------------------------- the model
_T1 = 528  # conv1 row tile (multiple of 16); 2 tiles per batch -> even (B, 2) grid


def small_model_forward(x, kp):
    B, _, L = x.shape

    # --- conv1 (k=3, s=3, p=1) + ReLU + MaxPool(2,2): one lane-dense matmul kernel ---
    L1 = (L + 2 - 3) // 3 + 1            # conv1 output length (16667)
    Lp1 = L1 // 2                        # pooled length (8333)
    rows_pb = -(-L1 // 16)               # 16 conv windows per matmul row (1042)
    n_t1 = -(-rows_pb // _T1)            # row tiles per batch (2)
    rows_pb_pad = n_t1 * _T1             # 1056
    Lpad = 48 * rows_pb_pad              # padded input positions needed (50688)

    d = x[:, :6, :].astype(jnp.bfloat16)
    d = jnp.pad(d, ((0, 0), (0, 0), (1, Lpad - L - 1)))   # conv left pad + zero tail
    d = jnp.transpose(d, (0, 2, 1))                        # (B, Lpad, 6) channels-last
    rows1 = d.reshape(B, rows_pb_pad, 288)                 # free reshape (48 pos x 6 ch)

    pooled1 = pl.pallas_call(
        _conv1_kernel,
        out_shape=jax.ShapeDtypeStruct((B, rows_pb_pad, 128), jnp.bfloat16),
        grid=(B, n_t1),
        in_specs=[
            pl.BlockSpec((1, _T1, 288), lambda b, i: (b, i, 0)),   # packed windows, tiled rows
            pl.BlockSpec((288, 256), lambda b, i: (0, 0)),         # packed weight, resident
            pl.BlockSpec((1, 128), lambda b, i: (0, 0)),           # tiled bias, resident
        ],
        out_specs=pl.BlockSpec((1, _T1, 128), lambda b, i: (b, i, 0)),
        compiler_params=pltpu.CompilerParams(
            dimension_semantics=("parallel", "parallel"),
            allow_input_fusion=[True, False, False],
        ),
    )(rows1, kp["w1p"], kp["b1t"])
    pooled1 = pooled1.reshape(B, rows_pb_pad * 8, 16)      # (B, 8448, 16), free reshape

    # --- conv2 (k=10, s=5, p=1) + ReLU + MaxPool(2,2): one deca-chunk matmul kernel ---
    L2 = (Lp1 + 2 - 10) // 5 + 1         # conv2 output length (1666)
    Lp2 = L2 // 2                        # pooled length (833)
    n_deca = Lp2 + 1                     # 10-position chunks of padded input (834)
    dd = jnp.pad(pooled1[:, :Lp1, :], ((0, 0), (1, 10 * n_deca - Lp1 - 1), (0, 0)))
    deca = dd.reshape(B, n_deca, 160)    # free reshape: (B, 834, 160)

    pooled2 = pl.pallas_call(
        _conv2_kernel,
        out_shape=jax.ShapeDtypeStruct((B, Lp2, 8), jnp.bfloat16),
        grid=(B,),
        in_specs=[
            pl.BlockSpec((1, n_deca, 160), lambda b: (b, 0, 0)),   # whole batch resident
            pl.BlockSpec((160, 24), lambda b: (0, 0)),
            pl.BlockSpec((1, 8), lambda b: (0, 0)),
        ],
        out_specs=pl.BlockSpec((1, Lp2, 8), lambda b: (b, 0, 0)),
        compiler_params=pltpu.CompilerParams(
            dimension_semantics=("parallel",),
            allow_input_fusion=[True, False, False],
        ),
    )(deca, kp["w2p"], kp["b2t"])

    # --- flatten (channels-last feature order; fw1 rows stored to match) -----------
    flat = pooled2.reshape(B, Lp2 * 8)                     # (B, 6664), free reshape
    assert flat.shape[1] == kp["fw1"].shape[0], (flat.shape, kp["fw1"].shape)

    # --- fused classifier: 6664 -> 256 -> 128 -> nc in one kernel ------------------
    return _fc_stack(flat, kp)


# --------------------------------------------------------------------- parameter init
def init_params(key, num_classes):
    ks = jax.random.split(key, 10)

    def kaiming(k, fan_in, shape):
        return jnp.sqrt(2.0 / fan_in) * jax.random.normal(k, shape, jnp.float32)

    p = {}
    # Conv1d(6, 16, 3): stored k-major as (3*6, 16); row index = j*6 + c.
    p["w1"] = kaiming(ks[0], 6 * 3, (18, 16))
    p["b1"] = 0.01 * jax.random.normal(ks[1], (16,), jnp.float32)
    # Conv1d(16, 8, 10): stored k-major as (10*16, 8); row index = j*16 + c.
    p["w2"] = kaiming(ks[2], 16 * 10, (160, 8))
    p["b2"] = 0.01 * jax.random.normal(ks[3], (8,), jnp.float32)
    # Linear(6664, 256): rows stored in channels-last feature order (pos*8 + ch),
    # a fixed row-permutation of PyTorch's NCL flatten (ch*833 + pos).  Internally
    # consistent with reference_forward; permute fw1 rows if importing torch weights.
    p["fw1"] = kaiming(ks[4], 6664, (6664, 256))
    p["fb1"] = 0.01 * jax.random.normal(ks[5], (256,), jnp.float32)
    p["fw2"] = kaiming(ks[6], 256, (256, 128))
    p["fb2"] = 0.01 * jax.random.normal(ks[7], (128,), jnp.float32)
    p["fw3"] = kaiming(ks[8], 128, (128, num_classes))
    p["fb3"] = 0.01 * jax.random.normal(ks[9], (num_classes,), jnp.float32)
    return p


# ------------------------------------------------------------ pure-JAX reference
def reference_forward(x, params):
    hp = lax.Precision.HIGHEST
    d = x[:, :6, :].astype(jnp.float32)
    # k-major (18,16) -> OIH (16, 6, 3)
    w1 = params["w1"].T.reshape(16, 3, 6).transpose(0, 2, 1)
    h = lax.conv_general_dilated(d, w1, (3,), [(1, 1)],
                                 dimension_numbers=("NCH", "OIH", "NCH"),
                                 precision=hp) + params["b1"][None, :, None]
    h = jax.nn.relu(h)
    Lp = h.shape[-1] // 2
    h = jnp.max(h[:, :, :2 * Lp].reshape(h.shape[0], h.shape[1], Lp, 2), axis=-1)
    # k-major (160,8) -> OIH (8, 16, 10)
    w2 = params["w2"].T.reshape(8, 10, 16).transpose(0, 2, 1)
    h = lax.conv_general_dilated(h, w2, (5,), [(1, 1)],
                                 dimension_numbers=("NCH", "OIH", "NCH"),
                                 precision=hp) + params["b2"][None, :, None]
    h = jax.nn.relu(h)
    Lp = h.shape[-1] // 2
    h = jnp.max(h[:, :, :2 * Lp].reshape(h.shape[0], h.shape[1], Lp, 2), axis=-1)
    # flatten channels-last to match fw1's stored row order (see init_params)
    h = h.transpose(0, 2, 1).reshape(h.shape[0], -1)
    h = jax.nn.relu(jnp.dot(h, params["fw1"], precision=hp) + params["fb1"])
    h = jax.nn.relu(jnp.dot(h, params["fw2"], precision=hp) + params["fb2"])
    return jnp.dot(h, params["fw3"], precision=hp) + params["fb3"]


# --------------------------------------------------------------------------------- main
if __name__ == "__main__":
    # The classifier hard-codes 6664 = 833 * 8 flattened features, which forces
    # input_length = 50000 for this architecture (smallest shape consistent with it).
    INPUT_LENGTH = 50000
    NUM_CLASSES = 10
    B, C_IN = 2, 8          # extra channels exercise the x[:, :6, :] slice

    key = jax.random.PRNGKey(0)
    k_x, k_p = jax.random.split(key)
    x = jax.random.normal(k_x, (B, C_IN, INPUT_LENGTH), dtype=jnp.float32)
    params = init_params(k_p, NUM_CLASSES)
    kparams = prepare_params(params)      # one-time weight packing / bf16 cast

    fwd = jax.jit(small_model_forward)
    out = jax.block_until_ready(fwd(x, kparams))
    assert out.shape == (B, NUM_CLASSES), out.shape

    ref = jax.block_until_ready(reference_forward(x, params))
    max_err = float(jnp.max(jnp.abs(out - ref)))
    scale = float(jnp.max(jnp.abs(ref))) + 1e-6
    # bf16 matmul inputs with f32 accumulation -> ~0.5-1% end-to-end relative error.
    assert max_err <= 2e-2 * scale + 1e-3, (max_err, scale)

    print("KERNEL_OK")
</pallas_src>

<mosaic_0001>
module attributes {stable_mosaic.version = 11 : i64} {
  func.func @_conv1_kernel(%arg0: i32, %arg1: i32, %arg2: memref<1x528x288xbf16, #tpu.memory_space<vmem>>, %arg3: memref<288x256xbf16, #tpu.memory_space<vmem>>, %arg4: memref<1x128xf32, #tpu.memory_space<vmem>>, %arg5: memref<1x528x128xbf16, #tpu.memory_space<vmem>>) attributes {dimension_semantics = [#tpu.dimension_semantics<parallel>, #tpu.dimension_semantics<parallel>], iteration_bounds = array<i64: 2, 2>, scalar_prefetch = 0 : i64, scratch_operands = 0 : i64, tpu.core_type = #tpu.core_type<tc>, window_params = [{transform_indices = @transform_0, window_bounds = array<i64: 1, 528, 288>}, {pipeline_mode = #tpu.pipeline_mode<synchronous>, transform_indices = @transform_1, window_bounds = array<i64: 288, 256>}, {pipeline_mode = #tpu.pipeline_mode<synchronous>, transform_indices = @transform_2, window_bounds = array<i64: 1, 128>}, {transform_indices = @transform_3, window_bounds = array<i64: 1, 528, 128>}]} {
    %c0 = arith.constant 0 : index
    %c0_0 = arith.constant 0 : index
    %c0_1 = arith.constant 0 : index
    %0 = vector.load %arg2[%c0, %c0_0, %c0_1] : memref<1x528x288xbf16, #tpu.memory_space<vmem>>, vector<1x528x288xbf16>
    %1 = vector.shape_cast %0 : vector<1x528x288xbf16> to vector<528x288xbf16>
    %c0_2 = arith.constant 0 : index
    %c0_3 = arith.constant 0 : index
    %2 = vector.load %arg3[%c0_2, %c0_3] : memref<288x256xbf16, #tpu.memory_space<vmem>>, vector<288x256xbf16>
    %cst = arith.constant dense<0.000000e+00> : vector<528x256xf32>
    %3 = tpu.matmul %1, %2, %cst {dimension_numbers = #tpu.dot_dimension_numbers<[1], [0], [0], [1], [0, 0, 1, 1], [], []>} : vector<528x288xbf16>, vector<288x256xbf16>, vector<528x256xf32> -> vector<528x256xf32>
    %4 = vector.extract_strided_slice %3 {offsets = [0, 0], sizes = [528, 128], strides = [1, 1]} : vector<528x256xf32> to vector<528x128xf32>
    %5 = vector.extract_strided_slice %3 {offsets = [0, 128], sizes = [528, 128], strides = [1, 1]} : vector<528x256xf32> to vector<528x128xf32>
    %6 = arith.maximumf %4, %5 : vector<528x128xf32>
    %c0_4 = arith.constant 0 : index
    %c0_5 = arith.constant 0 : index
    %7 = vector.load %arg4[%c0_4, %c0_5] : memref<1x128xf32, #tpu.memory_space<vmem>>, vector<1x128xf32>
    %8 = vector.broadcast %7 : vector<1x128xf32> to vector<528x128xf32>
    %9 = arith.addf %6, %8 : vector<528x128xf32>
    %cst_6 = arith.constant 0.000000e+00 : f32
    %10 = vector.broadcast %cst_6 : f32 to vector<528x128xf32>
    %11 = arith.maximumf %9, %10 : vector<528x128xf32>
    %12 = arith.truncf %11 : vector<528x128xf32> to vector<528x128xbf16>
    %c0_7 = arith.constant 0 : index
    %c0_8 = arith.constant 0 : index
    %c0_9 = arith.constant 0 : index
    %13 = vector.load %arg5[%c0_7, %c0_8, %c0_9] : memref<1x528x128xbf16, #tpu.memory_space<vmem>>, vector<1x528x128xbf16>
    %14 = vector.shape_cast %13 : vector<1x528x128xbf16> to vector<528x128xbf16>
    %15 = vector.shape_cast %12 : vector<528x128xbf16> to vector<1x528x128xbf16>
    tpu.vector_store %arg5[%c0_7, %c0_8, %c0_9], %15 {strides = array<i32>} : memref<1x528x128xbf16, #tpu.memory_space<vmem>>, vector<1x528x128xbf16>,
    return
  }
  func.func @transform_0(%arg0: i32, %arg1: i32) -> (i32, i32, i32) {
    %c0_i32 = arith.constant 0 : i32
    %c0_i32_0 = arith.constant 0 : i32
    return %arg0, %arg1, %c0_i32 : i32, i32, i32
  }
  func.func @transform_1(%arg0: i32, %arg1: i32) -> (i32, i32) {
    %c0_i32 = arith.constant 0 : i32
    %c0_i32_0 = arith.constant 0 : i32
    %c0_i32_1 = arith.constant 0 : i32
    return %c0_i32, %c0_i32_0 : i32, i32
  }
  func.func @transform_2(%arg0: i32, %arg1: i32) -> (i32, i32) {
    %c0_i32 = arith.constant 0 : i32
    %c0_i32_0 = arith.constant 0 : i32
    %c0_i32_1 = arith.constant 0 : i32
    return %c0_i32, %c0_i32_0 : i32, i32
  }
  func.func @transform_3(%arg0: i32, %arg1: i32) -> (i32, i32, i32) {
    %c0_i32 = arith.constant 0 : i32
    %c0_i32_0 = arith.constant 0 : i32
    return %arg0, %arg1, %c0_i32 : i32, i32, i32
  }
}

module attributes {stable_mosaic.version = 11 : i64} {
  func.func @_conv2_kernel(%arg0: i32, %arg1: memref<1x834x160xbf16, #tpu.memory_space<vmem>>, %arg2: memref<160x24xbf16, #tpu.memory_space<vmem>>, %arg3: memref<1x8xf32, #tpu.memory_space<vmem>>, %arg4: memref<1x833x8xbf16, #tpu.memory_space<vmem>>) attributes {dimension_semantics = [#tpu.dimension_semantics<parallel>], iteration_bounds = array<i64: 2>, scalar_prefetch = 0 : i64, scratch_operands = 0 : i64, tpu.core_type = #tpu.core_type<tc>, window_params = [{transform_indices = @transform_0, window_bounds = array<i64: 1, 834, 160>}, {pipeline_mode = #tpu.pipeline_mode<synchronous>, transform_indices = @transform_1, window_bounds = array<i64: 160, 24>}, {pipeline_mode = #tpu.pipeline_mode<synchronous>, transform_indices = @transform_2, window_bounds = array<i64: 1, 8>}, {transform_indices = @transform_3, window_bounds = array<i64: 1, 833, 8>}]} {
    %c0 = arith.constant 0 : index
    %c0_0 = arith.constant 0 : index
    %c0_1 = arith.constant 0 : index
    %0 = vector.load %arg1[%c0, %c0_0, %c0_1] : memref<1x834x160xbf16, #tpu.memory_space<vmem>>, vector<1x834x160xbf16>
    %1 = vector.shape_cast %0 : vector<1x834x160xbf16> to vector<834x160xbf16>
    %c0_2 = arith.constant 0 : index
    %c0_3 = arith.constant 0 : index
    %2 = vector.load %arg2[%c0_2, %c0_3] : memref<160x24xbf16, #tpu.memory_space<vmem>>, vector<160x24xbf16>
    %cst = arith.constant dense<0.000000e+00> : vector<834x24xf32>
    %3 = tpu.matmul %1, %2, %cst {dimension_numbers = #tpu.dot_dimension_numbers<[1], [0], [0], [1], [0, 0, 1, 1], [], []>} : vector<834x160xbf16>, vector<160x24xbf16>, vector<834x24xf32> -> vector<834x24xf32>
    %4 = vector.extract_strided_slice %3 {offsets = [0, 0], sizes = [833, 8], strides = [1, 1]} : vector<834x24xf32> to vector<833x8xf32>
    %5 = vector.extract_strided_slice %3 {offsets = [0, 8], sizes = [833, 8], strides = [1, 1]} : vector<834x24xf32> to vector<833x8xf32>
    %6 = vector.extract_strided_slice %3 {offsets = [1, 16], sizes = [833, 8], strides = [1, 1]} : vector<834x24xf32> to vector<833x8xf32>
    %7 = arith.addf %5, %6 : vector<833x8xf32>
    %8 = arith.maximumf %4, %7 : vector<833x8xf32>
    %c0_4 = arith.constant 0 : index
    %c0_5 = arith.constant 0 : index
    %9 = vector.load %arg3[%c0_4, %c0_5] : memref<1x8xf32, #tpu.memory_space<vmem>>, vector<1x8xf32>
    %10 = vector.broadcast %9 : vector<1x8xf32> to vector<833x8xf32>
    %11 = arith.addf %8, %10 : vector<833x8xf32>
    %cst_6 = arith.constant 0.000000e+00 : f32
    %12 = vector.broadcast %cst_6 : f32 to vector<833x8xf32>
    %13 = arith.maximumf %11, %12 : vector<833x8xf32>
    %14 = arith.truncf %13 : vector<833x8xf32> to vector<833x8xbf16>
    %c0_7 = arith.constant 0 : index
    %c0_8 = arith.constant 0 : index
    %c0_9 = arith.constant 0 : index
    %15 = vector.load %arg4[%c0_7, %c0_8, %c0_9] : memref<1x833x8xbf16, #tpu.memory_space<vmem>>, vector<1x833x8xbf16>
    %16 = vector.shape_cast %15 : vector<1x833x8xbf16> to vector<833x8xbf16>
    %17 = vector.shape_cast %14 : vector<833x8xbf16> to vector<1x833x8xbf16>
    tpu.vector_store %arg4[%c0_7, %c0_8, %c0_9], %17 {strides = array<i32>} : memref<1x833x8xbf16, #tpu.memory_space<vmem>>, vector<1x833x8xbf16>,
    return
  }
  func.func @transform_0(%arg0: i32) -> (i32, i32, i32) {
    %c0_i32 = arith.constant 0 : i32
    %c0_i32_0 = arith.constant 0 : i32
    %c0_i32_1 = arith.constant 0 : i32
    return %arg0, %c0_i32, %c0_i32_0 : i32, i32, i32
  }
  func.func @transform_1(%arg0: i32) -> (i32, i32) {
    %c0_i32 = arith.constant 0 : i32
    %c0_i32_0 = arith.constant 0 : i32
    %c0_i32_1 = arith.constant 0 : i32
    return %c0_i32, %c0_i32_0 : i32, i32
  }
  func.func @transform_2(%arg0: i32) -> (i32, i32) {
    %c0_i32 = arith.constant 0 : i32
    %c0_i32_0 = arith.constant 0 : i32
    %c0_i32_1 = arith.constant 0 : i32
    return %c0_i32, %c0_i32_0 : i32, i32
  }
  func.func @transform_3(%arg0: i32) -> (i32, i32, i32) {
    %c0_i32 = arith.constant 0 : i32
    %c0_i32_0 = arith.constant 0 : i32
    %c0_i32_1 = arith.constant 0 : i32
    return %arg0, %c0_i32, %c0_i32_0 : i32, i32, i32
  }
}

module attributes {stable_mosaic.version = 11 : i64} {
  func.func @_fc_stack_kernel(%arg0: memref<8x6664xbf16, #tpu.memory_space<vmem>>, %arg1: memref<6664x256xbf16, #tpu.memory_space<vmem>>, %arg2: memref<1x256xf32, #tpu.memory_space<vmem>>, %arg3: memref<256x128xbf16, #tpu.memory_space<vmem>>, %arg4: memref<1x128xf32, #tpu.memory_space<vmem>>, %arg5: memref<128x10xbf16, #tpu.memory_space<vmem>>, %arg6: memref<1x10xf32, #tpu.memory_space<vmem>>, %arg7: memref<8x10xf32, #tpu.memory_space<vmem>>) attributes {dimension_semantics = [], scalar_prefetch = 0 : i64, scratch_operands = 0 : i64, tpu.core_type = #tpu.core_type<tc>} {
    %c0 = arith.constant 0 : index
    %c0_0 = arith.constant 0 : index
    %0 = vector.load %arg0[%c0, %c0_0] : memref<8x6664xbf16, #tpu.memory_space<vmem>>, vector<8x6664xbf16>
    %c0_1 = arith.constant 0 : index
    %c0_2 = arith.constant 0 : index
    %1 = vector.load %arg1[%c0_1, %c0_2] : memref<6664x256xbf16, #tpu.memory_space<vmem>>, vector<6664x256xbf16>
    %cst = arith.constant dense<0.000000e+00> : vector<8x256xf32>
    %2 = tpu.matmul %0, %1, %cst {dimension_numbers = #tpu.dot_dimension_numbers<[1], [0], [0], [1], [0, 0, 1, 1], [], []>} : vector<8x6664xbf16>, vector<6664x256xbf16>, vector<8x256xf32> -> vector<8x256xf32>
    %c0_3 = arith.constant 0 : index
    %c0_4 = arith.constant 0 : index
    %3 = vector.load %arg2[%c0_3, %c0_4] : memref<1x256xf32, #tpu.memory_space<vmem>>, vector<1x256xf32>
    %4 = vector.broadcast %3 : vector<1x256xf32> to vector<8x256xf32>
    %5 = arith.addf %2, %4 : vector<8x256xf32>
    %cst_5 = arith.constant 0.000000e+00 : f32
    %6 = vector.broadcast %cst_5 : f32 to vector<8x256xf32>
    %7 = arith.maximumf %5, %6 : vector<8x256xf32>
    %8 = arith.truncf %7 : vector<8x256xf32> to vector<8x256xbf16>
    %c0_6 = arith.constant 0 : index
    %c0_7 = arith.constant 0 : index
    %9 = vector.load %arg3[%c0_6, %c0_7] : memref<256x128xbf16, #tpu.memory_space<vmem>>, vector<256x128xbf16>
    %cst_8 = arith.constant dense<0.000000e+00> : vector<8x128xf32>
    %10 = tpu.matmul %8, %9, %cst_8 {dimension_numbers = #tpu.dot_dimension_numbers<[1], [0], [0], [1], [0, 0, 1, 1], [], []>} : vector<8x256xbf16>, vector<256x128xbf16>, vector<8x128xf32> -> vector<8x128xf32>
    %c0_9 = arith.constant 0 : index
    %c0_10 = arith.constant 0 : index
    %11 = vector.load %arg4[%c0_9, %c0_10] : memref<1x128xf32, #tpu.memory_space<vmem>>, vector<1x128xf32>
    %12 = vector.broadcast %11 : vector<1x128xf32> to vector<8x128xf32>
    %13 = arith.addf %10, %12 : vector<8x128xf32>
    %cst_11 = arith.constant 0.000000e+00 : f32
    %14 = vector.broadcast %cst_11 : f32 to vector<8x128xf32>
    %15 = arith.maximumf %13, %14 : vector<8x128xf32>
    %16 = arith.truncf %15 : vector<8x128xf32> to vector<8x128xbf16>
    %c0_12 = arith.constant 0 : index
    %c0_13 = arith.constant 0 : index
    %17 = vector.load %arg5[%c0_12, %c0_13] : memref<128x10xbf16, #tpu.memory_space<vmem>>, vector<128x10xbf16>
    %cst_14 = arith.constant dense<0.000000e+00> : vector<8x10xf32>
    %18 = tpu.matmul %16, %17, %cst_14 {dimension_numbers = #tpu.dot_dimension_numbers<[1], [0], [0], [1], [0, 0, 1, 1], [], []>} : vector<8x128xbf16>, vector<128x10xbf16>, vector<8x10xf32> -> vector<8x10xf32>
    %c0_15 = arith.constant 0 : index
    %c0_16 = arith.constant 0 : index
    %19 = vector.load %arg6[%c0_15, %c0_16] : memref<1x10xf32, #tpu.memory_space<vmem>>, vector<1x10xf32>
    %20 = vector.broadcast %19 : vector<1x10xf32> to vector<8x10xf32>
    %21 = arith.addf %18, %20 : vector<8x10xf32>
    %c0_17 = arith.constant 0 : index
    %c0_18 = arith.constant 0 : index
    %22 = vector.load %arg7[%c0_17, %c0_18] : memref<8x10xf32, #tpu.memory_space<vmem>>, vector<8x10xf32>
    tpu.vector_store %arg7[%c0_17, %c0_18], %21 {strides = array<i32>} : memref<8x10xf32, #tpu.memory_space<vmem>>, vector<8x10xf32>,
    return
  }
}

</mosaic_0001>

<bundles_post_ra>
// kernel: small_model_forward.3
= control target key start
LH: loop header
LB: loop body
LE: loop exit
PB: predicated region body
PF: predicated region fallthrough
CT: control target
= control target key end

     0   :  { %s3442_s12 = smov 0   ;;  %s3444_s13 = smov 0   ;;  %s4278_s0 = inlined_call_operand.vmem [shape: bf16[2,1056,288], index: 0, kind: input, shape index: {}]   ;;  %s4279_s1 = inlined_call_operand.vmem [shape: bf16[288,256], index: 1, kind: input, shape index: {}]   ;;  %s4280_s2 = inlined_call_operand.vmem [shape: f32[1,128], index: 2, kind: input, shape index: {}]   ;;  %s4281_s3 = inlined_call_operand.vmem [shape: bf16[2,1056,128], index: 3, kind: output, shape index: {}]  }
   0x1   :  { %s3446_s14 = smov 0   ;;  %s3448_s15 = smov 0  }
   0x2   :  { %s3450_s16 = smov 0  }
   0x3 LB: > { %s22_s17 = sadd.s32 1, %s3411_s14  ;;  %s25_s18 = sadd.s32 1, %s3415_s15  ;;  %s3419_s16 = sphi %s3450_s16, %s13_s16   ;;  %s3415_s15 = sphi %s3448_s15, %s4285_s15   ;;  %s3411_s14 = sphi %s3446_s14, %s4284_s14   ;;  %s3407_s13 = sphi %s3444_s13, %s4283_s13   ;;  %s3403_s12 = sphi %s3442_s12, %s4282_s12  }
   0x4   : > { %p23_p0 = scmp.ge.s32.totalorder %s22_s17, 2  ;;  %p2515_p1 = scmp.ge.s32.totalorder %s3419_s16, 1 }
   0x5   : > { %p159_p2 = scmp.lt.s32.totalorder %s3419_s16, 5 }
   0x6   : > { %s4287_s17 = smov (%p23_p0, %s22_s17), 0  ;;  %s4289_s18 = smov (!%p23_p0, %s25_s18), %s3415_s15 }
   0x7   : > { %p160_p3 = pnand %p2515_p1, %p159_p2  ;;  %p27_p4 = scmp.ge.s32.totalorder %s4289_s18, 2 }
   0x8   : > { %v3194_v0 = vld [vmem:[%s4279_s1 + $0x4] ss:$8 sps:$4 sm:$0xff] (!%p160_p3)   ;;  %s192_s21 = smul.u32 (!%p160_p3), 66, %s3403_s12  ;;  %v3196_v1 = vld [vmem:[%s4279_s1] ss:$8 sps:$4 sm:$0xff] (!%p160_p3)   ;;  %v3421_v2 = vmov (!%p160_p3), 0  }
   0x9   : > { %s4291_s18 = smov (%p27_p4, %s4289_s18), 0  ;;  %163 = sbr.rel (%p160_p3) target bundleno = 556 (0x22c), region = 32 }
   0xa   : > { %1552 = vmatprep.mubr.bf16.mxu0 (!%p160_p3), %v3421_v2  ;;  %1157 = vmatprep.subr.bf16.mxu1 (!%p160_p3), %v3194_v0  ;;  %v3197_v3 = vld [vmem:[%s4279_s1 + $0x14] ss:$8 sps:$4 sm:$0xff] (!%p160_p3)   ;;  %v3199_v4 = vld [vmem:[%s4279_s1 + $0x10] ss:$8 sps:$4 sm:$0xff] (!%p160_p3)   ;;  %p193_p5 = scmp.lt.s32.totalorder (!%p160_p3), %s3407_s13, 1  ;;  %p195_p6 = scmp.lt.s32.totalorder (!%p160_p3), %s192_s21, 131 }
   0xb   : > { %1158 = vmatpush1.bf16.msra.mxu1 (!%p160_p3), %v3196_v1  ;;  %v3200_v5 = vld [vmem:[%s4279_s1 + $0x24] ss:$8 sps:$4 sm:$0xff] (!%p160_p3)   ;;  %v3202_v6 = vld [vmem:[%s4279_s1 + $0x20] ss:$8 sps:$4 sm:$0xff] (!%p160_p3)   ;;  %v3203_v7 = vld [vmem:[%s4279_s1 + $0x34] ss:$8 sps:$4 sm:$0xff] (!%p160_p3)  }
   0xc   : > { %1159 = vmatprep.subr.bf16.mxu1 (!%p160_p3), %v3197_v3  ;;  %v3205_v8 = vld [vmem:[%s4279_s1 + $0x30] ss:$8 sps:$4 sm:$0xff] (!%p160_p3)   ;;  %v3206_v9 = vld [vmem:[%s4279_s1 + $0x44] ss:$8 sps:$4 sm:$0xff] (!%p160_p3)   ;;  %v3208_v10 = vld [vmem:[%s4279_s1 + $0x40] ss:$8 sps:$4 sm:$0xff] (!%p160_p3)  }
   0xd   : > { %v3209_v11 = vld [vmem:[%s4279_s1 + $0x54] ss:$8 sps:$4 sm:$0xff] (!%p160_p3)   ;;  %v3211_v12 = vld [vmem:[%s4279_s1 + $0x50] ss:$8 sps:$4 sm:$0xff] (!%p160_p3)   ;;  %v3236_v13 = vld [vmem:[%s4279_s1 + $0x104] ss:$8 sps:$4 sm:$0xff] (!%p160_p3)  }
   0xe   : > { %v3238_v14 = vld [vmem:[%s4279_s1 + $0x100] ss:$8 sps:$4 sm:$0xff] (!%p160_p3)   ;;  %v3212_v15 = vld [vmem:[%s4279_s1 + $0x64] ss:$8 sps:$4 sm:$0xff] (!%p160_p3)   ;;  %1520 = vmatprep.subr.bf16.mxu0 (!%p160_p3), %v3236_v13  ;;  %v3242_v16 = vld [vmem:[%s4279_s1 + $0x114] ss:$8 sps:$4 sm:$0xff] (!%p160_p3)  }
   0xf   : > { %1160 = vmatpush1.bf16.msra.mxu1 (!%p160_p3), %v3199_v4  ;;  %1521 = vmatpush1.bf16.msra.mxu0 (!%p160_p3), %v3238_v14  ;;  %v3244_v17 = vld [vmem:[%s4279_s1 + $0x110] ss:$8 sps:$4 sm:$0xff] (!%p160_p3)   ;;  %v3214_v18 = vld [vmem:[%s4279_s1 + $0x60] ss:$8 sps:$4 sm:$0xff] (!%p160_p3)   ;;  %v3215_v19 = vld [vmem:[%s4279_s1 + $0x74] ss:$8 sps:$4 sm:$0xff] (!%p160_p3)  }
  0x10   : > { %s4293_s13 = smov (!%p193_p5, %s3407_s13), 1  ;;  %1161 = vmatprep.subr.bf16.mxu1 %v3200_v5  ;;  %s4295_s21 = smov (!%p195_p6, %s192_s21), 131  ;;  %1522 = vmatprep.subr.bf16.mxu0 %v3242_v16  ;;  %vm1057_vm0 = vcmask 261120   ;;  %v3217_v22 = vld [vmem:[%s4279_s1 + $0x70] ss:$8 sps:$4 sm:$0xff]  }
  0x11   : > { %s3151_s9 = smul.u32 396, %s4293_s13  ;;  %v3218_v23 = vld [vmem:[%s4279_s1 + $0x84] ss:$8 sps:$4 sm:$0xff]   ;;  %v3220_v24 = vld [vmem:[%s4279_s1 + $0x80] ss:$8 sps:$4 sm:$0xff]  }
  0x12   : > { %s3150_s12 = smul.u32 3, %s4295_s21  ;;  %v3221_v25 = vld [vmem:[%s4279_s1 + $0x94] ss:$8 sps:$4 sm:$0xff]   ;;  %v3223_v27 = vld [vmem:[%s4279_s1 + $0x90] ss:$8 sps:$4 sm:$0xff]  }
  0x13   : > { %1162 = vmatpush1.bf16.msra.mxu1 %v3202_v6  ;;  %1523 = vmatpush1.bf16.msra.mxu0 %v3244_v17  ;;  %v3224_v28 = vld [vmem:[%s4279_s1 + $0xa4] ss:$8 sps:$4 sm:$0xff]   ;;  %v3226_v29 = vld [vmem:[%s4279_s1 + $0xa0] ss:$8 sps:$4 sm:$0xff]   ;;  %v3227_v30 = vld [vmem:[%s4279_s1 + $0xb4] ss:$8 sps:$4 sm:$0xff]  }
  0x14   : > { %1163 = vmatprep.subr.bf16.mxu1 %v3203_v7  ;;  %s199_s24 = sadd.s32 %s3151_s9, %s3150_s12  ;;  %v3229_v32 = vld [vmem:[%s4279_s1 + $0xb0] ss:$8 sps:$4 sm:$0xff]   ;;  %v3230_v33 = vld [vmem:[%s4279_s1 + $0xc4] ss:$8 sps:$4 sm:$0xff]   ;;  %v3232_v34 = vld [vmem:[%s4279_s1 + $0xc0] ss:$8 sps:$4 sm:$0xff]  }
  0x15   : > { %s2516_s4 = sshll.u32 %s199_s24, 2  ;;  %v3233_v35 = vld [vmem:[%s4279_s1 + $0xd4] ss:$8 sps:$4 sm:$0xff]   ;;  %v3235_v37 = vld [vmem:[%s4279_s1 + $0xd0] ss:$8 sps:$4 sm:$0xff]   ;;  %s3152_s20 = smul.u32 132, %s4293_s13 }
  0x16   : > { %s3540_s19 = scalar_lea.vmem %s4278_s0, %s2516_s4  ;;  %v3239_v38 = vld [vmem:[%s4279_s1 + $0xe4] ss:$8 sps:$4 sm:$0xff]   ;;  %v3241_v39 = vld [vmem:[%s4279_s1 + $0xe0] ss:$8 sps:$4 sm:$0xff]   ;;  %v3245_v40 = vld [vmem:[%s4279_s1 + $0xf4] ss:$8 sps:$4 sm:$0xff]  }
  0x17   : > { %1164 = vmatpush1.bf16.msra.mxu1 %v3205_v8  ;;  %v3248_v20 = vld [vmem:[%s3540_s19 + $0x8] ss:$12 sps:$4 sm:$0xff]   ;;  %v3251_v21 = vld [vmem:[%s3540_s19 + $0x4] ss:$12 sps:$4 sm:$0xff]   ;;  %v3252_v26 = vld [vmem:[%s3540_s19 + $0x20] ss:$12 sps:$4 sm:$0xff]   ;;  %s209_s13 = sadd.s32 %s3152_s20, %s4295_s21 }
  0x18   : > { %1165 = vmatprep.subr.bf16.mxu1 %v3206_v9  ;;  %1189 = vmatprep.mubr.bf16.mxu1 %v3251_v21  ;;  %v3256_v31 = vld [vmem:[%s3540_s19 + $0x38] ss:$12 sps:$4 sm:$0xff]   ;;  %v3260_v36 = vld [vmem:[%s3540_s19 + $0x50] ss:$12 sps:$4 sm:$0xff]   ;;  %v3264_v41 = vld [vmem:[%s3540_s19 + $0x68] ss:$12 sps:$4 sm:$0xff]  }
  0x19   : > { %2653 = vmatmul.mubr.msk.bf16.vlgmr.msra.gmra.mrb[0].mxu0 %vm1057_vm0, %v3248_v20  ;;  %v3247_v42 = vld [vmem:[%s4279_s1 + $0xf0] ss:$8 sps:$4 sm:$0xff]   ;;  %v3249_v43 = vld [vmem:[%s3540_s19] ss:$12 sps:$4 sm:$0xff]   ;;  %v3253_v44 = vld [vmem:[%s3540_s19 + $0x1c] ss:$12 sps:$4 sm:$0xff]  }
  0x1a   : > { %1562 = vmatprep.mubr.bf16.mxu0 %v3421_v2  ;;  %v3268_v45 = vld [vmem:[%s3540_s19 + $0x80] ss:$12 sps:$4 sm:$0xff]   ;;  %v3255_v46 = vld [vmem:[%s3540_s19 + $0x18] ss:$12 sps:$4 sm:$0xff]   ;;  %v3259_v49 = vld [vmem:[%s3540_s19 + $0x30] ss:$12 sps:$4 sm:$0xff]  }
  0x1b   : > { %1166 = vmatpush1.bf16.msra.mxu1 %v3208_v10  ;;  %v3257_v47 = vld [vmem:[%s3540_s19 + $0x34] ss:$12 sps:$4 sm:$0xff]   ;;  %v3272_v48 = vld [vmem:[%s3540_s19 + $0x98] ss:$12 sps:$4 sm:$0xff]   ;;  %v3276_v51 = vld [vmem:[%s3540_s19 + $0xb0] ss:$12 sps:$4 sm:$0xff]  }
  0x1c   : > { %1167 = vmatprep.subr.bf16.mxu1 %v3209_v11  ;;  %v3261_v50 = vld [vmem:[%s3540_s19 + $0x4c] ss:$12 sps:$4 sm:$0xff]   ;;  %v3263_v52 = vld [vmem:[%s3540_s19 + $0x48] ss:$12 sps:$4 sm:$0xff]   ;;  %v3265_v53 = vld [vmem:[%s3540_s19 + $0x64] ss:$12 sps:$4 sm:$0xff]  }
  0x1d   : > { %v3280_v54 = vld [vmem:[%s3540_s19 + $0xc8] ss:$12 sps:$4 sm:$0xff]   ;;  %v3267_v55 = vld [vmem:[%s3540_s19 + $0x60] ss:$12 sps:$4 sm:$0xff]   ;;  %v3271_v58 = vld [vmem:[%s3540_s19 + $0x78] ss:$12 sps:$4 sm:$0xff]  }
  0x1e   : > { %v3269_v56 = vld [vmem:[%s3540_s19 + $0x7c] ss:$12 sps:$4 sm:$0xff]   ;;  %v3284_v57 = vld [vmem:[%s3540_s19 + $0xe0] ss:$12 sps:$4 sm:$0xff]   ;;  %v3288_v60 = vld [vmem:[%s3540_s19 + $0xf8] ss:$12 sps:$4 sm:$0xff]  }
  0x1f   : > { %1168 = vmatpush1.bf16.msra.mxu1 %v3211_v12  ;;  %v3273_v59 = vld [vmem:[%s3540_s19 + $0x94] ss:$12 sps:$4 sm:$0xff]   ;;  %v3275_v61 = vld [vmem:[%s3540_s19 + $0x90] ss:$12 sps:$4 sm:$0xff]   ;;  %v3277_v62 = vld [vmem:[%s3540_s19 + $0xac] ss:$12 sps:$4 sm:$0xff]  }
  0x20   : > { %1169 = vmatprep.subr.bf16.mxu1 %v3212_v15  ;;  %v3292_v63 = vld [vmem:[%s3540_s19 + $0x110] ss:$12 sps:$4 sm:$0xff]   ;;  %v3279_v0 = vld [vmem:[%s3540_s19 + $0xa8] ss:$12 sps:$4 sm:$0xff]   ;;  %v3283_v4 = vld [vmem:[%s3540_s19 + $0xc0] ss:$12 sps:$4 sm:$0xff]  }
  0x21   : > { %2654 = vmatmul.mubr.msk.bf16.gmra.mrb[4].mxu0 %vm1057_vm0, %v3252_v26  ;;  %v3281_v1 = vld [vmem:[%s3540_s19 + $0xc4] ss:$12 sps:$4 sm:$0xff]   ;;  %v3296_v3 = vld [vmem:[%s3540_s19 + $0x128] ss:$12 sps:$4 sm:$0xff]   ;;  %v3300_v6 = vld [vmem:[%s3540_s19 + $0x140] ss:$12 sps:$4 sm:$0xff]  }
  0x22   : > { %1572 = vmatprep.mubr.bf16.mxu0 %v3421_v2  ;;  %v3285_v5 = vld [vmem:[%s3540_s19 + $0xdc] ss:$12 sps:$4 sm:$0xff]   ;;  %v3287_v7 = vld [vmem:[%s3540_s19 + $0xd8] ss:$12 sps:$4 sm:$0xff]   ;;  %v3289_v8 = vld [vmem:[%s3540_s19 + $0xf4] ss:$12 sps:$4 sm:$0xff]  }
  0x23   : > { %1170 = vmatpush1.bf16.msra.mxu1 %v3214_v18  ;;  %v3304_v9 = vld [vmem:[%s3540_s19 + $0x158] ss:$12 sps:$4 sm:$0xff]   ;;  %v3291_v10 = vld [vmem:[%s3540_s19 + $0xf0] ss:$12 sps:$4 sm:$0xff]   ;;  %v3295_v13 = vld [vmem:[%s3540_s19 + $0x108] ss:$12 sps:$4 sm:$0xff]  }
  0x24   : > { %1171 = vmatprep.subr.bf16.mxu1 %v3215_v19  ;;  %v3293_v11 = vld [vmem:[%s3540_s19 + $0x10c] ss:$12 sps:$4 sm:$0xff]   ;;  %v3308_v12 = vld [vmem:[%s3540_s19 + $0x170] ss:$12 sps:$4 sm:$0xff]   ;;  %v3312_v15 = vld [vmem:[%s3540_s19 + $0x188] ss:$12 sps:$4 sm:$0xff]  }
  0x25   : > { %v3297_v14 = vld [vmem:[%s3540_s19 + $0x124] ss:$12 sps:$4 sm:$0xff]   ;;  %v3299_v16 = vld [vmem:[%s3540_s19 + $0x120] ss:$12 sps:$4 sm:$0xff]   ;;  %v3301_v17 = vld [vmem:[%s3540_s19 + $0x13c] ss:$12 sps:$4 sm:$0xff]  }
  0x26   : > { %v3316_v18 = vld [vmem:[%s3540_s19 + $0x1a0] ss:$12 sps:$4 sm:$0xff]   ;;  %v3303_v19 = vld [vmem:[%s3540_s19 + $0x138] ss:$12 sps:$4 sm:$0xff]   ;;  %s2517_s24 = sshll.u32 %s209_s13, 2 }
  0x27   : > { %1172 = vmatpush1.bf16.msra.mxu1 %v3217_v22  ;;  %v3305_v20 = vld [vmem:[%s3540_s19 + $0x154] ss:$12 sps:$4 sm:$0xff]   ;;  %v3320_v21 = vld [vmem:[%s3540_s19 + $0x1b8] ss:$12 sps:$4 sm:$0xff]   ;;  %v3307_v22 = vld [vmem:[%s3540_s19 + $0x150] ss:$12 sps:$4 sm:$0xff]   ;;  %s3810_s26 = scalar_lea.vmem %s4281_s3, %s2517_s24 }
  0x28   : > { %1173 = vmatprep.subr.bf16.mxu1 %v3218_v23  ;;  %v3309_v23 = vld [vmem:[%s3540_s19 + $0x16c] ss:$12 sps:$4 sm:$0xff]   ;;  %v3313_v26 = vld [vmem:[%s3540_s19 + $0x184] ss:$12 sps:$4 sm:$0xff]  }
  0x29   : > { %2655 = vmatmul.mubr.msk.bf16.gmra.mrb[8].mxu0 %vm1057_vm0, %v3256_v31  ;;  %v3319_v31 = vld [vmem:[%s3540_s19 + $0x198] ss:$12 sps:$4 sm:$0xff]  }
  0x2a   : > { %1582 = vmatprep.mubr.bf16.mxu0 %v3421_v2 }
  0x2b   : > { %1174 = vmatpush1.bf16.msra.mxu1 %v3220_v24  ;;  %v3324_v24 = vld [vmem:[%s3540_s19 + $0x1d0] ss:$12 sps:$4 sm:$0xff]  }
  0x2c   : > { %1175 = vmatprep.subr.bf16.mxu1 %v3221_v25  ;;  %v3311_v25 = vld [vmem:[%s3540_s19 + $0x168] ss:$12 sps:$4 sm:$0xff]  }
  0x2f   : > { %1176 = vmatpush1.bf16.msra.mxu1 %v3223_v27  ;;  %v3328_v27 = vld [vmem:[%s3540_s19 + $0x1e8] ss:$12 sps:$4 sm:$0xff]  }
  0x30   : > { %1177 = vmatprep.subr.bf16.mxu1 %v3224_v28  ;;  %v3315_v28 = vld [vmem:[%s3540_s19 + $0x180] ss:$12 sps:$4 sm:$0xff]  }
  0x31   : > { %2656 = vmatmul.mubr.msk.bf16.gmra.mrb[12].mxu0 %vm1057_vm0, %v3260_v36  ;;  %v3340_v36 = vld [vmem:[%s3540_s19 + $0x230] ss:$12 sps:$4 sm:$0xff]  }
  0x32   : > { %1592 = vmatprep.mubr.bf16.mxu0 %v3421_v2 }
  0x33   : > { %1178 = vmatpush1.bf16.msra.mxu1 %v3226_v29  ;;  %v3317_v29 = vld [vmem:[%s3540_s19 + $0x19c] ss:$12 sps:$4 sm:$0xff]  }
  0x34   : > { %1179 = vmatprep.subr.bf16.mxu1 %v3227_v30  ;;  %v3332_v30 = vld [vmem:[%s3540_s19 + $0x200] ss:$12 sps:$4 sm:$0xff]  }
  0x37   : > { %1180 = vmatpush1.bf16.msra.mxu1 %v3229_v32  ;;  %v3321_v32 = vld [vmem:[%s3540_s19 + $0x1b4] ss:$12 sps:$4 sm:$0xff]  }
  0x38   : > { %1181 = vmatprep.subr.bf16.mxu1 %v3230_v33  ;;  %v3336_v33 = vld [vmem:[%s3540_s19 + $0x218] ss:$12 sps:$4 sm:$0xff]  }
  0x39   : > { %2657 = vmatmul.mubr.msk.bf16.gmra.mrb[16].mxu0 %vm1057_vm0, %v3264_v41  ;;  %v3333_v41 = vld [vmem:[%s3540_s19 + $0x1fc] ss:$12 sps:$4 sm:$0xff]  }
  0x3a   : > { %1602 = vmatprep.mubr.bf16.mxu0 %v3421_v2 }
  0x3b   : > { %1182 = vmatpush1.bf16.msra.mxu1 %v3232_v34  ;;  %v3323_v34 = vld [vmem:[%s3540_s19 + $0x1b0] ss:$12 sps:$4 sm:$0xff]  }
  0x3c   : > { %1183 = vmatprep.subr.bf16.mxu1 %v3233_v35  ;;  %v3325_v35 = vld [vmem:[%s3540_s19 + $0x1cc] ss:$12 sps:$4 sm:$0xff]  }
  0x3f   : > { %1184 = vmatpush1.bf16.msra.mxu1 %v3235_v37  ;;  %v3327_v37 = vld [vmem:[%s3540_s19 + $0x1c8] ss:$12 sps:$4 sm:$0xff]  }
  0x40   : > { %1185 = vmatprep.subr.bf16.mxu1 %v3239_v38  ;;  %v3329_v38 = vld [vmem:[%s3540_s19 + $0x1e4] ss:$12 sps:$4 sm:$0xff]  }
  0x41   : > { %2658 = vmatmul.mubr.msk.bf16.gmra.mrb[20].mxu0 %vm1057_vm0, %v3268_v45  ;;  %v3352_v45 = vld [vmem:[%s3540_s19 + $0x278] ss:$12 sps:$4 sm:$0xff]  }
  0x42   : > { %1612 = vmatprep.mubr.bf16.mxu0 %v3421_v2 }
  0x43   : > { %1186 = vmatpush1.bf16.msra.mxu1 %v3241_v39  ;;  %v3344_v39 = vld [vmem:[%s3540_s19 + $0x248] ss:$12 sps:$4 sm:$0xff]  }
  0x44   : > { %1187 = vmatprep.subr.bf16.mxu1 %v3245_v40  ;;  %v3331_v40 = vld [vmem:[%s3540_s19 + $0x1e0] ss:$12 sps:$4 sm:$0xff]  }
  0x47   : > { %1188 = vmatpush1.bf16.msra.mxu1 %v3247_v42  ;;  %v3348_v42 = vld [vmem:[%s3540_s19 + $0x260] ss:$12 sps:$4 sm:$0xff]  }
  0x49   : > { %2659 = vmatmul.mubr.msk.bf16.gmra.mrb[24].mxu0 %vm1057_vm0, %v3272_v48 }
  0x4a   : > { %1190 = vmatmul.mubr.bf16.vlgmr.msra.gmra.mrb[0].mxu1 %v3249_v43  ;;  %1622 = vmatprep.mubr.bf16.mxu0 %v3421_v2  ;;  %v3335_v43 = vld [vmem:[%s3540_s19 + $0x1f8] ss:$12 sps:$4 sm:$0xff]  }
  0x4b   : > { %1199 = vmatprep.mubr.bf16.mxu1 %v3253_v44  ;;  %v3337_v44 = vld [vmem:[%s3540_s19 + $0x214] ss:$12 sps:$4 sm:$0xff]  }
  0x51   : > { %2660 = vmatmul.mubr.msk.bf16.gmra.mrb[28].mxu0 %vm1057_vm0, %v3276_v51 }
  0x52   : > { %1200 = vmatmul.mubr.bf16.gmra.mrb[4].mxu1 %v3255_v46  ;;  %1632 = vmatprep.mubr.bf16.mxu0 %v3421_v2  ;;  %v3339_v46 = vld [vmem:[%s3540_s19 + $0x210] ss:$12 sps:$4 sm:$0xff]  }
  0x53   : > { %1209 = vmatprep.mubr.bf16.mxu1 %v3257_v47  ;;  %v3341_v47 = vld [vmem:[%s3540_s19 + $0x22c] ss:$12 sps:$4 sm:$0xff]  }
  0x59   : > { %2661 = vmatmul.mubr.msk.bf16.gmra.mrb[32].mxu0 %vm1057_vm0, %v3280_v54  ;;  %v3345_v54 = vld [vmem:[%s3540_s19 + $0x244] ss:$12 sps:$4 sm:$0xff]  }
  0x5a   : > { %1210 = vmatmul.mubr.bf16.gmra.mrb[8].mxu1 %v3259_v49  ;;  %1642 = vmatprep.mubr.bf16.mxu0 %v3421_v2 }
  0x5b   : > { %1219 = vmatprep.mubr.bf16.mxu1 %v3261_v50  ;;  %v3356_v50 = vld [vmem:[%s3540_s19 + $0x290] ss:$12 sps:$4 sm:$0xff]  }
  0x61   : > { %2662 = vmatmul.mubr.msk.bf16.gmra.mrb[36].mxu0 %vm1057_vm0, %v3284_v57  ;;  %v3360_v57 = vld [vmem:[%s3540_s19 + $0x2a8] ss:$12 sps:$4 sm:$0xff]  }
  0x62   : > { %1220 = vmatmul.mubr.bf16.gmra.mrb[12].mxu1 %v3263_v52  ;;  %1652 = vmatprep.mubr.bf16.mxu0 %v3421_v2 }
  0x63   : > { %1229 = vmatprep.mubr.bf16.mxu1 %v3265_v53  ;;  %v3343_v53 = vld [vmem:[%s3540_s19 + $0x228] ss:$12 sps:$4 sm:$0xff]  }
  0x69   : > { %2663 = vmatmul.mubr.msk.bf16.gmra.mrb[40].mxu0 %vm1057_vm0, %v3288_v60  ;;  %v3347_v60 = vld [vmem:[%s3540_s19 + $0x240] ss:$12 sps:$4 sm:$0xff]  }
  0x6a   : > { %1230 = vmatmul.mubr.bf16.gmra.mrb[16].mxu1 %v3267_v55  ;;  %1662 = vmatprep.mubr.bf16.mxu0 %v3421_v2 }
  0x6b   : > { %1239 = vmatprep.mubr.bf16.mxu1 %v3269_v56 }
  0x71   : > { %2664 = vmatmul.mubr.msk.bf16.gmra.mrb[44].mxu0 %vm1057_vm0, %v3292_v63 }
  0x72   : > { %1240 = vmatmul.mubr.bf16.gmra.mrb[20].mxu1 %v3271_v58  ;;  %1672 = vmatprep.mubr.bf16.mxu0 %v3421_v2 }
  0x73   : > { %1249 = vmatprep.mubr.bf16.mxu1 %v3273_v59 }
  0x79   : > { %2665 = vmatmul.mubr.msk.bf16.gmra.mrb[48].mxu0 %vm1057_vm0, %v3296_v3 }
  0x7a   : > { %1250 = vmatmul.mubr.bf16.gmra.mrb[24].mxu1 %v3275_v61  ;;  %1682 = vmatprep.mubr.bf16.mxu0 %v3421_v2  ;;  %v3349_v61 = vld [vmem:[%s3540_s19 + $0x25c] ss:$12 sps:$4 sm:$0xff]  }
  0x7b   : > { %1259 = vmatprep.mubr.bf16.mxu1 %v3277_v62 }
  0x81   : > { %2666 = vmatmul.mubr.msk.bf16.gmra.mrb[52].mxu0 %vm1057_vm0, %v3300_v6 }
  0x82   : > { %1260 = vmatmul.mubr.bf16.gmra.mrb[28].mxu1 %v3279_v0  ;;  %1692 = vmatprep.mubr.bf16.mxu0 %v3421_v2  ;;  %v3364_v0 = vld [vmem:[%s3540_s19 + $0x2c0] ss:$12 sps:$4 sm:$0xff]  }
  0x83   : > { %1269 = vmatprep.mubr.bf16.mxu1 %v3281_v1 }
  0x89   : > { %2667 = vmatmul.mubr.msk.bf16.gmra.mrb[56].mxu0 %vm1057_vm0, %v3304_v9 }
  0x8a   : > { %1270 = vmatmul.mubr.bf16.gmra.mrb[32].mxu1 %v3283_v4  ;;  %1702 = vmatprep.mubr.bf16.mxu0 %v3421_v2  ;;  %v3351_v4 = vld [vmem:[%s3540_s19 + $0x258] ss:$12 sps:$4 sm:$0xff]  }
  0x8b   : > { %1279 = vmatprep.mubr.bf16.mxu1 %v3285_v5  ;;  %v3353_v5 = vld [vmem:[%s3540_s19 + $0x274] ss:$12 sps:$4 sm:$0xff]  }
  0x91   : > { %2668 = vmatmul.mubr.msk.bf16.gmra.mrb[60].mxu0 %vm1057_vm0, %v3308_v12  ;;  %v3357_v12 = vld [vmem:[%s3540_s19 + $0x28c] ss:$12 sps:$4 sm:$0xff]  }
  0x92   : > { %1280 = vmatmul.mubr.bf16.gmra.mrb[36].mxu1 %v3287_v7  ;;  %1712 = vmatprep.mubr.bf16.mxu0 %v3421_v2 }
  0x93   : > { %1289 = vmatprep.mubr.bf16.mxu1 %v3289_v8  ;;  %v3368_v8 = vld [vmem:[%s3540_s19 + $0x2d8] ss:$12 sps:$4 sm:$0xff]  }
  0x99   : > { %2669 = vmatmul.mubr.msk.bf16.gmra.mrb[64].mxu0 %vm1057_vm0, %v3312_v15  ;;  %v3372_v15 = vld [vmem:[%s3540_s19 + $0x2f0] ss:$12 sps:$4 sm:$0xff]  }
  0x9a   : > { %1290 = vmatmul.mubr.bf16.gmra.mrb[40].mxu1 %v3291_v10  ;;  %1722 = vmatprep.mubr.bf16.mxu0 %v3421_v2 }
  0x9b   : > { %1299 = vmatprep.mubr.bf16.mxu1 %v3293_v11  ;;  %v3355_v11 = vld [vmem:[%s3540_s19 + $0x270] ss:$12 sps:$4 sm:$0xff]  }
  0xa1   : > { %2670 = vmatmul.mubr.msk.bf16.gmra.mrb[68].mxu0 %vm1057_vm0, %v3316_v18 }
  0xa2   : > { %1300 = vmatmul.mubr.bf16.gmra.mrb[44].mxu1 %v3295_v13  ;;  %1732 = vmatprep.mubr.bf16.mxu0 %v3421_v2 }
  0xa3   : > { %1309 = vmatprep.mubr.bf16.mxu1 %v3297_v14 }
  0xa9   : > { %2671 = vmatmul.mubr.msk.bf16.gmra.mrb[72].mxu0 %vm1057_vm0, %v3320_v21  ;;  %v3359_v21 = vld [vmem:[%s3540_s19 + $0x288] ss:$12 sps:$4 sm:$0xff]  }
  0xaa   : > { %1310 = vmatmul.mubr.bf16.gmra.mrb[48].mxu1 %v3299_v16  ;;  %1742 = vmatprep.mubr.bf16.mxu0 %v3421_v2 }
  0xab   : > { %1319 = vmatprep.mubr.bf16.mxu1 %v3301_v17 }
  0xb1   : > { %2672 = vmatmul.mubr.msk.bf16.gmra.mrb[76].mxu0 %vm1057_vm0, %v3324_v24  ;;  %v3361_v24 = vld [vmem:[%s3540_s19 + $0x2a4] ss:$12 sps:$4 sm:$0xff]  }
  0xb2   : > { %1320 = vmatmul.mubr.bf16.gmra.mrb[52].mxu1 %v3303_v19  ;;  %1752 = vmatprep.mubr.bf16.mxu0 %v3421_v2 }
  0xb3   : > { %1329 = vmatprep.mubr.bf16.mxu1 %v3305_v20 }
  0xb9   : > { %2673 = vmatmul.mubr.msk.bf16.gmra.mrb[80].mxu0 %vm1057_vm0, %v3328_v27 }
  0xba   : > { %1330 = vmatmul.mubr.bf16.gmra.mrb[56].mxu1 %v3307_v22  ;;  %1762 = vmatprep.mubr.bf16.mxu0 %v3421_v2 }
  0xbb   : > { %1339 = vmatprep.mubr.bf16.mxu1 %v3309_v23 }
  0xc1   : > { %2674 = vmatmul.mubr.msk.bf16.gmra.mrb[84].mxu0 %vm1057_vm0, %v3332_v30 }
  0xc2   : > { %1340 = vmatmul.mubr.bf16.gmra.mrb[60].mxu1 %v3311_v25  ;;  %1772 = vmatprep.mubr.bf16.mxu0 %v3421_v2  ;;  %v3788_v25 = vld [vmem:[%s4280_s2] ss:$0 sm:$0xff] }
  0xc3   : > { %1349 = vmatprep.mubr.bf16.mxu1 %v3313_v26 }
  0xc9   : > { %2675 = vmatmul.mubr.msk.bf16.gmra.mrb[88].mxu0 %vm1057_vm0, %v3336_v33 }
  0xca   : > { %1350 = vmatmul.mubr.bf16.gmra.mrb[64].mxu1 %v3315_v28  ;;  %1782 = vmatprep.mubr.bf16.mxu0 %v3421_v2 }
  0xcb   : > { %1359 = vmatprep.mubr.bf16.mxu1 %v3317_v29 }
  0xd1   : > { %2676 = vmatmul.mubr.msk.bf16.gmra.mrb[92].mxu0 %vm1057_vm0, %v3340_v36 }
  0xd2   : > { %1360 = vmatmul.mubr.bf16.gmra.mrb[68].mxu1 %v3319_v31  ;;  %1792 = vmatprep.mubr.bf16.mxu0 %v3421_v2 }
  0xd3   : > { %1369 = vmatprep.mubr.bf16.mxu1 %v3321_v32  ;;  %v3376_v32 = vld [vmem:[%s3540_s19 + $0x308] ss:$12 sps:$4 sm:$0xff]  }
  0xd9   : > { %2677 = vmatmul.mubr.msk.bf16.gmra.mrb[96].mxu0 %vm1057_vm0, %v3344_v39 }
  0xda   : > { %1370 = vmatmul.mubr.bf16.gmra.mrb[72].mxu1 %v3323_v34  ;;  %1802 = vmatprep.mubr.bf16.mxu0 %v3421_v2 }
  0xdb   : > { %1379 = vmatprep.mubr.bf16.mxu1 %v3325_v35 }
  0xe1   : > { %2678 = vmatmul.mubr.msk.bf16.gmra.mrb[100].mxu0 %vm1057_vm0, %v3348_v42 }
  0xe2   : > { %1380 = vmatmul.mubr.bf16.gmra.mrb[76].mxu1 %v3327_v37  ;;  %1812 = vmatprep.mubr.bf16.mxu0 %v3421_v2 }
  0xe3   : > { %1389 = vmatprep.mubr.bf16.mxu1 %v3329_v38 }
  0xe9   : > { %2679 = vmatmul.mubr.msk.bf16.gmra.mrb[104].mxu0 %vm1057_vm0, %v3352_v45  ;;  %v3365_v45 = vld [vmem:[%s3540_s19 + $0x2bc] ss:$12 sps:$4 sm:$0xff]  }
  0xea   : > { %1390 = vmatmul.mubr.bf16.gmra.mrb[80].mxu1 %v3331_v40  ;;  %1822 = vmatprep.mubr.bf16.mxu0 %v3421_v2  ;;  %v3363_v40 = vld [vmem:[%s3540_s19 + $0x2a0] ss:$12 sps:$4 sm:$0xff]  }
  0xeb   : > { %1399 = vmatprep.mubr.bf16.mxu1 %v3333_v41 }
  0xec   : > { %v1554_v48 = vpop.f32.mrb[0].mxu0 }
  0xed   : > { %v1556_v49 = vpop.f32.mrb[1].mxu0 }
  0xee   : > { %v1558_v51 = vpop.f32.mrb[2].mxu0 }
  0xef   : > { %v1560_v52 = vpop.f32.mrb[3].mxu0 }
  0xf1   : > { %2680 = vmatmul.mubr.msk.bf16.gmra.mrb[108].mxu0 %vm1057_vm0, %v3356_v50 }
  0xf2   : > { %1400 = vmatmul.mubr.bf16.gmra.mrb[84].mxu1 %v3335_v43  ;;  %1832 = vmatprep.mubr.bf16.mxu0 %v3421_v2 }
  0xf3   : > { %1409 = vmatprep.mubr.bf16.mxu1 %v3337_v44 }
  0xf4   : > { %v3732_v55 = vpop.f32.mrb[4].mxu0 }
  0xf5   : > { %v3734_v56 = vpop.f32.mrb[5].mxu0 }
  0xf6   : > { %v3737_v58 = vpop.f32.mrb[6].mxu0 }
  0xf7   : > { %v3739_v59 = vpop.f32.mrb[7].mxu0 }
  0xf9   : > { %2681 = vmatmul.mubr.msk.bf16.gmra.mrb[112].mxu0 %vm1057_vm0, %v3360_v57 }
  0xfa   : > { %1410 = vmatmul.mubr.bf16.gmra.mrb[88].mxu1 %v3339_v46  ;;  %1842 = vmatprep.mubr.bf16.mxu0 %v3421_v2 }
  0xfb   : > { %1419 = vmatprep.mubr.bf16.mxu1 %v3341_v47 }
  0xfc   : > { %v3745_v62 = vpop.f32.mrb[8].mxu0 }
  0xfd   : > { %v3747_v63 = vpop.f32.mrb[9].mxu0 }
  0xfe   : > { %v3750_v1 = vpop.f32.mrb[10].mxu0 }
  0xff   : > { %v3752_v3 = vpop.f32.mrb[11].mxu0 }
 0x101   : > { %2682 = vmatmul.mubr.msk.bf16.gmra.mrb[116].mxu0 %vm1057_vm0, %v3364_v0 }
 0x102   : > { %1420 = vmatmul.mubr.bf16.gmra.mrb[92].mxu1 %v3343_v53  ;;  %1852 = vmatprep.mubr.bf16.mxu0 %v3421_v2 }
 0x103   : > { %1429 = vmatprep.mubr.bf16.mxu1 %v3345_v54 }
 0x104   : > { %v3758_v6 = vpop.f32.mrb[12].mxu0 }
 0x105   : > { %v3760_v7 = vpop.f32.mrb[13].mxu0 }
 0x106   : > { %v3763_v9 = vpop.f32.mrb[14].mxu0 }
 0x107   : > { %v3765_v10 = vpop.f32.mrb[15].mxu0 }
 0x109   : > { %2683 = vmatmul.mubr.msk.bf16.gmra.mrb[120].mxu0 %vm1057_vm0, %v3368_v8 }
 0x10a   : > { %1430 = vmatmul.mubr.bf16.gmra.mrb[96].mxu1 %v3347_v60  ;;  %1862 = vmatprep.mubr.bf16.mxu0 %v3421_v2 }
 0x10b   : > { %1439 = vmatprep.mubr.bf16.mxu1 %v3349_v61 }
 0x10c   : > { %v3771_v13 = vpop.f32.mrb[16].mxu0 }
 0x10d   : > { %v3773_v14 = vpop.f32.mrb[17].mxu0 }
 0x10e   : > { %v3776_v16 = vpop.f32.mrb[18].mxu0 }
 0x10f   : > { %v3778_v17 = vpop.f32.mrb[19].mxu0 }
 0x111   : > { %2684 = vmatmul.mubr.msk.bf16.gmra.mrb[124].mxu0 %vm1057_vm0, %v3372_v15 }
 0x112   : > { %1440 = vmatmul.mubr.bf16.gmra.mrb[100].mxu1 %v3351_v4  ;;  %1872 = vmatprep.mubr.bf16.mxu0 %v3421_v2 }
 0x113   : > { %1449 = vmatprep.mubr.bf16.mxu1 %v3353_v5 }
 0x114   : > { %v3790_v28 = vpop.f32.mrb[20].mxu0 }
 0x115   : > { %v3792_v31 = vpop.f32.mrb[21].mxu0 }
 0x116   : > { %v3796_v2 = vpop.f32.mrb[22].mxu0 }
 0x117   : > { %v3799_v35 = vpop.f32.mrb[23].mxu0 }
 0x119   : > { %2685 = vmatmul.mubr.msk.bf16.gmra.mrb[128].mxu0 %vm1057_vm0, %v3376_v32 }
 0x11a   : > { %1450 = vmatmul.mubr.bf16.gmra.mrb[104].mxu1 %v3355_v11  ;;  %v3369_v11 = vld [vmem:[%s3540_s19 + $0x2d4] ss:$12 sps:$4 sm:$0xff]  }
 0x11b   : > { %1459 = vmatprep.mubr.bf16.mxu1 %v3357_v12 }
 0x11d   : > { %v1191_v18 = vpop.f32.mrb[0].mxu1 }
 0x11e   : > { %v1555_v19 = vadd.f32 %v1554_v48, %v1191_v18  ;;  %v1193_v20 = vpop.f32.mrb[1].mxu1  ;;  %v3813_v48 = vpop.f32.mrb[24].mxu0 }
 0x11f   : > { %v1557_v22 = vadd.f32 %v1556_v49, %v1193_v20  ;;  %v1195_v23 = vpop.f32.mrb[2].mxu1 }
 0x120   : > { %v1559_v26 = vadd.f32 %v1558_v51, %v1195_v23  ;;  %v1197_v27 = vpop.f32.mrb[3].mxu1 }
 0x121   : > { %v1883_v29 = vmax.f32 %v1555_v19, %v1557_v22  ;;  %v1561_v30 = vadd.f32 %v1560_v52, %v1197_v27  ;;  %v3816_v52 = vpop.f32.mrb[25].mxu0 }
 0x122   : > { %1460 = vmatmul.mubr.bf16.gmra.mrb[108].mxu1 %v3359_v21  ;;  %v3818_v53 = vpop.f32.mrb[26].mxu0 }
 0x123   : > { %v1956_v33 = vadd.f32 %v3788_v25, %v1883_v29  ;;  %v1884_v34 = vmax.f32 %v1559_v26, %v1561_v30  ;;  %1469 = vmatprep.mubr.bf16.mxu1 %v3361_v24 }
 0x125   : > { %v1957_v36 = vadd.f32 %v3788_v25, %v1884_v34  ;;  %v1201_v37 = vpop.f32.mrb[4].mxu1  ;;  %v2022_v41 = vmax.f32 %v1956_v33, 0.0 }
 0x126   : > { %v1565_v38 = vadd.f32 %v3732_v55, %v1201_v37  ;;  %v1203_v39 = vpop.f32.mrb[5].mxu1 }
 0x127   : > { %v2023_v42 = vmax.f32 %v1957_v36, 0.0  ;;  %v1567_v43 = vadd.f32 %v3734_v56, %v1203_v39  ;;  %v1205_v44 = vpop.f32.mrb[6].mxu1  ;;  %v3822_v56 = vpop.f32.mrb[27].mxu0  ;;  %v3373_v36 = vld [vmem:[%s3540_s19 + $0x2ec] ss:$12 sps:$4 sm:$0xff]  }
 0x128   : > { %v1569_v46 = vadd.f32 %v3737_v58, %v1205_v44  ;;  %v1207_v47 = vpop.f32.mrb[7].mxu1  ;;  %v3830_v18 = vpop.f32.mrb[28].mxu0 }
 0x129   : > { %v2824_v49 = vpack.c.bf16 %v2023_v42, %v2022_v41  ;;  %v1885_v50 = vmax.f32 %v1565_v38, %v1567_v43  ;;  %v1571_v51 = vadd.f32 %v3739_v59, %v1207_v47  ;;  %v3367_v59 = vld [vmem:[%s3540_s19 + $0x2b8] ss:$12 sps:$4 sm:$0xff]  }
 0x12a   : > { %1470 = vmatmul.mubr.bf16.gmra.mrb[112].mxu1 %v3363_v40 }
 0x12b   : > { %2825 = vst [vmem:[%s3810_s26] sm:$0xff] %v2824_v49   ;;  %v1958_v54 = vadd.f32 %v3788_v25, %v1885_v50  ;;  %v1886_v55 = vmax.f32 %v1569_v46, %v1571_v51  ;;  %1479 = vmatprep.mubr.bf16.mxu1 %v3365_v45 }
 0x12d   : > { %v1959_v57 = vadd.f32 %v3788_v25, %v1886_v55  ;;  %v1211_v58 = vpop.f32.mrb[8].mxu1  ;;  %v2024_v0 = vmax.f32 %v1958_v54, 0.0 }
 0x12e   : > { %v1575_v60 = vadd.f32 %v3745_v62, %v1211_v58  ;;  %v1213_v61 = vpop.f32.mrb[9].mxu1  ;;  %v3833_v62 = vpop.f32.mrb[29].mxu0 }
 0x12f   : > { %v2025_v4 = vmax.f32 %v1959_v57, 0.0  ;;  %v1577_v5 = vadd.f32 %v3747_v63, %v1213_v61  ;;  %v1215_v8 = vpop.f32.mrb[10].mxu1  ;;  %v3835_v22 = vpop.f32.mrb[30].mxu0  ;;  %v3377_v57 = vld [vmem:[%s3540_s19 + $0x304] ss:$12 sps:$4 sm:$0xff]  }
 0x130   : > { %v1579_v12 = vadd.f32 %v3750_v1, %v1215_v8  ;;  %v1217_v15 = vpop.f32.mrb[11].mxu1  ;;  %v3839_v1 = vpop.f32.mrb[31].mxu0 }
 0x131   : > { %v2829_v19 = vpack.c.bf16 %v2025_v4, %v2024_v0  ;;  %v1887_v20 = vmax.f32 %v1575_v60, %v1577_v5  ;;  %v1581_v21 = vadd.f32 %v3752_v3, %v1217_v15  ;;  %v3371_v3 = vld [vmem:[%s3540_s19 + $0x2d0] ss:$12 sps:$4 sm:$0xff]   ;;  %v3847_v39 = vpop.f32.mrb[32].mxu0 }
 0x132   : > { %1480 = vmatmul.mubr.bf16.gmra.mrb[116].mxu1 %v3367_v59 }
 0x133   : > { %2986 = vst [vmem:[%s3810_s26 + $0x8] sm:$0xff] %v2829_v19   ;;  %v1960_v63 = vadd.f32 %v3788_v25, %v1887_v20  ;;  %v1888_v23 = vmax.f32 %v1579_v12, %v1581_v21  ;;  %1489 = vmatprep.mubr.bf16.mxu1 %v3369_v11 }
 0x135   : > { %v1961_v24 = vadd.f32 %v3788_v25, %v1888_v23  ;;  %v1221_v26 = vpop.f32.mrb[12].mxu1  ;;  %v2026_v30 = vmax.f32 %v1960_v63, 0.0 }
 0x136   : > { %v1585_v27 = vadd.f32 %v3758_v6, %v1221_v26  ;;  %v1223_v29 = vpop.f32.mrb[13].mxu1  ;;  %v3850_v6 = vpop.f32.mrb[33].mxu0 }
 0x137   : > { %v2027_v32 = vmax.f32 %v1961_v24, 0.0  ;;  %v1587_v33 = vadd.f32 %v3760_v7, %v1223_v29  ;;  %v1225_v34 = vpop.f32.mrb[14].mxu1  ;;  %v3852_v43 = vpop.f32.mrb[34].mxu0 }
 0x138   : > { %v1589_v37 = vadd.f32 %v3763_v9, %v1225_v34  ;;  %v1227_v38 = vpop.f32.mrb[15].mxu1  ;;  %v3856_v9 = vpop.f32.mrb[35].mxu0 }
 0x139   : > { %v2834_v40 = vpack.c.bf16 %v2027_v32, %v2026_v30  ;;  %v1889_v41 = vmax.f32 %v1585_v27, %v1587_v33  ;;  %v1591_v42 = vadd.f32 %v3765_v10, %v1227_v38  ;;  %v3375_v10 = vld [vmem:[%s3540_s19 + $0x2e8] ss:$12 sps:$4 sm:$0xff]   ;;  %v3864_v61 = vpop.f32.mrb[36].mxu0 }
 0x13a   : > { %1490 = vmatmul.mubr.bf16.gmra.mrb[120].mxu1 %v3371_v3 }
 0x13b   : > { %2987 = vst [vmem:[%s3810_s26 + $0x10] sm:$0xff] %v2834_v40   ;;  %v1962_v7 = vadd.f32 %v3788_v25, %v1889_v41  ;;  %v1890_v44 = vmax.f32 %v1589_v37, %v1591_v42  ;;  %1499 = vmatprep.mubr.bf16.mxu1 %v3373_v36 }
 0x13d   : > { %v1963_v45 = vadd.f32 %v3788_v25, %v1890_v44  ;;  %v1231_v46 = vpop.f32.mrb[16].mxu1  ;;  %v2028_v50 = vmax.f32 %v1962_v7, 0.0 }
 0x13e   : > { %v1595_v47 = vadd.f32 %v3771_v13, %v1231_v46  ;;  %v1233_v49 = vpop.f32.mrb[17].mxu1  ;;  %v3867_v13 = vpop.f32.mrb[37].mxu0 }
 0x13f   : > { %v2029_v51 = vmax.f32 %v1963_v45, 0.0  ;;  %v1597_v54 = vadd.f32 %v3773_v14, %v1233_v49  ;;  %v1235_v55 = vpop.f32.mrb[18].mxu1  ;;  %v3869_v5 = vpop.f32.mrb[38].mxu0 }
 0x140   : > { %v1599_v58 = vadd.f32 %v3776_v16, %v1235_v55  ;;  %v1237_v60 = vpop.f32.mrb[19].mxu1  ;;  %v3873_v11 = vpop.f32.mrb[39].mxu0 }
 0x141   : > { %v2839_v59 = vpack.c.bf16 %v2029_v51, %v2028_v50  ;;  %v1891_v0 = vmax.f32 %v1595_v47, %v1597_v54  ;;  %v1601_v4 = vadd.f32 %v3778_v17, %v1237_v60  ;;  %v3379_v17 = vld [vmem:[%s3540_s19 + $0x300] ss:$12 sps:$4 sm:$0xff]   ;;  %v3880_v27 = vpop.f32.mrb[40].mxu0 }
 0x142   : > { %1500 = vmatmul.mubr.bf16.gmra.mrb[124].mxu1 %v3375_v10  ;;  %v3883_v32 = vpop.f32.mrb[41].mxu0 }
 0x143   : > { %2988 = vst [vmem:[%s3810_s26 + $0x18] sm:$0xff] %v2839_v59   ;;  %v1964_v14 = vadd.f32 %v3788_v25, %v1891_v0  ;;  %v1892_v8 = vmax.f32 %v1599_v58, %v1601_v4  ;;  %1509 = vmatprep.mubr.bf16.mxu1 %v3377_v57 }
 0x145   : > { %v1965_v16 = vadd.f32 %v3788_v25, %v1892_v8  ;;  %v1241_v12 = vpop.f32.mrb[20].mxu1  ;;  %v2030_v20 = vmax.f32 %v1964_v14, 0.0 }
 0x146   : > { %v1605_v15 = vadd.f32 %v3790_v28, %v1241_v12  ;;  %v1243_v19 = vpop.f32.mrb[21].mxu1  ;;  %v3885_v28 = vpop.f32.mrb[42].mxu0 }
 0x147   : > { %v2031_v21 = vmax.f32 %v1965_v16, 0.0  ;;  %v1607_v63 = vadd.f32 %v3792_v31, %v1243_v19  ;;  %v1245_v23 = vpop.f32.mrb[22].mxu1  ;;  %v3889_v31 = vpop.f32.mrb[43].mxu0 }
 0x148   : > { %v1609_v24 = vadd.f32 %v3796_v2, %v1245_v23  ;;  %v1247_v26 = vpop.f32.mrb[23].mxu1  ;;  %v3895_v45 = vpop.f32.mrb[44].mxu0 }
 0x149   : > { %v2844_v29 = vpack.c.bf16 %v2031_v21, %v2030_v20  ;;  %v1893_v3 = vmax.f32 %v1605_v15, %v1607_v63  ;;  %v1611_v30 = vadd.f32 %v3799_v35, %v1247_v26  ;;  %v3898_v10 = vpop.f32.mrb[45].mxu0 }
 0x14a   : > { %1510 = vmatmul.mubr.bf16.gmra.mrb[128].mxu1 %v3379_v17  ;;  %v3900_v50 = vpop.f32.mrb[46].mxu0 }
 0x14b   : > { %2989 = vst [vmem:[%s3810_s26 + $0x20] sm:$0xff] %v2844_v29   ;;  %v1966_v33 = vadd.f32 %v3788_v25, %v1893_v3  ;;  %v1894_v34 = vmax.f32 %v1609_v24, %v1611_v30  ;;  %v3904_v54 = vpop.f32.mrb[47].mxu0 }
 0x14c   : > { %v3910_v14 = vpop.f32.mrb[48].mxu0 }
 0x14d   : > { %v1967_v2 = vadd.f32 %v3788_v25, %v1894_v34  ;;  %v1251_v36 = vpop.f32.mrb[24].mxu1  ;;  %v2032_v40 = vmax.f32 %v1966_v33, 0.0  ;;  %v3913_v15 = vpop.f32.mrb[49].mxu0 }
 0x14e   : > { %v1615_v37 = vadd.f32 %v3813_v48, %v1251_v36  ;;  %v1253_v38 = vpop.f32.mrb[25].mxu1  ;;  %v3915_v19 = vpop.f32.mrb[50].mxu0 }
 0x14f   : > { %v2033_v35 = vmax.f32 %v1967_v2, 0.0  ;;  %v1617_v41 = vadd.f32 %v3816_v52, %v1253_v38  ;;  %v1255_v42 = vpop.f32.mrb[26].mxu1  ;;  %v3919_v20 = vpop.f32.mrb[51].mxu0 }
 0x150   : > { %v1619_v7 = vadd.f32 %v3818_v53, %v1255_v42  ;;  %v1257_v44 = vpop.f32.mrb[27].mxu1 }
 0x151   : > { %v2849_v46 = vpack.c.bf16 %v2033_v35, %v2032_v40  ;;  %v1895_v47 = vmax.f32 %v1615_v37, %v1617_v41  ;;  %v1621_v49 = vadd.f32 %v3822_v56, %v1257_v44 }
 0x153   : > { %2990 = vst [vmem:[%s3810_s26 + $0x28] sm:$0xff] %v2849_v46   ;;  %v1968_v48 = vadd.f32 %v3788_v25, %v1895_v47  ;;  %v1896_v51 = vmax.f32 %v1619_v7, %v1621_v49 }
 0x154   : > { %v3925_v30 = vpop.f32.mrb[52].mxu0 }
 0x155   : > { %v1969_v52 = vadd.f32 %v3788_v25, %v1896_v51  ;;  %v1261_v53 = vpop.f32.mrb[28].mxu1  ;;  %v2034_v58 = vmax.f32 %v1968_v48, 0.0  ;;  %v3928_v36 = vpop.f32.mrb[53].mxu0 }
 0x156   : > { %v1625_v55 = vadd.f32 %v3830_v18, %v1261_v53  ;;  %v1263_v57 = vpop.f32.mrb[29].mxu1  ;;  %v3930_v37 = vpop.f32.mrb[54].mxu0 }
 0x157   : > { %v2035_v60 = vmax.f32 %v1969_v52, 0.0  ;;  %v1627_v56 = vadd.f32 %v3833_v62, %v1263_v57  ;;  %v1265_v59 = vpop.f32.mrb[30].mxu1  ;;  %v3934_v40 = vpop.f32.mrb[55].mxu0 }
 0x158   : > { %v1629_v0 = vadd.f32 %v3835_v22, %v1265_v59  ;;  %v1267_v4 = vpop.f32.mrb[31].mxu1 }
 0x159   : > { %v2854_v8 = vpack.c.bf16 %v2035_v60, %v2034_v58  ;;  %v1897_v16 = vmax.f32 %v1625_v55, %v1627_v56  ;;  %v1631_v12 = vadd.f32 %v3839_v1, %v1267_v4 }
 0x15b   : > { %2991 = vst [vmem:[%s3810_s26 + $0x30] sm:$0xff] %v2854_v8   ;;  %v1970_v18 = vadd.f32 %v3788_v25, %v1897_v16  ;;  %v1898_v17 = vmax.f32 %v1629_v0, %v1631_v12 }
 0x15c   : > { %v3940_v49 = vpop.f32.mrb[56].mxu0 }
 0x15d   : > { %v1971_v62 = vadd.f32 %v3788_v25, %v1898_v17  ;;  %v1271_v22 = vpop.f32.mrb[32].mxu1  ;;  %v2036_v23 = vmax.f32 %v1970_v18, 0.0  ;;  %v3943_v53 = vpop.f32.mrb[57].mxu0 }
 0x15e   : > { %v1635_v21 = vadd.f32 %v3847_v39, %v1271_v22  ;;  %v1273_v63 = vpop.f32.mrb[33].mxu1  ;;  %v3945_v55 = vpop.f32.mrb[58].mxu0 }
 0x15f   : > { %v2037_v24 = vmax.f32 %v1971_v62, 0.0  ;;  %v1637_v1 = vadd.f32 %v3850_v6, %v1273_v63  ;;  %v1275_v26 = vpop.f32.mrb[34].mxu1  ;;  %v3949_v58 = vpop.f32.mrb[59].mxu0 }
 0x160   : > { %v1639_v29 = vadd.f32 %v3852_v43, %v1275_v26  ;;  %v1277_v3 = vpop.f32.mrb[35].mxu1 }
 0x161   : > { %v2859_v33 = vpack.c.bf16 %v2037_v24, %v2036_v23  ;;  %v1899_v34 = vmax.f32 %v1635_v21, %v1637_v1  ;;  %v1641_v2 = vadd.f32 %v3856_v9, %v1277_v3 }
 0x163   : > { %2992 = vst [vmem:[%s3810_s26 + $0x38] sm:$0xff] %v2859_v33   ;;  %v1972_v39 = vadd.f32 %v3788_v25, %v1899_v34  ;;  %v1900_v38 = vmax.f32 %v1639_v29, %v1641_v2 }
 0x164   : > { %v3955_v12 = vpop.f32.mrb[60].mxu0 }
 0x165   : > { %v1973_v6 = vadd.f32 %v3788_v25, %v1900_v38  ;;  %v1281_v43 = vpop.f32.mrb[36].mxu1  ;;  %v2038_v42 = vmax.f32 %v1972_v39, 0.0  ;;  %v3958_v22 = vpop.f32.mrb[61].mxu0 }
 0x166   : > { %v1645_v35 = vadd.f32 %v3864_v61, %v1281_v43  ;;  %v1283_v41 = vpop.f32.mrb[37].mxu1  ;;  %v3960_v21 = vpop.f32.mrb[62].mxu0 }
 0x167   : > { %v2039_v7 = vmax.f32 %v1973_v6, 0.0  ;;  %v1647_v9 = vadd.f32 %v3867_v13, %v1283_v41  ;;  %v1285_v44 = vpop.f32.mrb[38].mxu1  ;;  %v3964_v23 = vpop.f32.mrb[63].mxu0 }
 0x168   : > { %v1649_v46 = vadd.f32 %v3869_v5, %v1285_v44  ;;  %v1287_v47 = vpop.f32.mrb[39].mxu1 }
 0x169   : > { %v2864_v48 = vpack.c.bf16 %v2039_v7, %v2038_v42  ;;  %v1901_v51 = vmax.f32 %v1645_v35, %v1647_v9  ;;  %v1651_v52 = vadd.f32 %v3873_v11, %v1287_v47 }
 0x16b   : > { %2993 = vst [vmem:[%s3810_s26 + $0x40] sm:$0xff] %v2864_v48   ;;  %v1974_v61 = vadd.f32 %v3788_v25, %v1901_v51  ;;  %v1902_v57 = vmax.f32 %v1649_v46, %v1651_v52 }
 0x16c   : > { %v3970_v2 = vpop.f32.mrb[64].mxu0 }
 0x16d   : > { %v1975_v13 = vadd.f32 %v3788_v25, %v1902_v57  ;;  %v1291_v5 = vpop.f32.mrb[40].mxu1  ;;  %v2040_v59 = vmax.f32 %v1974_v61, 0.0  ;;  %v3973_v43 = vpop.f32.mrb[65].mxu0 }
 0x16e   : > { %v1655_v60 = vadd.f32 %v3880_v27, %v1291_v5  ;;  %v1293_v56 = vpop.f32.mrb[41].mxu1  ;;  %v3975_v35 = vpop.f32.mrb[66].mxu0 }
 0x16f   : > { %v2041_v0 = vmax.f32 %v1975_v13, 0.0  ;;  %v1657_v11 = vadd.f32 %v3883_v32, %v1293_v56  ;;  %v1295_v4 = vpop.f32.mrb[42].mxu1  ;;  %v3979_v42 = vpop.f32.mrb[67].mxu0 }
 0x170   : > { %v1659_v8 = vadd.f32 %v3885_v28, %v1295_v4  ;;  %v1297_v16 = vpop.f32.mrb[43].mxu1 }
 0x171   : > { %v2869_v18 = vpack.c.bf16 %v2041_v0, %v2040_v59  ;;  %v1903_v17 = vmax.f32 %v1655_v60, %v1657_v11  ;;  %v1661_v62 = vadd.f32 %v3889_v31, %v1297_v16 }
 0x173   : > { %2994 = vst [vmem:[%s3810_s26 + $0x48] sm:$0xff] %v2869_v18   ;;  %v1976_v27 = vadd.f32 %v3788_v25, %v1903_v17  ;;  %v1904_v63 = vmax.f32 %v1659_v8, %v1661_v62 }
 0x174   : > { %v3985_v52 = vpop.f32.mrb[68].mxu0 }
 0x175   : > { %v1977_v32 = vadd.f32 %v3788_v25, %v1904_v63  ;;  %v1301_v28 = vpop.f32.mrb[44].mxu1  ;;  %v2042_v26 = vmax.f32 %v1976_v27, 0.0  ;;  %v3988_v5 = vpop.f32.mrb[69].mxu0 }
 0x176   : > { %v1665_v24 = vadd.f32 %v3895_v45, %v1301_v28  ;;  %v1303_v1 = vpop.f32.mrb[45].mxu1  ;;  %v3990_v60 = vpop.f32.mrb[70].mxu0 }
 0x177   : > { %v2043_v29 = vmax.f32 %v1977_v32, 0.0  ;;  %v1667_v31 = vadd.f32 %v3898_v10, %v1303_v1  ;;  %v1305_v3 = vpop.f32.mrb[46].mxu1  ;;  %v3994_v59 = vpop.f32.mrb[71].mxu0 }
 0x178   : > { %v1669_v33 = vadd.f32 %v3900_v50, %v1305_v3  ;;  %v1307_v34 = vpop.f32.mrb[47].mxu1 }
 0x179   : > { %v2874_v39 = vpack.c.bf16 %v2043_v29, %v2042_v26  ;;  %v1905_v38 = vmax.f32 %v1665_v24, %v1667_v31  ;;  %v1671_v6 = vadd.f32 %v3904_v54, %v1307_v34 }
 0x17b   : > { %2995 = vst [vmem:[%s3810_s26 + $0x50] sm:$0xff] %v2874_v39   ;;  %v1978_v45 = vadd.f32 %v3788_v25, %v1905_v38  ;;  %v1906_v41 = vmax.f32 %v1669_v33, %v1671_v6 }
 0x17c   : > { %v4000_v62 = vpop.f32.mrb[72].mxu0 }
 0x17d   : > { %v1979_v10 = vadd.f32 %v3788_v25, %v1906_v41  ;;  %v1311_v50 = vpop.f32.mrb[48].mxu1  ;;  %v2044_v44 = vmax.f32 %v1978_v45, 0.0  ;;  %v4003_v28 = vpop.f32.mrb[73].mxu0 }
 0x17e   : > { %v1675_v7 = vadd.f32 %v3910_v14, %v1311_v50  ;;  %v1313_v9 = vpop.f32.mrb[49].mxu1  ;;  %v4005_v24 = vpop.f32.mrb[74].mxu0 }
 0x17f   : > { %v2045_v46 = vmax.f32 %v1979_v10, 0.0  ;;  %v1677_v54 = vadd.f32 %v3913_v15, %v1313_v9  ;;  %v1315_v47 = vpop.f32.mrb[50].mxu1  ;;  %v4009_v26 = vpop.f32.mrb[75].mxu0 }
 0x180   : > { %v1679_v48 = vadd.f32 %v3915_v19, %v1315_v47  ;;  %v1317_v51 = vpop.f32.mrb[51].mxu1 }
 0x181   : > { %v2879_v61 = vpack.c.bf16 %v2045_v46, %v2044_v44  ;;  %v1907_v57 = vmax.f32 %v1675_v7, %v1677_v54  ;;  %v1681_v13 = vadd.f32 %v3919_v20, %v1317_v51 }
 0x183   : > { %2996 = vst [vmem:[%s3810_s26 + $0x58] sm:$0xff] %v2879_v61   ;;  %v1980_v14 = vadd.f32 %v3788_v25, %v1907_v57  ;;  %v1908_v56 = vmax.f32 %v1679_v48, %v1681_v13 }
 0x184   : > { %v4015_v6 = vpop.f32.mrb[76].mxu0 }
 0x185   : > { %v1981_v15 = vadd.f32 %v3788_v25, %v1908_v56  ;;  %v1321_v19 = vpop.f32.mrb[52].mxu1  ;;  %v2046_v4 = vmax.f32 %v1980_v14, 0.0  ;;  %v4018_v50 = vpop.f32.mrb[77].mxu0 }
 0x186   : > { %v1685_v0 = vadd.f32 %v3925_v30, %v1321_v19  ;;  %v1323_v11 = vpop.f32.mrb[53].mxu1  ;;  %v4020_v7 = vpop.f32.mrb[78].mxu0 }
 0x187   : > { %v2047_v8 = vmax.f32 %v1981_v15, 0.0  ;;  %v1687_v20 = vadd.f32 %v3928_v36, %v1323_v11  ;;  %v1325_v16 = vpop.f32.mrb[54].mxu1  ;;  %v4024_v44 = vpop.f32.mrb[79].mxu0 }
 0x188   : > { %v1689_v18 = vadd.f32 %v3930_v37, %v1325_v16  ;;  %v1327_v17 = vpop.f32.mrb[55].mxu1 }
 0x189   : > { %v2884_v27 = vpack.c.bf16 %v2047_v8, %v2046_v4  ;;  %v1909_v63 = vmax.f32 %v1685_v0, %v1687_v20  ;;  %v1691_v32 = vadd.f32 %v3934_v40, %v1327_v17 }
 0x18b   : > { %2997 = vst [vmem:[%s3810_s26 + $0x60] sm:$0xff] %v2884_v27   ;;  %v1982_v30 = vadd.f32 %v3788_v25, %v1909_v63  ;;  %v1910_v1 = vmax.f32 %v1689_v18, %v1691_v32 }
 0x18c   : > { %v4030_v13 = vpop.f32.mrb[80].mxu0 }
 0x18d   : > { %v1983_v36 = vadd.f32 %v3788_v25, %v1910_v1  ;;  %v1331_v37 = vpop.f32.mrb[56].mxu1  ;;  %v2048_v3 = vmax.f32 %v1982_v30, 0.0  ;;  %v4033_v19 = vpop.f32.mrb[81].mxu0 }
 0x18e   : > { %v1695_v29 = vadd.f32 %v3940_v49, %v1331_v37  ;;  %v1333_v31 = vpop.f32.mrb[57].mxu1  ;;  %v4035_v0 = vpop.f32.mrb[82].mxu0 }
 0x18f   : > { %v2049_v33 = vmax.f32 %v1983_v36, 0.0  ;;  %v1697_v40 = vadd.f32 %v3943_v53, %v1333_v31  ;;  %v1335_v34 = vpop.f32.mrb[58].mxu1  ;;  %v4039_v4 = vpop.f32.mrb[83].mxu0 }
 0x190   : > { %v1699_v39 = vadd.f32 %v3945_v55, %v1335_v34  ;;  %v1337_v38 = vpop.f32.mrb[59].mxu1 }
 0x191   : > { %v2889_v45 = vpack.c.bf16 %v2049_v33, %v2048_v3  ;;  %v1911_v41 = vmax.f32 %v1695_v29, %v1697_v40  ;;  %v1701_v10 = vadd.f32 %v3949_v58, %v1337_v38 }
 0x193   : > { %2998 = vst [vmem:[%s3810_s26 + $0x68] sm:$0xff] %v2889_v45   ;;  %v1984_v49 = vadd.f32 %v3788_v25, %v1911_v41  ;;  %v1912_v9 = vmax.f32 %v1699_v39, %v1701_v10 }
 0x194   : > { %v4045_v32 = vpop.f32.mrb[84].mxu0 }
 0x195   : > { %v1985_v53 = vadd.f32 %v3788_v25, %v1912_v9  ;;  %v1341_v55 = vpop.f32.mrb[60].mxu1  ;;  %v2050_v47 = vmax.f32 %v1984_v49, 0.0  ;;  %v4048_v37 = vpop.f32.mrb[85].mxu0 }
 0x196   : > { %v1705_v46 = vadd.f32 %v3955_v12, %v1341_v55  ;;  %v1343_v54 = vpop.f32.mrb[61].mxu1  ;;  %v4050_v29 = vpop.f32.mrb[86].mxu0 }
 0x197   : > { %v2051_v48 = vmax.f32 %v1985_v53, 0.0  ;;  %v1707_v58 = vadd.f32 %v3958_v22, %v1343_v54  ;;  %v1345_v51 = vpop.f32.mrb[62].mxu1  ;;  %v4054_v3 = vpop.f32.mrb[87].mxu0 }
 0x198   : > { %v1709_v61 = vadd.f32 %v3960_v21, %v1345_v51  ;;  %v1347_v57 = vpop.f32.mrb[63].mxu1 }
 0x199   : > { %v2894_v14 = vpack.c.bf16 %v2051_v48, %v2050_v47  ;;  %v1913_v56 = vmax.f32 %v1705_v46, %v1707_v58  ;;  %v1711_v15 = vadd.f32 %v3964_v23, %v1347_v57 }
 0x19b   : > { %2999 = vst [vmem:[%s3810_s26 + $0x70] sm:$0xff] %v2894_v14   ;;  %v1986_v12 = vadd.f32 %v3788_v25, %v1913_v56  ;;  %v1914_v11 = vmax.f32 %v1709_v61, %v1711_v15 }
 0x19c   : > { %v4060_v10 = vpop.f32.mrb[88].mxu0 }
 0x19d   : > { %v1987_v22 = vadd.f32 %v3788_v25, %v1914_v11  ;;  %v1351_v21 = vpop.f32.mrb[64].mxu1  ;;  %v2052_v16 = vmax.f32 %v1986_v12, 0.0  ;;  %v4063_v55 = vpop.f32.mrb[89].mxu0 }
 0x19e   : > { %v1715_v8 = vadd.f32 %v3970_v2, %v1351_v21  ;;  %v1353_v20 = vpop.f32.mrb[65].mxu1  ;;  %v4065_v46 = vpop.f32.mrb[90].mxu0 }
 0x19f   : > { %v2053_v18 = vmax.f32 %v1987_v22, 0.0  ;;  %v1717_v23 = vadd.f32 %v3973_v43, %v1353_v20  ;;  %v1355_v17 = vpop.f32.mrb[66].mxu1  ;;  %v4069_v47 = vpop.f32.mrb[91].mxu0 }
 0x1a0   : > { %v1719_v27 = vadd.f32 %v3975_v35, %v1355_v17  ;;  %v1357_v63 = vpop.f32.mrb[67].mxu1 }
 0x1a1   : > { %v2899_v30 = vpack.c.bf16 %v2053_v18, %v2052_v16  ;;  %v1915_v1 = vmax.f32 %v1715_v8, %v1717_v23  ;;  %v1721_v36 = vadd.f32 %v3979_v42, %v1357_v63 }
 0x1a3   : > { %3000 = vst [vmem:[%s3810_s26 + $0x78] sm:$0xff] %v2899_v30   ;;  %v1988_v2 = vadd.f32 %v3788_v25, %v1915_v1  ;;  %v1916_v31 = vmax.f32 %v1719_v27, %v1721_v36 }
 0x1a4   : > { %v4075_v15 = vpop.f32.mrb[92].mxu0 }
 0x1a5   : > { %v1989_v43 = vadd.f32 %v3788_v25, %v1916_v31  ;;  %v1361_v35 = vpop.f32.mrb[68].mxu1  ;;  %v2054_v34 = vmax.f32 %v1988_v2, 0.0  ;;  %v4078_v21 = vpop.f32.mrb[93].mxu0 }
 0x1a6   : > { %v1725_v33 = vadd.f32 %v3985_v52, %v1361_v35  ;;  %v1363_v40 = vpop.f32.mrb[69].mxu1  ;;  %v4080_v8 = vpop.f32.mrb[94].mxu0 }
 0x1a7   : > { %v2055_v39 = vmax.f32 %v1989_v43, 0.0  ;;  %v1727_v42 = vadd.f32 %v3988_v5, %v1363_v40  ;;  %v1365_v38 = vpop.f32.mrb[70].mxu1  ;;  %v4084_v16 = vpop.f32.mrb[95].mxu0 }
 0x1a8   : > { %v1729_v45 = vadd.f32 %v3990_v60, %v1365_v38  ;;  %v1367_v41 = vpop.f32.mrb[71].mxu1 }
 0x1a9   : > { %v2904_v49 = vpack.c.bf16 %v2055_v39, %v2054_v34  ;;  %v1917_v9 = vmax.f32 %v1725_v33, %v1727_v42  ;;  %v1731_v53 = vadd.f32 %v3994_v59, %v1367_v41 }
 0x1ab   : > { %3001 = vst [vmem:[%s3810_s26 + $0x80] sm:$0xff] %v2904_v49   ;;  %v1990_v52 = vadd.f32 %v3788_v25, %v1917_v9  ;;  %v1918_v54 = vmax.f32 %v1729_v45, %v1731_v53 }
 0x1ac   : > { %v4090_v36 = vpop.f32.mrb[96].mxu0 }
 0x1ad   : > { %v1991_v5 = vadd.f32 %v3788_v25, %v1918_v54  ;;  %v1371_v60 = vpop.f32.mrb[72].mxu1  ;;  %v2056_v51 = vmax.f32 %v1990_v52, 0.0  ;;  %v4093_v35 = vpop.f32.mrb[97].mxu0 }
 0x1ae   : > { %v1735_v48 = vadd.f32 %v4000_v62, %v1371_v60  ;;  %v1373_v58 = vpop.f32.mrb[73].mxu1  ;;  %v4095_v33 = vpop.f32.mrb[98].mxu0 }
 0x1af   : > { %v2057_v61 = vmax.f32 %v1991_v5, 0.0  ;;  %v1737_v59 = vadd.f32 %v4003_v28, %v1373_v58  ;;  %v1375_v57 = vpop.f32.mrb[74].mxu1  ;;  %v4099_v34 = vpop.f32.mrb[99].mxu0 }
 0x1b0   : > { %v1739_v14 = vadd.f32 %v4005_v24, %v1375_v57  ;;  %v1377_v56 = vpop.f32.mrb[75].mxu1 }
 0x1b1   : > { %v2909_v12 = vpack.c.bf16 %v2057_v61, %v2056_v51  ;;  %v1919_v11 = vmax.f32 %v1735_v48, %v1737_v59  ;;  %v1741_v22 = vadd.f32 %v4009_v26, %v1377_v56 }
 0x1b3   : > { %3002 = vst [vmem:[%s3810_s26 + $0x88] sm:$0xff] %v2909_v12   ;;  %v1992_v62 = vadd.f32 %v3788_v25, %v1919_v11  ;;  %v1920_v20 = vmax.f32 %v1739_v14, %v1741_v22 }
 0x1b4   : > { %v4105_v53 = vpop.f32.mrb[100].mxu0 }
 0x1b5   : > { %v1993_v28 = vadd.f32 %v3788_v25, %v1920_v20  ;;  %v1381_v24 = vpop.f32.mrb[76].mxu1  ;;  %v2058_v17 = vmax.f32 %v1992_v62, 0.0  ;;  %v4108_v60 = vpop.f32.mrb[101].mxu0 }
 0x1b6   : > { %v1745_v18 = vadd.f32 %v4015_v6, %v1381_v24  ;;  %v1383_v23 = vpop.f32.mrb[77].mxu1  ;;  %v4110_v48 = vpop.f32.mrb[102].mxu0 }
 0x1b7   : > { %v2059_v27 = vmax.f32 %v1993_v28, 0.0  ;;  %v1747_v26 = vadd.f32 %v4018_v50, %v1383_v23  ;;  %v1385_v63 = vpop.f32.mrb[78].mxu1  ;;  %v4114_v51 = vpop.f32.mrb[103].mxu0 }
 0x1b8   : > { %v1749_v30 = vadd.f32 %v4020_v7, %v1385_v63  ;;  %v1387_v1 = vpop.f32.mrb[79].mxu1 }
 0x1b9   : > { %v2914_v2 = vpack.c.bf16 %v2059_v27, %v2058_v17  ;;  %v1921_v31 = vmax.f32 %v1745_v18, %v1747_v26  ;;  %v1751_v43 = vadd.f32 %v4024_v44, %v1387_v1 }
 0x1bb   : > { %3003 = vst [vmem:[%s3810_s26 + $0x90] sm:$0xff] %v2914_v2   ;;  %v1994_v6 = vadd.f32 %v3788_v25, %v1921_v31  ;;  %v1922_v40 = vmax.f32 %v1749_v30, %v1751_v43 }
 0x1bc   : > { %v4120_v22 = vpop.f32.mrb[104].mxu0 }
 0x1bd   : > { %v1995_v50 = vadd.f32 %v3788_v25, %v1922_v40  ;;  %v1391_v7 = vpop.f32.mrb[80].mxu1  ;;  %v2060_v38 = vmax.f32 %v1994_v6, 0.0  ;;  %v4123_v24 = vpop.f32.mrb[105].mxu0 }
 0x1be   : > { %v1755_v39 = vadd.f32 %v4030_v13, %v1391_v7  ;;  %v1393_v42 = vpop.f32.mrb[81].mxu1  ;;  %v4125_v18 = vpop.f32.mrb[106].mxu0 }
 0x1bf   : > { %v2061_v45 = vmax.f32 %v1995_v50, 0.0  ;;  %v1757_v44 = vadd.f32 %v4033_v19, %v1393_v42  ;;  %v1395_v41 = vpop.f32.mrb[82].mxu1  ;;  %v4129_v17 = vpop.f32.mrb[107].mxu0 }
 0x1c0   : > { %v1759_v49 = vadd.f32 %v4035_v0, %v1395_v41  ;;  %v1397_v9 = vpop.f32.mrb[83].mxu1 }
 0x1c1   : > { %v2919_v52 = vpack.c.bf16 %v2061_v45, %v2060_v38  ;;  %v1923_v54 = vmax.f32 %v1755_v39, %v1757_v44  ;;  %v1761_v5 = vadd.f32 %v4039_v4, %v1397_v9 }
 0x1c3   : > { %3004 = vst [vmem:[%s3810_s26 + $0x98] sm:$0xff] %v2919_v52   ;;  %v1996_v13 = vadd.f32 %v3788_v25, %v1923_v54  ;;  %v1924_v58 = vmax.f32 %v1759_v49, %v1761_v5 }
 0x1c4   : > { %v4135_v43 = vpop.f32.mrb[108].mxu0 }
 0x1c5   : > { %v1997_v19 = vadd.f32 %v3788_v25, %v1924_v58  ;;  %v1401_v0 = vpop.f32.mrb[84].mxu1  ;;  %v2062_v57 = vmax.f32 %v1996_v13, 0.0  ;;  %v4138_v7 = vpop.f32.mrb[109].mxu0 }
 0x1c6   : > { %v1765_v61 = vadd.f32 %v4045_v32, %v1401_v0  ;;  %v1403_v59 = vpop.f32.mrb[85].mxu1  ;;  %v4140_v39 = vpop.f32.mrb[110].mxu0 }
 0x1c7   : > { %v2063_v14 = vmax.f32 %v1997_v19, 0.0  ;;  %v1767_v4 = vadd.f32 %v4048_v37, %v1403_v59  ;;  %v1405_v56 = vpop.f32.mrb[86].mxu1  ;;  %v4144_v38 = vpop.f32.mrb[111].mxu0 }
 0x1c8   : > { %v1769_v12 = vadd.f32 %v4050_v29, %v1405_v56  ;;  %v1407_v11 = vpop.f32.mrb[87].mxu1 }
 0x1c9   : > { %v2924_v62 = vpack.c.bf16 %v2063_v14, %v2062_v57  ;;  %v1925_v20 = vmax.f32 %v1765_v61, %v1767_v4  ;;  %v1771_v28 = vadd.f32 %v4054_v3, %v1407_v11 }
 0x1cb   : > { %3005 = vst [vmem:[%s3810_s26 + $0xa0] sm:$0xff] %v2924_v62   ;;  %v1998_v32 = vadd.f32 %v3788_v25, %v1925_v20  ;;  %v1926_v23 = vmax.f32 %v1769_v12, %v1771_v28 }
 0x1cc   : > { %v4150_v5 = vpop.f32.mrb[112].mxu0 }
 0x1cd   : > { %v1999_v37 = vadd.f32 %v3788_v25, %v1926_v23  ;;  %v1411_v29 = vpop.f32.mrb[88].mxu1  ;;  %v2064_v63 = vmax.f32 %v1998_v32, 0.0  ;;  %v4153_v0 = vpop.f32.mrb[113].mxu0 }
 0x1ce   : > { %v1775_v27 = vadd.f32 %v4060_v10, %v1411_v29  ;;  %v1413_v26 = vpop.f32.mrb[89].mxu1  ;;  %v4155_v61 = vpop.f32.mrb[114].mxu0 }
 0x1cf   : > { %v2065_v30 = vmax.f32 %v1999_v37, 0.0  ;;  %v1777_v3 = vadd.f32 %v4063_v55, %v1413_v26  ;;  %v1415_v1 = vpop.f32.mrb[90].mxu1  ;;  %v4159_v57 = vpop.f32.mrb[115].mxu0 }
 0x1d0   : > { %v1779_v2 = vadd.f32 %v4065_v46, %v1415_v1  ;;  %v1417_v31 = vpop.f32.mrb[91].mxu1 }
 0x1d1   : > { %v2929_v6 = vpack.c.bf16 %v2065_v30, %v2064_v63  ;;  %v1927_v40 = vmax.f32 %v1775_v27, %v1777_v3  ;;  %v1781_v50 = vadd.f32 %v4069_v47, %v1417_v31 }
 0x1d3   : > { %3006 = vst [vmem:[%s3810_s26 + $0xa8] sm:$0xff] %v2929_v6   ;;  %v2000_v10 = vadd.f32 %v3788_v25, %v1927_v40  ;;  %v1928_v42 = vmax.f32 %v1779_v2, %v1781_v50 }
 0x1d4   : > { %v4165_v28 = vpop.f32.mrb[116].mxu0 }
 0x1d5   : > { %v2001_v55 = vadd.f32 %v3788_v25, %v1928_v42  ;;  %v1421_v46 = vpop.f32.mrb[92].mxu1  ;;  %v2066_v41 = vmax.f32 %v2000_v10, 0.0 }
 0x1d6   : > { %v1785_v45 = vadd.f32 %v4075_v15, %v1421_v46  ;;  %v1423_v44 = vpop.f32.mrb[93].mxu1 }
 0x1d7   : > { %v2067_v49 = vmax.f32 %v2001_v55, 0.0  ;;  %v1787_v47 = vadd.f32 %v4078_v21, %v1423_v44  ;;  %v1425_v9 = vpop.f32.mrb[94].mxu1 }
 0x1d8   : > { %v1789_v52 = vadd.f32 %v4080_v8, %v1425_v9  ;;  %v1427_v54 = vpop.f32.mrb[95].mxu1 }
 0x1d9   : > { %v2934_v13 = vpack.c.bf16 %v2067_v49, %v2066_v41  ;;  %v1929_v58 = vmax.f32 %v1785_v45, %v1787_v47  ;;  %v1791_v19 = vadd.f32 %v4084_v16, %v1427_v54 }
 0x1db   : > { %3007 = vst [vmem:[%s3810_s26 + $0xb0] sm:$0xff] %v2934_v13   ;;  %v2002_v15 = vadd.f32 %v3788_v25, %v1929_v58  ;;  %v1930_v59 = vmax.f32 %v1789_v52, %v1791_v19 }
 0x1dd   : > { %v2003_v21 = vadd.f32 %v3788_v25, %v1930_v59  ;;  %v1431_v8 = vpop.f32.mrb[96].mxu1  ;;  %v2068_v56 = vmax.f32 %v2002_v15, 0.0  ;;  %v4168_v25 = vpop.f32.mrb[117].mxu0 }
 0x1de   : > { %v1795_v14 = vadd.f32 %v4090_v36, %v1431_v8  ;;  %v1433_v4 = vpop.f32.mrb[97].mxu1  ;;  %v4170_v29 = vpop.f32.mrb[118].mxu0  ;;  %v4176_v36 = vld [vmem:[%s4280_s2] ss:$0 sm:$0xff] }
 0x1df   : > { %v2069_v12 = vmax.f32 %v2003_v21, 0.0  ;;  %v1797_v16 = vadd.f32 %v4093_v35, %v1433_v4  ;;  %v1435_v11 = vpop.f32.mrb[98].mxu1  ;;  %v4179_v27 = vpop.f32.mrb[119].mxu0 }
 0x1e0   : > { %v1799_v62 = vadd.f32 %v4095_v33, %v1435_v11  ;;  %v1437_v20 = vpop.f32.mrb[99].mxu1  ;;  %v4185_v50 = vpop.f32.mrb[120].mxu0 }
 0x1e1   : > { %v2939_v32 = vpack.c.bf16 %v2069_v12, %v2068_v56  ;;  %v1931_v23 = vmax.f32 %v1795_v14, %v1797_v16  ;;  %v1801_v37 = vadd.f32 %v4099_v34, %v1437_v20  ;;  %v4188_v46 = vpop.f32.mrb[121].mxu0 }
 0x1e2   : > { %v4190_v45 = vpop.f32.mrb[122].mxu0 }
 0x1e3   : > { %3008 = vst [vmem:[%s3810_s26 + $0xb8] sm:$0xff] %v2939_v32   ;;  %v2004_v35 = vadd.f32 %v4176_v36, %v1931_v23  ;;  %v1932_v33 = vmax.f32 %v1799_v62, %v1801_v37  ;;  %v4194_v41 = vpop.f32.mrb[123].mxu0 }
 0x1e4   : > { %v4200_v19 = vpop.f32.mrb[124].mxu0 }
 0x1e5   : > { %v2005_v26 = vadd.f32 %v4176_v36, %v1932_v33  ;;  %v1441_v63 = vpop.f32.mrb[100].mxu1  ;;  %v2070_v3 = vmax.f32 %v2004_v35, 0.0  ;;  %v4203_v8 = vpop.f32.mrb[125].mxu0 }
 0x1e6   : > { %v1805_v34 = vadd.f32 %v4105_v53, %v1441_v63  ;;  %v1443_v30 = vpop.f32.mrb[101].mxu1  ;;  %v4205_v14 = vpop.f32.mrb[126].mxu0 }
 0x1e7   : > { %v2071_v1 = vmax.f32 %v2005_v26, 0.0  ;;  %v1807_v2 = vadd.f32 %v4108_v60, %v1443_v30  ;;  %v1445_v31 = vpop.f32.mrb[102].mxu1  ;;  %v4209_v56 = vpop.f32.mrb[127].mxu0 }
 0x1e8   : > { %v1809_v6 = vadd.f32 %v4110_v48, %v1445_v31  ;;  %v1447_v40 = vpop.f32.mrb[103].mxu1 }
 0x1e9   : > { %v2944_v10 = vpack.c.bf16 %v2071_v1, %v2070_v3  ;;  %v1933_v42 = vmax.f32 %v1805_v34, %v1807_v2  ;;  %v1811_v55 = vadd.f32 %v4114_v51, %v1447_v40 }
 0x1eb   : > { %3009 = vst [vmem:[%s3810_s26 + $0xc0] sm:$0xff] %v2944_v10   ;;  %v2006_v53 = vadd.f32 %v4176_v36, %v1933_v42  ;;  %v1934_v44 = vmax.f32 %v1809_v6, %v1811_v55 }
 0x1ec   : > { %v4215_v37 = vpop.f32.mrb[128].mxu0 }
 0x1ed   : > { %v2007_v60 = vadd.f32 %v4176_v36, %v1934_v44  ;;  %v1451_v48 = vpop.f32.mrb[104].mxu1  ;;  %v2072_v9 = vmax.f32 %v2006_v53, 0.0  ;;  %v4218_v63 = vpop.f32.mrb[129].mxu0 }
 0x1ee   : > { %v1815_v49 = vadd.f32 %v4120_v22, %v1451_v48  ;;  %v1453_v47 = vpop.f32.mrb[105].mxu1  ;;  %v4220_v34 = vpop.f32.mrb[130].mxu0 }
 0x1ef   : > { %v2073_v52 = vmax.f32 %v2007_v60, 0.0  ;;  %v1817_v51 = vadd.f32 %v4123_v24, %v1453_v47  ;;  %v1455_v54 = vpop.f32.mrb[106].mxu1 }
 0x1f0   : > { %v1819_v13 = vadd.f32 %v4125_v18, %v1455_v54  ;;  %v1457_v58 = vpop.f32.mrb[107].mxu1 }
 0x1f1   : > { %v2949_v15 = vpack.c.bf16 %v2073_v52, %v2072_v9  ;;  %v1935_v59 = vmax.f32 %v1815_v49, %v1817_v51  ;;  %v1821_v21 = vadd.f32 %v4129_v17, %v1457_v58 }
 0x1f3   : > { %3010 = vst [vmem:[%s3810_s26 + $0xc8] sm:$0xff] %v2949_v15   ;;  %v2008_v22 = vadd.f32 %v4176_v36, %v1935_v59  ;;  %v1936_v4 = vmax.f32 %v1819_v13, %v1821_v21 }
 0x1f5   : > { %v2009_v24 = vadd.f32 %v4176_v36, %v1936_v4  ;;  %v1461_v18 = vpop.f32.mrb[108].mxu1  ;;  %v2074_v11 = vmax.f32 %v2008_v22, 0.0 }
 0x1f6   : > { %v1825_v12 = vadd.f32 %v4135_v43, %v1461_v18  ;;  %v1463_v16 = vpop.f32.mrb[109].mxu1 }
 0x1f7   : > { %v2075_v62 = vmax.f32 %v2009_v24, 0.0  ;;  %v1827_v17 = vadd.f32 %v4138_v7, %v1463_v16  ;;  %v1465_v20 = vpop.f32.mrb[110].mxu1  ;;  %v4224_v7 = vpop.f32.mrb[131].mxu0 }
 0x1f8   : > { %v1829_v32 = vadd.f32 %v4140_v39, %v1465_v20  ;;  %v1467_v23 = vpop.f32.mrb[111].mxu1 }
 0x1f9   : > { %v2954_v35 = vpack.c.bf16 %v2075_v62, %v2074_v11  ;;  %v1937_v33 = vmax.f32 %v1825_v12, %v1827_v17  ;;  %v1831_v26 = vadd.f32 %v4144_v38, %v1467_v23 }
 0x1fb   : > { %3011 = vst [vmem:[%s3810_s26 + $0xd0] sm:$0xff] %v2954_v35   ;;  %v2010_v43 = vadd.f32 %v4176_v36, %v1937_v33  ;;  %v1938_v30 = vmax.f32 %v1829_v32, %v1831_v26 }
 0x1fd   : > { %v2011_v39 = vadd.f32 %v4176_v36, %v1938_v30  ;;  %v1471_v3 = vpop.f32.mrb[112].mxu1  ;;  %v2076_v31 = vmax.f32 %v2010_v43, 0.0 }
 0x1fe   : > { %v1835_v1 = vadd.f32 %v4150_v5, %v1471_v3  ;;  %v1473_v2 = vpop.f32.mrb[113].mxu1 }
 0x1ff   : > { %v2077_v6 = vmax.f32 %v2011_v39, 0.0  ;;  %v1837_v38 = vadd.f32 %v4153_v0, %v1473_v2  ;;  %v1475_v40 = vpop.f32.mrb[114].mxu1 }
 0x200   : > { %v1839_v10 = vadd.f32 %v4155_v61, %v1475_v40  ;;  %v1477_v42 = vpop.f32.mrb[115].mxu1 }
 0x201   : > { %v2959_v55 = vpack.c.bf16 %v2077_v6, %v2076_v31  ;;  %v1939_v53 = vmax.f32 %v1835_v1, %v1837_v38  ;;  %v1841_v44 = vadd.f32 %v4159_v57, %v1477_v42 }
 0x203   : > { %3012 = vst [vmem:[%s3810_s26 + $0xd8] sm:$0xff] %v2959_v55   ;;  %v2012_v60 = vadd.f32 %v4176_v36, %v1939_v53  ;;  %v1940_v48 = vmax.f32 %v1839_v10, %v1841_v44 }
 0x205   : > { %v2013_v5 = vadd.f32 %v4176_v36, %v1940_v48  ;;  %v1481_v49 = vpop.f32.mrb[116].mxu1  ;;  %v2078_v0 = vmax.f32 %v2012_v60, 0.0 }
 0x206   : > { %v1845_v47 = vadd.f32 %v4165_v28, %v1481_v49  ;;  %v1483_v9 = vpop.f32.mrb[117].mxu1 }
 0x207   : > { %v2079_v52 = vmax.f32 %v2013_v5, 0.0  ;;  %v1847_v61 = vadd.f32 %v4168_v25, %v1483_v9  ;;  %v1485_v51 = vpop.f32.mrb[118].mxu1 }
 0x208   : > { %v1849_v54 = vadd.f32 %v4170_v29, %v1485_v51  ;;  %v1487_v13 = vpop.f32.mrb[119].mxu1 }
 0x209   : > { %v2964_v57 = vpack.c.bf16 %v2079_v52, %v2078_v0  ;;  %v1941_v58 = vmax.f32 %v1845_v47, %v1847_v61  ;;  %v1851_v15 = vadd.f32 %v4179_v27, %v1487_v13 }
 0x20b   : > { %3013 = vst [vmem:[%s3810_s26 + $0xe0] sm:$0xff] %v2964_v57   ;;  %v2014_v59 = vadd.f32 %v4176_v36, %v1941_v58  ;;  %v1942_v21 = vmax.f32 %v1849_v54, %v1851_v15 }
 0x20d   : > { %v2015_v28 = vadd.f32 %v4176_v36, %v1942_v21  ;;  %v1491_v22 = vpop.f32.mrb[120].mxu1  ;;  %v2080_v25 = vmax.f32 %v2014_v59, 0.0 }
 0x20e   : > { %v1855_v4 = vadd.f32 %v4185_v50, %v1491_v22  ;;  %v1493_v24 = vpop.f32.mrb[121].mxu1 }
 0x20f   : > { %v2081_v18 = vmax.f32 %v2015_v28, 0.0  ;;  %v1857_v29 = vadd.f32 %v4188_v46, %v1493_v24  ;;  %v1495_v12 = vpop.f32.mrb[122].mxu1 }
 0x210   : > { %v1859_v16 = vadd.f32 %v4190_v45, %v1495_v12  ;;  %v1497_v11 = vpop.f32.mrb[123].mxu1 }
 0x211   : > { %v2969_v27 = vpack.c.bf16 %v2081_v18, %v2080_v25  ;;  %v1943_v62 = vmax.f32 %v1855_v4, %v1857_v29  ;;  %v1861_v17 = vadd.f32 %v4194_v41, %v1497_v11 }
 0x213   : > { %3014 = vst [vmem:[%s3810_s26 + $0xe8] sm:$0xff] %v2969_v27   ;;  %v2016_v20 = vadd.f32 %v4176_v36, %v1943_v62  ;;  %v1944_v32 = vmax.f32 %v1859_v16, %v1861_v17 }
 0x215   : > { %v2017_v50 = vadd.f32 %v4176_v36, %v1944_v32  ;;  %v1501_v23 = vpop.f32.mrb[124].mxu1  ;;  %v2082_v46 = vmax.f32 %v2016_v20, 0.0 }
 0x216   : > { %v1865_v35 = vadd.f32 %v4200_v19, %v1501_v23  ;;  %v1503_v33 = vpop.f32.mrb[125].mxu1 }
 0x217   : > { %v2083_v26 = vmax.f32 %v2017_v50, 0.0  ;;  %v1867_v45 = vadd.f32 %v4203_v8, %v1503_v33  ;;  %v1505_v43 = vpop.f32.mrb[126].mxu1 }
 0x218   : > { %v1869_v30 = vadd.f32 %v4205_v14, %v1505_v43  ;;  %v1507_v39 = vpop.f32.mrb[127].mxu1 }
 0x219   : > { %v2974_v41 = vpack.c.bf16 %v2083_v26, %v2082_v46  ;;  %v1945_v3 = vmax.f32 %v1865_v35, %v1867_v45  ;;  %v1871_v1 = vadd.f32 %v4209_v56, %v1507_v39 }
 0x21b   : > { %3015 = vst [vmem:[%s3810_s26 + $0xf0] sm:$0xff] %v2974_v41   ;;  %v2018_v2 = vadd.f32 %v4176_v36, %v1945_v3  ;;  %v1946_v31 = vmax.f32 %v1869_v30, %v1871_v1 }
 0x21d   : > { %v2019_v19 = vadd.f32 %v4176_v36, %v1946_v31  ;;  %v1511_v6 = vpop.f32.mrb[128].mxu1  ;;  %v2084_v8 = vmax.f32 %v2018_v2, 0.0 }
 0x21e   : > { %v1875_v38 = vadd.f32 %v4215_v37, %v1511_v6  ;;  %v1513_v40 = vpop.f32.mrb[129].mxu1 }
 0x21f   : > { %v2085_v10 = vmax.f32 %v2019_v19, 0.0  ;;  %v1877_v14 = vadd.f32 %v4218_v63, %v1513_v40  ;;  %v1515_v42 = vpop.f32.mrb[130].mxu1 }
 0x220   : > { %v1879_v55 = vadd.f32 %v4220_v34, %v1515_v42  ;;  %v1517_v56 = vpop.f32.mrb[131].mxu1 }
 0x221   : > { %v2979_v53 = vpack.c.bf16 %v2085_v10, %v2084_v8  ;;  %v1947_v44 = vmax.f32 %v1875_v38, %v1877_v14  ;;  %v1881_v60 = vadd.f32 %v4224_v7, %v1517_v56 }
 0x223   : > { %3016 = vst [vmem:[%s3810_s26 + $0xf8] sm:$0xff] %v2979_v53   ;;  %v2020_v48 = vadd.f32 %v4176_v36, %v1947_v44  ;;  %v1948_v5 = vmax.f32 %v1879_v55, %v1881_v60 }
 0x225   : > { %v2021_v37 = vadd.f32 %v4176_v36, %v1948_v5  ;;  %v2086_v49 = vmax.f32 %v2020_v48, 0.0 }
 0x227   : > { %v2087_v47 = vmax.f32 %v2021_v37, 0.0 }
 0x229   : > { %v2984_v9 = vpack.c.bf16 %v2087_v47, %v2086_v49 }
 0x22b   : > { %3017 = vst [vmem:[%s3810_s26 + $0x100] sm:$0xff] %v2984_v9  }
 0x22c PF: > { %s13_s16 = sadd.s32 1, %s3419_s16   ;;  %s4282_s12 = smov %s3411_s14 }
 0x22d   : > { %p10_p7 = scmp.ge.s32.totalorder %s13_s16, 6   ;;  %s4283_s13 = smov %s3415_s15 }
 0x22e   : > { %s4284_s14 = smov %s4287_s17  ;;  %s4285_s15 = smov %s4291_s18 }
 0x22f   :  { %12 = sbr.rel (!%p10_p7) target bundleno = 3 (0x3), region = 62 }

// kernel: small_model_forward.4
= control target key start
LH: loop header
LB: loop body
LE: loop exit
PB: predicated region body
PF: predicated region fallthrough
CT: control target
= control target key end

     0   :  { %s4131_s12 = smov 0   ;;  %s5877_s0 = inlined_call_operand.vmem [shape: bf16[2,834,160], index: 0, kind: input, shape index: {}]   ;;  %s5878_s1 = inlined_call_operand.vmem [shape: bf16[160,24], index: 1, kind: input, shape index: {}]   ;;  %s5879_s2 = inlined_call_operand.vmem [shape: f32[1,8], index: 2, kind: input, shape index: {}]   ;;  %s5880_s3 = inlined_call_operand.vmem [shape: bf16[2,833,8], index: 3, kind: output, shape index: {}]  }
   0x1 LB: > { %s3511_s13 = sadd.s32 4294967295, %s4107_s12   ;;  %p3515_p0 = scmp.ge.s32.totalorder %s4107_s12, 1  ;;  %s4107_s12 = sphi %s4131_s12, %s13_s12  }
   0x2   : > { %p137_p1 = scmp.lt.s32.totalorder %s4107_s12, 3 }
   0x4   : > { %p138_p2 = pnand %p3515_p0, %p137_p1 }
   0x6   : > { %141 = sbr.rel (%p138_p2) target bundleno = 818 (0x332), region = 32 }
   0xd   : > { %v3932_v0 = vld [vmem:[%s5878_s1] sm:$0xff]   ;;  %v4109_v1 = vmov 0   ;;  %p161_p3 = scmp.lt.s32.totalorder %s3511_s13, 1  ;;  %v3933_v2 = vld [vmem:[%s5878_s1 + $0x8] sm:$0xff]   ;;  %v3934_v3 = vld [vmem:[%s5878_s1 + $0x10] sm:$0xff]   ;;  %vm831_vm0 = vcmask 261120  }
   0xe   : > { %991 = vmatprep.subr.bf16.mxu0 %v4109_v1  ;;  %3900 = vmatprep.subr.bf16.mxu1 %v4109_v1  ;;  %v3935_v4 = vld [vmem:[%s5878_s1 + $0x18] sm:$0xff]   ;;  %v3936_v7 = vld [vmem:[%s5878_s1 + $0x20] sm:$0xff]   ;;  %v3937_v8 = vld [vmem:[%s5878_s1 + $0x28] sm:$0xff]   ;;  %vm1552_vm1 = vcmask 1046528   ;;  %s4110_s11 = smov 120   ;;  %vm3345_vm2 = vcmask 60416  }
   0xf   : > { %992 = vmatpush1.bf16.msra.mxu0 %v3932_v0  ;;  %3910 = vmatpush1.bf16.msra.mxu1 %v3932_v0  ;;  %s6267_s13 = smov (!%p161_p3, %s3511_s13), 1  ;;  %v3938_v9 = vld [vmem:[%s5878_s1 + $0x30] sm:$0xff]   ;;  %v3939_v10 = vld [vmem:[%s5878_s1 + $0x38] sm:$0xff]   ;;  %v3940_v11 = vld [vmem:[%s5878_s1 + $0x40] sm:$0xff]   ;;  %vm3450_vm3 = vcmask 57344  }
  0x10   : > { %993 = vmatprep.subr.bf16.mxu0 %v4109_v1  ;;  %3901 = vmatprep.subr.bf16.mxu1 %v4109_v1  ;;  %s3920_s18 = smul.u32 840, %s6267_s13  ;;  %v3941_v12 = vld [vmem:[%s5878_s1 + $0x48] sm:$0xff]   ;;  %vm3451_vm4 = vsmask.f32 256 }
  0x11   : > { %s3921_s16 = smul.u32 420, %s6267_s13  ;;  %vm3452_vm5 = vmand %vm3450_vm3, %vm3451_vm4 }
  0x12   : > { %s4154_s23 = scalar_lea.vmem %s5877_s0, %s3920_s18 }
  0x13   : > { %994 = vmatpush1.bf16.msra.mxu0 %v3933_v2  ;;  %3911 = vmatpush1.bf16.msra.mxu1 %v3933_v2  ;;  %v3944_v5 = vld [vmem:[%s4154_s23 + $0x4] ss:$8 sps:$4 sm:$0xff]   ;;  %v3947_v6 = vld [vmem:[%s4154_s23 + $0x1b4] ss:$8 sps:$4 sm:$0xff]   ;;  %v3942_v13 = vld [vmem:[%s4154_s23] ss:$8 sps:$4 sm:$0xff]   ;;  %s5130_s19 = scalar_lea.vmem %s5880_s3, %s3921_s16 }
  0x14   : > { %995 = vmatprep.subr.bf16.mxu0 %v4109_v1  ;;  %3902 = vmatprep.subr.bf16.mxu1 %v4109_v1  ;;  %v3945_v14 = vld [vmem:[%s4154_s23 + $0x1b0] ss:$8 sps:$4 sm:$0xff]   ;;  %v3948_v15 = vld [vmem:[%s4154_s23 + $0x14] ss:$8 sps:$4 sm:$0xff]   ;;  %v3950_v16 = vld [vmem:[%s4154_s23 + $0x1c4] ss:$8 sps:$4 sm:$0xff]  }
  0x15   : > { %3634 = vmatprep.mubr.msk.bf16.mxu0 %vm831_vm0, %v3944_v5  ;;  %3661 = vmatprep.mubr.msk.bf16.mxu1 %vm831_vm0, %v3947_v6  ;;  %v3952_v17 = vld [vmem:[%s4154_s23 + $0x10] ss:$8 sps:$4 sm:$0xff]   ;;  %v3953_v18 = vld [vmem:[%s4154_s23 + $0x1c0] ss:$8 sps:$4 sm:$0xff]   ;;  %v3954_v19 = vld [vmem:[%s4154_s23 + $0x24] ss:$8 sps:$4 sm:$0xff]  }
  0x16   : > { %v3956_v20 = vld [vmem:[%s4154_s23 + $0x1d4] ss:$8 sps:$4 sm:$0xff]   ;;  %v3958_v21 = vld [vmem:[%s4154_s23 + $0x20] ss:$8 sps:$4 sm:$0xff]   ;;  %v3959_v22 = vld [vmem:[%s4154_s23 + $0x1d0] ss:$8 sps:$4 sm:$0xff]  }
  0x17   : > { %996 = vmatpush1.bf16.msra.mxu0 %v3934_v3  ;;  %3912 = vmatpush1.bf16.msra.mxu1 %v3934_v3  ;;  %v3960_v23 = vld [vmem:[%s4154_s23 + $0x34] ss:$8 sps:$4 sm:$0xff]   ;;  %v3962_v24 = vld [vmem:[%s4154_s23 + $0x1e4] ss:$8 sps:$4 sm:$0xff]   ;;  %v3964_v25 = vld [vmem:[%s4154_s23 + $0x30] ss:$8 sps:$4 sm:$0xff]  }
  0x18   : > { %997 = vmatprep.subr.bf16.mxu0 %v4109_v1  ;;  %3903 = vmatprep.subr.bf16.mxu1 %v4109_v1  ;;  %v3965_v26 = vld [vmem:[%s4154_s23 + $0x1e0] ss:$8 sps:$4 sm:$0xff]   ;;  %v3966_v27 = vld [vmem:[%s4154_s23 + $0x44] ss:$8 sps:$4 sm:$0xff]   ;;  %v3968_v28 = vld [vmem:[%s4154_s23 + $0x1f4] ss:$8 sps:$4 sm:$0xff]  }
  0x19   : > { %v3970_v29 = vld [vmem:[%s4154_s23 + $0x40] ss:$8 sps:$4 sm:$0xff]   ;;  %v3971_v30 = vld [vmem:[%s4154_s23 + $0x1f0] ss:$8 sps:$4 sm:$0xff]   ;;  %v3972_v31 = vld [vmem:[%s4154_s23 + $0x54] ss:$8 sps:$4 sm:$0xff]  }
  0x1a   : > { %v3974_v32 = vld [vmem:[%s4154_s23 + $0x204] ss:$8 sps:$4 sm:$0xff]   ;;  %v3976_v33 = vld [vmem:[%s4154_s23 + $0x50] ss:$8 sps:$4 sm:$0xff]   ;;  %v3977_v34 = vld [vmem:[%s4154_s23 + $0x200] ss:$8 sps:$4 sm:$0xff]  }
  0x1b   : > { %998 = vmatpush1.bf16.msra.mxu0 %v3935_v4  ;;  %3913 = vmatpush1.bf16.msra.mxu1 %v3935_v4  ;;  %v3978_v35 = vld [vmem:[%s4154_s23 + $0x64] ss:$8 sps:$4 sm:$0xff]   ;;  %v3980_v36 = vld [vmem:[%s4154_s23 + $0x214] ss:$8 sps:$4 sm:$0xff]   ;;  %v3982_v37 = vld [vmem:[%s4154_s23 + $0x60] ss:$8 sps:$4 sm:$0xff]  }
  0x1c   : > { %999 = vmatprep.subr.bf16.mxu0 %v4109_v1  ;;  %3904 = vmatprep.subr.bf16.mxu1 %v4109_v1  ;;  %v3983_v38 = vld [vmem:[%s4154_s23 + $0x210] ss:$8 sps:$4 sm:$0xff]   ;;  %v3984_v39 = vld [vmem:[%s4154_s23 + $0x74] ss:$8 sps:$4 sm:$0xff]   ;;  %v3986_v40 = vld [vmem:[%s4154_s23 + $0x224] ss:$8 sps:$4 sm:$0xff]  }
  0x1d   : > { %v3988_v41 = vld [vmem:[%s4154_s23 + $0x70] ss:$8 sps:$4 sm:$0xff]   ;;  %v3989_v42 = vld [vmem:[%s4154_s23 + $0x220] ss:$8 sps:$4 sm:$0xff]   ;;  %v3990_v43 = vld [vmem:[%s4154_s23 + $0x84] ss:$8 sps:$4 sm:$0xff]  }
  0x1e   : > { %v3992_v44 = vld [vmem:[%s4154_s23 + $0x234] ss:$8 sps:$4 sm:$0xff]   ;;  %v3994_v45 = vld [vmem:[%s4154_s23 + $0x80] ss:$8 sps:$4 sm:$0xff]   ;;  %v3995_v46 = vld [vmem:[%s4154_s23 + $0x230] ss:$8 sps:$4 sm:$0xff]  }
  0x1f   : > { %1000 = vmatpush1.bf16.msra.mxu0 %v3936_v7  ;;  %3914 = vmatpush1.bf16.msra.mxu1 %v3936_v7  ;;  %v3996_v47 = vld [vmem:[%s4154_s23 + $0x94] ss:$8 sps:$4 sm:$0xff]   ;;  %v3998_v48 = vld [vmem:[%s4154_s23 + $0x244] ss:$8 sps:$4 sm:$0xff]   ;;  %v4000_v49 = vld [vmem:[%s4154_s23 + $0x90] ss:$8 sps:$4 sm:$0xff]  }
  0x20   : > { %1001 = vmatprep.subr.bf16.mxu0 %v4109_v1  ;;  %3905 = vmatprep.subr.bf16.mxu1 %v4109_v1  ;;  %v4001_v50 = vld [vmem:[%s4154_s23 + $0x240] ss:$8 sps:$4 sm:$0xff]   ;;  %v4002_v51 = vld [vmem:[%s4154_s23 + $0xa4] ss:$8 sps:$4 sm:$0xff]   ;;  %v4004_v52 = vld [vmem:[%s4154_s23 + $0x254] ss:$8 sps:$4 sm:$0xff]  }
  0x21   : > { %v4006_v53 = vld [vmem:[%s4154_s23 + $0xa0] ss:$8 sps:$4 sm:$0xff]   ;;  %v4007_v54 = vld [vmem:[%s4154_s23 + $0x250] ss:$8 sps:$4 sm:$0xff]   ;;  %v4008_v55 = vld [vmem:[%s4154_s23 + $0xb4] ss:$8 sps:$4 sm:$0xff]  }
  0x22   : > { %v4010_v56 = vld [vmem:[%s4154_s23 + $0x264] ss:$8 sps:$4 sm:$0xff]   ;;  %v4012_v57 = vld [vmem:[%s4154_s23 + $0xb0] ss:$8 sps:$4 sm:$0xff]   ;;  %v4013_v58 = vld [vmem:[%s4154_s23 + $0x260] ss:$8 sps:$4 sm:$0xff]  }
  0x23   : > { %1002 = vmatpush1.bf16.msra.mxu0 %v3937_v8  ;;  %3915 = vmatpush1.bf16.msra.mxu1 %v3937_v8  ;;  %v4014_v59 = vld [vmem:[%s4154_s23 + $0xc4] ss:$8 sps:$4 sm:$0xff]   ;;  %v4016_v60 = vld [vmem:[%s4154_s23 + $0x274] ss:$8 sps:$4 sm:$0xff]   ;;  %v4018_v61 = vld [vmem:[%s4154_s23 + $0xc0] ss:$8 sps:$4 sm:$0xff]  }
  0x24   : > { %1003 = vmatprep.subr.bf16.mxu0 %v4109_v1  ;;  %3906 = vmatprep.subr.bf16.mxu1 %v4109_v1  ;;  %v4019_v62 = vld [vmem:[%s4154_s23 + $0x270] ss:$8 sps:$4 sm:$0xff]   ;;  %v4020_v63 = vld [vmem:[%s4154_s23 + $0xd4] ss:$8 sps:$4 sm:$0xff]   ;;  %v4022_v0 = vld [vmem:[%s4154_s23 + $0x284] ss:$8 sps:$4 sm:$0xff]  }
  0x25   : > { %v4025_v2 = vld [vmem:[%s4154_s23 + $0x280] ss:$8 sps:$4 sm:$0xff]   ;;  %v4026_v3 = vld [vmem:[%s4154_s23 + $0xe4] ss:$8 sps:$4 sm:$0xff]   ;;  %v4028_v4 = vld [vmem:[%s4154_s23 + $0x294] ss:$8 sps:$4 sm:$0xff]  }
  0x26   : > { %v4030_v5 = vld [vmem:[%s4154_s23 + $0xe0] ss:$8 sps:$4 sm:$0xff]   ;;  %v4031_v6 = vld [vmem:[%s4154_s23 + $0x290] ss:$8 sps:$4 sm:$0xff]   ;;  %v4032_v7 = vld [vmem:[%s4154_s23 + $0xf4] ss:$8 sps:$4 sm:$0xff]  }
  0x27   : > { %1004 = vmatpush1.bf16.msra.mxu0 %v3938_v9  ;;  %3916 = vmatpush1.bf16.msra.mxu1 %v3938_v9  ;;  %v4034_v8 = vld [vmem:[%s4154_s23 + $0x2a4] ss:$8 sps:$4 sm:$0xff]   ;;  %v4036_v9 = vld [vmem:[%s4154_s23 + $0xf0] ss:$8 sps:$4 sm:$0xff]  }
  0x28   : > { %1005 = vmatprep.subr.bf16.mxu0 %v4109_v1  ;;  %3907 = vmatprep.subr.bf16.mxu1 %v4109_v1 }
  0x2b   : > { %1006 = vmatpush1.bf16.msra.mxu0 %v3939_v10  ;;  %3917 = vmatpush1.bf16.msra.mxu1 %v3939_v10  ;;  %v4037_v10 = vld [vmem:[%s4154_s23 + $0x2a0] ss:$8 sps:$4 sm:$0xff]  }
  0x2c   : > { %1007 = vmatprep.subr.bf16.mxu0 %v4109_v1  ;;  %3908 = vmatprep.subr.bf16.mxu1 %v4109_v1 }
  0x2f   : > { %1008 = vmatpush1.bf16.msra.mxu0 %v3940_v11  ;;  %3918 = vmatpush1.bf16.msra.mxu1 %v3940_v11  ;;  %v4038_v11 = vld [vmem:[%s4154_s23 + $0x104] ss:$8 sps:$4 sm:$0xff]  }
  0x30   : > { %1009 = vmatprep.subr.bf16.mxu0 %v4109_v1  ;;  %3909 = vmatprep.subr.bf16.mxu1 %v4109_v1  ;;  %v4024_v1 = vld [vmem:[%s4154_s23 + $0xd0] ss:$8 sps:$4 sm:$0xff]  }
  0x33   : > { %1010 = vmatpush1.bf16.msra.mxu0 %v3941_v12  ;;  %3919 = vmatpush1.bf16.msra.mxu1 %v3941_v12  ;;  %v4040_v12 = vld [vmem:[%s4154_s23 + $0x2b4] ss:$8 sps:$4 sm:$0xff]  }
  0x36   : > { %1024 = vmatmul.mubr.bf16.vlgmr.msra.gmra.mrb[0].mxu0 %v3942_v13  ;;  %1240 = vmatmul.mubr.bf16.vlgmr.msra.gmra.mrb[0].mxu1 %v3945_v14  ;;  %v4042_v13 = vld [vmem:[%s4154_s23 + $0x100] ss:$8 sps:$4 sm:$0xff]   ;;  %v4043_v14 = vld [vmem:[%s4154_s23 + $0x2b0] ss:$8 sps:$4 sm:$0xff]  }
  0x37   : > { %3635 = vmatprep.mubr.msk.bf16.mxu0 %vm831_vm0, %v3948_v15  ;;  %3662 = vmatprep.mubr.msk.bf16.mxu1 %vm831_vm0, %v3950_v16  ;;  %v4044_v15 = vld [vmem:[%s4154_s23 + $0x114] ss:$8 sps:$4 sm:$0xff]   ;;  %v4047_v16 = vld [vmem:[%s4154_s23 + $0x2c4] ss:$8 sps:$4 sm:$0xff]  }
  0x3e   : > { %1032 = vmatmul.mubr.bf16.gmra.mrb[4].mxu0 %v3952_v17  ;;  %1248 = vmatmul.mubr.bf16.gmra.mrb[4].mxu1 %v3953_v18  ;;  %v4046_v17 = vld [vmem:[%s4154_s23 + $0x110] ss:$8 sps:$4 sm:$0xff]   ;;  %v4049_v18 = vld [vmem:[%s4154_s23 + $0x2c0] ss:$8 sps:$4 sm:$0xff]  }
  0x3f   : > { %3636 = vmatprep.mubr.msk.bf16.mxu0 %vm831_vm0, %v3954_v19  ;;  %3663 = vmatprep.mubr.msk.bf16.mxu1 %vm831_vm0, %v3956_v20  ;;  %v4050_v19 = vld [vmem:[%s4154_s23 + $0x124] ss:$8 sps:$4 sm:$0xff]   ;;  %v4056_v20 = vld [vmem:[%s4154_s23 + $0x2d4] ss:$8 sps:$4 sm:$0xff]  }
  0x46   : > { %1040 = vmatmul.mubr.bf16.gmra.mrb[8].mxu0 %v3958_v21  ;;  %1256 = vmatmul.mubr.bf16.gmra.mrb[8].mxu1 %v3959_v22  ;;  %v4052_v21 = vld [vmem:[%s4154_s23 + $0x120] ss:$8 sps:$4 sm:$0xff]   ;;  %v4058_v22 = vld [vmem:[%s4154_s23 + $0x2d0] ss:$8 sps:$4 sm:$0xff]  }
  0x47   : > { %3637 = vmatprep.mubr.msk.bf16.mxu0 %vm831_vm0, %v3960_v23  ;;  %3664 = vmatprep.mubr.msk.bf16.mxu1 %vm831_vm0, %v3962_v24  ;;  %v4053_v23 = vld [vmem:[%s4154_s23 + $0x134] ss:$8 sps:$4 sm:$0xff]   ;;  %v4065_v24 = vld [vmem:[%s4154_s23 + $0x2e4] ss:$8 sps:$4 sm:$0xff]  }
  0x4e   : > { %1048 = vmatmul.mubr.bf16.gmra.mrb[12].mxu0 %v3964_v25  ;;  %1264 = vmatmul.mubr.bf16.gmra.mrb[12].mxu1 %v3965_v26  ;;  %v4055_v25 = vld [vmem:[%s4154_s23 + $0x130] ss:$8 sps:$4 sm:$0xff]   ;;  %v4067_v26 = vld [vmem:[%s4154_s23 + $0x2e0] ss:$8 sps:$4 sm:$0xff]  }
  0x4f   : > { %3638 = vmatprep.mubr.msk.bf16.mxu0 %vm831_vm0, %v3966_v27  ;;  %3665 = vmatprep.mubr.msk.bf16.mxu1 %vm831_vm0, %v3968_v28  ;;  %v4059_v27 = vld [vmem:[%s4154_s23 + $0x144] ss:$8 sps:$4 sm:$0xff]   ;;  %v4074_v28 = vld [vmem:[%s4154_s23 + $0x2f4] ss:$8 sps:$4 sm:$0xff]  }
  0x56   : > { %1056 = vmatmul.mubr.bf16.gmra.mrb[16].mxu0 %v3970_v29  ;;  %1272 = vmatmul.mubr.bf16.gmra.mrb[16].mxu1 %v3971_v30  ;;  %v4061_v29 = vld [vmem:[%s4154_s23 + $0x140] ss:$8 sps:$4 sm:$0xff]   ;;  %v4076_v30 = vld [vmem:[%s4154_s23 + $0x2f0] ss:$8 sps:$4 sm:$0xff]  }
  0x57   : > { %3639 = vmatprep.mubr.msk.bf16.mxu0 %vm831_vm0, %v3972_v31  ;;  %3666 = vmatprep.mubr.msk.bf16.mxu1 %vm831_vm0, %v3974_v32  ;;  %v4062_v31 = vld [vmem:[%s4154_s23 + $0x154] ss:$8 sps:$4 sm:$0xff]   ;;  %v4083_v32 = vld [vmem:[%s4154_s23 + $0x304] ss:$8 sps:$4 sm:$0xff]  }
  0x5e   : > { %1064 = vmatmul.mubr.bf16.gmra.mrb[20].mxu0 %v3976_v33  ;;  %1280 = vmatmul.mubr.bf16.gmra.mrb[20].mxu1 %v3977_v34  ;;  %v4064_v33 = vld [vmem:[%s4154_s23 + $0x150] ss:$8 sps:$4 sm:$0xff]   ;;  %v4085_v34 = vld [vmem:[%s4154_s23 + $0x300] ss:$8 sps:$4 sm:$0xff]  }
  0x5f   : > { %3640 = vmatprep.mubr.msk.bf16.mxu0 %vm831_vm0, %v3978_v35  ;;  %3667 = vmatprep.mubr.msk.bf16.mxu1 %vm831_vm0, %v3980_v36  ;;  %v4068_v35 = vld [vmem:[%s4154_s23 + $0x164] ss:$8 sps:$4 sm:$0xff]   ;;  %v4089_v36 = vld [vmem:[%s4154_s23 + $0x314] ss:$8 sps:$4 sm:$0xff]  }
  0x66   : > { %1072 = vmatmul.mubr.bf16.gmra.mrb[24].mxu0 %v3982_v37  ;;  %1288 = vmatmul.mubr.bf16.gmra.mrb[24].mxu1 %v3983_v38  ;;  %v4070_v37 = vld [vmem:[%s4154_s23 + $0x160] ss:$8 sps:$4 sm:$0xff]   ;;  %v4091_v38 = vld [vmem:[%s4154_s23 + $0x310] ss:$8 sps:$4 sm:$0xff]  }
  0x67   : > { %3641 = vmatprep.mubr.msk.bf16.mxu0 %vm831_vm0, %v3984_v39  ;;  %3668 = vmatprep.mubr.msk.bf16.mxu1 %vm831_vm0, %v3986_v40  ;;  %v4071_v39 = vld [vmem:[%s4154_s23 + $0x174] ss:$8 sps:$4 sm:$0xff]   ;;  %v4092_v40 = vld [vmem:[%s4154_s23 + $0x324] ss:$8 sps:$4 sm:$0xff]  }
  0x6e   : > { %1080 = vmatmul.mubr.bf16.gmra.mrb[28].mxu0 %v3988_v41  ;;  %1296 = vmatmul.mubr.bf16.gmra.mrb[28].mxu1 %v3989_v42  ;;  %v4073_v41 = vld [vmem:[%s4154_s23 + $0x170] ss:$8 sps:$4 sm:$0xff]   ;;  %v4094_v42 = vld [vmem:[%s4154_s23 + $0x320] ss:$8 sps:$4 sm:$0xff]  }
  0x6f   : > { %3642 = vmatprep.mubr.msk.bf16.mxu0 %vm831_vm0, %v3990_v43  ;;  %3669 = vmatprep.mubr.msk.bf16.mxu1 %vm831_vm0, %v3992_v44  ;;  %v4077_v43 = vld [vmem:[%s4154_s23 + $0x184] ss:$8 sps:$4 sm:$0xff]   ;;  %v4095_v44 = vld [vmem:[%s4154_s23 + $0x334] ss:$8 sps:$4 sm:$0xff]  }
  0x76   : > { %1088 = vmatmul.mubr.bf16.gmra.mrb[32].mxu0 %v3994_v45  ;;  %1304 = vmatmul.mubr.bf16.gmra.mrb[32].mxu1 %v3995_v46  ;;  %v276_v45 = vld [vmem:[%s4154_s23 + $0x340] sm:$0x11] }
  0x77   : > { %3643 = vmatprep.mubr.msk.bf16.mxu0 %vm831_vm0, %v3996_v47  ;;  %3670 = vmatprep.mubr.msk.bf16.mxu1 %vm831_vm0, %v3998_v48  ;;  %v4079_v46 = vld [vmem:[%s4154_s23 + $0x180] ss:$8 sps:$4 sm:$0xff]   ;;  %v4097_v47 = vld [vmem:[%s4154_s23 + $0x330] ss:$8 sps:$4 sm:$0xff]   ;;  %v4080_v48 = vld [vmem:[%s4154_s23 + $0x194] ss:$8 sps:$4 sm:$0xff]  }
  0x7e   : > { %1096 = vmatmul.mubr.bf16.gmra.mrb[36].mxu0 %v4000_v49  ;;  %1312 = vmatmul.mubr.bf16.gmra.mrb[36].mxu1 %v4001_v50  ;;  %v3623_v49 = vcombine.high %v276_v45, %v276_v45  ;;  %v4082_v50 = vld [vmem:[%s4154_s23 + $0x190] ss:$8 sps:$4 sm:$0xff]  }
  0x7f   : > { %3644 = vmatprep.mubr.msk.bf16.mxu0 %vm831_vm0, %v4002_v51  ;;  %3671 = vmatprep.mubr.msk.bf16.mxu1 %vm831_vm0, %v4004_v52  ;;  %v3622_v51 = vcombine.low %v276_v45, %v276_v45  ;;  %v4086_v52 = vld [vmem:[%s4154_s23 + $0x1a4] ss:$8 sps:$4 sm:$0xff]  }
  0x86   : > { %1104 = vmatmul.mubr.bf16.gmra.mrb[40].mxu0 %v4006_v53  ;;  %1320 = vmatmul.mubr.bf16.gmra.mrb[40].mxu1 %v4007_v54  ;;  %v4088_v53 = vld [vmem:[%s4154_s23 + $0x1a0] ss:$8 sps:$4 sm:$0xff]  }
  0x87   : > { %3645 = vmatprep.mubr.msk.bf16.mxu0 %vm831_vm0, %v4008_v55  ;;  %3672 = vmatprep.mubr.msk.bf16.mxu1 %vm831_vm0, %v4010_v56 }
  0x8e   : > { %1112 = vmatmul.mubr.bf16.gmra.mrb[44].mxu0 %v4012_v57  ;;  %1328 = vmatmul.mubr.bf16.gmra.mrb[44].mxu1 %v4013_v58 }
  0x8f   : > { %3646 = vmatprep.mubr.msk.bf16.mxu0 %vm831_vm0, %v4014_v59  ;;  %3673 = vmatprep.mubr.msk.bf16.mxu1 %vm831_vm0, %v4016_v60 }
  0x96   : > { %1120 = vmatmul.mubr.bf16.gmra.mrb[48].mxu0 %v4018_v61  ;;  %1336 = vmatmul.mubr.bf16.gmra.mrb[48].mxu1 %v4019_v62 }
  0x97   : > { %3647 = vmatprep.mubr.msk.bf16.mxu0 %vm831_vm0, %v4020_v63  ;;  %3674 = vmatprep.mubr.msk.bf16.mxu1 %vm831_vm0, %v4022_v0 }
  0x9e   : > { %1128 = vmatmul.mubr.bf16.gmra.mrb[52].mxu0 %v4024_v1  ;;  %1344 = vmatmul.mubr.bf16.gmra.mrb[52].mxu1 %v4025_v2 }
  0x9f   : > { %3648 = vmatprep.mubr.msk.bf16.mxu0 %vm831_vm0, %v4026_v3  ;;  %3675 = vmatprep.mubr.msk.bf16.mxu1 %vm831_vm0, %v4028_v4 }
  0xa6   : > { %1136 = vmatmul.mubr.bf16.gmra.mrb[56].mxu0 %v4030_v5  ;;  %1352 = vmatmul.mubr.bf16.gmra.mrb[56].mxu1 %v4031_v6 }
  0xa7   : > { %3649 = vmatprep.mubr.msk.bf16.mxu0 %vm831_vm0, %v4032_v7  ;;  %3676 = vmatprep.mubr.msk.bf16.mxu1 %vm831_vm0, %v4034_v8 }
  0xae   : > { %1144 = vmatmul.mubr.bf16.gmra.mrb[60].mxu0 %v4036_v9  ;;  %1360 = vmatmul.mubr.bf16.gmra.mrb[60].mxu1 %v4037_v10 }
  0xaf   : > { %3650 = vmatprep.mubr.msk.bf16.mxu0 %vm831_vm0, %v4038_v11  ;;  %3677 = vmatprep.mubr.msk.bf16.mxu1 %vm831_vm0, %v4040_v12 }
  0xb6   : > { %1152 = vmatmul.mubr.bf16.gmra.mrb[64].mxu0 %v4042_v13  ;;  %1368 = vmatmul.mubr.bf16.gmra.mrb[64].mxu1 %v4043_v14 }
  0xb7   : > { %3651 = vmatprep.mubr.msk.bf16.mxu0 %vm831_vm0, %v4044_v15  ;;  %3678 = vmatprep.mubr.msk.bf16.mxu1 %vm831_vm0, %v4047_v16 }
  0xbe   : > { %1160 = vmatmul.mubr.bf16.gmra.mrb[68].mxu0 %v4046_v17  ;;  %1376 = vmatmul.mubr.bf16.gmra.mrb[68].mxu1 %v4049_v18 }
  0xbf   : > { %3652 = vmatprep.mubr.msk.bf16.mxu0 %vm831_vm0, %v4050_v19  ;;  %3679 = vmatprep.mubr.msk.bf16.mxu1 %vm831_vm0, %v4056_v20 }
  0xc6   : > { %1168 = vmatmul.mubr.bf16.gmra.mrb[72].mxu0 %v4052_v21  ;;  %1384 = vmatmul.mubr.bf16.gmra.mrb[72].mxu1 %v4058_v22 }
  0xc7   : > { %3653 = vmatprep.mubr.msk.bf16.mxu0 %vm831_vm0, %v4053_v23  ;;  %3680 = vmatprep.mubr.msk.bf16.mxu1 %vm831_vm0, %v4065_v24 }
  0xce   : > { %1176 = vmatmul.mubr.bf16.gmra.mrb[76].mxu0 %v4055_v25  ;;  %1392 = vmatmul.mubr.bf16.gmra.mrb[76].mxu1 %v4067_v26 }
  0xcf   : > { %3654 = vmatprep.mubr.msk.bf16.mxu0 %vm831_vm0, %v4059_v27  ;;  %3681 = vmatprep.mubr.msk.bf16.mxu1 %vm831_vm0, %v4074_v28 }
  0xd6   : > { %1184 = vmatmul.mubr.bf16.gmra.mrb[80].mxu0 %v4061_v29  ;;  %1400 = vmatmul.mubr.bf16.gmra.mrb[80].mxu1 %v4076_v30 }
  0xd7   : > { %3655 = vmatprep.mubr.msk.bf16.mxu0 %vm831_vm0, %v4062_v31  ;;  %3682 = vmatprep.mubr.msk.bf16.mxu1 %vm831_vm0, %v4083_v32 }
  0xde   : > { %1192 = vmatmul.mubr.bf16.gmra.mrb[84].mxu0 %v4064_v33  ;;  %1408 = vmatmul.mubr.bf16.gmra.mrb[84].mxu1 %v4085_v34 }
  0xdf   : > { %3656 = vmatprep.mubr.msk.bf16.mxu0 %vm831_vm0, %v4068_v35  ;;  %3683 = vmatprep.mubr.msk.bf16.mxu1 %vm831_vm0, %v4089_v36 }
  0xe6   : > { %1200 = vmatmul.mubr.bf16.gmra.mrb[88].mxu0 %v4070_v37  ;;  %1416 = vmatmul.mubr.bf16.gmra.mrb[88].mxu1 %v4091_v38 }
  0xe7   : > { %3657 = vmatprep.mubr.msk.bf16.mxu0 %vm831_vm0, %v4071_v39  ;;  %3684 = vmatprep.mubr.msk.bf16.mxu1 %vm831_vm0, %v4092_v40 }
  0xee   : > { %1208 = vmatmul.mubr.bf16.gmra.mrb[92].mxu0 %v4073_v41  ;;  %1424 = vmatmul.mubr.bf16.gmra.mrb[92].mxu1 %v4094_v42 }
  0xef   : > { %3658 = vmatprep.mubr.msk.bf16.mxu0 %vm831_vm0, %v4077_v43  ;;  %3685 = vmatprep.mubr.msk.bf16.mxu1 %vm831_vm0, %v4095_v44 }
  0xf6   : > { %1216 = vmatmul.mubr.bf16.gmra.mrb[96].mxu0 %v4079_v46  ;;  %1432 = vmatmul.mubr.bf16.gmra.mrb[96].mxu1 %v4097_v47 }
  0xf7   : > { %3659 = vmatprep.mubr.msk.bf16.mxu0 %vm831_vm0, %v4080_v48  ;;  %3686 = vmatprep.mubr.msk.bf16.mxu1 %vm831_vm0, %v3623_v49 }
  0xfe   : > { %1224 = vmatmul.mubr.bf16.gmra.mrb[100].mxu0 %v4082_v50  ;;  %1440 = vmatmul.mubr.bf16.gmra.mrb[100].mxu1 %v3622_v51 }
  0xff   : > { %3660 = vmatprep.mubr.msk.bf16.mxu0 %vm831_vm0, %v4086_v52 }
 0x106   : > { %1232 = vmatmul.mubr.bf16.gmra.mrb[104].mxu0 %v4088_v53 }
 0x109   : > { %v4335_v54 = vpop.f32.mrb[0].mxu0  ;;  %v4337_v55 = vpop.f32.mrb[0].mxu1 }
 0x10a   : > { %v1027_v56 = vpop.f32.mrb[1].mxu0  ;;  %v1243_v57 = vpop.f32.mrb[1].mxu1  ;;  %v1553_v60 = vrot.slane %v4335_v54, 1  ;;  %v5881_v2 = vrot.slane %v4337_v55, 1 }
 0x10b   : > { %v4339_v58 = vpop.f32.mrb[2].mxu0  ;;  %v4341_v59 = vpop.f32.mrb[2].mxu1 }
 0x10c   : > { %6048 = vst [vmem:[#allocation2_spill] sm:$0xff] %v4339_v58  ;;  %6049 = vst [vmem:[#allocation3_spill] sm:$0xff] %v4341_v59  ;;  %v1554_v61 = vrot.slane %v4339_v58, 1  ;;  %v1030_v62 = vpop.f32.mrb[3].mxu0  ;;  %v1246_v63 = vpop.f32.mrb[3].mxu1  ;;  %v1662_v0 = vrot.slane %v4341_v59, 1 }
 0x10e   : > { %v1555_v1 = vsel %vm1552_vm1, %v1553_v60, %v1554_v61  ;;  %v1663_v9 = vsel %vm1552_vm1, %v5881_v2, %v1662_v0 }
 0x10f   : > { %1762 = vrot.lane.b32.xlu0 %v1555_v1, %s4110_s11 }
 0x111   : > { %v4349_v3 = vpop.f32.mrb[4].mxu0  ;;  %v4351_v4 = vpop.f32.mrb[4].mxu1 }
 0x112   : > { %6050 = vst [vmem:[#allocation4_spill] sm:$0xff] %v4349_v3  ;;  %6051 = vst [vmem:[#allocation5_spill] sm:$0xff] %v4351_v4  ;;  %v1556_v5 = vrot.slane %v4349_v3, 1  ;;  %v1664_v6 = vrot.slane %v4351_v4, 1  ;;  %v1035_v7 = vpop.f32.mrb[5].mxu0  ;;  %v1251_v8 = vpop.f32.mrb[5].mxu1 }
 0x113   : > { %v4358_v10 = vpop.f32.mrb[6].mxu1  ;;  %1870 = vrot.lane.b32.xlu0 %v1663_v9, %s4110_s11  ;;  %v4361_v11 = vpop.f32.mrb[6].mxu0 }
 0x114   : > { %6052 = vst [vmem:[#allocation6_spill] sm:$0xff] %v4358_v10  ;;  %6053 = vst [vmem:[#allocation7_spill] sm:$0xff] %v4361_v11  ;;  %v1666_v12 = vrot.slane %v4358_v10, 1  ;;  %v1558_v13 = vrot.slane %v4361_v11, 1  ;;  %v1038_v14 = vpop.f32.mrb[7].mxu0  ;;  %v1254_v15 = vpop.f32.mrb[7].mxu1  ;;  %v1665_v16 = vsel %vm1552_vm1, %v1662_v0, %v1664_v6  ;;  %v1557_v17 = vsel %vm1552_vm1, %v1554_v61, %v1556_v5 }
 0x115   : > { %1872 = vrot.lane.b32.xlu1 %v1665_v16, %s4110_s11 }
 0x116   : > { %v1559_v18 = vsel %vm1552_vm1, %v1556_v5, %v1558_v13  ;;  %v1667_v19 = vsel %vm1552_vm1, %v1664_v6, %v1666_v12 }
 0x117   : > { %1764 = vrot.lane.b32.xlu0 %v1557_v17, %s4110_s11 }
 0x119   : > { %v4371_v20 = vpop.f32.mrb[8].mxu1  ;;  %1766 = vrot.lane.b32.xlu1 %v1559_v18, %s4110_s11  ;;  %v4374_v21 = vpop.f32.mrb[8].mxu0 }
 0x11a   : > { %6054 = vst [vmem:[#allocation8_spill] sm:$0xff] %v4371_v20  ;;  %6055 = vst [vmem:[#allocation9_spill] sm:$0xff] %v4374_v21  ;;  %v1668_v22 = vrot.slane %v4371_v20, 1  ;;  %v1560_v23 = vrot.slane %v4374_v21, 1  ;;  %v1043_v24 = vpop.f32.mrb[9].mxu0  ;;  %v1259_v25 = vpop.f32.mrb[9].mxu1 }
 0x11b   : > { %1874 = vrot.lane.b32.xlu0 %v1667_v19, %s4110_s11  ;;  %v4379_v26 = vpop.f32.mrb[10].mxu0  ;;  %v4381_v27 = vpop.f32.mrb[10].mxu1 }
 0x11c   : > { %6056 = vst [vmem:[#allocation10_spill] sm:$0xff] %v4379_v26  ;;  %6057 = vst [vmem:[#allocation11_spill] sm:$0xff] %v4381_v27  ;;  %v1562_v28 = vrot.slane %v4379_v26, 1  ;;  %v1046_v29 = vpop.f32.mrb[11].mxu0  ;;  %v1670_v30 = vrot.slane %v4381_v27, 1  ;;  %v1262_v31 = vpop.f32.mrb[11].mxu1  ;;  %v1561_v32 = vsel %vm1552_vm1, %v1558_v13, %v1560_v23  ;;  %v1669_v33 = vsel %vm1552_vm1, %v1666_v12, %v1668_v22 }
 0x11d   : > { %1768 = vrot.lane.b32.xlu1 %v1561_v32, %s4110_s11 }
 0x11e   : > { %v1563_v34 = vsel %vm1552_vm1, %v1560_v23, %v1562_v28  ;;  %v1671_v35 = vsel %vm1552_vm1, %v1668_v22, %v1670_v30 }
 0x11f   : > { %1770 = vrot.lane.b32.xlu0 %v1563_v34, %s4110_s11 }
 0x121   : > { %v4391_v36 = vpop.f32.mrb[12].mxu1  ;;  %1876 = vrot.lane.b32.xlu1 %v1669_v33, %s4110_s11  ;;  %v4394_v37 = vpop.f32.mrb[12].mxu0 }
 0x122   : > { %6058 = vst [vmem:[#allocation12_spill] sm:$0xff] %v4391_v36  ;;  %6059 = vst [vmem:[#allocation13_spill] sm:$0xff] %v4394_v37  ;;  %v1672_v38 = vrot.slane %v4391_v36, 1  ;;  %v1564_v39 = vrot.slane %v4394_v37, 1  ;;  %v1051_v40 = vpop.f32.mrb[13].mxu0  ;;  %v1267_v41 = vpop.f32.mrb[13].mxu1 }
 0x123   : > { %1878 = vrot.lane.b32.xlu0 %v1671_v35, %s4110_s11  ;;  %v4399_v42 = vpop.f32.mrb[14].mxu0  ;;  %v4401_v43 = vpop.f32.mrb[14].mxu1 }
 0x124   : > { %6060 = vst [vmem:[#allocation14_spill] sm:$0xff] %v4399_v42  ;;  %6061 = vst [vmem:[#allocation15_spill] sm:$0xff] %v4401_v43  ;;  %v1566_v44 = vrot.slane %v4399_v42, 1  ;;  %v1054_v45 = vpop.f32.mrb[15].mxu0  ;;  %v1674_v46 = vrot.slane %v4401_v43, 1  ;;  %v1270_v47 = vpop.f32.mrb[15].mxu1  ;;  %v1565_v48 = vsel %vm1552_vm1, %v1562_v28, %v1564_v39  ;;  %v1673_v49 = vsel %vm1552_vm1, %v1670_v30, %v1672_v38 }
 0x125   : > { %1772 = vrot.lane.b32.xlu1 %v1565_v48, %s4110_s11 }
 0x126   : > { %v1567_v50 = vsel %vm1552_vm1, %v1564_v39, %v1566_v44  ;;  %v1675_v51 = vsel %vm1552_vm1, %v1672_v38, %v1674_v46 }
 0x127   : > { %1774 = vrot.lane.b32.xlu0 %v1567_v50, %s4110_s11 }
 0x129   : > { %v4411_v52 = vpop.f32.mrb[16].mxu1  ;;  %1880 = vrot.lane.b32.xlu1 %v1673_v49, %s4110_s11  ;;  %v4414_v53 = vpop.f32.mrb[16].mxu0 }
 0x12a   : > { %6062 = vst [vmem:[#allocation16_spill] sm:$0xff] %v4411_v52  ;;  %6063 = vst [vmem:[#allocation17_spill] sm:$0xff] %v4414_v53  ;;  %v1676_v56 = vrot.slane %v4411_v52, 1  ;;  %v1568_v57 = vrot.slane %v4414_v53, 1  ;;  %v1059_v60 = vpop.f32.mrb[17].mxu0  ;;  %v1275_v61 = vpop.f32.mrb[17].mxu1 }
 0x12b   : > { %1882 = vrot.lane.b32.xlu0 %v1675_v51, %s4110_s11  ;;  %v4419_v62 = vpop.f32.mrb[18].mxu0  ;;  %v4421_v63 = vpop.f32.mrb[18].mxu1 }
 0x12c   : > { %6064 = vst [vmem:[#allocation18_spill] sm:$0xff] %v4419_v62  ;;  %6065 = vst [vmem:[#allocation19_spill] sm:$0xff] %v4421_v63  ;;  %v1570_v0 = vrot.slane %v4419_v62, 1  ;;  %v1062_v1 = vpop.f32.mrb[19].mxu0  ;;  %v1678_v5 = vrot.slane %v4421_v63, 1  ;;  %v1278_v6 = vpop.f32.mrb[19].mxu1  ;;  %v1569_v7 = vsel %vm1552_vm1, %v1566_v44, %v1568_v57  ;;  %v1677_v8 = vsel %vm1552_vm1, %v1674_v46, %v1676_v56 }
 0x12d   : > { %1776 = vrot.lane.b32.xlu1 %v1569_v7, %s4110_s11 }
 0x12e   : > { %v1571_v9 = vsel %vm1552_vm1, %v1568_v57, %v1570_v0  ;;  %v1679_v12 = vsel %vm1552_vm1, %v1676_v56, %v1678_v5 }
 0x12f   : > { %1778 = vrot.lane.b32.xlu0 %v1571_v9, %s4110_s11 }
 0x131   : > { %v4431_v13 = vpop.f32.mrb[20].mxu1  ;;  %1884 = vrot.lane.b32.xlu1 %v1677_v8, %s4110_s11  ;;  %v4434_v14 = vpop.f32.mrb[20].mxu0 }
 0x132   : > { %6066 = vst [vmem:[#allocation20_spill] sm:$0xff] %v4434_v14  ;;  %v1680_v15 = vrot.slane %v4431_v13, 1  ;;  %v1572_v16 = vrot.slane %v4434_v14, 1  ;;  %v1067_v17 = vpop.f32.mrb[21].mxu0  ;;  %v1283_v18 = vpop.f32.mrb[21].mxu1 }
 0x133   : > { %1886 = vrot.lane.b32.xlu0 %v1679_v12, %s4110_s11  ;;  %v4439_v19 = vpop.f32.mrb[22].mxu0  ;;  %v4441_v22 = vpop.f32.mrb[22].mxu1 }
 0x134   : > { %v1574_v23 = vrot.slane %v4439_v19, 1  ;;  %v1070_v24 = vpop.f32.mrb[23].mxu0  ;;  %v1682_v25 = vrot.slane %v4441_v22, 1  ;;  %v1286_v28 = vpop.f32.mrb[23].mxu1  ;;  %v1573_v29 = vsel %vm1552_vm1, %v1570_v0, %v1572_v16  ;;  %v1681_v30 = vsel %vm1552_vm1, %v1678_v5, %v1680_v15 }
 0x135   : > { %1780 = vrot.lane.b32.xlu1 %v1573_v29, %s4110_s11 }
 0x136   : > { %v1575_v31 = vsel %vm1552_vm1, %v1572_v16, %v1574_v23  ;;  %v1683_v32 = vsel %vm1552_vm1, %v1680_v15, %v1682_v25 }
 0x137   : > { %1782 = vrot.lane.b32.xlu0 %v1575_v31, %s4110_s11 }
 0x139   : > { %v4451_v33 = vpop.f32.mrb[24].mxu1  ;;  %1888 = vrot.lane.b32.xlu1 %v1681_v30, %s4110_s11  ;;  %v4454_v34 = vpop.f32.mrb[24].mxu0 }
 0x13a   : > { %v1684_v35 = vrot.slane %v4451_v33, 1  ;;  %v1576_v38 = vrot.slane %v4454_v34, 1  ;;  %v1075_v39 = vpop.f32.mrb[25].mxu0  ;;  %v1291_v40 = vpop.f32.mrb[25].mxu1 }
 0x13b   : > { %1890 = vrot.lane.b32.xlu0 %v1683_v32, %s4110_s11  ;;  %v4459_v41 = vpop.f32.mrb[26].mxu0  ;;  %v4461_v44 = vpop.f32.mrb[26].mxu1 }
 0x13c   : > { %v1578_v45 = vrot.slane %v4459_v41, 1  ;;  %v1078_v46 = vpop.f32.mrb[27].mxu0  ;;  %v1686_v47 = vrot.slane %v4461_v44, 1  ;;  %v1294_v48 = vpop.f32.mrb[27].mxu1  ;;  %v1577_v49 = vsel %vm1552_vm1, %v1574_v23, %v1576_v38  ;;  %v1685_v50 = vsel %vm1552_vm1, %v1682_v25, %v1684_v35 }
 0x13d   : > { %1784 = vrot.lane.b32.xlu1 %v1577_v49, %s4110_s11 }
 0x13e   : > { %v1579_v51 = vsel %vm1552_vm1, %v1576_v38, %v1578_v45  ;;  %v1687_v56 = vsel %vm1552_vm1, %v1684_v35, %v1686_v47 }
 0x13f   : > { %1786 = vrot.lane.b32.xlu0 %v1579_v51, %s4110_s11 }
 0x141   : > { %v4471_v57 = vpop.f32.mrb[28].mxu1  ;;  %1892 = vrot.lane.b32.xlu1 %v1685_v50, %s4110_s11  ;;  %v4474_v60 = vpop.f32.mrb[28].mxu0 }
 0x142   : > { %6067 = vst [vmem:[#allocation21_spill] sm:$0xff] %v4471_v57  ;;  %6068 = vst [vmem:[#allocation22_spill] sm:$0xff] %v4474_v60  ;;  %v1688_v61 = vrot.slane %v4471_v57, 1  ;;  %v1580_v0 = vrot.slane %v4474_v60, 1  ;;  %v1083_v1 = vpop.f32.mrb[29].mxu0  ;;  %v1299_v5 = vpop.f32.mrb[29].mxu1 }
 0x143   : > { %1894 = vrot.lane.b32.xlu0 %v1687_v56, %s4110_s11  ;;  %v4479_v6 = vpop.f32.mrb[30].mxu0  ;;  %v4481_v7 = vpop.f32.mrb[30].mxu1 }
 0x144   : > { %6069 = vst [vmem:[#allocation23_spill] sm:$0xff] %v4479_v6  ;;  %v1582_v8 = vrot.slane %v4479_v6, 1  ;;  %v1086_v9 = vpop.f32.mrb[31].mxu0  ;;  %v1690_v12 = vrot.slane %v4481_v7, 1  ;;  %v1302_v15 = vpop.f32.mrb[31].mxu1  ;;  %v1581_v16 = vsel %vm1552_vm1, %v1578_v45, %v1580_v0  ;;  %v1689_v17 = vsel %vm1552_vm1, %v1686_v47, %v1688_v61 }
 0x145   : > { %1788 = vrot.lane.b32.xlu1 %v1581_v16, %s4110_s11 }
 0x146   : > { %v1583_v18 = vsel %vm1552_vm1, %v1580_v0, %v1582_v8  ;;  %v1691_v23 = vsel %vm1552_vm1, %v1688_v61, %v1690_v12 }
 0x147   : > { %1790 = vrot.lane.b32.xlu0 %v1583_v18, %s4110_s11 }
 0x149   : > { %v4491_v24 = vpop.f32.mrb[32].mxu1  ;;  %1896 = vrot.lane.b32.xlu1 %v1689_v17, %s4110_s11  ;;  %v4494_v25 = vpop.f32.mrb[32].mxu0 }
 0x14a   : > { %6070 = vst [vmem:[#allocation24_spill] sm:$0xff] %v4491_v24  ;;  %6071 = vst [vmem:[#allocation25_spill] sm:$0xff] %v4494_v25  ;;  %v1692_v28 = vrot.slane %v4491_v24, 1  ;;  %v1584_v29 = vrot.slane %v4494_v25, 1  ;;  %v1091_v30 = vpop.f32.mrb[33].mxu0  ;;  %v1307_v31 = vpop.f32.mrb[33].mxu1 }
 0x14b   : > { %1898 = vrot.lane.b32.xlu0 %v1691_v23, %s4110_s11  ;;  %v4499_v32 = vpop.f32.mrb[34].mxu0  ;;  %v4501_v35 = vpop.f32.mrb[34].mxu1 }
 0x14c   : > { %6072 = vst [vmem:[#allocation26_spill] sm:$0xff] %v4499_v32  ;;  %6073 = vst [vmem:[#allocation27_spill] sm:$0xff] %v4501_v35  ;;  %v1586_v38 = vrot.slane %v4499_v32, 1  ;;  %v1094_v39 = vpop.f32.mrb[35].mxu0  ;;  %v1694_v40 = vrot.slane %v4501_v35, 1  ;;  %v1310_v45 = vpop.f32.mrb[35].mxu1  ;;  %v1585_v46 = vsel %vm1552_vm1, %v1582_v8, %v1584_v29  ;;  %v1693_v47 = vsel %vm1552_vm1, %v1690_v12, %v1692_v28 }
 0x14d   : > { %1792 = vrot.lane.b32.xlu1 %v1585_v46, %s4110_s11 }
 0x14e   : > { %v1587_v48 = vsel %vm1552_vm1, %v1584_v29, %v1586_v38  ;;  %v1695_v49 = vsel %vm1552_vm1, %v1692_v28, %v1694_v40 }
 0x14f   : > { %1794 = vrot.lane.b32.xlu0 %v1587_v48, %s4110_s11 }
 0x151   : > { %v4511_v50 = vpop.f32.mrb[36].mxu1  ;;  %1900 = vrot.lane.b32.xlu1 %v1693_v47, %s4110_s11  ;;  %v4514_v51 = vpop.f32.mrb[36].mxu0 }
 0x152   : > { %6074 = vst [vmem:[#allocation28_spill] sm:$0xff] %v4511_v50  ;;  %6075 = vst [vmem:[#allocation29_spill] sm:$0xff] %v4514_v51  ;;  %v1696_v56 = vrot.slane %v4511_v50, 1  ;;  %v1588_v61 = vrot.slane %v4514_v51, 1  ;;  %v1099_v0 = vpop.f32.mrb[37].mxu0  ;;  %v1315_v1 = vpop.f32.mrb[37].mxu1 }
 0x153   : > { %1902 = vrot.lane.b32.xlu0 %v1695_v49, %s4110_s11  ;;  %v4519_v5 = vpop.f32.mrb[38].mxu0  ;;  %v4521_v8 = vpop.f32.mrb[38].mxu1 }
 0x154   : > { %6076 = vst [vmem:[#allocation30_spill] sm:$0xff] %v4519_v5  ;;  %6077 = vst [vmem:[#allocation31_spill] sm:$0xff] %v4521_v8  ;;  %v1590_v9 = vrot.slane %v4519_v5, 1  ;;  %v1102_v12 = vpop.f32.mrb[39].mxu0  ;;  %v1698_v15 = vrot.slane %v4521_v8, 1  ;;  %v1318_v16 = vpop.f32.mrb[39].mxu1  ;;  %v1589_v17 = vsel %vm1552_vm1, %v1586_v38, %v1588_v61  ;;  %v1697_v18 = vsel %vm1552_vm1, %v1694_v40, %v1696_v56 }
 0x155   : > { %1796 = vrot.lane.b32.xlu1 %v1589_v17, %s4110_s11 }
 0x156   : > { %v1591_v23 = vsel %vm1552_vm1, %v1588_v61, %v1590_v9  ;;  %v1699_v28 = vsel %vm1552_vm1, %v1696_v56, %v1698_v15 }
 0x157   : > { %1798 = vrot.lane.b32.xlu0 %v1591_v23, %s4110_s11 }
 0x159   : > { %v4531_v29 = vpop.f32.mrb[40].mxu1  ;;  %1904 = vrot.lane.b32.xlu1 %v1697_v18, %s4110_s11  ;;  %v4534_v30 = vpop.f32.mrb[40].mxu0 }
 0x15a   : > { %6078 = vst [vmem:[#allocation32_spill] sm:$0xff] %v4531_v29  ;;  %6079 = vst [vmem:[#allocation33_spill] sm:$0xff] %v4534_v30  ;;  %v1700_v31 = vrot.slane %v4531_v29, 1  ;;  %v1592_v38 = vrot.slane %v4534_v30, 1  ;;  %v1107_v39 = vpop.f32.mrb[41].mxu0  ;;  %v1323_v40 = vpop.f32.mrb[41].mxu1 }
 0x15b   : > { %1906 = vrot.lane.b32.xlu0 %v1699_v28, %s4110_s11  ;;  %v4539_v45 = vpop.f32.mrb[42].mxu0  ;;  %v4541_v46 = vpop.f32.mrb[42].mxu1 }
 0x15c   : > { %6080 = vst [vmem:[#allocation34_spill] sm:$0xff] %v4539_v45  ;;  %6081 = vst [vmem:[#allocation35_spill] sm:$0xff] %v4541_v46  ;;  %v1594_v47 = vrot.slane %v4539_v45, 1  ;;  %v1110_v48 = vpop.f32.mrb[43].mxu0  ;;  %v1702_v49 = vrot.slane %v4541_v46, 1  ;;  %v1326_v56 = vpop.f32.mrb[43].mxu1  ;;  %v1593_v61 = vsel %vm1552_vm1, %v1590_v9, %v1592_v38  ;;  %v1701_v0 = vsel %vm1552_vm1, %v1698_v15, %v1700_v31 }
 0x15d   : > { %1800 = vrot.lane.b32.xlu1 %v1593_v61, %s4110_s11 }
 0x15e   : > { %v1595_v1 = vsel %vm1552_vm1, %v1592_v38, %v1594_v47  ;;  %v1703_v12 = vsel %vm1552_vm1, %v1700_v31, %v1702_v49 }
 0x15f   : > { %1802 = vrot.lane.b32.xlu0 %v1595_v1, %s4110_s11 }
 0x161   : > { %v4551_v16 = vpop.f32.mrb[44].mxu1  ;;  %1908 = vrot.lane.b32.xlu1 %v1701_v0, %s4110_s11  ;;  %v4554_v17 = vpop.f32.mrb[44].mxu0 }
 0x162   : > { %6082 = vst [vmem:[#allocation36_spill] sm:$0xff] %v4551_v16  ;;  %6083 = vst [vmem:[#allocation37_spill] sm:$0xff] %v4554_v17  ;;  %v1704_v18 = vrot.slane %v4551_v16, 1  ;;  %v1596_v9 = vrot.slane %v4554_v17, 1  ;;  %v1115_v23 = vpop.f32.mrb[45].mxu0  ;;  %v1331_v15 = vpop.f32.mrb[45].mxu1 }
 0x163   : > { %1910 = vrot.lane.b32.xlu0 %v1703_v12, %s4110_s11  ;;  %v4559_v28 = vpop.f32.mrb[46].mxu0  ;;  %v4561_v38 = vpop.f32.mrb[46].mxu1 }
 0x164   : > { %6084 = vst [vmem:[#allocation38_spill] sm:$0xff] %v4559_v28  ;;  %6085 = vst [vmem:[#allocation39_spill] sm:$0xff] %v4561_v38  ;;  %v1598_v31 = vrot.slane %v4559_v28, 1  ;;  %v1118_v39 = vpop.f32.mrb[47].mxu0  ;;  %v1706_v40 = vrot.slane %v4561_v38, 1  ;;  %v1334_v48 = vpop.f32.mrb[47].mxu1  ;;  %v1597_v56 = vsel %vm1552_vm1, %v1594_v47, %v1596_v9  ;;  %v1705_v61 = vsel %vm1552_vm1, %v1702_v49, %v1704_v18 }
 0x165   : > { %1804 = vrot.lane.b32.xlu1 %v1597_v56, %s4110_s11 }
 0x166   : > { %v1599_v0 = vsel %vm1552_vm1, %v1596_v9, %v1598_v31  ;;  %v1707_v1 = vsel %vm1552_vm1, %v1704_v18, %v1706_v40 }
 0x167   : > { %1806 = vrot.lane.b32.xlu0 %v1599_v0, %s4110_s11 }
 0x169   : > { %v4571_v12 = vpop.f32.mrb[48].mxu1  ;;  %1912 = vrot.lane.b32.xlu1 %v1705_v61, %s4110_s11  ;;  %v4574_v23 = vpop.f32.mrb[48].mxu0 }
 0x16a   : > { %6086 = vst [vmem:[#allocation40_spill] sm:$0xff] %v4571_v12  ;;  %6087 = vst [vmem:[#allocation41_spill] sm:$0xff] %v4574_v23  ;;  %v1708_v15 = vrot.slane %v4571_v12, 1  ;;  %v1600_v47 = vrot.slane %v4574_v23, 1  ;;  %v1123_v39 = vpop.f32.mrb[49].mxu0  ;;  %v1339_v49 = vpop.f32.mrb[49].mxu1 }
 0x16b   : > { %1914 = vrot.lane.b32.xlu0 %v1707_v1, %s4110_s11  ;;  %v4579_v48 = vpop.f32.mrb[50].mxu0  ;;  %v4581_v9 = vpop.f32.mrb[50].mxu1 }
 0x16c   : > { %6088 = vst [vmem:[#allocation42_spill] sm:$0xff] %v4579_v48  ;;  %6089 = vst [vmem:[#allocation43_spill] sm:$0xff] %v4581_v9  ;;  %v1602_v18 = vrot.slane %v4579_v48, 1  ;;  %v1126_v56 = vpop.f32.mrb[51].mxu0  ;;  %v1710_v0 = vrot.slane %v4581_v9, 1  ;;  %v1342_v61 = vpop.f32.mrb[51].mxu1  ;;  %v1601_v2 = vsel %vm1552_vm1, %v1598_v31, %v1600_v47  ;;  %v1709_v12 = vsel %vm1552_vm1, %v1706_v40, %v1708_v15 }
 0x16d   : > { %1808 = vrot.lane.b32.xlu1 %v1601_v2, %s4110_s11 }
 0x16e   : > { %v1603_v39 = vsel %vm1552_vm1, %v1600_v47, %v1602_v18  ;;  %v1711_v1 = vsel %vm1552_vm1, %v1708_v15, %v1710_v0 }
 0x16f   : > { %1810 = vrot.lane.b32.xlu0 %v1603_v39, %s4110_s11 }
 0x171   : > { %v4591_v49 = vpop.f32.mrb[52].mxu1  ;;  %1916 = vrot.lane.b32.xlu1 %v1709_v12, %s4110_s11  ;;  %v4594_v56 = vpop.f32.mrb[52].mxu0 }
 0x172   : > { %6090 = vst [vmem:[#allocation44_spill] sm:$0xff] %v4591_v49  ;;  %6091 = vst [vmem:[#allocation45_spill] sm:$0xff] %v4594_v56  ;;  %v1712_v61 = vrot.slane %v4591_v49, 1  ;;  %v1604_v31 = vrot.slane %v4594_v56, 1  ;;  %v1131_v9 = vpop.f32.mrb[53].mxu0  ;;  %v1347_v40 = vpop.f32.mrb[53].mxu1 }
 0x173   : > { %1918 = vrot.lane.b32.xlu0 %v1711_v1, %s4110_s11  ;;  %v4599_v2 = vpop.f32.mrb[54].mxu0  ;;  %v4601_v47 = vpop.f32.mrb[54].mxu1 }
 0x174   : > { %6092 = vst [vmem:[#allocation46_spill] sm:$0xff] %v4599_v2  ;;  %6093 = vst [vmem:[#allocation47_spill] sm:$0xff] %v4601_v47  ;;  %v1606_v15 = vrot.slane %v4599_v2, 1  ;;  %v1134_v39 = vpop.f32.mrb[55].mxu0  ;;  %v1714_v48 = vrot.slane %v4601_v47, 1  ;;  %v1350_v12 = vpop.f32.mrb[55].mxu1  ;;  %v1605_v23 = vsel %vm1552_vm1, %v1602_v18, %v1604_v31  ;;  %v1713_v49 = vsel %vm1552_vm1, %v1710_v0, %v1712_v61 }
 0x175   : > { %1812 = vrot.lane.b32.xlu1 %v1605_v23, %s4110_s11 }
 0x176   : > { %v1607_v9 = vsel %vm1552_vm1, %v1604_v31, %v1606_v15  ;;  %v1715_v1 = vsel %vm1552_vm1, %v1712_v61, %v1714_v48 }
 0x177   : > { %1814 = vrot.lane.b32.xlu0 %v1607_v9, %s4110_s11 }
 0x179   : > { %v4611_v40 = vpop.f32.mrb[56].mxu1  ;;  %1920 = vrot.lane.b32.xlu1 %v1713_v49, %s4110_s11  ;;  %v4614_v39 = vpop.f32.mrb[56].mxu0 }
 0x17a   : > { %6094 = vst [vmem:[#allocation48_spill] sm:$0xff] %v4611_v40  ;;  %6095 = vst [vmem:[#allocation49_spill] sm:$0xff] %v4614_v39  ;;  %v1716_v12 = vrot.slane %v4611_v40, 1  ;;  %v1608_v18 = vrot.slane %v4614_v39, 1  ;;  %v1139_v47 = vpop.f32.mrb[57].mxu0  ;;  %v1355_v0 = vpop.f32.mrb[57].mxu1 }
 0x17b   : > { %1922 = vrot.lane.b32.xlu0 %v1715_v1, %s4110_s11  ;;  %v4619_v23 = vpop.f32.mrb[58].mxu0  ;;  %v4621_v31 = vpop.f32.mrb[58].mxu1 }
 0x17c   : > { %6096 = vst [vmem:[#allocation50_spill] sm:$0xff] %v4619_v23  ;;  %6097 = vst [vmem:[#allocation51_spill] sm:$0xff] %v4621_v31  ;;  %v1610_v61 = vrot.slane %v4619_v23, 1  ;;  %v1142_v9 = vpop.f32.mrb[59].mxu0  ;;  %v1718_v2 = vrot.slane %v4621_v31, 1  ;;  %v1358_v49 = vpop.f32.mrb[59].mxu1  ;;  %v1609_v56 = vsel %vm1552_vm1, %v1606_v15, %v1608_v18  ;;  %v1717_v40 = vsel %vm1552_vm1, %v1714_v48, %v1716_v12 }
 0x17d   : > { %1816 = vrot.lane.b32.xlu1 %v1609_v56, %s4110_s11 }
 0x17e   : > { %v1611_v47 = vsel %vm1552_vm1, %v1608_v18, %v1610_v61  ;;  %v1719_v1 = vsel %vm1552_vm1, %v1716_v12, %v1718_v2 }
 0x17f   : > { %1818 = vrot.lane.b32.xlu0 %v1611_v47, %s4110_s11 }
 0x181   : > { %v4631_v0 = vpop.f32.mrb[60].mxu1  ;;  %v1763_v39 = vpop.permute.xlu0 %1762  ;;  %1924 = vrot.lane.b32.xlu1 %v1717_v40, %s4110_s11 }
 0x182   : > { %6098 = vst [vmem:[#allocation52_spill] sm:$0xff] %v4631_v0  ;;  %v1720_v9 = vrot.slane %v4631_v0, 1  ;;  %v2077_v49 = vadd.f32 %v1763_v39, %v4335_v54  ;;  %v4636_v15 = vpop.f32.mrb[60].mxu0  ;;  %v1363_v48 = vpop.f32.mrb[61].mxu1 }
 0x183   : > { %6099 = vst [vmem:[#allocation53_spill] sm:$0xff] %v4636_v15  ;;  %v1612_v56 = vrot.slane %v4636_v15, 1  ;;  %v1147_v31 = vpop.f32.mrb[61].mxu0  ;;  %1926 = vrot.lane.b32.xlu0 %v1719_v1, %s4110_s11  ;;  %v4640_v12 = vpop.f32.mrb[62].mxu1 }
 0x184   : > { %6100 = vst [vmem:[#allocation54_spill] sm:$0xff] %v4640_v12  ;;  %v4642_v18 = vpop.f32.mrb[62].mxu0  ;;  %v1722_v47 = vrot.slane %v4640_v12, 1  ;;  %v1366_v23 = vpop.f32.mrb[63].mxu1  ;;  %v1721_v40 = vsel %vm1552_vm1, %v1718_v2, %v1720_v9 }
 0x185   : > { %6101 = vst [vmem:[#allocation55_spill] sm:$0xff] %v4642_v18  ;;  %v1614_v0 = vrot.slane %v4642_v18, 1  ;;  %v1150_v39 = vpop.f32.mrb[63].mxu0  ;;  %v1871_v38 = vpop.permute.xlu0 %1870  ;;  %2287 = vrot.lane.b32.xlu1 %v2077_v49, %s4110_s11  ;;  %v1613_v48 = vsel %vm1552_vm1, %v1610_v61, %v1612_v56 }
 0x186   : > { %v2131_v31 = vadd.f32 %v1871_v38, %v4337_v55  ;;  %v1723_v1 = vsel %vm1552_vm1, %v1720_v9, %v1722_v47 }
 0x187   : > { %v1873_v15 = vpop.permute.xlu1 %1872  ;;  %v1615_v28 = vsel %vm1552_vm1, %v1612_v56, %v1614_v0 }
 0x188   : > { %1822 = vrot.lane.b32.xlu0 %v1615_v28, %s4110_s11 }
 0x189   : > { %v4653_v23 = vpop.f32.mrb[64].mxu1  ;;  %v1765_v2 = vpop.permute.xlu0 %1764  ;;  %2395 = vrot.lane.b32.xlu1 %v2131_v31, %s4110_s11 }
 0x18a   : > { %6102 = vst [vmem:[#allocation56_spill] sm:$0xff] %v4653_v23  ;;  %v1724_v39 = vrot.slane %v4653_v23, 1  ;;  %v4657_v12 = vpop.f32.mrb[64].mxu0  ;;  %v1371_v49 = vpop.f32.mrb[65].mxu1 }
 0x18b   : > { %6103 = vst [vmem:[#allocation57_spill] sm:$0xff] %v4657_v12  ;;  %v1616_v61 = vrot.slane %v4657_v12, 1  ;;  %v1767_v38 = vpop.permute.xlu1 %1766  ;;  %v1155_v18 = vpop.f32.mrb[65].mxu0 }
 0x18c   : > { %1930 = vrot.lane.b32.xlu0 %v1723_v1, %s4110_s11  ;;  %v4661_v9 = vpop.f32.mrb[66].mxu0  ;;  %v4663_v56 = vpop.f32.mrb[66].mxu1  ;;  %v4666_v28 = vsel %vm1552_vm1, %v1722_v47, %v1724_v39  ;;  %v2078_v18 = vadd.f32 %v1765_v2, %v4339_v58 }
 0x18d   : > { %6104 = vst [vmem:[#allocation58_spill] sm:$0xff] %v4661_v9  ;;  %6105 = vst [vmem:[#allocation59_spill] sm:$0xff] %v4663_v56  ;;  %v1875_v16 = vpop.permute.xlu0 %1874  ;;  %1820 = vrot.lane.b32.xlu1 %v1613_v48, %s4110_s11  ;;  %v1618_v31 = vrot.slane %v4661_v9, 1  ;;  %v1158_v23 = vpop.f32.mrb[67].mxu0  ;;  %v1726_v49 = vrot.slane %v4663_v56, 1  ;;  %v1617_v12 = vsel %vm1552_vm1, %v1614_v0, %v1616_v61 }
 0x18e   : > { %v1374_v1 = vpop.f32.mrb[67].mxu1  ;;  %v2132_v23 = vadd.f32 %v1873_v15, %v4341_v59 }
 0x18f   : > { %v1769_v17 = vpop.permute.xlu1 %1768  ;;  %v1619_v45 = vsel %vm1552_vm1, %v1616_v61, %v1618_v31  ;;  %v1727_v46 = vsel %vm1552_vm1, %v1724_v39, %v1726_v49  ;;  %v2079_v1 = vadd.f32 %v1767_v38, %v4349_v3 }
 0x190   : > { %2289 = vrot.lane.b32.xlu0 %v2078_v18, %s4110_s11 }
 0x191   : > { %v1771_v47 = vpop.permute.xlu0 %1770  ;;  %1928 = vrot.lane.b32.xlu1 %v1721_v40, %s4110_s11  ;;  %v4677_v48 = vpop.f32.mrb[68].mxu0 }
 0x192   : > { %6106 = vst [vmem:[#allocation60_spill] sm:$0xff] %v4677_v48  ;;  %v1620_v56 = vrot.slane %v4677_v48, 1  ;;  %v4681_v0 = vpop.f32.mrb[68].mxu1  ;;  %v1163_v2 = vpop.f32.mrb[69].mxu0 }
 0x193   : > { %6107 = vst [vmem:[#allocation61_spill] sm:$0xff] %v4681_v0  ;;  %v1877_v9 = vpop.permute.xlu1 %1876  ;;  %v1728_v61 = vrot.slane %v4681_v0, 1  ;;  %v4685_v39 = vpop.f32.mrb[70].mxu0 }
 0x194   : > { %6108 = vst [vmem:[#allocation62_spill] sm:$0xff] %v4685_v39  ;;  %2397 = vrot.lane.b32.xlu0 %v2132_v23, %s4110_s11  ;;  %v1622_v40 = vrot.slane %v4685_v39, 1  ;;  %v1166_v18 = vpop.f32.mrb[71].mxu0  ;;  %v1379_v29 = vpop.f32.mrb[69].mxu1  ;;  %v4690_v15 = vsel %vm1552_vm1, %v1618_v31, %v1620_v56  ;;  %v2133_v39 = vadd.f32 %v1875_v16, %v4351_v4 }
 0x195   : > { %v1879_v48 = vpop.permute.xlu0 %1878  ;;  %2291 = vrot.lane.b32.xlu1 %v2079_v1, %s4110_s11  ;;  %v4693_v2 = vpop.f32.mrb[70].mxu1  ;;  %v4696_v38 = vsel %vm1552_vm1, %v1726_v49, %v1728_v61 }
 0x196   : > { %6109 = vst [vmem:[#allocation63_spill] sm:$0xff] %v4693_v2  ;;  %v1730_v0 = vrot.slane %v4693_v2, 1  ;;  %v1382_v30 = vpop.f32.mrb[71].mxu1  ;;  %v1623_v23 = vsel %vm1552_vm1, %v1620_v56, %v1622_v40 }
 0x197   : > { %v4701_v18 = vpop.permute.xlu1 %1772 }
 0x198   : > { %1826 = vrot.lane.b32.xlu0 %v1619_v45, %s4110_s11  ;;  %v1731_v29 = vsel %vm1552_vm1, %v1728_v61, %v1730_v0 }
 0x199   : > { %v4705_v31 = vpop.permute.xlu0 %1774  ;;  %2399 = vrot.lane.b32.xlu1 %v2133_v39, %s4110_s11  ;;  %v4708_v1 = vpop.f32.mrb[72].mxu0 }
 0x19a   : > { %6110 = vst [vmem:[#allocation64_spill] sm:$0xff] %v4708_v1  ;;  %v1624_v49 = vrot.slane %v4708_v1, 1  ;;  %v4711_v2 = vpop.f32.mrb[72].mxu1  ;;  %v1171_v30 = vpop.f32.mrb[73].mxu0 }
 0x19b   : > { %6111 = vst [vmem:[#allocation65_spill] sm:$0xff] %v4711_v2  ;;  %v4713_v56 = vpop.permute.xlu1 %1880  ;;  %v1732_v16 = vrot.slane %v4711_v2, 1  ;;  %v4716_v5 = vpop.f32.mrb[74].mxu0  ;;  %v2080_v2 = vadd.f32 %v1769_v17, %v4361_v11  ;;  %v2134_v17 = vadd.f32 %v1877_v9, %v4358_v10 }
 0x19c   : > { %6112 = vst [vmem:[#allocation66_spill] sm:$0xff] %v4716_v5  ;;  %1934 = vrot.lane.b32.xlu0 %v1727_v46, %s4110_s11  ;;  %v1626_v45 = vrot.slane %v4716_v5, 1  ;;  %v1174_v61 = vpop.f32.mrb[75].mxu0  ;;  %v1387_v8 = vpop.f32.mrb[73].mxu1  ;;  %v4721_v39 = vsel %vm1552_vm1, %v1622_v40, %v1624_v49  ;;  %v2081_v5 = vadd.f32 %v1771_v47, %v4374_v21 }
 0x19d   : > { %v4723_v50 = vpop.permute.xlu0 %1882  ;;  %1824 = vrot.lane.b32.xlu1 %v1617_v12, %s4110_s11  ;;  %v4726_v30 = vpop.f32.mrb[74].mxu1  ;;  %v4729_v1 = vsel %vm1552_vm1, %v1730_v0, %v1732_v16 }
 0x19e   : > { %6113 = vst [vmem:[#allocation67_spill] sm:$0xff] %v4726_v30  ;;  %v1734_v46 = vrot.slane %v4726_v30, 1  ;;  %v1390_v51 = vpop.f32.mrb[75].mxu1  ;;  %v4734_v61 = vsel %vm1552_vm1, %v1624_v49, %v1626_v45 }
 0x19f   : > { %v4736_v8 = vpop.permute.xlu1 %1776 }
 0x1a0   : > { %2293 = vrot.lane.b32.xlu0 %v2080_v2, %s4110_s11  ;;  %v4740_v40 = vsel %vm1552_vm1, %v1732_v16, %v1734_v46 }
 0x1a1   : > { %v4742_v12 = vpop.permute.xlu0 %1778  ;;  %1932 = vrot.lane.b32.xlu1 %v4666_v28, %s4110_s11  ;;  %v4746_v0 = vpop.f32.mrb[76].mxu0 }
 0x1a2   : > { %6114 = vst [vmem:[#allocation68_spill] sm:$0xff] %v4746_v0  ;;  %v1628_v51 = vrot.slane %v4746_v0, 1  ;;  %v4750_v49 = vpop.f32.mrb[76].mxu1  ;;  %v1179_v30 = vpop.f32.mrb[77].mxu0 }
 0x1a3   : > { %6115 = vst [vmem:[#allocation69_spill] sm:$0xff] %v4750_v49  ;;  %v4753_v2 = vpop.permute.xlu1 %1884  ;;  %v1736_v16 = vrot.slane %v4750_v49, 1  ;;  %v4756_v11 = vpop.f32.mrb[78].mxu0 }
 0x1a4   : > { %6116 = vst [vmem:[#allocation70_spill] sm:$0xff] %v4756_v11  ;;  %2401 = vrot.lane.b32.xlu0 %v2134_v17, %s4110_s11  ;;  %v1630_v28 = vrot.slane %v4756_v11, 1  ;;  %v1182_v35 = vpop.f32.mrb[79].mxu0  ;;  %v1395_v32 = vpop.f32.mrb[77].mxu1  ;;  %v4761_v9 = vsel %vm1552_vm1, %v1626_v45, %v1628_v51 }
 0x1a5   : > { %v4763_v0 = vpop.permute.xlu0 %1886  ;;  %2295 = vrot.lane.b32.xlu1 %v2081_v5, %s4110_s11  ;;  %v4766_v47 = vpop.f32.mrb[78].mxu1  ;;  %v4769_v30 = vsel %vm1552_vm1, %v1734_v46, %v1736_v16  ;;  %v2135_v32 = vadd.f32 %v1879_v48, %v4371_v20 }
 0x1a6   : > { %6117 = vst [vmem:[#allocation71_spill] sm:$0xff] %v4766_v47  ;;  %v1738_v49 = vrot.slane %v4766_v47, 1  ;;  %v1398_v21 = vpop.f32.mrb[79].mxu1  ;;  %v4773_v17 = vsel %vm1552_vm1, %v1628_v51, %v1630_v28 }
 0x1a7   : > { %v4776_v35 = vpop.permute.xlu1 %1780 }
 0x1a8   : > { %1830 = vrot.lane.b32.xlu0 %v1623_v23, %s4110_s11  ;;  %v4780_v45 = vsel %vm1552_vm1, %v1736_v16, %v1738_v49 }
 0x1a9   : > { %v4782_v5 = vpop.permute.xlu0 %1782  ;;  %2403 = vrot.lane.b32.xlu1 %v2135_v32, %s4110_s11  ;;  %v4785_v46 = vpop.f32.mrb[80].mxu0 }
 0x1aa   : > { %6118 = vst [vmem:[#allocation72_spill] sm:$0xff] %v4785_v46  ;;  %v1632_v21 = vrot.slane %v4785_v46, 1  ;;  %v1187_v47 = vpop.f32.mrb[81].mxu0  ;;  %v4788_v51 = vpop.f32.mrb[80].mxu1 }
 0x1ab   : > { %6119 = vst [vmem:[#allocation73_spill] sm:$0xff] %v4788_v51  ;;  %v4790_v11 = vpop.permute.xlu1 %1888  ;;  %v4792_v48 = vpop.f32.mrb[82].mxu0  ;;  %v1740_v23 = vrot.slane %v4788_v51, 1 }
 0x1ac   : > { %6120 = vst [vmem:[#allocation74_spill] sm:$0xff] %v4792_v48  ;;  %1938 = vrot.lane.b32.xlu0 %v1731_v29, %s4110_s11  ;;  %v1634_v16 = vrot.slane %v4792_v48, 1  ;;  %v1190_v20 = vpop.f32.mrb[83].mxu0  ;;  %v1403_v10 = vpop.f32.mrb[81].mxu1  ;;  %v4798_v32 = vsel %vm1552_vm1, %v1630_v28, %v1632_v21  ;;  %v2082_v29 = vadd.f32 %v4701_v18, %v4379_v26  ;;  %v2136_v18 = vadd.f32 %v4713_v56, %v4381_v27 }
 0x1ad   : > { %v4800_v4 = vpop.permute.xlu0 %1890  ;;  %1828 = vrot.lane.b32.xlu1 %v4690_v15, %s4110_s11  ;;  %v4804_v47 = vpop.f32.mrb[82].mxu1  ;;  %v4807_v46 = vsel %vm1552_vm1, %v1738_v49, %v1740_v23 }
 0x1ae   : > { %6121 = vst [vmem:[#allocation75_spill] sm:$0xff] %v4804_v47  ;;  %v1742_v48 = vrot.slane %v4804_v47, 1  ;;  %v1406_v20 = vpop.f32.mrb[83].mxu1  ;;  %v4813_v10 = vsel %vm1552_vm1, %v1632_v21, %v1634_v16 }
 0x1af   : > { %v4815_v28 = vpop.permute.xlu1 %1784 }
 0x1b0   : > { %2297 = vrot.lane.b32.xlu0 %v2082_v29, %s4110_s11  ;;  %v4819_v15 = vsel %vm1552_vm1, %v1740_v23, %v1742_v48  ;;  %v2083_v29 = vadd.f32 %v4705_v31, %v4394_v37 }
 0x1b1   : > { %v4821_v51 = vpop.permute.xlu0 %1786  ;;  %1936 = vrot.lane.b32.xlu1 %v4696_v38, %s4110_s11  ;;  %v4825_v49 = vpop.f32.mrb[84].mxu0 }
 0x1b2   : > { %6122 = vst [vmem:[#allocation76_spill] sm:$0xff] %v4825_v49  ;;  %v1636_v21 = vrot.slane %v4825_v49, 1  ;;  %v1195_v20 = vpop.f32.mrb[85].mxu0  ;;  %v4830_v47 = vpop.f32.mrb[84].mxu1 }
 0x1b3   : > { %6123 = vst [vmem:[#allocation77_spill] sm:$0xff] %v4830_v47  ;;  %v4834_v23 = vpop.permute.xlu1 %1892  ;;  %v4836_v26 = vpop.f32.mrb[86].mxu0  ;;  %v1744_v3 = vrot.slane %v4830_v47, 1 }
 0x1b4   : > { %6124 = vst [vmem:[#allocation78_spill] sm:$0xff] %v4836_v26  ;;  %2405 = vrot.lane.b32.xlu0 %v2136_v18, %s4110_s11  ;;  %v1638_v38 = vrot.slane %v4836_v26, 1  ;;  %v1198_v59 = vpop.f32.mrb[87].mxu0  ;;  %v1411_v56 = vpop.f32.mrb[85].mxu1  ;;  %v4842_v49 = vsel %vm1552_vm1, %v1634_v16, %v1636_v21 }
 0x1b5   : > { %v4844_v20 = vpop.permute.xlu0 %1894  ;;  %2299 = vrot.lane.b32.xlu1 %v2083_v29, %s4110_s11  ;;  %v4847_v31 = vpop.f32.mrb[86].mxu1  ;;  %v4850_v37 = vsel %vm1552_vm1, %v1742_v48, %v1744_v3  ;;  %v2137_v59 = vadd.f32 %v4723_v50, %v4391_v36 }
 0x1b6   : > { %6125 = vst [vmem:[#allocation79_spill] sm:$0xff] %v4847_v31  ;;  %v1746_v47 = vrot.slane %v4847_v31, 1  ;;  %v1414_v27 = vpop.f32.mrb[87].mxu1  ;;  %v4854_v18 = vsel %vm1552_vm1, %v1636_v21, %v1638_v38 }
 0x1b7   : > { %v4858_v16 = vpop.permute.xlu1 %1788 }
 0x1b8   : > { %1834 = vrot.lane.b32.xlu0 %v4734_v61, %s4110_s11  ;;  %v4863_v29 = vsel %vm1552_vm1, %v1744_v3, %v1746_v47 }
 0x1b9   : > { %v4865_v56 = vpop.permute.xlu0 %1790  ;;  %2407 = vrot.lane.b32.xlu1 %v2137_v59, %s4110_s11  ;;  %v4868_v48 = vpop.f32.mrb[88].mxu0 }
 0x1ba   : > { %6126 = vst [vmem:[#allocation80_spill] sm:$0xff] %v4868_v48  ;;  %v1640_v27 = vrot.slane %v4868_v48, 1  ;;  %v1203_v21 = vpop.f32.mrb[89].mxu0  ;;  %v4871_v31 = vpop.f32.mrb[88].mxu1 }
 0x1bb   : > { %6127 = vst [vmem:[#allocation81_spill] sm:$0xff] %v4871_v31  ;;  %v4873_v50 = vpop.permute.xlu1 %1896  ;;  %v4875_v26 = vpop.f32.mrb[90].mxu0  ;;  %v1748_v61 = vrot.slane %v4871_v31, 1 }
 0x1bc   : > { %6128 = vst [vmem:[#allocation82_spill] sm:$0xff] %v4875_v26  ;;  %1942 = vrot.lane.b32.xlu0 %v4740_v40, %s4110_s11  ;;  %v1642_v3 = vrot.slane %v4875_v26, 1  ;;  %v1206_v36 = vpop.f32.mrb[91].mxu0  ;;  %v1419_v59 = vpop.f32.mrb[89].mxu1  ;;  %v4882_v24 = vsel %vm1552_vm1, %v1638_v38, %v1640_v27  ;;  %v2084_v40 = vadd.f32 %v4736_v8, %v4399_v42  ;;  %v2138_v8 = vadd.f32 %v4753_v2, %v4401_v43 }
 0x1bd   : > { %v4884_v48 = vpop.permute.xlu0 %1898  ;;  %1832 = vrot.lane.b32.xlu1 %v4721_v39, %s4110_s11  ;;  %v4888_v21 = vpop.f32.mrb[90].mxu1  ;;  %v4891_v58 = vsel %vm1552_vm1, %v1746_v47, %v1748_v61 }
 0x1be   : > { %6129 = vst [vmem:[#allocation83_spill] sm:$0xff] %v4888_v21  ;;  %v1750_v26 = vrot.slane %v4888_v21, 1  ;;  %v1422_v36 = vpop.f32.mrb[91].mxu1  ;;  %v4897_v59 = vsel %vm1552_vm1, %v1640_v27, %v1642_v3 }
 0x1bf   : > { %v4899_v38 = vpop.permute.xlu1 %1792 }
 0x1c0   : > { %2301 = vrot.lane.b32.xlu0 %v2084_v40, %s4110_s11  ;;  %v4903_v39 = vsel %vm1552_vm1, %v1748_v61, %v1750_v26  ;;  %v2085_v40 = vadd.f32 %v4742_v12, %v4414_v53 }
 0x1c1   : > { %v4905_v31 = vpop.permute.xlu0 %1794  ;;  %1940 = vrot.lane.b32.xlu1 %v4729_v1, %s4110_s11  ;;  %v4909_v47 = vpop.f32.mrb[92].mxu0 }
 0x1c2   : > { %6130 = vst [vmem:[#allocation84_spill] sm:$0xff] %v4905_v31  ;;  %6131 = vst [vmem:[#allocation85_spill] sm:$0xff] %v4909_v47  ;;  %v1644_v27 = vrot.slane %v4909_v47, 1  ;;  %v1211_v36 = vpop.f32.mrb[93].mxu0  ;;  %v4914_v21 = vpop.f32.mrb[92].mxu1 }
 0x1c3   : > { %6132 = vst [vmem:[#allocation86_spill] sm:$0xff] %v4914_v21  ;;  %v4918_v61 = vpop.permute.xlu1 %1900  ;;  %v4920_v42 = vpop.f32.mrb[94].mxu0  ;;  %v1752_v31 = vrot.slane %v4914_v21, 1 }
 0x1c4   : > { %6133 = vst [vmem:[#allocation87_spill] sm:$0xff] %v4920_v42  ;;  %2409 = vrot.lane.b32.xlu0 %v2138_v8, %s4110_s11  ;;  %v1646_v1 = vrot.slane %v4920_v42, 1  ;;  %v1214_v25 = vpop.f32.mrb[95].mxu0  ;;  %v1427_v2 = vpop.f32.mrb[93].mxu1  ;;  %v4926_v47 = vsel %vm1552_vm1, %v1642_v3, %v1644_v27 }
 0x1c5   : > { %v4928_v36 = vpop.permute.xlu0 %1902  ;;  %2303 = vrot.lane.b32.xlu1 %v2085_v40, %s4110_s11  ;;  %v4931_v12 = vpop.f32.mrb[94].mxu1  ;;  %v4934_v53 = vsel %vm1552_vm1, %v1750_v26, %v1752_v31  ;;  %v2139_v25 = vadd.f32 %v4763_v0, %v4411_v52 }
 0x1c6   : > { %6134 = vst [vmem:[#allocation88_spill] sm:$0xff] %v4931_v12  ;;  %v1754_v21 = vrot.slane %v4931_v12, 1  ;;  %v1430_v43 = vpop.f32.mrb[95].mxu1  ;;  %v4938_v8 = vsel %vm1552_vm1, %v1644_v27, %v1646_v1 }
 0x1c7   : > { %v4942_v3 = vpop.permute.xlu1 %1796 }
 0x1c8   : > { %1838 = vrot.lane.b32.xlu0 %v4773_v17, %s4110_s11  ;;  %v4947_v40 = vsel %vm1552_vm1, %v1752_v31, %v1754_v21 }
 0x1c9   : > { %v4949_v2 = vpop.permute.xlu0 %1798  ;;  %2411 = vrot.lane.b32.xlu1 %v2139_v25, %s4110_s11  ;;  %v4952_v26 = vpop.f32.mrb[96].mxu0 }
 0x1ca   : > { %6135 = vst [vmem:[#allocation89_spill] sm:$0xff] %v4949_v2  ;;  %6136 = vst [vmem:[#allocation90_spill] sm:$0xff] %v4952_v26  ;;  %v1648_v43 = vrot.slane %v4952_v26, 1  ;;  %v1219_v27 = vpop.f32.mrb[97].mxu0  ;;  %v4955_v12 = vpop.f32.mrb[96].mxu1 }
 0x1cb   : > { %6137 = vst [vmem:[#allocation91_spill] sm:$0xff] %v4955_v12  ;;  %v4957_v0 = vpop.permute.xlu1 %1904  ;;  %v4959_v42 = vpop.f32.mrb[98].mxu0  ;;  %v1756_v17 = vrot.slane %v4955_v12, 1 }
 0x1cc   : > { %6138 = vst [vmem:[#allocation92_spill] sm:$0xff] %v4957_v0  ;;  %6139 = vst [vmem:[#allocation93_spill] sm:$0xff] %v4959_v42  ;;  %1946 = vrot.lane.b32.xlu0 %v4780_v45, %s4110_s11  ;;  %v1650_v31 = vrot.slane %v4959_v42, 1  ;;  %v1222_v52 = vpop.f32.mrb[99].mxu0  ;;  %v1435_v25 = vpop.f32.mrb[97].mxu1  ;;  %v4966_v2 = vsel %vm1552_vm1, %v1646_v1, %v1648_v43  ;;  %v2086_v45 = vadd.f32 %v4776_v35, %v4419_v62 }
 0x1cd   : > { %v4968_v26 = vpop.permute.xlu0 %1906  ;;  %1836 = vrot.lane.b32.xlu1 %v4761_v9, %s4110_s11  ;;  %v4972_v27 = vpop.f32.mrb[98].mxu1  ;;  %v4975_v0 = vsel %vm1552_vm1, %v1754_v21, %v1756_v17  ;;  %v2140_v35 = vadd.f32 %v4790_v11, %v4421_v63 }
 0x1ce   : > { %6140 = vst [vmem:[#allocation94_spill] sm:$0xff] %v4972_v27  ;;  %v1758_v12 = vrot.slane %v4972_v27, 1  ;;  %v1438_v52 = vpop.f32.mrb[99].mxu1  ;;  %v4981_v25 = vsel %vm1552_vm1, %v1648_v43, %v1650_v31 }
 0x1cf   : > { %v4983_v1 = vpop.permute.xlu1 %1800 }
 0x1d0   : > { %6141 = vst [vmem:[#allocation95_spill] sm:$0xff] %v4983_v1  ;;  %2305 = vrot.lane.b32.xlu0 %v2086_v45, %s4110_s11  ;;  %v4987_v9 = vsel %vm1552_vm1, %v1756_v17, %v1758_v12  ;;  %v2087_v45 = vadd.f32 %v4782_v5, %v4434_v14 }
 0x1d1   : > { %v4989_v42 = vpop.permute.xlu0 %1802  ;;  %1944 = vrot.lane.b32.xlu1 %v4769_v30, %s4110_s11  ;;  %v4993_v21 = vpop.f32.mrb[100].mxu0 }
 0x1d2   : > { %6142 = vst [vmem:[#allocation96_spill] sm:$0xff] %v4989_v42  ;;  %6143 = vst [vmem:[#allocation97_spill] sm:$0xff] %v4993_v21  ;;  %v1652_v43 = vrot.slane %v4993_v21, 1  ;;  %v1227_v52 = vpop.f32.mrb[101].mxu0  ;;  %v4998_v27 = vpop.f32.mrb[100].mxu1 }
 0x1d3   : > { %v5002_v17 = vpop.permute.xlu1 %1908  ;;  %v5004_v62 = vpop.f32.mrb[102].mxu0  ;;  %v6039_v42 = vrot.slane %v4998_v27, 1 }
 0x1d4   : > { %6144 = vst [vmem:[#allocation98_spill] sm:$0xff] %v5004_v62  ;;  %2413 = vrot.lane.b32.xlu0 %v2140_v35, %s4110_s11  ;;  %v1654_v30 = vrot.slane %v5004_v62, 1  ;;  %v1230_v1 = vpop.f32.mrb[103].mxu0  ;;  %v1443_v11 = vpop.f32.mrb[101].mxu1  ;;  %v5010_v21 = vsel %vm1552_vm1, %v1650_v31, %v1652_v43 }
 0x1d5   : > { %v5012_v52 = vpop.permute.xlu0 %1910  ;;  %2307 = vrot.lane.b32.xlu1 %v2087_v45, %s4110_s11  ;;  %v1444_v5 = vpop.f32.mrb[102].mxu1  ;;  %v5018_v14 = vsel %vm1552_vm1, %v1758_v12, %v6039_v42  ;;  %v2141_v1 = vadd.f32 %v4800_v4, %v4431_v13 }
 0x1d6   : > { %v1445_v63 = vpop.f32.mrb[103].mxu1  ;;  %v5021_v35 = vsel %vm1552_vm1, %v1652_v43, %v1654_v30 }
 0x1d7   : > { %v5025_v11 = vpop.permute.xlu1 %1804 }
 0x1d8   : > { %1842 = vrot.lane.b32.xlu0 %v4813_v10, %s4110_s11 }
 0x1d9   : > { %v5029_v31 = vpop.permute.xlu0 %1806  ;;  %2415 = vrot.lane.b32.xlu1 %v2141_v1, %s4110_s11  ;;  %v5032_v45 = vpop.f32.mrb[104].mxu0  ;;  %v2088_v1 = vadd.f32 %v4815_v28, %v4439_v19  ;;  %v2089_v28 = vadd.f32 %v4821_v51, %v4454_v34 }
 0x1da   : > { %6145 = vst [vmem:[#allocation99_spill] sm:$0xff] %v5032_v45  ;;  %v1656_v12 = vrot.slane %v5032_v45, 1  ;;  %v1235_v63 = vpop.f32.mrb[105].mxu0 }
 0x1db   : > { %v5035_v5 = vpop.permute.xlu1 %1912  ;;  %v5037_v43 = vpop.f32.mrb[106].mxu0 }
 0x1dc   : > { %1950 = vrot.lane.b32.xlu0 %v4819_v15, %s4110_s11  ;;  %v6042_v4 = vrot.slane %v5037_v43, 1  ;;  %v1238_v42 = vpop.f32.mrb[107].mxu0  ;;  %v5043_v10 = vsel %vm1552_vm1, %v1654_v30, %v1656_v12 }
 0x1dd   : > { %v5045_v62 = vpop.permute.xlu0 %1914  ;;  %1840 = vrot.lane.b32.xlu1 %v4798_v32, %s4110_s11  ;;  %v2142_v32 = vadd.f32 %v4834_v23, %v4441_v22 }
 0x1de   : > { %v5054_v63 = vsel %vm1552_vm1, %v1656_v12, %v6042_v4 }
 0x1df   : > { %v5056_v15 = vpop.permute.xlu1 %1808 }
 0x1e0   : > { %2309 = vrot.lane.b32.xlu0 %v2088_v1, %s4110_s11  ;;  %v2143_v1 = vadd.f32 %v4844_v20, %v4451_v33  ;;  %v2090_v20 = vadd.f32 %v4858_v16, %v4459_v41 }
 0x1e1   : > { %v5059_v42 = vpop.permute.xlu0 %1810  ;;  %1948 = vrot.lane.b32.xlu1 %v4807_v46, %s4110_s11 }
 0x1e3   : > { %v5067_v30 = vpop.permute.xlu1 %1916 }
 0x1e4   : > { %2417 = vrot.lane.b32.xlu0 %v2142_v32, %s4110_s11 }
 0x1e5   : > { %v5070_v12 = vpop.permute.xlu0 %1918  ;;  %2311 = vrot.lane.b32.xlu1 %v2089_v28, %s4110_s11  ;;  %v2091_v28 = vadd.f32 %v4865_v56, %v4474_v60 }
 0x1e7   : > { %v5075_v4 = vpop.permute.xlu1 %1812 }
 0x1e8   : > { %1846 = vrot.lane.b32.xlu0 %v4854_v18, %s4110_s11 }
 0x1e9   : > { %v5079_v46 = vpop.permute.xlu0 %1814  ;;  %2419 = vrot.lane.b32.xlu1 %v2143_v1, %s4110_s11  ;;  %v2145_v1 = vadd.f32 %v4884_v48, %v4471_v57 }
 0x1eb   : > { %v5082_v51 = vpop.permute.xlu1 %1920 }
 0x1ec   : > { %1954 = vrot.lane.b32.xlu0 %v4863_v29, %s4110_s11  ;;  %v2144_v29 = vadd.f32 %v4873_v50, %v4461_v44 }
 0x1ed   : > { %v5086_v23 = vpop.permute.xlu0 %1922  ;;  %1844 = vrot.lane.b32.xlu1 %v4842_v49, %s4110_s11 }
 0x1ef   : > { %v5092_v32 = vpop.permute.xlu1 %1816 }
 0x1f0   : > { %2313 = vrot.lane.b32.xlu0 %v2090_v20, %s4110_s11 }
 0x1f1   : > { %v5095_v18 = vpop.permute.xlu0 %1818  ;;  %1952 = vrot.lane.b32.xlu1 %v4850_v37, %s4110_s11  ;;  %v5114_v37 = vld [vmem:[%s5879_s2] ss:$0 sm:$0xff] }
 0x1f3   : > { %v5103_v49 = vpop.permute.xlu1 %1924 }
 0x1f4   : > { %2421 = vrot.lane.b32.xlu0 %v2144_v29, %s4110_s11 }
 0x1f5   : > { %v5106_v16 = vpop.permute.xlu0 %1926  ;;  %2315 = vrot.lane.b32.xlu1 %v2091_v28, %s4110_s11 }
 0x1f7   : > { %v2288_v50 = vpop.permute.xlu1 %2287 }
 0x1f8   : > { %v2602_v20 = vmax.f32 %v4335_v54, %v2288_v50  ;;  %1850 = vrot.lane.b32.xlu0 %v4897_v59, %s4110_s11  ;;  %v2092_v54 = vadd.f32 %v4899_v38, %v4479_v6  ;;  %v6148_v6 = vld [vmem:[#allocation2_spill] sm:$0xff] }
 0x1f9   : > { %2423 = vrot.lane.b32.xlu1 %v2145_v1, %s4110_s11 }
 0x1fa   : > { %v2714_v56 = vadd.f32 %v5114_v37, %v2602_v20  ;;  %v5122_v29 = vpop.permute.xlu0 %1822 }
 0x1fb   : > { %v2396_v28 = vpop.permute.xlu1 %2395 }
 0x1fc   : > { %v2819_v48 = vmax.f32 %v2714_v56, 0.0  ;;  %v2656_v45 = vmax.f32 %v4337_v55, %v2396_v28  ;;  %1958 = vrot.lane.b32.xlu0 %v4903_v39, %s4110_s11  ;;  %v6146_v28 = vld [vmem:[#allocation25_spill] sm:$0xff] }
 0x1fd   : > { %1848 = vrot.lane.b32.xlu1 %v4882_v24, %s4110_s11  ;;  %v2146_v24 = vadd.f32 %v4918_v61, %v4481_v7  ;;  %v6149_v61 = vld [vmem:[#allocation24_spill] sm:$0xff] }
 0x1fe   : > { %v3795_v59 = vpack.c.bf16 %v2819_v48, %v2819_v48  ;;  %v2768_v1 = vadd.f32 %v5114_v37, %v2656_v45  ;;  %v5137_v50 = vpop.permute.xlu0 %1930  ;;  %v6147_v48 = vld [vmem:[#allocation84_spill] sm:$0xff] }
 0x1ff   : > { %v5139_v39 = vpop.permute.xlu1 %1820  ;;  %v2093_v45 = vadd.f32 %v6147_v48, %v6146_v28 }
 0x200   : > { %3346 = vst.msk [vmem:[%s5130_s19] sm:$0xf] %vm3345_vm2, %v3795_v59  ;;  %v2873_v20 = vmax.f32 %v2768_v1, 0.0  ;;  %2317 = vrot.lane.b32.xlu0 %v2092_v54, %s4110_s11  ;;  %v2147_v59 = vadd.f32 %v4928_v36, %v6149_v61 }
 0x201   : > { %1956 = vrot.lane.b32.xlu1 %v4891_v58, %s4110_s11 }
 0x202   : > { %v3849_v56 = vpack.c.bf16 %v2873_v20, %v2873_v20  ;;  %v2290_v38 = vpop.permute.xlu0 %2289  ;;  %v6150_v20 = vld [vmem:[#allocation3_spill] sm:$0xff] }
 0x203   : > { %v2603_v57 = vmax.f32 %v6148_v6, %v2290_v38  ;;  %v5151_v60 = vpop.permute.xlu1 %1928  ;;  %v6151_v6 = vld [vmem:[#allocation4_spill] sm:$0xff] }
 0x204   : > { %3400 = vst.msk [vmem:[%s5130_s19 + $0xd8] sm:$0xf] %vm3345_vm2, %v3849_v56  ;;  %2425 = vrot.lane.b32.xlu0 %v2146_v24, %s4110_s11 }
 0x205   : > { %v2715_v54 = vadd.f32 %v5114_v37, %v2603_v57  ;;  %2319 = vrot.lane.b32.xlu1 %v2093_v45, %s4110_s11 }
 0x206   : > { %v2398_v58 = vpop.permute.xlu0 %2397 }
 0x207   : > { %v2820_v1 = vmax.f32 %v2715_v54, 0.0  ;;  %v2657_v48 = vmax.f32 %v6150_v20, %v2398_v58  ;;  %v2292_v28 = vpop.permute.xlu1 %2291 }
 0x208   : > { %v2604_v38 = vmax.f32 %v6151_v6, %v2292_v28  ;;  %1854 = vrot.lane.b32.xlu0 %v4938_v8, %s4110_s11  ;;  %v6152_v28 = vld [vmem:[#allocation5_spill] sm:$0xff] }
 0x209   : > { %v3796_v56 = vpack.c.bf16 %v2820_v1, %v2820_v1  ;;  %v2769_v24 = vadd.f32 %v5114_v37, %v2657_v48  ;;  %2427 = vrot.lane.b32.xlu1 %v2147_v59, %s4110_s11  ;;  %v6153_v59 = vld [vmem:[#allocation26_spill] sm:$0xff] }
 0x20a   : > { %v2716_v57 = vadd.f32 %v5114_v37, %v2604_v38  ;;  %v5167_v45 = vpop.permute.xlu0 %1826  ;;  %v2094_v1 = vadd.f32 %v4942_v3, %v6153_v59  ;;  %v6155_v3 = vld [vmem:[#allocation92_spill] sm:$0xff] }
 0x20b   : > { %3347 = vst.msk [vmem:[%s5130_s19 + $0x4] sm:$0xf] %vm3345_vm2, %v3796_v56  ;;  %v2874_v36 = vmax.f32 %v2769_v24, 0.0  ;;  %v2400_v54 = vpop.permute.xlu1 %2399 }
 0x20c   : > { %v2821_v58 = vmax.f32 %v2716_v57, 0.0  ;;  %v2658_v20 = vmax.f32 %v6152_v28, %v2400_v54  ;;  %1962 = vrot.lane.b32.xlu0 %v4947_v40, %s4110_s11  ;;  %v6156_v54 = vld [vmem:[#allocation29_spill] sm:$0xff] }
 0x20d   : > { %v3850_v8 = vpack.c.bf16 %v2874_v36, %v2874_v36  ;;  %1852 = vrot.lane.b32.xlu1 %v4926_v47, %s4110_s11  ;;  %v6154_v47 = vld [vmem:[#allocation27_spill] sm:$0xff] }
 0x20e   : > { %v3797_v48 = vpack.c.bf16 %v2821_v58, %v2821_v58  ;;  %v2770_v6 = vadd.f32 %v5114_v37, %v2658_v20  ;;  %v5179_v38 = vpop.permute.xlu0 %1934  ;;  %v2148_v24 = vadd.f32 %v6155_v3, %v6154_v47  ;;  %v6157_v58 = vld [vmem:[#allocation89_spill] sm:$0xff]  ;;  %v6158_v20 = vld [vmem:[#allocation7_spill] sm:$0xff]  ;;  %v6160_v3 = vld [vmem:[#allocation6_spill] sm:$0xff] }
 0x20f   : > { %3401 = vst.msk [vmem:[%s5130_s19 + $0xdc] sm:$0xf] %vm3345_vm2, %v3850_v8  ;;  %v5183_v56 = vpop.permute.xlu1 %1824  ;;  %v2095_v28 = vadd.f32 %v6157_v58, %v6156_v54 }
 0x210   : > { %3348 = vst.msk [vmem:[%s5130_s19 + $0x8] sm:$0xf] %vm3345_vm2, %v3797_v48  ;;  %v2875_v40 = vmax.f32 %v2770_v6, 0.0  ;;  %2321 = vrot.lane.b32.xlu0 %v2094_v1, %s4110_s11 }
 0x211   : > { %1960 = vrot.lane.b32.xlu1 %v4934_v53, %s4110_s11  ;;  %v6159_v53 = vld [vmem:[#allocation28_spill] sm:$0xff] }
 0x212   : > { %v3851_v57 = vpack.c.bf16 %v2875_v40, %v2875_v40  ;;  %v2294_v36 = vpop.permute.xlu0 %2293  ;;  %v2149_v48 = vadd.f32 %v4968_v26, %v6159_v53 }
 0x213   : > { %v2605_v8 = vmax.f32 %v6158_v20, %v2294_v36  ;;  %v5195_v59 = vpop.permute.xlu1 %1932  ;;  %v6161_v36 = vld [vmem:[#allocation9_spill] sm:$0xff] }
 0x214   : > { %3402 = vst.msk [vmem:[%s5130_s19 + $0xe0] sm:$0xf] %vm3345_vm2, %v3851_v57  ;;  %2429 = vrot.lane.b32.xlu0 %v2148_v24, %s4110_s11 }
 0x215   : > { %v2717_v1 = vadd.f32 %v5114_v37, %v2605_v8  ;;  %2323 = vrot.lane.b32.xlu1 %v2095_v28, %s4110_s11 }
 0x216   : > { %v2402_v6 = vpop.permute.xlu0 %2401 }
 0x217   : > { %v2822_v40 = vmax.f32 %v2717_v1, 0.0  ;;  %v2659_v58 = vmax.f32 %v6160_v3, %v2402_v6  ;;  %v2296_v54 = vpop.permute.xlu1 %2295 }
 0x218   : > { %v2606_v20 = vmax.f32 %v6161_v36, %v2296_v54  ;;  %2431 = vrot.lane.b32.xlu0 %v2149_v48, %s4110_s11  ;;  %v6162_v54 = vld [vmem:[#allocation8_spill] sm:$0xff] }
 0x219   : > { %v3798_v57 = vpack.c.bf16 %v2822_v40, %v2822_v40  ;;  %v2771_v47 = vadd.f32 %v5114_v37, %v2659_v58  ;;  %1856 = vrot.lane.b32.xlu1 %v4966_v2, %s4110_s11  ;;  %v6163_v58 = vld [vmem:[#allocation31_spill] sm:$0xff] }
 0x21a   : > { %v2718_v24 = vadd.f32 %v5114_v37, %v2606_v20  ;;  %v5211_v26 = vpop.permute.xlu0 %1830  ;;  %v6165_v20 = vld [vmem:[#allocation95_spill] sm:$0xff] }
 0x21b   : > { %3349 = vst.msk [vmem:[%s5130_s19 + $0xc] sm:$0xf] %vm3345_vm2, %v3798_v57  ;;  %v2876_v28 = vmax.f32 %v2771_v47, 0.0  ;;  %v2404_v8 = vpop.permute.xlu1 %2403  ;;  %v2150_v47 = vadd.f32 %v5002_v17, %v6163_v58 }
 0x21c   : > { %v2823_v1 = vmax.f32 %v2718_v24, 0.0  ;;  %v2660_v6 = vmax.f32 %v6162_v54, %v2404_v8  ;;  %1858 = vrot.lane.b32.xlu0 %v4981_v25, %s4110_s11  ;;  %v6166_v8 = vld [vmem:[#allocation33_spill] sm:$0xff]  ;;  %v6168_v54 = vld [vmem:[#allocation10_spill] sm:$0xff] }
 0x21d   : > { %v3852_v48 = vpack.c.bf16 %v2876_v28, %v2876_v28  ;;  %1964 = vrot.lane.b32.xlu1 %v4975_v0, %s4110_s11  ;;  %v6164_v0 = vld [vmem:[#allocation30_spill] sm:$0xff] }
 0x21e   : > { %v3799_v2 = vpack.c.bf16 %v2823_v1, %v2823_v1  ;;  %v2772_v40 = vadd.f32 %v5114_v37, %v2660_v6  ;;  %v5221_v3 = vpop.permute.xlu0 %1938  ;;  %v2096_v57 = vadd.f32 %v6165_v20, %v6164_v0  ;;  %v6167_v1 = vld [vmem:[#allocation96_spill] sm:$0xff]  ;;  %v6170_v0 = vld [vmem:[#allocation13_spill] sm:$0xff] }
 0x21f   : > { %3403 = vst.msk [vmem:[%s5130_s19 + $0xe4] sm:$0xf] %vm3345_vm2, %v3852_v48  ;;  %v5227_v36 = vpop.permute.xlu1 %1828  ;;  %v2097_v17 = vadd.f32 %v6167_v1, %v6166_v8 }
 0x220   : > { %3350 = vst.msk [vmem:[%s5130_s19 + $0x10] sm:$0xf] %vm3345_vm2, %v3799_v2  ;;  %v2877_v25 = vmax.f32 %v2772_v40, 0.0  ;;  %1966 = vrot.lane.b32.xlu0 %v4987_v9, %s4110_s11 }
 0x221   : > { %2433 = vrot.lane.b32.xlu1 %v2150_v47, %s4110_s11  ;;  %v6169_v47 = vld [vmem:[#allocation11_spill] sm:$0xff] }
 0x222   : > { %v3853_v24 = vpack.c.bf16 %v2877_v25, %v2877_v25  ;;  %v2298_v28 = vpop.permute.xlu0 %2297 }
 0x223   : > { %v2607_v6 = vmax.f32 %v6168_v54, %v2298_v28  ;;  %v5239_v48 = vpop.permute.xlu1 %1936  ;;  %v6171_v28 = vrot.slane %v4998_v27, 1 }
 0x224   : > { %3404 = vst.msk [vmem:[%s5130_s19 + $0xe8] sm:$0xf] %vm3345_vm2, %v3853_v24  ;;  %2325 = vrot.lane.b32.xlu0 %v2096_v57, %s4110_s11  ;;  %v6172_v57 = vld [vmem:[#allocation32_spill] sm:$0xff] }
 0x225   : > { %v2719_v9 = vadd.f32 %v5114_v37, %v2607_v6  ;;  %2327 = vrot.lane.b32.xlu1 %v2097_v17, %s4110_s11  ;;  %v2151_v17 = vadd.f32 %v5012_v52, %v6172_v57 }
 0x226   : > { %v2406_v2 = vpop.permute.xlu0 %2405 }
 0x227   : > { %v2824_v40 = vmax.f32 %v2719_v9, 0.0  ;;  %v2661_v25 = vmax.f32 %v6169_v47, %v2406_v2  ;;  %v2300_v20 = vpop.permute.xlu1 %2299 }
 0x228   : > { %v2608_v1 = vmax.f32 %v6170_v0, %v2300_v20  ;;  %1970 = vrot.lane.b32.xlu0 %v6171_v28, %s4110_s11  ;;  %v6174_v28 = vld [vmem:[#allocation35_spill] sm:$0xff] }
 0x229   : > { %v3800_v54 = vpack.c.bf16 %v2824_v40, %v2824_v40  ;;  %v2773_v24 = vadd.f32 %v5114_v37, %v2661_v25  ;;  %1860 = vrot.lane.b32.xlu1 %v5010_v21, %s4110_s11  ;;  %v6173_v40 = vld [vmem:[#allocation12_spill] sm:$0xff] }
 0x22a   : > { %v2720_v6 = vadd.f32 %v5114_v37, %v2608_v1  ;;  %v5257_v9 = vpop.permute.xlu0 %1834 }
 0x22b   : > { %3351 = vst.msk [vmem:[%s5130_s19 + $0x14] sm:$0xf] %vm3345_vm2, %v3800_v54  ;;  %v2878_v0 = vmax.f32 %v2773_v24, 0.0  ;;  %v2408_v2 = vpop.permute.xlu1 %2407  ;;  %v2152_v54 = vadd.f32 %v5035_v5, %v6174_v28 }
 0x22c   : > { %v2825_v47 = vmax.f32 %v2720_v6, 0.0  ;;  %v2662_v20 = vmax.f32 %v6173_v40, %v2408_v2  ;;  %2435 = vrot.lane.b32.xlu0 %v2151_v17, %s4110_s11  ;;  %v6177_v40 = vld [vmem:[#allocation14_spill] sm:$0xff] }
 0x22d   : > { %v3854_v25 = vpack.c.bf16 %v2878_v0, %v2878_v0  ;;  %1968 = vrot.lane.b32.xlu1 %v5018_v14, %s4110_s11  ;;  %v6175_v14 = vld [vmem:[#allocation34_spill] sm:$0xff] }
 0x22e   : > { %v3801_v21 = vpack.c.bf16 %v2825_v47, %v2825_v47  ;;  %v2774_v52 = vadd.f32 %v5114_v37, %v2662_v20  ;;  %v5266_v1 = vpop.permute.xlu0 %1942  ;;  %v2098_v6 = vadd.f32 %v5025_v11, %v6175_v14  ;;  %v6176_v47 = vld [vmem:[#allocation37_spill] sm:$0xff] }
 0x22f   : > { %3405 = vst.msk [vmem:[%s5130_s19 + $0xec] sm:$0xf] %vm3345_vm2, %v3854_v25  ;;  %v5272_v24 = vpop.permute.xlu1 %1832  ;;  %v2099_v5 = vadd.f32 %v5029_v31, %v6176_v47 }
 0x230   : > { %3352 = vst.msk [vmem:[%s5130_s19 + $0x18] sm:$0xf] %vm3345_vm2, %v3801_v21  ;;  %v2879_v17 = vmax.f32 %v2774_v52, 0.0  ;;  %1862 = vrot.lane.b32.xlu0 %v5021_v35, %s4110_s11  ;;  %v6178_v21 = vld [vmem:[#allocation36_spill] sm:$0xff] }
 0x231   : > { %2437 = vrot.lane.b32.xlu1 %v2152_v54, %s4110_s11  ;;  %v2153_v11 = vadd.f32 %v5045_v62, %v6178_v21 }
 0x232   : > { %v3855_v0 = vpack.c.bf16 %v2879_v17, %v2879_v17  ;;  %v2302_v2 = vpop.permute.xlu0 %2301  ;;  %v6179_v17 = vld [vmem:[#allocation15_spill] sm:$0xff] }
 0x233   : > { %v2609_v20 = vmax.f32 %v6177_v40, %v2302_v2  ;;  %v5284_v25 = vpop.permute.xlu1 %1940  ;;  %v6180_v2 = vld [vmem:[#allocation17_spill] sm:$0xff] }
 0x234   : > { %3406 = vst.msk [vmem:[%s5130_s19 + $0xf0] sm:$0xf] %vm3345_vm2, %v3855_v0  ;;  %2329 = vrot.lane.b32.xlu0 %v2098_v6, %s4110_s11 }
 0x235   : > { %v2721_v35 = vadd.f32 %v5114_v37, %v2609_v20  ;;  %2331 = vrot.lane.b32.xlu1 %v2099_v5, %s4110_s11 }
 0x236   : > { %v2410_v52 = vpop.permute.xlu0 %2409 }
 0x237   : > { %v2826_v54 = vmax.f32 %v2721_v35, 0.0  ;;  %v2663_v31 = vmax.f32 %v6179_v17, %v2410_v52  ;;  %v2304_v47 = vpop.permute.xlu1 %2303 }
 0x238   : > { %v2610_v40 = vmax.f32 %v6180_v2, %v2304_v47  ;;  %2439 = vrot.lane.b32.xlu0 %v2153_v11, %s4110_s11  ;;  %v6181_v47 = vld [vmem:[#allocation16_spill] sm:$0xff]  ;;  %v6182_v11 = vrot.slane %v4337_v55, 1 }
 0x239   : > { %v3802_v0 = vpack.c.bf16 %v2826_v54, %v2826_v54  ;;  %v2775_v14 = vadd.f32 %v5114_v37, %v2663_v31  ;;  %1864 = vrot.lane.b32.xlu1 %v5043_v10, %s4110_s11  ;;  %v6183_v10 = vrot.slane %v5037_v43, 1  ;;  %v6184_v31 = vld [vmem:[#allocation38_spill] sm:$0xff] }
 0x23a   : > { %v2722_v6 = vadd.f32 %v5114_v37, %v2610_v40  ;;  %v5300_v5 = vpop.permute.xlu0 %1838  ;;  %v2100_v2 = vadd.f32 %v5056_v15, %v6184_v31  ;;  %v6186_v15 = vld [vmem:[#allocation40_spill] sm:$0xff] }
 0x23b   : > { %3353 = vst.msk [vmem:[%s5130_s19 + $0x1c] sm:$0xf] %vm3345_vm2, %v3802_v0  ;;  %v2880_v62 = vmax.f32 %v2775_v14, 0.0  ;;  %v2412_v20 = vpop.permute.xlu1 %2411  ;;  %v1661_v54 = vsel %vm1552_vm1, %v6183_v10, %v6182_v11 }
 0x23c   : > { %v2827_v35 = vmax.f32 %v2722_v6, 0.0  ;;  %v2664_v52 = vmax.f32 %v6181_v47, %v2412_v20  ;;  %1866 = vrot.lane.b32.xlu0 %v5054_v63, %s4110_s11  ;;  %v6185_v6 = vld [vmem:[#allocation39_spill] sm:$0xff]  ;;  %v2155_v20 = vadd.f32 %v5070_v12, %v6186_v15 }
 0x23d   : > { %v3856_v17 = vpack.c.bf16 %v2880_v62, %v2880_v62  ;;  %1868 = vrot.lane.b32.xlu1 %v1661_v54, %s4110_s11  ;;  %v2154_v63 = vadd.f32 %v5067_v30, %v6185_v6  ;;  %v6188_v30 = vld [vmem:[#allocation18_spill] sm:$0xff] }
 0x23e   : > { %v3803_v14 = vpack.c.bf16 %v2827_v35, %v2827_v35  ;;  %v2776_v40 = vadd.f32 %v5114_v37, %v2664_v52  ;;  %v5316_v0 = vpop.permute.xlu0 %1946  ;;  %v6187_v52 = vld [vmem:[#allocation41_spill] sm:$0xff] }
 0x23f   : > { %3407 = vst.msk [vmem:[%s5130_s19 + $0xf4] sm:$0xf] %vm3345_vm2, %v3856_v17  ;;  %v5322_v55 = vpop.permute.xlu1 %1836  ;;  %v2101_v11 = vadd.f32 %v5059_v42, %v6187_v52  ;;  %v6192_v52 = vld [vmem:[#allocation20_spill] sm:$0xff] }
 0x240   : > { %3354 = vst.msk [vmem:[%s5130_s19 + $0x20] sm:$0xf] %vm3345_vm2, %v3803_v14  ;;  %v2881_v62 = vmax.f32 %v2776_v40, 0.0  ;;  %2333 = vrot.lane.b32.xlu0 %v2100_v2, %s4110_s11  ;;  %v6189_v2 = vld [vmem:[#allocation42_spill] sm:$0xff]  ;;  %v6190_v40 = vld [vmem:[#allocation43_spill] sm:$0xff] }
 0x241   : > { %2441 = vrot.lane.b32.xlu1 %v2154_v63, %s4110_s11  ;;  %v2102_v12 = vadd.f32 %v5075_v4, %v6189_v2  ;;  %v2156_v42 = vadd.f32 %v5082_v51, %v6190_v40 }
 0x242   : > { %v3857_v35 = vpack.c.bf16 %v2881_v62, %v2881_v62  ;;  %v2306_v47 = vpop.permute.xlu0 %2305  ;;  %v6191_v62 = vld [vmem:[#allocation19_spill] sm:$0xff] }
 0x243   : > { %v2611_v10 = vmax.f32 %v6188_v30, %v2306_v47  ;;  %v5333_v54 = vpop.permute.xlu1 %1944 }
 0x244   : > { %3408 = vst.msk [vmem:[%s5130_s19 + $0xf8] sm:$0xf] %vm3345_vm2, %v3857_v35  ;;  %2443 = vrot.lane.b32.xlu0 %v2155_v20, %s4110_s11 }
 0x245   : > { %v2723_v17 = vadd.f32 %v5114_v37, %v2611_v10  ;;  %2335 = vrot.lane.b32.xlu1 %v2101_v11, %s4110_s11  ;;  %v6193_v11 = vld [vmem:[#allocation44_spill] sm:$0xff] }
 0x246   : > { %v2414_v14 = vpop.permute.xlu0 %2413  ;;  %v2157_v4 = vadd.f32 %v5086_v23, %v6193_v11  ;;  %v6195_v23 = vld [vmem:[#allocation46_spill] sm:$0xff] }
 0x247   : > { %v2828_v63 = vmax.f32 %v2723_v17, 0.0  ;;  %v2665_v47 = vmax.f32 %v6191_v62, %v2414_v14  ;;  %v2308_v30 = vpop.permute.xlu1 %2307  ;;  %v6194_v17 = vld [vmem:[#allocation45_spill] sm:$0xff] }
 0x248   : > { %v2612_v35 = vmax.f32 %v6192_v52, %v2308_v30  ;;  %2337 = vrot.lane.b32.xlu0 %v2102_v12, %s4110_s11  ;;  %v2103_v14 = vadd.f32 %v5079_v46, %v6194_v17 }
 0x249   : > { %v3804_v20 = vpack.c.bf16 %v2828_v63, %v2828_v63  ;;  %v2777_v10 = vadd.f32 %v5114_v37, %v2665_v47  ;;  %2445 = vrot.lane.b32.xlu1 %v2156_v42, %s4110_s11  ;;  %v2104_v47 = vadd.f32 %v5092_v32, %v6195_v23  ;;  %v6197_v32 = vld [vmem:[#allocation48_spill] sm:$0xff] }
 0x24a   : > { %v2724_v2 = vadd.f32 %v5114_v37, %v2612_v35  ;;  %v5352_v51 = vpop.permute.xlu0 %1842 }
 0x24b   : > { %3355 = vst.msk [vmem:[%s5130_s19 + $0x24] sm:$0xf] %vm3345_vm2, %v3804_v20  ;;  %v2882_v52 = vmax.f32 %v2777_v10, 0.0  ;;  %v2416_v12 = vpop.permute.xlu1 %2415  ;;  %v6196_v20 = vld [vmem:[#allocation47_spill] sm:$0xff] }
 0x24c   : > { %v2829_v63 = vmax.f32 %v2724_v2, 0.0  ;;  %v2666_v62 = vmax.f32 %v4431_v13, %v2416_v12  ;;  %2447 = vrot.lane.b32.xlu0 %v2157_v4, %s4110_s11  ;;  %v2158_v10 = vadd.f32 %v5103_v49, %v6196_v20  ;;  %v2159_v4 = vadd.f32 %v5106_v16, %v6197_v32  ;;  %v6198_v12 = vld [vmem:[#allocation49_spill] sm:$0xff] }
 0x24d   : > { %v3858_v42 = vpack.c.bf16 %v2882_v52, %v2882_v52  ;;  %2339 = vrot.lane.b32.xlu1 %v2103_v14, %s4110_s11 }
 0x24e   : > { %v3805_v30 = vpack.c.bf16 %v2829_v63, %v2829_v63  ;;  %v2778_v46 = vadd.f32 %v5114_v37, %v2666_v62  ;;  %v5364_v35 = vpop.permute.xlu0 %1950  ;;  %v2105_v63 = vadd.f32 %v5095_v18, %v6198_v12 }
 0x24f   : > { %3409 = vst.msk [vmem:[%s5130_s19 + $0xfc] sm:$0xf] %vm3345_vm2, %v3858_v42  ;;  %v5370_v13 = vpop.permute.xlu1 %1840 }
 0x250   : > { %3356 = vst.msk [vmem:[%s5130_s19 + $0x28] sm:$0xf] %vm3345_vm2, %v3805_v30  ;;  %v2883_v2 = vmax.f32 %v2778_v46, 0.0  ;;  %2341 = vrot.lane.b32.xlu0 %v2104_v47, %s4110_s11  ;;  %v6199_v47 = vld [vmem:[#allocation50_spill] sm:$0xff]  ;;  %v6200_v46 = vld [vmem:[#allocation51_spill] sm:$0xff] }
 0x251   : > { %2449 = vrot.lane.b32.xlu1 %v2158_v10, %s4110_s11  ;;  %v2106_v16 = vadd.f32 %v5139_v39, %v6199_v47  ;;  %v2160_v18 = vadd.f32 %v5151_v60, %v6200_v46 }
 0x252   : > { %v3859_v14 = vpack.c.bf16 %v2883_v2, %v2883_v2  ;;  %v2310_v52 = vpop.permute.xlu0 %2309 }
 0x253   : > { %v2613_v49 = vmax.f32 %v4439_v19, %v2310_v52  ;;  %v5381_v62 = vpop.permute.xlu1 %1948 }
 0x254   : > { %3410 = vst.msk [vmem:[%s5130_s19 + $0x100] sm:$0xf] %vm3345_vm2, %v3859_v14  ;;  %2451 = vrot.lane.b32.xlu0 %v2159_v4, %s4110_s11 }
 0x255   : > { %v2725_v42 = vadd.f32 %v5114_v37, %v2613_v49  ;;  %2343 = vrot.lane.b32.xlu1 %v2105_v63, %s4110_s11  ;;  %v6201_v63 = vld [vmem:[#allocation52_spill] sm:$0xff] }
 0x256   : > { %v2418_v30 = vpop.permute.xlu0 %2417  ;;  %v2161_v39 = vadd.f32 %v5137_v50, %v6201_v63  ;;  %v6203_v50 = vld [vmem:[#allocation55_spill] sm:$0xff] }
 0x257   : > { %v2830_v10 = vmax.f32 %v2725_v42, 0.0  ;;  %v2667_v19 = vmax.f32 %v4441_v22, %v2418_v30  ;;  %v2312_v2 = vpop.permute.xlu1 %2311  ;;  %v6202_v42 = vld [vmem:[#allocation53_spill] sm:$0xff] }
 0x258   : > { %v2614_v14 = vmax.f32 %v4454_v34, %v2312_v2  ;;  %2345 = vrot.lane.b32.xlu0 %v2106_v16, %s4110_s11  ;;  %v2107_v22 = vadd.f32 %v5122_v29, %v6202_v42 }
 0x259   : > { %v3806_v4 = vpack.c.bf16 %v2830_v10, %v2830_v10  ;;  %v2779_v52 = vadd.f32 %v5114_v37, %v2667_v19  ;;  %2453 = vrot.lane.b32.xlu1 %v2160_v18, %s4110_s11  ;;  %v2108_v19 = vadd.f32 %v5183_v56, %v6203_v50  ;;  %v6205_v56 = vld [vmem:[#allocation56_spill] sm:$0xff] }
 0x25a   : > { %v2726_v49 = vadd.f32 %v5114_v37, %v2614_v14  ;;  %v5400_v60 = vpop.permute.xlu0 %1846 }
 0x25b   : > { %3357 = vst.msk [vmem:[%s5130_s19 + $0x2c] sm:$0xf] %vm3345_vm2, %v3806_v4  ;;  %v2884_v34 = vmax.f32 %v2779_v52, 0.0  ;;  %v2420_v16 = vpop.permute.xlu1 %2419  ;;  %v6204_v4 = vld [vmem:[#allocation54_spill] sm:$0xff] }
 0x25c   : > { %v2831_v30 = vmax.f32 %v2726_v49, 0.0  ;;  %v2668_v10 = vmax.f32 %v4451_v33, %v2420_v16  ;;  %2455 = vrot.lane.b32.xlu0 %v2161_v39, %s4110_s11  ;;  %v2162_v52 = vadd.f32 %v5195_v59, %v6204_v4  ;;  %v2163_v49 = vadd.f32 %v5179_v38, %v6205_v56  ;;  %v6206_v16 = vld [vmem:[#allocation57_spill] sm:$0xff] }
 0x25d   : > { %v3860_v18 = vpack.c.bf16 %v2884_v34, %v2884_v34  ;;  %2347 = vrot.lane.b32.xlu1 %v2107_v22, %s4110_s11 }
 0x25e   : > { %v3807_v2 = vpack.c.bf16 %v2831_v30, %v2831_v30  ;;  %v2780_v29 = vadd.f32 %v5114_v37, %v2668_v10  ;;  %v5412_v14 = vpop.permute.xlu0 %1954  ;;  %v2109_v30 = vadd.f32 %v5167_v45, %v6206_v16 }
 0x25f   : > { %3411 = vst.msk [vmem:[%s5130_s19 + $0x104] sm:$0xf] %vm3345_vm2, %v3860_v18  ;;  %v5418_v33 = vpop.permute.xlu1 %1844 }
 0x260   : > { %3358 = vst.msk [vmem:[%s5130_s19 + $0x30] sm:$0xf] %vm3345_vm2, %v3807_v2  ;;  %v2885_v39 = vmax.f32 %v2780_v29, 0.0  ;;  %2349 = vrot.lane.b32.xlu0 %v2108_v19, %s4110_s11  ;;  %v6207_v19 = vld [vmem:[#allocation58_spill] sm:$0xff]  ;;  %v6208_v29 = vld [vmem:[#allocation59_spill] sm:$0xff] }
 0x261   : > { %2457 = vrot.lane.b32.xlu1 %v2162_v52, %s4110_s11  ;;  %v2110_v38 = vadd.f32 %v5227_v36, %v6207_v19  ;;  %v2164_v45 = vadd.f32 %v5239_v48, %v6208_v29 }
 0x262   : > { %v3861_v22 = vpack.c.bf16 %v2885_v39, %v2885_v39  ;;  %v2314_v34 = vpop.permute.xlu0 %2313 }
 0x263   : > { %v2615_v59 = vmax.f32 %v4459_v41, %v2314_v34  ;;  %v5429_v10 = vpop.permute.xlu1 %1952  ;;  %v6209_v34 = vld [vmem:[#allocation22_spill] sm:$0xff] }
 0x264   : > { %3412 = vst.msk [vmem:[%s5130_s19 + $0x108] sm:$0xf] %vm3345_vm2, %v3861_v22  ;;  %2459 = vrot.lane.b32.xlu0 %v2163_v49, %s4110_s11 }
 0x265   : > { %v2727_v18 = vadd.f32 %v5114_v37, %v2615_v59  ;;  %2351 = vrot.lane.b32.xlu1 %v2109_v30, %s4110_s11  ;;  %v6210_v30 = vld [vmem:[#allocation61_spill] sm:$0xff] }
 0x266   : > { %v2422_v2 = vpop.permute.xlu0 %2421  ;;  %v2165_v36 = vadd.f32 %v5221_v3, %v6210_v30  ;;  %v6213_v3 = vld [vmem:[#allocation62_spill] sm:$0xff] }
 0x267   : > { %v2832_v52 = vmax.f32 %v2727_v18, 0.0  ;;  %v2669_v41 = vmax.f32 %v4461_v44, %v2422_v2  ;;  %v2316_v39 = vpop.permute.xlu1 %2315  ;;  %v6211_v18 = vld [vmem:[#allocation60_spill] sm:$0xff] }
 0x268   : > { %v2616_v22 = vmax.f32 %v6209_v34, %v2316_v39  ;;  %2353 = vrot.lane.b32.xlu0 %v2110_v38, %s4110_s11  ;;  %v2111_v44 = vadd.f32 %v5211_v26, %v6211_v18  ;;  %v2112_v34 = vadd.f32 %v5272_v24, %v6213_v3  ;;  %v6215_v24 = vld [vmem:[#allocation65_spill] sm:$0xff] }
 0x269   : > { %v3808_v49 = vpack.c.bf16 %v2832_v52, %v2832_v52  ;;  %v2781_v59 = vadd.f32 %v5114_v37, %v2669_v41  ;;  %2461 = vrot.lane.b32.xlu1 %v2164_v45, %s4110_s11  ;;  %v6212_v41 = vld [vmem:[#allocation21_spill] sm:$0xff] }
 0x26a   : > { %v2728_v19 = vadd.f32 %v5114_v37, %v2616_v22  ;;  %v5448_v48 = vpop.permute.xlu0 %1850 }
 0x26b   : > { %3359 = vst.msk [vmem:[%s5130_s19 + $0x34] sm:$0xf] %vm3345_vm2, %v3808_v49  ;;  %v2886_v38 = vmax.f32 %v2781_v59, 0.0  ;;  %v2424_v2 = vpop.permute.xlu1 %2423  ;;  %v6214_v49 = vld [vmem:[#allocation63_spill] sm:$0xff] }
 0x26c   : > { %v2833_v52 = vmax.f32 %v2728_v19, 0.0  ;;  %v2670_v39 = vmax.f32 %v6212_v41, %v2424_v2  ;;  %2463 = vrot.lane.b32.xlu0 %v2165_v36, %s4110_s11  ;;  %v2166_v59 = vadd.f32 %v5284_v25, %v6214_v49  ;;  %v6217_v25 = vld [vmem:[#allocation23_spill] sm:$0xff] }
 0x26d   : > { %v3862_v45 = vpack.c.bf16 %v2886_v38, %v2886_v38  ;;  %2355 = vrot.lane.b32.xlu1 %v2111_v44, %s4110_s11  ;;  %v2167_v44 = vadd.f32 %v5266_v1, %v6215_v24 }
 0x26e   : > { %v3809_v22 = vpack.c.bf16 %v2833_v52, %v2833_v52  ;;  %v2782_v26 = vadd.f32 %v5114_v37, %v2670_v39  ;;  %v5460_v18 = vpop.permute.xlu0 %1958  ;;  %v6216_v52 = vld [vmem:[#allocation64_spill] sm:$0xff] }
 0x26f   : > { %3413 = vst.msk [vmem:[%s5130_s19 + $0x10c] sm:$0xf] %vm3345_vm2, %v3862_v45  ;;  %v5466_v19 = vpop.permute.xlu1 %1848  ;;  %v2113_v41 = vadd.f32 %v5257_v9, %v6216_v52  ;;  %v6220_v52 = vld [vmem:[#allocation25_spill] sm:$0xff] }
 0x270   : > { %3360 = vst.msk [vmem:[%s5130_s19 + $0x38] sm:$0xf] %vm3345_vm2, %v3809_v22  ;;  %v2887_v36 = vmax.f32 %v2782_v26, 0.0  ;;  %2357 = vrot.lane.b32.xlu0 %v2112_v34, %s4110_s11  ;;  %v6218_v22 = vld [vmem:[#allocation66_spill] sm:$0xff] }
 0x271   : > { %2465 = vrot.lane.b32.xlu1 %v2166_v59, %s4110_s11  ;;  %v2114_v1 = vadd.f32 %v5322_v55, %v6218_v22  ;;  %v6219_v59 = vld [vmem:[#allocation67_spill] sm:$0xff] }
 0x272   : > { %v3863_v38 = vpack.c.bf16 %v2887_v36, %v2887_v36  ;;  %v2318_v2 = vpop.permute.xlu0 %2317  ;;  %v2168_v9 = vadd.f32 %v5333_v54, %v6219_v59 }
 0x273   : > { %v2617_v39 = vmax.f32 %v6217_v25, %v2318_v2  ;;  %v5477_v45 = vpop.permute.xlu1 %1956 }
 0x274   : > { %3414 = vst.msk [vmem:[%s5130_s19 + $0x110] sm:$0xf] %vm3345_vm2, %v3863_v38  ;;  %2467 = vrot.lane.b32.xlu0 %v2167_v44, %s4110_s11 }
 0x275   : > { %v2729_v34 = vadd.f32 %v5114_v37, %v2617_v39  ;;  %2359 = vrot.lane.b32.xlu1 %v2113_v41, %s4110_s11  ;;  %v6221_v41 = vld [vmem:[#allocation69_spill] sm:$0xff] }
 0x276   : > { %v2426_v26 = vpop.permute.xlu0 %2425  ;;  %v2169_v55 = vadd.f32 %v5316_v0, %v6221_v41  ;;  %v6223_v0 = vld [vmem:[#allocation70_spill] sm:$0xff] }
 0x277   : > { %v2834_v36 = vmax.f32 %v2729_v34, 0.0  ;;  %v2671_v2 = vmax.f32 %v4481_v7, %v2426_v26  ;;  %v2320_v25 = vpop.permute.xlu1 %2319  ;;  %v6222_v34 = vld [vmem:[#allocation68_spill] sm:$0xff] }
 0x278   : > { %v2618_v38 = vmax.f32 %v6220_v52, %v2320_v25  ;;  %2361 = vrot.lane.b32.xlu0 %v2114_v1, %s4110_s11  ;;  %v2115_v7 = vadd.f32 %v5300_v5, %v6222_v34 }
 0x279   : > { %v3810_v44 = vpack.c.bf16 %v2834_v36, %v2834_v36  ;;  %v2783_v39 = vadd.f32 %v5114_v37, %v2671_v2  ;;  %2469 = vrot.lane.b32.xlu1 %v2168_v9, %s4110_s11  ;;  %v2116_v2 = vadd.f32 %v5370_v13, %v6223_v0  ;;  %v6225_v13 = vld [vmem:[#allocation73_spill] sm:$0xff] }
 0x27a   : > { %v2730_v22 = vadd.f32 %v5114_v37, %v2618_v38  ;;  %v5496_v54 = vpop.permute.xlu0 %1854 }
 0x27b   : > { %3361 = vst.msk [vmem:[%s5130_s19 + $0x3c] sm:$0xf] %vm3345_vm2, %v3810_v44  ;;  %v2888_v52 = vmax.f32 %v2783_v39, 0.0  ;;  %v2428_v1 = vpop.permute.xlu1 %2427  ;;  %v6224_v44 = vld [vmem:[#allocation71_spill] sm:$0xff] }
 0x27c   : > { %v2835_v26 = vmax.f32 %v2730_v22, 0.0  ;;  %v2672_v36 = vmax.f32 %v6149_v61, %v2428_v1  ;;  %2471 = vrot.lane.b32.xlu0 %v2169_v55, %s4110_s11  ;;  %v2170_v39 = vadd.f32 %v5381_v62, %v6224_v44  ;;  %v2171_v55 = vadd.f32 %v5364_v35, %v6225_v13  ;;  %v6226_v1 = vld [vmem:[#allocation72_spill] sm:$0xff] }
 0x27d   : > { %v3864_v9 = vpack.c.bf16 %v2888_v52, %v2888_v52  ;;  %2363 = vrot.lane.b32.xlu1 %v2115_v7, %s4110_s11 }
 0x27e   : > { %v3811_v25 = vpack.c.bf16 %v2835_v26, %v2835_v26  ;;  %v2784_v5 = vadd.f32 %v5114_v37, %v2672_v36  ;;  %v5508_v38 = vpop.permute.xlu0 %1962  ;;  %v2117_v26 = vadd.f32 %v5352_v51, %v6226_v1  ;;  %v6227_v36 = vld [vmem:[#allocation26_spill] sm:$0xff]  ;;  %v6231_v1 = vld [vmem:[#allocation29_spill] sm:$0xff] }
 0x27f   : > { %3415 = vst.msk [vmem:[%s5130_s19 + $0x114] sm:$0xf] %vm3345_vm2, %v3864_v9  ;;  %v1853_v61 = vpop.permute.xlu1 %1852 }
 0x280   : > { %3362 = vst.msk [vmem:[%s5130_s19 + $0x40] sm:$0xf] %vm3345_vm2, %v3811_v25  ;;  %v2889_v22 = vmax.f32 %v2784_v5, 0.0  ;;  %2365 = vrot.lane.b32.xlu0 %v2116_v2, %s4110_s11  ;;  %v6228_v2 = vld [vmem:[#allocation74_spill] sm:$0xff]  ;;  %v6229_v5 = vld [vmem:[#allocation75_spill] sm:$0xff] }
 0x281   : > { %2473 = vrot.lane.b32.xlu1 %v2170_v39, %s4110_s11  ;;  %v2118_v35 = vadd.f32 %v5418_v33, %v6228_v2  ;;  %v2172_v39 = vadd.f32 %v5429_v10, %v6229_v5 }
 0x282   : > { %v3865_v7 = vpack.c.bf16 %v2889_v22, %v2889_v22  ;;  %v2322_v52 = vpop.permute.xlu0 %2321  ;;  %v6230_v22 = vld [vmem:[#allocation27_spill] sm:$0xff] }
 0x283   : > { %v2619_v62 = vmax.f32 %v6227_v36, %v2322_v52  ;;  %v1961_v44 = vpop.permute.xlu1 %1960 }
 0x284   : > { %3416 = vst.msk [vmem:[%s5130_s19 + $0x118] sm:$0xf] %vm3345_vm2, %v3865_v7  ;;  %2475 = vrot.lane.b32.xlu0 %v2171_v55, %s4110_s11 }
 0x285   : > { %v2731_v9 = vadd.f32 %v5114_v37, %v2619_v62  ;;  %2367 = vrot.lane.b32.xlu1 %v2117_v26, %s4110_s11  ;;  %v6232_v26 = vld [vmem:[#allocation77_spill] sm:$0xff] }
 0x286   : > { %v2430_v25 = vpop.permute.xlu0 %2429  ;;  %v2173_v33 = vadd.f32 %v5412_v14, %v6232_v26 }
 0x287   : > { %v2836_v51 = vmax.f32 %v2731_v9, 0.0  ;;  %v2673_v52 = vmax.f32 %v6230_v22, %v2430_v25  ;;  %v2324_v36 = vpop.permute.xlu1 %2323  ;;  %v6233_v9 = vld [vmem:[#allocation76_spill] sm:$0xff] }
 0x288   : > { %v2620_v7 = vmax.f32 %v6231_v1, %v2324_v36  ;;  %2369 = vrot.lane.b32.xlu0 %v2118_v35, %s4110_s11  ;;  %v2119_v25 = vadd.f32 %v5400_v60, %v6233_v9 }
 0x289   : > { %v3812_v55 = vpack.c.bf16 %v2836_v51, %v2836_v51  ;;  %v2785_v62 = vadd.f32 %v5114_v37, %v2673_v52  ;;  %2477 = vrot.lane.b32.xlu1 %v2172_v39, %s4110_s11  ;;  %v6234_v52 = vld [vmem:[#allocation78_spill] sm:$0xff] }
 0x28a   : > { %v2732_v2 = vadd.f32 %v5114_v37, %v2620_v7  ;;  %v2432_v10 = vpop.permute.xlu0 %2431  ;;  %v2120_v36 = vadd.f32 %v5466_v19, %v6234_v52 }
 0x28b   : > { %3363 = vst.msk [vmem:[%s5130_s19 + $0x44] sm:$0xf] %vm3345_vm2, %v3812_v55  ;;  %v2890_v1 = vmax.f32 %v2785_v62, 0.0  ;;  %v2674_v35 = vmax.f32 %v6159_v53, %v2432_v10  ;;  %v1857_v51 = vpop.permute.xlu1 %1856  ;;  %v6235_v55 = vld [vmem:[#allocation79_spill] sm:$0xff]  ;;  %v6236_v10 = vld [vmem:[#allocation81_spill] sm:$0xff] }
 0x28c   : > { %v2837_v22 = vmax.f32 %v2732_v2, 0.0  ;;  %2479 = vrot.lane.b32.xlu0 %v2173_v33, %s4110_s11  ;;  %v2174_v62 = vadd.f32 %v5477_v45, %v6235_v55 }
 0x28d   : > { %v3866_v39 = vpack.c.bf16 %v2890_v1, %v2890_v1  ;;  %v2786_v14 = vadd.f32 %v5114_v37, %v2674_v35  ;;  %2371 = vrot.lane.b32.xlu1 %v2119_v25, %s4110_s11  ;;  %v2175_v25 = vadd.f32 %v5460_v18, %v6236_v10  ;;  %v6237_v1 = vld [vmem:[#allocation80_spill] sm:$0xff]  ;;  %v6239_v18 = vld [vmem:[#allocation83_spill] sm:$0xff] }
 0x28e   : > { %v3813_v60 = vpack.c.bf16 %v2837_v22, %v2837_v22  ;;  %v1859_v7 = vpop.permute.xlu0 %1858  ;;  %v2121_v35 = vadd.f32 %v5448_v48, %v6237_v1 }
 0x28f   : > { %3417 = vst.msk [vmem:[%s5130_s19 + $0x11c] sm:$0xf] %vm3345_vm2, %v3866_v39  ;;  %v2891_v53 = vmax.f32 %v2786_v14, 0.0  ;;  %v1965_v2 = vpop.permute.xlu1 %1964  ;;  %v6238_v39 = vld [vmem:[#allocation82_spill] sm:$0xff] }
 0x290   : > { %3364 = vst.msk [vmem:[%s5130_s19 + $0x48] sm:$0xf] %vm3345_vm2, %v3813_v60  ;;  %2373 = vrot.lane.b32.xlu0 %v2120_v36, %s4110_s11  ;;  %v2122_v14 = vadd.f32 %v1853_v61, %v6238_v39 }
 0x291   : > { %v3867_v33 = vpack.c.bf16 %v2891_v53, %v2891_v53  ;;  %2481 = vrot.lane.b32.xlu1 %v2174_v62, %s4110_s11  ;;  %v2176_v62 = vadd.f32 %v1961_v44, %v6239_v18  ;;  %v6240_v53 = vld [vmem:[#allocation30_spill] sm:$0xff] }
 0x292   : > { %v5560_v19 = vpop.permute.xlu0 %1966 }
 0x293   : > { %3418 = vst.msk [vmem:[%s5130_s19 + $0x120] sm:$0xf] %vm3345_vm2, %v3867_v33  ;;  %v2434_v45 = vpop.permute.xlu1 %2433 }
 0x294   : > { %v2675_v22 = vmax.f32 %v6163_v58, %v2434_v45  ;;  %2483 = vrot.lane.b32.xlu0 %v2175_v25, %s4110_s11  ;;  %v6241_v25 = vld [vmem:[#allocation86_spill] sm:$0xff] }
 0x295   : > { %2375 = vrot.lane.b32.xlu1 %v2121_v35, %s4110_s11  ;;  %v2177_v61 = vadd.f32 %v5508_v38, %v6241_v25  ;;  %v6243_v38 = vld [vmem:[#allocation87_spill] sm:$0xff] }
 0x296   : > { %v2787_v36 = vadd.f32 %v5114_v37, %v2675_v22  ;;  %v2326_v60 = vpop.permute.xlu0 %2325  ;;  %v6242_v22 = vld [vmem:[#allocation85_spill] sm:$0xff] }
 0x297   : > { %v2621_v10 = vmax.f32 %v6240_v53, %v2326_v60  ;;  %v2328_v48 = vpop.permute.xlu1 %2327 }
 0x298   : > { %v2892_v1 = vmax.f32 %v2787_v36, 0.0  ;;  %v2622_v33 = vmax.f32 %v6166_v8, %v2328_v48  ;;  %2377 = vrot.lane.b32.xlu0 %v2122_v14, %s4110_s11  ;;  %v2123_v36 = vadd.f32 %v5496_v54, %v6242_v22  ;;  %v6244_v48 = vld [vmem:[#allocation88_spill] sm:$0xff] }
 0x299   : > { %v2733_v58 = vadd.f32 %v5114_v37, %v2621_v10  ;;  %2485 = vrot.lane.b32.xlu1 %v2176_v62, %s4110_s11  ;;  %v2124_v62 = vadd.f32 %v1857_v51, %v6243_v38 }
 0x29a   : > { %v3868_v35 = vpack.c.bf16 %v2892_v1, %v2892_v1  ;;  %v2734_v45 = vadd.f32 %v5114_v37, %v2622_v33  ;;  %v1971_v44 = vpop.permute.xlu0 %1970  ;;  %v2178_v33 = vadd.f32 %v1965_v2, %v6244_v48 }
 0x29b   : > { %v2838_v60 = vmax.f32 %v2733_v58, 0.0  ;;  %v1861_v8 = vpop.permute.xlu1 %1860 }
 0x29c   : > { %3419 = vst.msk [vmem:[%s5130_s19 + $0x124] sm:$0xf] %vm3345_vm2, %v3868_v35  ;;  %v2839_v14 = vmax.f32 %v2734_v45, 0.0  ;;  %2487 = vrot.lane.b32.xlu0 %v2177_v61, %s4110_s11  ;;  %v6245_v35 = vld [vmem:[#allocation93_spill] sm:$0xff] }
 0x29d   : > { %v3814_v10 = vpack.c.bf16 %v2838_v60, %v2838_v60  ;;  %2379 = vrot.lane.b32.xlu1 %v2123_v36, %s4110_s11  ;;  %v2126_v51 = vadd.f32 %v1861_v8, %v6245_v35  ;;  %v6246_v36 = vld [vmem:[#allocation90_spill] sm:$0xff] }
 0x29e   : > { %v3815_v1 = vpack.c.bf16 %v2839_v14, %v2839_v14  ;;  %v2436_v53 = vpop.permute.xlu0 %2435  ;;  %v2125_v60 = vadd.f32 %v1859_v7, %v6246_v36  ;;  %v6247_v8 = vld [vmem:[#allocation34_spill] sm:$0xff] }
 0x29f   : > { %3365 = vst.msk [vmem:[%s5130_s19 + $0x4c] sm:$0xf] %vm3345_vm2, %v3814_v10  ;;  %v2676_v54 = vmax.f32 %v6172_v57, %v2436_v53  ;;  %v1969_v58 = vpop.permute.xlu1 %1968  ;;  %v2181_v53 = vadd.f32 %v1971_v44, %v4998_v27 }
 0x2a0   : > { %3366 = vst.msk [vmem:[%s5130_s19 + $0x50] sm:$0xf] %vm3345_vm2, %v3815_v1  ;;  %2381 = vrot.lane.b32.xlu0 %v2124_v62, %s4110_s11 }
 0x2a1   : > { %v2788_v61 = vadd.f32 %v5114_v37, %v2676_v54  ;;  %2489 = vrot.lane.b32.xlu1 %v2178_v33, %s4110_s11 }
 0x2a2   : > { %v1863_v45 = vpop.permute.xlu0 %1862 }
 0x2a3   : > { %v2893_v2 = vmax.f32 %v2788_v61, 0.0  ;;  %v2438_v14 = vpop.permute.xlu1 %2437  ;;  %v6248_v61 = vld [vmem:[#allocation37_spill] sm:$0xff] }
 0x2a4   : > { %v2677_v10 = vmax.f32 %v6174_v28, %v2438_v14  ;;  %2385 = vrot.lane.b32.xlu0 %v2126_v51, %s4110_s11  ;;  %v6249_v14 = vld [vmem:[#allocation97_spill] sm:$0xff] }
 0x2a5   : > { %v3869_v57 = vpack.c.bf16 %v2893_v2, %v2893_v2  ;;  %2383 = vrot.lane.b32.xlu1 %v2125_v60, %s4110_s11 }
 0x2a6   : > { %v2789_v62 = vadd.f32 %v5114_v37, %v2677_v10  ;;  %v2330_v1 = vpop.permute.xlu0 %2329  ;;  %v2127_v10 = vadd.f32 %v1863_v45, %v6249_v14 }
 0x2a7   : > { %3420 = vst.msk [vmem:[%s5130_s19 + $0x128] sm:$0xf] %vm3345_vm2, %v3869_v57  ;;  %v2623_v33 = vmax.f32 %v6247_v8, %v2330_v1  ;;  %v2332_v7 = vpop.permute.xlu1 %2331  ;;  %v6250_v8 = vld [vmem:[#allocation98_spill] sm:$0xff] }
 0x2a8   : > { %v2894_v54 = vmax.f32 %v2789_v62, 0.0  ;;  %v2624_v36 = vmax.f32 %v6248_v61, %v2332_v7 }
 0x2a9   : > { %v2735_v28 = vadd.f32 %v5114_v37, %v2623_v33  ;;  %2495 = vrot.lane.b32.xlu1 %v2181_v53, %s4110_s11 }
 0x2aa   : > { %v3870_v51 = vpack.c.bf16 %v2894_v54, %v2894_v54  ;;  %v2736_v60 = vadd.f32 %v5114_v37, %v2624_v36  ;;  %v2440_v2 = vpop.permute.xlu0 %2439 }
 0x2ab   : > { %v2840_v44 = vmax.f32 %v2735_v28, 0.0  ;;  %v2678_v57 = vmax.f32 %v6178_v21, %v2440_v2  ;;  %v1865_v1 = vpop.permute.xlu1 %1864  ;;  %v6251_v21 = vld [vmem:[#allocation99_spill] sm:$0xff] }
 0x2ac   : > { %3421 = vst.msk [vmem:[%s5130_s19 + $0x12c] sm:$0xf] %vm3345_vm2, %v3870_v51  ;;  %v2841_v62 = vmax.f32 %v2736_v60, 0.0  ;;  %v2128_v7 = vadd.f32 %v1865_v1, %v6250_v8 }
 0x2ad   : > { %v3816_v33 = vpack.c.bf16 %v2840_v44, %v2840_v44  ;;  %v2790_v53 = vadd.f32 %v5114_v37, %v2678_v57  ;;  %2387 = vrot.lane.b32.xlu1 %v2127_v10, %s4110_s11  ;;  %v6252_v10 = vld [vmem:[#allocation94_spill] sm:$0xff] }
 0x2ae   : > { %v3817_v36 = vpack.c.bf16 %v2841_v62, %v2841_v62  ;;  %v1867_v54 = vpop.permute.xlu0 %1866  ;;  %2389 = vrot.lane.b32.xlu0 %v2128_v7, %s4110_s11  ;;  %v2180_v44 = vadd.f32 %v1969_v58, %v6252_v10  ;;  %v6253_v62 = vld [vmem:[#allocation91_spill] sm:$0xff] }
 0x2af   : > { %3367 = vst.msk [vmem:[%s5130_s19 + $0x54] sm:$0xf] %vm3345_vm2, %v3816_v33  ;;  %v2895_v45 = vmax.f32 %v2790_v53, 0.0  ;;  %v2129_v61 = vadd.f32 %v1867_v54, %v6251_v21  ;;  %v1869_v28 = vpop.permute.xlu1 %1868  ;;  %v2179_v7 = vadd.f32 %v5560_v19, %v6253_v62 }
 0x2b0   : > { %3368 = vst.msk [vmem:[%s5130_s19 + $0x58] sm:$0xf] %vm3345_vm2, %v3817_v36  ;;  %v2130_v51 = vadd.f32 %v1869_v28, %v5037_v43  ;;  %v6254_v28 = vld [vmem:[#allocation41_spill] sm:$0xff] }
 0x2b1   : > { %v3871_v60 = vpack.c.bf16 %v2895_v45, %v2895_v45  ;;  %2391 = vrot.lane.b32.xlu1 %v2129_v61, %s4110_s11 }
 0x2b2   : > { %v2334_v2 = vpop.permute.xlu0 %2333  ;;  %2393 = vrot.lane.b32.xlu0 %v2130_v51, %s4110_s11 }
 0x2b3   : > { %3422 = vst.msk [vmem:[%s5130_s19 + $0x130] sm:$0xf] %vm3345_vm2, %v3871_v60  ;;  %v2625_v57 = vmax.f32 %v6184_v31, %v2334_v2  ;;  %v2442_v1 = vpop.permute.xlu1 %2441  ;;  %v5643_v2 = vld [vmem:[%s5879_s2] ss:$0 sm:$0xff] }
 0x2b4   : > { %v2679_v33 = vmax.f32 %v6185_v6, %v2442_v1  ;;  %v6255_v1 = vld [vmem:[#allocation42_spill] sm:$0xff] }
 0x2b5   : > { %v2737_v53 = vadd.f32 %v5114_v37, %v2625_v57  ;;  %2493 = vrot.lane.b32.xlu1 %v2180_v44, %s4110_s11 }
 0x2b6   : > { %v2791_v36 = vadd.f32 %v5114_v37, %v2679_v33  ;;  %v2444_v54 = vpop.permute.xlu0 %2443  ;;  %2491 = vrot.lane.b32.xlu0 %v2179_v7, %s4110_s11 }
 0x2b7   : > { %v2842_v58 = vmax.f32 %v2737_v53, 0.0  ;;  %v2680_v31 = vmax.f32 %v6186_v15, %v2444_v54  ;;  %v2336_v45 = vpop.permute.xlu1 %2335 }
 0x2b8   : > { %v2896_v61 = vmax.f32 %v2791_v36, 0.0  ;;  %v2626_v19 = vmax.f32 %v6254_v28, %v2336_v45 }
 0x2b9   : > { %v3818_v51 = vpack.c.bf16 %v2842_v58, %v2842_v58  ;;  %v2792_v6 = vadd.f32 %v5114_v37, %v2680_v31 }
 0x2ba   : > { %v3872_v60 = vpack.c.bf16 %v2896_v61, %v2896_v61  ;;  %v2738_v44 = vadd.f32 %v5643_v2, %v2626_v19  ;;  %v2338_v57 = vpop.permute.xlu0 %2337 }
 0x2bb   : > { %3369 = vst.msk [vmem:[%s5130_s19 + $0x5c] sm:$0xf] %vm3345_vm2, %v3818_v51  ;;  %v2897_v15 = vmax.f32 %v2792_v6, 0.0  ;;  %v2627_v7 = vmax.f32 %v6255_v1, %v2338_v57  ;;  %v2446_v33 = vpop.permute.xlu1 %2445 }
 0x2bc   : > { %3423 = vst.msk [vmem:[%s5130_s19 + $0x134] sm:$0xf] %vm3345_vm2, %v3872_v60  ;;  %v2843_v37 = vmax.f32 %v2738_v44, 0.0  ;;  %v2681_v53 = vmax.f32 %v6190_v40, %v2446_v33 }
 0x2bd   : > { %v3873_v36 = vpack.c.bf16 %v2897_v15, %v2897_v15  ;;  %v2739_v54 = vadd.f32 %v5643_v2, %v2627_v7 }
 0x2be   : > { %v3819_v58 = vpack.c.bf16 %v2843_v37, %v2843_v37  ;;  %v2793_v31 = vadd.f32 %v5643_v2, %v2681_v53  ;;  %v2448_v45 = vpop.permute.xlu0 %2447 }
 0x2bf   : > { %3424 = vst.msk [vmem:[%s5130_s19 + $0x138] sm:$0xf] %vm3345_vm2, %v3873_v36  ;;  %v2844_v61 = vmax.f32 %v2739_v54, 0.0  ;;  %v2682_v28 = vmax.f32 %v6193_v11, %v2448_v45  ;;  %v2340_v19 = vpop.permute.xlu1 %2339 }
 0x2c0   : > { %3370 = vst.msk [vmem:[%s5130_s19 + $0x60] sm:$0xf] %vm3345_vm2, %v3819_v58  ;;  %v2898_v51 = vmax.f32 %v2793_v31, 0.0  ;;  %v2628_v40 = vmax.f32 %v6194_v17, %v2340_v19 }
 0x2c1   : > { %v3820_v6 = vpack.c.bf16 %v2844_v61, %v2844_v61  ;;  %v2794_v60 = vadd.f32 %v5643_v2, %v2682_v28 }
 0x2c2   : > { %v3874_v44 = vpack.c.bf16 %v2898_v51, %v2898_v51  ;;  %v2740_v57 = vadd.f32 %v5643_v2, %v2628_v40  ;;  %v2342_v15 = vpop.permute.xlu0 %2341 }
 0x2c3   : > { %3371 = vst.msk [vmem:[%s5130_s19 + $0x64] sm:$0xf] %vm3345_vm2, %v3820_v6  ;;  %v2899_v1 = vmax.f32 %v2794_v60, 0.0  ;;  %v2629_v11 = vmax.f32 %v6195_v23, %v2342_v15  ;;  %v2450_v7 = vpop.permute.xlu1 %2449 }
 0x2c4   : > { %3425 = vst.msk [vmem:[%s5130_s19 + $0x13c] sm:$0xf] %vm3345_vm2, %v3874_v44  ;;  %v2845_v33 = vmax.f32 %v2740_v57, 0.0  ;;  %v2683_v17 = vmax.f32 %v6196_v20, %v2450_v7 }
 0x2c5   : > { %v3875_v37 = vpack.c.bf16 %v2899_v1, %v2899_v1  ;;  %v2741_v53 = vadd.f32 %v5643_v2, %v2629_v11 }
 0x2c6   : > { %v3821_v36 = vpack.c.bf16 %v2845_v33, %v2845_v33  ;;  %v2795_v54 = vadd.f32 %v5643_v2, %v2683_v17  ;;  %v2452_v58 = vpop.permute.xlu0 %2451 }
 0x2c7   : > { %3426 = vst.msk [vmem:[%s5130_s19 + $0x140] sm:$0xf] %vm3345_vm2, %v3875_v37  ;;  %v2846_v31 = vmax.f32 %v2741_v53, 0.0  ;;  %v2684_v23 = vmax.f32 %v6197_v32, %v2452_v58  ;;  %v2344_v45 = vpop.permute.xlu1 %2343 }
 0x2c8   : > { %3372 = vst.msk [vmem:[%s5130_s19 + $0x68] sm:$0xf] %vm3345_vm2, %v3821_v36  ;;  %v2900_v61 = vmax.f32 %v2795_v54, 0.0  ;;  %v2630_v20 = vmax.f32 %v6198_v12, %v2344_v45 }
 0x2c9   : > { %v3822_v28 = vpack.c.bf16 %v2846_v31, %v2846_v31  ;;  %v2796_v19 = vadd.f32 %v5643_v2, %v2684_v23 }
 0x2ca   : > { %v3876_v51 = vpack.c.bf16 %v2900_v61, %v2900_v61  ;;  %v2742_v40 = vadd.f32 %v5643_v2, %v2630_v20  ;;  %v2346_v6 = vpop.permute.xlu0 %2345 }
 0x2cb   : > { %3373 = vst.msk [vmem:[%s5130_s19 + $0x6c] sm:$0xf] %vm3345_vm2, %v3822_v28  ;;  %v2901_v60 = vmax.f32 %v2796_v19, 0.0  ;;  %v2631_v32 = vmax.f32 %v6199_v47, %v2346_v6  ;;  %v2454_v44 = vpop.permute.xlu1 %2453 }
 0x2cc   : > { %3427 = vst.msk [vmem:[%s5130_s19 + $0x144] sm:$0xf] %vm3345_vm2, %v3876_v51  ;;  %v2847_v57 = vmax.f32 %v2742_v40, 0.0  ;;  %v2685_v12 = vmax.f32 %v6200_v46, %v2454_v44 }
 0x2cd   : > { %v3877_v15 = vpack.c.bf16 %v2901_v60, %v2901_v60  ;;  %v2743_v1 = vadd.f32 %v5643_v2, %v2631_v32 }
 0x2ce   : > { %v3823_v11 = vpack.c.bf16 %v2847_v57, %v2847_v57  ;;  %v2797_v7 = vadd.f32 %v5643_v2, %v2685_v12  ;;  %v2456_v33 = vpop.permute.xlu0 %2455 }
 0x2cf   : > { %3428 = vst.msk [vmem:[%s5130_s19 + $0x148] sm:$0xf] %vm3345_vm2, %v3877_v15  ;;  %v2848_v17 = vmax.f32 %v2743_v1, 0.0  ;;  %v2686_v47 = vmax.f32 %v6201_v63, %v2456_v33  ;;  %v2348_v37 = vpop.permute.xlu1 %2347  ;;  %v6256_v33 = vld [vmem:[#allocation58_spill] sm:$0xff] }
 0x2d0   : > { %3374 = vst.msk [vmem:[%s5130_s19 + $0x70] sm:$0xf] %vm3345_vm2, %v3823_v11  ;;  %v2902_v53 = vmax.f32 %v2797_v7, 0.0  ;;  %v2632_v46 = vmax.f32 %v6202_v42, %v2348_v37 }
 0x2d1   : > { %v3824_v36 = vpack.c.bf16 %v2848_v17, %v2848_v17  ;;  %v2798_v54 = vadd.f32 %v5643_v2, %v2686_v47 }
 0x2d2   : > { %v3878_v58 = vpack.c.bf16 %v2902_v53, %v2902_v53  ;;  %v2744_v31 = vadd.f32 %v5643_v2, %v2632_v46  ;;  %v2350_v23 = vpop.permute.xlu0 %2349 }
 0x2d3   : > { %3375 = vst.msk [vmem:[%s5130_s19 + $0x74] sm:$0xf] %vm3345_vm2, %v3824_v36  ;;  %v2903_v45 = vmax.f32 %v2798_v54, 0.0  ;;  %v2633_v63 = vmax.f32 %v6203_v50, %v2350_v23  ;;  %v2458_v61 = vpop.permute.xlu1 %2457 }
 0x2d4   : > { %3429 = vst.msk [vmem:[%s5130_s19 + $0x14c] sm:$0xf] %vm3345_vm2, %v3878_v58  ;;  %v2849_v20 = vmax.f32 %v2744_v31, 0.0  ;;  %v2687_v42 = vmax.f32 %v6204_v4, %v2458_v61 }
 0x2d5   : > { %v3879_v28 = vpack.c.bf16 %v2903_v45, %v2903_v45  ;;  %v2745_v19 = vadd.f32 %v5643_v2, %v2633_v63  ;;  %v6257_v63 = vld [vmem:[#allocation60_spill] sm:$0xff] }
 0x2d6   : > { %v3825_v51 = vpack.c.bf16 %v2849_v20, %v2849_v20  ;;  %v2799_v40 = vadd.f32 %v5643_v2, %v2687_v42  ;;  %v2460_v6 = vpop.permute.xlu0 %2459 }
 0x2d7   : > { %3430 = vst.msk [vmem:[%s5130_s19 + $0x150] sm:$0xf] %vm3345_vm2, %v3879_v28  ;;  %v2850_v60 = vmax.f32 %v2745_v19, 0.0  ;;  %v2688_v50 = vmax.f32 %v6205_v56, %v2460_v6  ;;  %v2352_v32 = vpop.permute.xlu1 %2351 }
 0x2d8   : > { %3376 = vst.msk [vmem:[%s5130_s19 + $0x78] sm:$0xf] %vm3345_vm2, %v3825_v51  ;;  %v2904_v44 = vmax.f32 %v2799_v40, 0.0  ;;  %v2634_v4 = vmax.f32 %v6206_v16, %v2352_v32 }
 0x2d9   : > { %v3826_v57 = vpack.c.bf16 %v2850_v60, %v2850_v60  ;;  %v2800_v12 = vadd.f32 %v5643_v2, %v2688_v50 }
 0x2da   : > { %v3880_v15 = vpack.c.bf16 %v2904_v44, %v2904_v44  ;;  %v2746_v1 = vadd.f32 %v5643_v2, %v2634_v4  ;;  %v2354_v11 = vpop.permute.xlu0 %2353 }
 0x2db   : > { %3377 = vst.msk [vmem:[%s5130_s19 + $0x7c] sm:$0xf] %vm3345_vm2, %v3826_v57  ;;  %v2905_v7 = vmax.f32 %v2800_v12, 0.0  ;;  %v2635_v56 = vmax.f32 %v6256_v33, %v2354_v11  ;;  %v2462_v17 = vpop.permute.xlu1 %2461  ;;  %v6258_v11 = vld [vmem:[#allocation64_spill] sm:$0xff] }
 0x2dc   : > { %3431 = vst.msk [vmem:[%s5130_s19 + $0x154] sm:$0xf] %vm3345_vm2, %v3880_v15  ;;  %v2851_v47 = vmax.f32 %v2746_v1, 0.0  ;;  %v2689_v16 = vmax.f32 %v6208_v29, %v2462_v17 }
 0x2dd   : > { %v3881_v37 = vpack.c.bf16 %v2905_v7, %v2905_v7  ;;  %v2747_v53 = vadd.f32 %v5643_v2, %v2635_v56 }
 0x2de   : > { %v3827_v46 = vpack.c.bf16 %v2851_v47, %v2851_v47  ;;  %v2801_v36 = vadd.f32 %v5643_v2, %v2689_v16  ;;  %v2464_v54 = vpop.permute.xlu0 %2463 }
 0x2df   : > { %3432 = vst.msk [vmem:[%s5130_s19 + $0x158] sm:$0xf] %vm3345_vm2, %v3881_v37  ;;  %v2852_v58 = vmax.f32 %v2747_v53, 0.0  ;;  %v2690_v31 = vmax.f32 %v6210_v30, %v2464_v54  ;;  %v2356_v23 = vpop.permute.xlu1 %2355  ;;  %v6259_v37 = vld [vmem:[#allocation66_spill] sm:$0xff] }
 0x2e0   : > { %3378 = vst.msk [vmem:[%s5130_s19 + $0x80] sm:$0xf] %vm3345_vm2, %v3827_v46  ;;  %v2906_v45 = vmax.f32 %v2801_v36, 0.0  ;;  %v2636_v29 = vmax.f32 %v6257_v63, %v2356_v23 }
 0x2e1   : > { %v3828_v61 = vpack.c.bf16 %v2852_v58, %v2852_v58  ;;  %v2802_v20 = vadd.f32 %v5643_v2, %v2690_v31 }
 0x2e2   : > { %v3882_v42 = vpack.c.bf16 %v2906_v45, %v2906_v45  ;;  %v2748_v28 = vadd.f32 %v5643_v2, %v2636_v29  ;;  %v2358_v19 = vpop.permute.xlu0 %2357 }
 0x2e3   : > { %3379 = vst.msk [vmem:[%s5130_s19 + $0x84] sm:$0xf] %vm3345_vm2, %v3828_v61  ;;  %v2907_v51 = vmax.f32 %v2802_v20, 0.0  ;;  %v2637_v30 = vmax.f32 %v6213_v3, %v2358_v19  ;;  %v2466_v40 = vpop.permute.xlu1 %2465 }
 0x2e4   : > { %3433 = vst.msk [vmem:[%s5130_s19 + $0x15c] sm:$0xf] %vm3345_vm2, %v3882_v42  ;;  %v2853_v6 = vmax.f32 %v2748_v28, 0.0  ;;  %v2691_v60 = vmax.f32 %v6214_v49, %v2466_v40 }
 0x2e5   : > { %v3883_v50 = vpack.c.bf16 %v2907_v51, %v2907_v51  ;;  %v2749_v32 = vadd.f32 %v5643_v2, %v2637_v30 }
 0x2e6   : > { %v3829_v44 = vpack.c.bf16 %v2853_v6, %v2853_v6  ;;  %v2803_v4 = vadd.f32 %v5643_v2, %v2691_v60  ;;  %v2468_v57 = vpop.permute.xlu0 %2467 }
 0x2e7   : > { %3434 = vst.msk [vmem:[%s5130_s19 + $0x160] sm:$0xf] %vm3345_vm2, %v3883_v50  ;;  %v2854_v12 = vmax.f32 %v2749_v32, 0.0  ;;  %v2692_v3 = vmax.f32 %v6215_v24, %v2468_v57  ;;  %v2360_v15 = vpop.permute.xlu1 %2359  ;;  %v6260_v50 = vld [vmem:[#allocation71_spill] sm:$0xff] }
 0x2e8   : > { %3380 = vst.msk [vmem:[%s5130_s19 + $0x88] sm:$0xf] %vm3345_vm2, %v3829_v44  ;;  %v2908_v1 = vmax.f32 %v2803_v4, 0.0  ;;  %v2638_v49 = vmax.f32 %v6258_v11, %v2360_v15  ;;  %v6261_v11 = vld [vmem:[#allocation72_spill] sm:$0xff] }
 0x2e9   : > { %v3830_v7 = vpack.c.bf16 %v2854_v12, %v2854_v12  ;;  %v2804_v33 = vadd.f32 %v5643_v2, %v2692_v3 }
 0x2ea   : > { %v3884_v56 = vpack.c.bf16 %v2908_v1, %v2908_v1  ;;  %v2750_v17 = vadd.f32 %v5643_v2, %v2638_v49  ;;  %v2362_v47 = vpop.permute.xlu0 %2361 }
 0x2eb   : > { %3381 = vst.msk [vmem:[%s5130_s19 + $0x8c] sm:$0xf] %vm3345_vm2, %v3830_v7  ;;  %v2909_v16 = vmax.f32 %v2804_v33, 0.0  ;;  %v2639_v24 = vmax.f32 %v6259_v37, %v2362_v47  ;;  %v2470_v53 = vpop.permute.xlu1 %2469  ;;  %v6262_v37 = vld [vmem:[#allocation74_spill] sm:$0xff] }
 0x2ec   : > { %3435 = vst.msk [vmem:[%s5130_s19 + $0x164] sm:$0xf] %vm3345_vm2, %v3884_v56  ;;  %v2855_v46 = vmax.f32 %v2750_v17, 0.0  ;;  %v2693_v36 = vmax.f32 %v6219_v59, %v2470_v53 }
 0x2ed   : > { %v3885_v54 = vpack.c.bf16 %v2909_v16, %v2909_v16  ;;  %v2751_v58 = vadd.f32 %v5643_v2, %v2639_v24 }
 0x2ee   : > { %v3831_v31 = vpack.c.bf16 %v2855_v46, %v2855_v46  ;;  %v2805_v23 = vadd.f32 %v5643_v2, %v2693_v36  ;;  %v2472_v45 = vpop.permute.xlu0 %2471 }
 0x2ef   : > { %3436 = vst.msk [vmem:[%s5130_s19 + $0x168] sm:$0xf] %vm3345_vm2, %v3885_v54  ;;  %v2856_v63 = vmax.f32 %v2751_v58, 0.0  ;;  %v2694_v29 = vmax.f32 %v6221_v41, %v2472_v45  ;;  %v2364_v61 = vpop.permute.xlu1 %2363 }
 0x2f0   : > { %3382 = vst.msk [vmem:[%s5130_s19 + $0x90] sm:$0xf] %vm3345_vm2, %v3831_v31  ;;  %v2910_v20 = vmax.f32 %v2805_v23, 0.0  ;;  %v2640_v59 = vmax.f32 %v6222_v34, %v2364_v61 }
 0x2f1   : > { %v3832_v42 = vpack.c.bf16 %v2856_v63, %v2856_v63  ;;  %v2806_v28 = vadd.f32 %v5643_v2, %v2694_v29 }
 0x2f2   : > { %v3886_v19 = vpack.c.bf16 %v2910_v20, %v2910_v20  ;;  %v2752_v51 = vadd.f32 %v5643_v2, %v2640_v59  ;;  %v2366_v30 = vpop.permute.xlu0 %2365 }
 0x2f3   : > { %3383 = vst.msk [vmem:[%s5130_s19 + $0x94] sm:$0xf] %vm3345_vm2, %v3832_v42  ;;  %v2911_v40 = vmax.f32 %v2806_v28, 0.0  ;;  %v2641_v41 = vmax.f32 %v6223_v0, %v2366_v30  ;;  %v2474_v6 = vpop.permute.xlu1 %2473 }
 0x2f4   : > { %3437 = vst.msk [vmem:[%s5130_s19 + $0x16c] sm:$0xf] %vm3345_vm2, %v3886_v19  ;;  %v2857_v60 = vmax.f32 %v2752_v51, 0.0  ;;  %v2695_v34 = vmax.f32 %v6260_v50, %v2474_v6 }
 0x2f5   : > { %v3887_v32 = vpack.c.bf16 %v2911_v40, %v2911_v40  ;;  %v2753_v44 = vadd.f32 %v5643_v2, %v2641_v41 }
 0x2f6   : > { %v3833_v4 = vpack.c.bf16 %v2857_v60, %v2857_v60  ;;  %v2807_v57 = vadd.f32 %v5643_v2, %v2695_v34  ;;  %v2476_v12 = vpop.permute.xlu0 %2475 }
 0x2f7   : > { %3438 = vst.msk [vmem:[%s5130_s19 + $0x170] sm:$0xf] %vm3345_vm2, %v3887_v32  ;;  %v2858_v3 = vmax.f32 %v2753_v44, 0.0  ;;  %v2696_v0 = vmax.f32 %v6225_v13, %v2476_v12  ;;  %v2368_v15 = vpop.permute.xlu1 %2367  ;;  %v6263_v44 = vld [vmem:[#allocation81_spill] sm:$0xff]  ;;  %v6264_v12 = vld [vmem:[#allocation80_spill] sm:$0xff] }
 0x2f8   : > { %3384 = vst.msk [vmem:[%s5130_s19 + $0x98] sm:$0xf] %vm3345_vm2, %v3833_v4  ;;  %v2912_v1 = vmax.f32 %v2807_v57, 0.0  ;;  %v2642_v49 = vmax.f32 %v6261_v11, %v2368_v15 }
 0x2f9   : > { %v3834_v7 = vpack.c.bf16 %v2858_v3, %v2858_v3  ;;  %v2808_v33 = vadd.f32 %v5643_v2, %v2696_v0 }
 0x2fa   : > { %v3888_v56 = vpack.c.bf16 %v2912_v1, %v2912_v1  ;;  %v2754_v17 = vadd.f32 %v5643_v2, %v2642_v49  ;;  %v2370_v47 = vpop.permute.xlu0 %2369 }
 0x2fb   : > { %3385 = vst.msk [vmem:[%s5130_s19 + $0x9c] sm:$0xf] %vm3345_vm2, %v3834_v7  ;;  %v2913_v16 = vmax.f32 %v2808_v33, 0.0  ;;  %v2643_v13 = vmax.f32 %v6262_v37, %v2370_v47  ;;  %v2478_v24 = vpop.permute.xlu1 %2477 }
 0x2fc   : > { %3439 = vst.msk [vmem:[%s5130_s19 + $0x174] sm:$0xf] %vm3345_vm2, %v3888_v56  ;;  %v2859_v53 = vmax.f32 %v2754_v17, 0.0  ;;  %v2697_v46 = vmax.f32 %v6229_v5, %v2478_v24 }
 0x2fd   : > { %v3889_v36 = vpack.c.bf16 %v2913_v16, %v2913_v16  ;;  %v2755_v54 = vadd.f32 %v5643_v2, %v2643_v13 }
 0x2fe   : > { %v3835_v58 = vpack.c.bf16 %v2859_v53, %v2859_v53  ;;  %v2809_v31 = vadd.f32 %v5643_v2, %v2697_v46  ;;  %v2480_v23 = vpop.permute.xlu0 %2479 }
 0x2ff   : > { %3440 = vst.msk [vmem:[%s5130_s19 + $0x178] sm:$0xf] %vm3345_vm2, %v3889_v36  ;;  %v2860_v45 = vmax.f32 %v2755_v54, 0.0  ;;  %v2698_v63 = vmax.f32 %v6232_v26, %v2480_v23  ;;  %v2372_v29 = vpop.permute.xlu1 %2371 }
 0x300   : > { %3386 = vst.msk [vmem:[%s5130_s19 + $0xa0] sm:$0xf] %vm3345_vm2, %v3835_v58  ;;  %v2914_v61 = vmax.f32 %v2809_v31, 0.0  ;;  %v2644_v5 = vmax.f32 %v6233_v9, %v2372_v29 }
 0x301   : > { %v3836_v20 = vpack.c.bf16 %v2860_v45, %v2860_v45  ;;  %v2810_v59 = vadd.f32 %v5643_v2, %v2698_v63 }
 0x302   : > { %v3890_v42 = vpack.c.bf16 %v2914_v61, %v2914_v61  ;;  %v2756_v28 = vadd.f32 %v5643_v2, %v2644_v5  ;;  %v2374_v19 = vpop.permute.xlu0 %2373 }
 0x303   : > { %3387 = vst.msk [vmem:[%s5130_s19 + $0xa4] sm:$0xf] %vm3345_vm2, %v3836_v20  ;;  %v2915_v51 = vmax.f32 %v2810_v59, 0.0  ;;  %v2645_v26 = vmax.f32 %v6234_v52, %v2374_v19  ;;  %v2482_v30 = vpop.permute.xlu1 %2481 }
 0x304   : > { %3441 = vst.msk [vmem:[%s5130_s19 + $0x17c] sm:$0xf] %vm3345_vm2, %v3890_v42  ;;  %v2861_v40 = vmax.f32 %v2756_v28, 0.0  ;;  %v2699_v9 = vmax.f32 %v6235_v55, %v2482_v30  ;;  %v6265_v30 = vld [vmem:[#allocation90_spill] sm:$0xff] }
 0x305   : > { %v3891_v41 = vpack.c.bf16 %v2915_v51, %v2915_v51  ;;  %v2757_v6 = vadd.f32 %v5643_v2, %v2645_v26 }
 0x306   : > { %v3837_v60 = vpack.c.bf16 %v2861_v40, %v2861_v40  ;;  %v2811_v50 = vadd.f32 %v5643_v2, %v2699_v9  ;;  %v2484_v34 = vpop.permute.xlu0 %2483 }
 0x307   : > { %3442 = vst.msk [vmem:[%s5130_s19 + $0x180] sm:$0xf] %vm3345_vm2, %v3891_v41  ;;  %v2862_v32 = vmax.f32 %v2757_v6, 0.0  ;;  %v2700_v52 = vmax.f32 %v6263_v44, %v2484_v34  ;;  %v2376_v4 = vpop.permute.xlu1 %2375 }
 0x308   : > { %3388 = vst.msk [vmem:[%s5130_s19 + $0xa8] sm:$0xf] %vm3345_vm2, %v3837_v60  ;;  %v2916_v57 = vmax.f32 %v2811_v50, 0.0  ;;  %v2646_v55 = vmax.f32 %v6264_v12, %v2376_v4 }
 0x309   : > { %v3838_v3 = vpack.c.bf16 %v2862_v32, %v2862_v32  ;;  %v2812_v0 = vadd.f32 %v5643_v2, %v2700_v52 }
 0x30a   : > { %v3892_v15 = vpack.c.bf16 %v2916_v57, %v2916_v57  ;;  %v2758_v1 = vadd.f32 %v5643_v2, %v2646_v55  ;;  %v2378_v11 = vpop.permute.xlu0 %2377 }
 0x30b   : > { %3389 = vst.msk [vmem:[%s5130_s19 + $0xac] sm:$0xf] %vm3345_vm2, %v3838_v3  ;;  %v2917_v49 = vmax.f32 %v2812_v0, 0.0  ;;  %v2647_v7 = vmax.f32 %v6238_v39, %v2378_v11  ;;  %v2486_v33 = vpop.permute.xlu1 %2485  ;;  %v3453_v3 = vld [vmem:[%s5130_s19 + $0x1a0] sm:$0x1] }
 0x30c   : > { %3443 = vst.msk [vmem:[%s5130_s19 + $0x184] sm:$0xf] %vm3345_vm2, %v3892_v15  ;;  %v2863_v56 = vmax.f32 %v2758_v1, 0.0  ;;  %v2701_v17 = vmax.f32 %v6239_v18, %v2486_v33 }
 0x30d   : > { %v3893_v47 = vpack.c.bf16 %v2917_v49, %v2917_v49  ;;  %v2759_v16 = vadd.f32 %v5643_v2, %v2647_v7 }
 0x30e   : > { %v3839_v37 = vpack.c.bf16 %v2863_v56, %v2863_v56  ;;  %v2813_v13 = vadd.f32 %v5643_v2, %v2701_v17  ;;  %v2488_v24 = vpop.permute.xlu0 %2487 }
 0x30f   : > { %3444 = vst.msk [vmem:[%s5130_s19 + $0x188] sm:$0xf] %vm3345_vm2, %v3893_v47  ;;  %v2864_v53 = vmax.f32 %v2759_v16, 0.0  ;;  %v2702_v39 = vmax.f32 %v6241_v25, %v2488_v24  ;;  %v2380_v46 = vpop.permute.xlu1 %2379 }
 0x310   : > { %3390 = vst.msk [vmem:[%s5130_s19 + $0xb0] sm:$0xf] %vm3345_vm2, %v3839_v37  ;;  %v2918_v36 = vmax.f32 %v2813_v13, 0.0  ;;  %v2648_v18 = vmax.f32 %v6242_v22, %v2380_v46 }
 0x311   : > { %v3840_v54 = vpack.c.bf16 %v2864_v53, %v2864_v53  ;;  %v2814_v58 = vadd.f32 %v5643_v2, %v2702_v39 }
 0x312   : > { %v3894_v31 = vpack.c.bf16 %v2918_v36, %v2918_v36  ;;  %v2760_v23 = vadd.f32 %v5643_v2, %v2648_v18  ;;  %v2382_v45 = vpop.permute.xlu0 %2381 }
 0x313   : > { %3391 = vst.msk [vmem:[%s5130_s19 + $0xb4] sm:$0xf] %vm3345_vm2, %v3840_v54  ;;  %v2919_v63 = vmax.f32 %v2814_v58, 0.0  ;;  %v2649_v25 = vmax.f32 %v6243_v38, %v2382_v45  ;;  %v2490_v29 = vpop.permute.xlu1 %2489 }
 0x314   : > { %3445 = vst.msk [vmem:[%s5130_s19 + $0x18c] sm:$0xf] %vm3345_vm2, %v3894_v31  ;;  %v2865_v61 = vmax.f32 %v2760_v23, 0.0  ;;  %v2703_v22 = vmax.f32 %v6244_v48, %v2490_v29 }
 0x315   : > { %v3895_v5 = vpack.c.bf16 %v2919_v63, %v2919_v63  ;;  %v2761_v20 = vadd.f32 %v5643_v2, %v2649_v25 }
 0x316   : > { %v3841_v59 = vpack.c.bf16 %v2865_v61, %v2865_v61  ;;  %v2815_v42 = vadd.f32 %v5643_v2, %v2703_v22  ;;  %v2386_v28 = vpop.permute.xlu0 %2385 }
 0x317   : > { %3446 = vst.msk [vmem:[%s5130_s19 + $0x190] sm:$0xf] %vm3345_vm2, %v3895_v5  ;;  %v2866_v19 = vmax.f32 %v2761_v20, 0.0  ;;  %v2651_v38 = vmax.f32 %v6245_v35, %v2386_v28  ;;  %v2384_v51 = vpop.permute.xlu1 %2383 }
 0x318   : > { %3392 = vst.msk [vmem:[%s5130_s19 + $0xb8] sm:$0xf] %vm3345_vm2, %v3841_v59  ;;  %v2920_v26 = vmax.f32 %v2815_v42, 0.0  ;;  %v2650_v48 = vmax.f32 %v6265_v30, %v2384_v51 }
 0x319   : > { %v3842_v40 = vpack.c.bf16 %v2866_v19, %v2866_v19  ;;  %v2763_v9 = vadd.f32 %v5643_v2, %v2651_v38 }
 0x31a   : > { %v3896_v41 = vpack.c.bf16 %v2920_v26, %v2920_v26  ;;  %v2762_v6 = vadd.f32 %v5643_v2, %v2650_v48 }
 0x31b   : > { %3393 = vst.msk [vmem:[%s5130_s19 + $0xbc] sm:$0xf] %vm3345_vm2, %v3842_v40  ;;  %v2868_v60 = vmax.f32 %v2763_v9, 0.0  ;;  %v2496_v50 = vpop.permute.xlu1 %2495 }
 0x31c   : > { %3447 = vst.msk [vmem:[%s5130_s19 + $0x194] sm:$0xf] %vm3345_vm2, %v3896_v41  ;;  %v2867_v35 = vmax.f32 %v2762_v6, 0.0  ;;  %v2706_v34 = vmax.f32 %v4998_v27, %v2496_v50 }
 0x31d   : > { %v3844_v32 = vpack.c.bf16 %v2868_v60, %v2868_v60 }
 0x31e   : > { %v3843_v44 = vpack.c.bf16 %v2867_v35, %v2867_v35  ;;  %v2818_v52 = vadd.f32 %v5643_v2, %v2706_v34 }
 0x31f   : > { %3395 = vst.msk [vmem:[%s5130_s19 + $0xc4] sm:$0xf] %vm3345_vm2, %v3844_v32  ;;  %v2388_v4 = vpop.permute.xlu1 %2387 }
 0x320   : > { %3394 = vst.msk [vmem:[%s5130_s19 + $0xc0] sm:$0xf] %vm3345_vm2, %v3843_v44  ;;  %v2923_v57 = vmax.f32 %v2818_v52, 0.0  ;;  %v2652_v12 = vmax.f32 %v6249_v14, %v2388_v4  ;;  %v2390_v55 = vpop.permute.xlu0 %2389 }
 0x321   : > { %v2653_v27 = vmax.f32 %v6250_v8, %v2390_v55 }
 0x322   : > { %v3899_v0 = vpack.c.bf16 %v2923_v57, %v2923_v57  ;;  %v2764_v15 = vadd.f32 %v5643_v2, %v2652_v12 }
 0x323   : > { %v2765_v1 = vadd.f32 %v5643_v2, %v2653_v27  ;;  %v2392_v11 = vpop.permute.xlu1 %2391 }
 0x324   : > { %v3454_v49 = vsel %vm3452_vm5, %v3899_v0, %v3453_v3  ;;  %v2869_v7 = vmax.f32 %v2764_v15, 0.0  ;;  %v2654_v33 = vmax.f32 %v6251_v21, %v2392_v11  ;;  %v2394_v56 = vpop.permute.xlu0 %2393 }
 0x325   : > { %3455 = vst [vmem:[%s5130_s19 + $0x1a0] sm:$0x1] %v3454_v49  ;;  %v2870_v14 = vmax.f32 %v2765_v1, 0.0  ;;  %v2655_v17 = vmax.f32 %v5037_v43, %v2394_v56 }
 0x326   : > { %v3845_v47 = vpack.c.bf16 %v2869_v7, %v2869_v7  ;;  %v2766_v8 = vadd.f32 %v5643_v2, %v2654_v33 }
 0x327   : > { %v3846_v16 = vpack.c.bf16 %v2870_v14, %v2870_v14  ;;  %v2767_v37 = vadd.f32 %v5643_v2, %v2655_v17  ;;  %v2494_v13 = vpop.permute.xlu1 %2493 }
 0x328   : > { %3396 = vst.msk [vmem:[%s5130_s19 + $0xc8] sm:$0xf] %vm3345_vm2, %v3845_v47  ;;  %v2871_v24 = vmax.f32 %v2766_v8, 0.0  ;;  %v2705_v21 = vmax.f32 %v6252_v10, %v2494_v13  ;;  %v2492_v53 = vpop.permute.xlu0 %2491 }
 0x329   : > { %3397 = vst.msk [vmem:[%s5130_s19 + $0xcc] sm:$0xf] %vm3345_vm2, %v3846_v16  ;;  %v2872_v43 = vmax.f32 %v2767_v37, 0.0  ;;  %v2704_v39 = vmax.f32 %v6253_v62, %v2492_v53 }
 0x32a   : > { %v3847_v46 = vpack.c.bf16 %v2871_v24, %v2871_v24  ;;  %v2817_v36 = vadd.f32 %v5643_v2, %v2705_v21 }
 0x32b   : > { %v3848_v18 = vpack.c.bf16 %v2872_v43, %v2872_v43  ;;  %v2816_v54 = vadd.f32 %v5643_v2, %v2704_v39 }
 0x32c   : > { %3398 = vst.msk [vmem:[%s5130_s19 + $0xd0] sm:$0xf] %vm3345_vm2, %v3847_v46  ;;  %v2922_v58 = vmax.f32 %v2817_v36, 0.0 }
 0x32d   : > { %3399 = vst.msk [vmem:[%s5130_s19 + $0xd4] sm:$0xf] %vm3345_vm2, %v3848_v18  ;;  %v2921_v31 = vmax.f32 %v2816_v54, 0.0 }
 0x32e   : > { %v3898_v10 = vpack.c.bf16 %v2922_v58, %v2922_v58 }
 0x32f   : > { %v3897_v23 = vpack.c.bf16 %v2921_v31, %v2921_v31 }
 0x330   : > { %3449 = vst.msk [vmem:[%s5130_s19 + $0x19c] sm:$0xf] %vm3345_vm2, %v3898_v10 }
 0x331   : > { %3448 = vst.msk [vmem:[%s5130_s19 + $0x198] sm:$0xf] %vm3345_vm2, %v3897_v23 }
 0x332 PF: > { %s13_s12 = sadd.s32 1, %s4107_s12  }
 0x333   : > { %p10_p4 = scmp.ge.s32.totalorder %s13_s12, 4  }
 0x335   :  { %12 = sbr.rel (!%p10_p4) target bundleno = 1 (0x1), region = 62 }

// kernel: small_model_forward.5
= control target key start
LH: loop header
LB: loop body
LE: loop exit
PB: predicated region body
PF: predicated region fallthrough
CT: control target
= control target key end

     0   :  { %vm5253_vm0 = vcmask 1043456   ;;  %vm5249_vm1 = vcmask 64512   ;;  %vm9067_vm2 = vmmov 0   ;;  %vm6659_vm3 = vcmask 80896   ;;  %s11916_s1 = inlined_call_operand.vmem [shape: bf16[6664,256], index: 1, kind: input, shape index: {}]   ;;  %s11917_s0 = inlined_call_operand.vmem [shape: bf16[8,6664], index: 0, kind: input, shape index: {}]   ;;  %s11918_s3 = inlined_call_operand.vmem [shape: bf16[256,128], index: 3, kind: input, shape index: {}]   ;;  %s11919_s5 = inlined_call_operand.vmem [shape: bf16[128,10], index: 5, kind: input, shape index: {}]   ;;  %s11920_s2 = inlined_call_operand.vmem [shape: f32[1,256], index: 2, kind: input, shape index: {}]   ;;  %s11921_s4 = inlined_call_operand.vmem [shape: f32[1,128], index: 4, kind: input, shape index: {}]   ;;  %s11922_s6 = inlined_call_operand.vmem [shape: f32[1,10], index: 6, kind: input, shape index: {}]   ;;  %s11923_s7 = inlined_call_operand.vmem [shape: f32[8,10], index: 7, kind: output, shape index: {}]  }
   0x1   :  { %v7738_v0 = vld [vmem:[%s11916_s1 + $0x4] ss:$8 sps:$4 sm:$0xff]   ;;  %v7742_v2 = vld [vmem:[%s11916_s1] ss:$8 sps:$4 sm:$0xff]   ;;  %v7744_v4 = vld [vmem:[%s11916_s1 + $0x14] ss:$8 sps:$4 sm:$0xff]  }
   0x2   :  { %v7740_v1 = vld [vmem:[%s11916_s1 + $0xd04] ss:$8 sps:$4 sm:$0xff]   ;;  %5260 = vmatprep.subr.bf16.mxu1 %v7738_v0  ;;  %v7743_v3 = vld [vmem:[%s11916_s1 + $0xd00] ss:$8 sps:$4 sm:$0xff]   ;;  %v7746_v5 = vld [vmem:[%s11916_s1 + $0xd14] ss:$8 sps:$4 sm:$0xff]  }
   0x3   :  { %5793 = vmatprep.subr.bf16.mxu0 %v7740_v1  ;;  %5261 = vmatpush1.bf16.msra.mxu1 %v7742_v2  ;;  %v7748_v6 = vld [vmem:[%s11916_s1 + $0x10] ss:$8 sps:$4 sm:$0xff]   ;;  %v7750_v8 = vld [vmem:[%s11916_s1 + $0x24] ss:$8 sps:$4 sm:$0xff]   ;;  %v7754_v10 = vld [vmem:[%s11916_s1 + $0x20] ss:$8 sps:$4 sm:$0xff]  }
   0x4   :  { %5794 = vmatpush1.bf16.msra.mxu0 %v7743_v3  ;;  %5262 = vmatprep.subr.bf16.mxu1 %v7744_v4  ;;  %v7749_v7 = vld [vmem:[%s11916_s1 + $0xd10] ss:$8 sps:$4 sm:$0xff]   ;;  %v7752_v9 = vld [vmem:[%s11916_s1 + $0xd24] ss:$8 sps:$4 sm:$0xff]   ;;  %v7755_v11 = vld [vmem:[%s11916_s1 + $0xd20] ss:$8 sps:$4 sm:$0xff]  }
   0x5   :  { %5795 = vmatprep.subr.bf16.mxu0 %v7746_v5  ;;  %v7756_v12 = vld [vmem:[%s11916_s1 + $0x34] ss:$8 sps:$4 sm:$0xff]   ;;  %v7760_v14 = vld [vmem:[%s11916_s1 + $0x30] ss:$8 sps:$4 sm:$0xff]   ;;  %v7762_v16 = vld [vmem:[%s11916_s1 + $0x44] ss:$8 sps:$4 sm:$0xff]  }
   0x6   :  { %v7758_v13 = vld [vmem:[%s11916_s1 + $0xd34] ss:$8 sps:$4 sm:$0xff]   ;;  %v7761_v15 = vld [vmem:[%s11916_s1 + $0xd30] ss:$8 sps:$4 sm:$0xff]   ;;  %v7764_v17 = vld [vmem:[%s11916_s1 + $0xd44] ss:$8 sps:$4 sm:$0xff]  }
   0x7   :  { %5263 = vmatpush1.bf16.msra.mxu1 %v7748_v6  ;;  %v7766_v18 = vld [vmem:[%s11916_s1 + $0x40] ss:$8 sps:$4 sm:$0xff]   ;;  %v7768_v20 = vld [vmem:[%s11916_s1 + $0x54] ss:$8 sps:$4 sm:$0xff]   ;;  %v7772_v22 = vld [vmem:[%s11916_s1 + $0x50] ss:$8 sps:$4 sm:$0xff]  }
   0x8   :  { %5796 = vmatpush1.bf16.msra.mxu0 %v7749_v7  ;;  %5264 = vmatprep.subr.bf16.mxu1 %v7750_v8  ;;  %v7767_v19 = vld [vmem:[%s11916_s1 + $0xd40] ss:$8 sps:$4 sm:$0xff]   ;;  %v7770_v21 = vld [vmem:[%s11916_s1 + $0xd54] ss:$8 sps:$4 sm:$0xff]   ;;  %v7773_v23 = vld [vmem:[%s11916_s1 + $0xd50] ss:$8 sps:$4 sm:$0xff]  }
   0x9   :  { %5797 = vmatprep.subr.bf16.mxu0 %v7752_v9  ;;  %v7774_v24 = vld [vmem:[%s11916_s1 + $0x64] ss:$8 sps:$4 sm:$0xff]   ;;  %v7778_v26 = vld [vmem:[%s11916_s1 + $0x60] ss:$8 sps:$4 sm:$0xff]   ;;  %v7780_v28 = vld [vmem:[%s11916_s1 + $0x74] ss:$8 sps:$4 sm:$0xff]  }
   0xa   :  { %v7776_v25 = vld [vmem:[%s11916_s1 + $0xd64] ss:$8 sps:$4 sm:$0xff]   ;;  %v7779_v27 = vld [vmem:[%s11916_s1 + $0xd60] ss:$8 sps:$4 sm:$0xff]   ;;  %v7782_v29 = vld [vmem:[%s11916_s1 + $0xd74] ss:$8 sps:$4 sm:$0xff]  }
   0xb   :  { %5265 = vmatpush1.bf16.msra.mxu1 %v7754_v10  ;;  %v7784_v30 = vld [vmem:[%s11916_s1 + $0x70] ss:$8 sps:$4 sm:$0xff]   ;;  %v7786_v32 = vld [vmem:[%s11916_s1 + $0x84] ss:$8 sps:$4 sm:$0xff]   ;;  %v7790_v34 = vld [vmem:[%s11916_s1 + $0x80] ss:$8 sps:$4 sm:$0xff]  }
   0xc   :  { %5798 = vmatpush1.bf16.msra.mxu0 %v7755_v11  ;;  %5266 = vmatprep.subr.bf16.mxu1 %v7756_v12  ;;  %v7785_v31 = vld [vmem:[%s11916_s1 + $0xd70] ss:$8 sps:$4 sm:$0xff]   ;;  %v7788_v33 = vld [vmem:[%s11916_s1 + $0xd84] ss:$8 sps:$4 sm:$0xff]   ;;  %v7791_v35 = vld [vmem:[%s11916_s1 + $0xd80] ss:$8 sps:$4 sm:$0xff]  }
   0xd   :  { %5799 = vmatprep.subr.bf16.mxu0 %v7758_v13  ;;  %v7792_v36 = vld [vmem:[%s11916_s1 + $0x94] ss:$8 sps:$4 sm:$0xff]   ;;  %v7796_v38 = vld [vmem:[%s11916_s1 + $0x90] ss:$8 sps:$4 sm:$0xff]   ;;  %v7798_v40 = vld [vmem:[%s11916_s1 + $0xa4] ss:$8 sps:$4 sm:$0xff]  }
   0xe   :  { %v7794_v37 = vld [vmem:[%s11916_s1 + $0xd94] ss:$8 sps:$4 sm:$0xff]   ;;  %v7797_v39 = vld [vmem:[%s11916_s1 + $0xd90] ss:$8 sps:$4 sm:$0xff]   ;;  %v7800_v41 = vld [vmem:[%s11916_s1 + $0xda4] ss:$8 sps:$4 sm:$0xff]  }
   0xf   :  { %5267 = vmatpush1.bf16.msra.mxu1 %v7760_v14  ;;  %v7802_v42 = vld [vmem:[%s11916_s1 + $0xa0] ss:$8 sps:$4 sm:$0xff]   ;;  %v7804_v44 = vld [vmem:[%s11916_s1 + $0xb4] ss:$8 sps:$4 sm:$0xff]   ;;  %v7808_v47 = vld [vmem:[%s11916_s1 + $0xb0] ss:$8 sps:$4 sm:$0xff]  }
  0x10   :  { %5800 = vmatpush1.bf16.msra.mxu0 %v7761_v15  ;;  %5268 = vmatprep.subr.bf16.mxu1 %v7762_v16  ;;  %v7803_v43 = vld [vmem:[%s11916_s1 + $0xda0] ss:$8 sps:$4 sm:$0xff]   ;;  %v7806_v45 = vld [vmem:[%s11916_s1 + $0xdb4] ss:$8 sps:$4 sm:$0xff]   ;;  %v7809_v49 = vld [vmem:[%s11916_s1 + $0xdb0] ss:$8 sps:$4 sm:$0xff]  }
  0x11   :  { %5801 = vmatprep.subr.bf16.mxu0 %v7764_v17  ;;  %v27_v46 = vld [vmem:[%s11917_s0] sm:$0xff]  ;;  %v40_v50 = vld [vmem:[%s11917_s0 + $0x68] sm:$0xff]  ;;  %v7816_v56 = vld [vmem:[%s11916_s1 + $0xd4] ss:$8 sps:$4 sm:$0xff]  }
  0x12   :  { %v6666_v48 = vcombine.high %v27_v46, %v27_v46  ;;  %v7810_v51 = vld [vmem:[%s11916_s1 + $0xc4] ss:$8 sps:$4 sm:$0xff]   ;;  %v6692_v53 = vcombine.high %v40_v50, %v40_v50  ;;  %v7814_v54 = vld [vmem:[%s11916_s1 + $0xc0] ss:$8 sps:$4 sm:$0xff]   ;;  %v7818_v57 = vld [vmem:[%s11916_s1 + $0xdd4] ss:$8 sps:$4 sm:$0xff]   ;;  %v6665_v6 = vcombine.low %v27_v46, %v27_v46  ;;  %v6691_v7 = vcombine.low %v40_v50, %v40_v50 }
  0x13   :  { %5269 = vmatpush1.bf16.msra.mxu1 %v7766_v18  ;;  %v7812_v52 = vld [vmem:[%s11916_s1 + $0xdc4] ss:$8 sps:$4 sm:$0xff]   ;;  %v7815_v55 = vld [vmem:[%s11916_s1 + $0xdc0] ss:$8 sps:$4 sm:$0xff]   ;;  %v7820_v58 = vld [vmem:[%s11916_s1 + $0xd0] ss:$8 sps:$4 sm:$0xff]  }
  0x14   :  { %5802 = vmatpush1.bf16.msra.mxu0 %v7767_v19  ;;  %5270 = vmatprep.subr.bf16.mxu1 %v7768_v20  ;;  %v7821_v59 = vld [vmem:[%s11916_s1 + $0xdd0] ss:$8 sps:$4 sm:$0xff]   ;;  %v7822_v60 = vld [vmem:[%s11916_s1 + $0xe4] ss:$8 sps:$4 sm:$0xff]   ;;  %v7826_v62 = vld [vmem:[%s11916_s1 + $0xe0] ss:$8 sps:$4 sm:$0xff]  }
  0x15   :  { %5803 = vmatprep.subr.bf16.mxu0 %v7770_v21  ;;  %5292 = vmatprep.mubr.bf16.mxu1 %v6666_v48  ;;  %v7824_v61 = vld [vmem:[%s11916_s1 + $0xde4] ss:$8 sps:$4 sm:$0xff]   ;;  %v7827_v63 = vld [vmem:[%s11916_s1 + $0xde0] ss:$8 sps:$4 sm:$0xff]   ;;  %v7828_v0 = vld [vmem:[%s11916_s1 + $0xf4] ss:$8 sps:$4 sm:$0xff]  }
  0x16   :  { %5825 = vmatprep.mubr.bf16.mxu0 %v6692_v53  ;;  %v7830_v1 = vld [vmem:[%s11916_s1 + $0xdf4] ss:$8 sps:$4 sm:$0xff]   ;;  %v7832_v2 = vld [vmem:[%s11916_s1 + $0xf0] ss:$8 sps:$4 sm:$0xff]   ;;  %v7838_v4 = vld [vmem:[%s11916_s1 + $0x104] ss:$8 sps:$4 sm:$0xff]  }
  0x17   :  { %5271 = vmatpush1.bf16.msra.mxu1 %v7772_v22  ;;  %v7833_v3 = vld [vmem:[%s11916_s1 + $0xdf0] ss:$8 sps:$4 sm:$0xff]   ;;  %v7843_v5 = vld [vmem:[%s11916_s1 + $0xe04] ss:$8 sps:$4 sm:$0xff]   ;;  %v7836_v8 = vld [vmem:[%s11916_s1 + $0x100] ss:$8 sps:$4 sm:$0xff]  }
  0x18   :  { %5804 = vmatpush1.bf16.msra.mxu0 %v7773_v23  ;;  %5272 = vmatprep.subr.bf16.mxu1 %v7774_v24  ;;  %v7841_v9 = vld [vmem:[%s11916_s1 + $0xe00] ss:$8 sps:$4 sm:$0xff]   ;;  %v7846_v10 = vld [vmem:[%s11916_s1 + $0x114] ss:$8 sps:$4 sm:$0xff]   ;;  %v7844_v12 = vld [vmem:[%s11916_s1 + $0x110] ss:$8 sps:$4 sm:$0xff]  }
  0x19   :  { %5805 = vmatprep.subr.bf16.mxu0 %v7776_v25  ;;  %v7849_v11 = vld [vmem:[%s11916_s1 + $0xe14] ss:$8 sps:$4 sm:$0xff]   ;;  %v7847_v13 = vld [vmem:[%s11916_s1 + $0xe10] ss:$8 sps:$4 sm:$0xff]   ;;  %v7852_v14 = vld [vmem:[%s11916_s1 + $0x124] ss:$8 sps:$4 sm:$0xff]  }
  0x1a   :  { %v7855_v15 = vld [vmem:[%s11916_s1 + $0xe24] ss:$8 sps:$4 sm:$0xff]   ;;  %v7850_v16 = vld [vmem:[%s11916_s1 + $0x120] ss:$8 sps:$4 sm:$0xff]   ;;  %v7858_v18 = vld [vmem:[%s11916_s1 + $0x134] ss:$8 sps:$4 sm:$0xff]  }
  0x1b   :  { %5273 = vmatpush1.bf16.msra.mxu1 %v7778_v26  ;;  %v7853_v17 = vld [vmem:[%s11916_s1 + $0xe20] ss:$8 sps:$4 sm:$0xff]   ;;  %v7861_v19 = vld [vmem:[%s11916_s1 + $0xe34] ss:$8 sps:$4 sm:$0xff]   ;;  %v7856_v20 = vld [vmem:[%s11916_s1 + $0x130] ss:$8 sps:$4 sm:$0xff]  }
  0x1c   :  { %5806 = vmatpush1.bf16.msra.mxu0 %v7779_v27  ;;  %5274 = vmatprep.subr.bf16.mxu1 %v7780_v28  ;;  %v7859_v21 = vld [vmem:[%s11916_s1 + $0xe30] ss:$8 sps:$4 sm:$0xff]   ;;  %v7864_v22 = vld [vmem:[%s11916_s1 + $0x144] ss:$8 sps:$4 sm:$0xff]   ;;  %v7862_v24 = vld [vmem:[%s11916_s1 + $0x140] ss:$8 sps:$4 sm:$0xff]  }
  0x1d   :  { %5807 = vmatprep.subr.bf16.mxu0 %v7782_v29  ;;  %v7867_v23 = vld [vmem:[%s11916_s1 + $0xe44] ss:$8 sps:$4 sm:$0xff]   ;;  %v7865_v25 = vld [vmem:[%s11916_s1 + $0xe40] ss:$8 sps:$4 sm:$0xff]   ;;  %v7870_v26 = vld [vmem:[%s11916_s1 + $0x154] ss:$8 sps:$4 sm:$0xff]  }
  0x1e   :  { %v7873_v27 = vld [vmem:[%s11916_s1 + $0xe54] ss:$8 sps:$4 sm:$0xff]   ;;  %v7868_v28 = vld [vmem:[%s11916_s1 + $0x150] ss:$8 sps:$4 sm:$0xff]   ;;  %v7900_v50 = vld [vmem:[%s11916_s1 + $0x1a4] ss:$8 sps:$4 sm:$0xff]  }
  0x1f   :  { %5275 = vmatpush1.bf16.msra.mxu1 %v7784_v30  ;;  %v7871_v29 = vld [vmem:[%s11916_s1 + $0xe50] ss:$8 sps:$4 sm:$0xff]   ;;  %v7876_v30 = vld [vmem:[%s11916_s1 + $0x164] ss:$8 sps:$4 sm:$0xff]   ;;  %v7894_v46 = vld [vmem:[%s11916_s1 + $0x194] ss:$8 sps:$4 sm:$0xff]  }
  0x20   :  { %5808 = vmatpush1.bf16.msra.mxu0 %v7785_v31  ;;  %5276 = vmatprep.subr.bf16.mxu1 %v7786_v32  ;;  %v7879_v31 = vld [vmem:[%s11916_s1 + $0xe64] ss:$8 sps:$4 sm:$0xff]   ;;  %v7892_v48 = vld [vmem:[%s11916_s1 + $0x190] ss:$8 sps:$4 sm:$0xff]   ;;  %v7901_v53 = vld [vmem:[%s11916_s1 + $0xea0] ss:$8 sps:$4 sm:$0xff]  }
  0x21   :  { %5809 = vmatprep.subr.bf16.mxu0 %v7788_v33  ;;  %v9387_v32 = vld [vmem:[%s11917_s0 + $0x8] sm:$0xff] }
  0x22   :  { %v7874_v33 = vld [vmem:[%s11916_s1 + $0x160] ss:$8 sps:$4 sm:$0xff]  }
  0x23   :  { %5277 = vmatpush1.bf16.msra.mxu1 %v7790_v34  ;;  %v7877_v34 = vld [vmem:[%s11916_s1 + $0xe60] ss:$8 sps:$4 sm:$0xff]  }
  0x24   :  { %5810 = vmatpush1.bf16.msra.mxu0 %v7791_v35  ;;  %5278 = vmatprep.subr.bf16.mxu1 %v7792_v36  ;;  %v6668_v35 = vcombine.high %v9387_v32, %v9387_v32  ;;  %v9400_v36 = vld [vmem:[%s11917_s0 + $0x70] sm:$0xff] }
  0x25   :  { %5811 = vmatprep.subr.bf16.mxu0 %v7794_v37  ;;  %v7882_v37 = vld [vmem:[%s11916_s1 + $0x174] ss:$8 sps:$4 sm:$0xff]  }
  0x27   :  { %5279 = vmatpush1.bf16.msra.mxu1 %v7796_v38  ;;  %v6694_v38 = vcombine.high %v9400_v36, %v9400_v36 }
  0x28   :  { %5812 = vmatpush1.bf16.msra.mxu0 %v7797_v39  ;;  %5280 = vmatprep.subr.bf16.mxu1 %v7798_v40  ;;  %v7885_v39 = vld [vmem:[%s11916_s1 + $0xe74] ss:$8 sps:$4 sm:$0xff]   ;;  %v7880_v40 = vld [vmem:[%s11916_s1 + $0x170] ss:$8 sps:$4 sm:$0xff]  }
  0x29   :  { %5813 = vmatprep.subr.bf16.mxu0 %v7800_v41  ;;  %v7883_v41 = vld [vmem:[%s11916_s1 + $0xe70] ss:$8 sps:$4 sm:$0xff]  }
  0x2b   :  { %5281 = vmatpush1.bf16.msra.mxu1 %v7802_v42  ;;  %v7888_v42 = vld [vmem:[%s11916_s1 + $0x184] ss:$8 sps:$4 sm:$0xff]  }
  0x2c   :  { %5814 = vmatpush1.bf16.msra.mxu0 %v7803_v43  ;;  %5282 = vmatprep.subr.bf16.mxu1 %v7804_v44  ;;  %v7891_v43 = vld [vmem:[%s11916_s1 + $0xe84] ss:$8 sps:$4 sm:$0xff]   ;;  %v7886_v44 = vld [vmem:[%s11916_s1 + $0x180] ss:$8 sps:$4 sm:$0xff]  }
  0x2d   :  { %5815 = vmatprep.subr.bf16.mxu0 %v7806_v45  ;;  %v7889_v45 = vld [vmem:[%s11916_s1 + $0xe80] ss:$8 sps:$4 sm:$0xff]  }
  0x2f   :  { %5283 = vmatpush1.bf16.msra.mxu1 %v7808_v47  ;;  %v7897_v47 = vld [vmem:[%s11916_s1 + $0xe94] ss:$8 sps:$4 sm:$0xff]  }
  0x30   :  { %5816 = vmatpush1.bf16.msra.mxu0 %v7809_v49  ;;  %5284 = vmatprep.subr.bf16.mxu1 %v7810_v51  ;;  %v7895_v49 = vld [vmem:[%s11916_s1 + $0xe90] ss:$8 sps:$4 sm:$0xff]   ;;  %v7903_v51 = vld [vmem:[%s11916_s1 + $0xea4] ss:$8 sps:$4 sm:$0xff]  }
  0x31   :  { %5817 = vmatprep.subr.bf16.mxu0 %v7812_v52  ;;  %v7898_v52 = vld [vmem:[%s11916_s1 + $0x1a0] ss:$8 sps:$4 sm:$0xff]  }
  0x33   :  { %5285 = vmatpush1.bf16.msra.mxu1 %v7814_v54  ;;  %v7906_v54 = vld [vmem:[%s11916_s1 + $0x1b4] ss:$8 sps:$4 sm:$0xff]  }
  0x34   :  { %5818 = vmatpush1.bf16.msra.mxu0 %v7815_v55  ;;  %5286 = vmatprep.subr.bf16.mxu1 %v7816_v56  ;;  %v7909_v55 = vld [vmem:[%s11916_s1 + $0xeb4] ss:$8 sps:$4 sm:$0xff]   ;;  %v7904_v56 = vld [vmem:[%s11916_s1 + $0x1b0] ss:$8 sps:$4 sm:$0xff]  }
  0x35   :  { %5819 = vmatprep.subr.bf16.mxu0 %v7818_v57  ;;  %v7907_v57 = vld [vmem:[%s11916_s1 + $0xeb0] ss:$8 sps:$4 sm:$0xff]  }
  0x37   :  { %5287 = vmatpush1.bf16.msra.mxu1 %v7820_v58  ;;  %v7912_v58 = vld [vmem:[%s11916_s1 + $0x1c4] ss:$8 sps:$4 sm:$0xff]  }
  0x38   :  { %5820 = vmatpush1.bf16.msra.mxu0 %v7821_v59  ;;  %5288 = vmatprep.subr.bf16.mxu1 %v7822_v60  ;;  %v7915_v59 = vld [vmem:[%s11916_s1 + $0xec4] ss:$8 sps:$4 sm:$0xff]   ;;  %v7910_v60 = vld [vmem:[%s11916_s1 + $0x1c0] ss:$8 sps:$4 sm:$0xff]  }
  0x39   :  { %5821 = vmatprep.subr.bf16.mxu0 %v7824_v61  ;;  %v7913_v61 = vld [vmem:[%s11916_s1 + $0xec0] ss:$8 sps:$4 sm:$0xff]  }
  0x3b   :  { %5289 = vmatpush1.bf16.msra.mxu1 %v7826_v62  ;;  %v7918_v62 = vld [vmem:[%s11916_s1 + $0x1d4] ss:$8 sps:$4 sm:$0xff]  }
  0x3c   :  { %5822 = vmatpush1.bf16.msra.mxu0 %v7827_v63  ;;  %5290 = vmatprep.subr.bf16.mxu1 %v7828_v0  ;;  %v7921_v63 = vld [vmem:[%s11916_s1 + $0xed4] ss:$8 sps:$4 sm:$0xff]   ;;  %v7916_v0 = vld [vmem:[%s11916_s1 + $0x1d0] ss:$8 sps:$4 sm:$0xff]  }
  0x3d   :  { %5823 = vmatprep.subr.bf16.mxu0 %v7830_v1  ;;  %v7919_v1 = vld [vmem:[%s11916_s1 + $0xed0] ss:$8 sps:$4 sm:$0xff]  }
  0x3f   :  { %5291 = vmatpush1.bf16.msra.mxu1 %v7832_v2  ;;  %v7924_v2 = vld [vmem:[%s11916_s1 + $0x1e4] ss:$8 sps:$4 sm:$0xff]  }
  0x40   :  { %5824 = vmatpush1.bf16.msra.mxu0 %v7833_v3  ;;  %5301 = vmatprep.subr.bf16.mxu1 %v7838_v4  ;;  %v7927_v3 = vld [vmem:[%s11916_s1 + $0xee4] ss:$8 sps:$4 sm:$0xff]   ;;  %v7922_v4 = vld [vmem:[%s11916_s1 + $0x1e0] ss:$8 sps:$4 sm:$0xff]  }
  0x41   :  { %5834 = vmatprep.subr.bf16.mxu0 %v7843_v5  ;;  %v7925_v5 = vld [vmem:[%s11916_s1 + $0xee0] ss:$8 sps:$4 sm:$0xff]  }
  0x42   :  { %5293 = vmatmul.mubr.bf16.vlgmr.msra.gmra.mrb[0].mxu1 %v6665_v6  ;;  %v7930_v6 = vld [vmem:[%s11916_s1 + $0x1f4] ss:$8 sps:$4 sm:$0xff]  }
  0x43   :  { %5826 = vmatmul.mubr.bf16.vlgmr.msra.gmra.mrb[0].mxu0 %v6691_v7  ;;  %5302 = vmatpush1.bf16.msra.mxu1 %v7836_v8  ;;  %v7933_v7 = vld [vmem:[%s11916_s1 + $0xef4] ss:$8 sps:$4 sm:$0xff]   ;;  %v7928_v8 = vld [vmem:[%s11916_s1 + $0x1f0] ss:$8 sps:$4 sm:$0xff]  }
  0x44   :  { %5835 = vmatpush1.bf16.msra.mxu0 %v7841_v9  ;;  %5303 = vmatprep.subr.bf16.mxu1 %v7846_v10  ;;  %v7931_v9 = vld [vmem:[%s11916_s1 + $0xef0] ss:$8 sps:$4 sm:$0xff]   ;;  %v7938_v10 = vld [vmem:[%s11916_s1 + $0x204] ss:$8 sps:$4 sm:$0xff]  }
  0x45   :  { %5836 = vmatprep.subr.bf16.mxu0 %v7849_v11  ;;  %5333 = vmatprep.mubr.bf16.mxu1 %v6668_v35  ;;  %v7943_v11 = vld [vmem:[%s11916_s1 + $0xf04] ss:$8 sps:$4 sm:$0xff]   ;;  %v7965_v35 = vld [vmem:[%s11916_s1 + $0xf40] ss:$8 sps:$4 sm:$0xff]  }
  0x46   :  { %5866 = vmatprep.mubr.bf16.mxu0 %v6694_v38  ;;  %v7968_v38 = vld [vmem:[%s11916_s1 + $0x250] ss:$8 sps:$4 sm:$0xff]  }
  0x47   :  { %5304 = vmatpush1.bf16.msra.mxu1 %v7844_v12  ;;  %v6667_v12 = vcombine.low %v9387_v32, %v9387_v32  ;;  %v7964_v32 = vld [vmem:[%s11916_s1 + $0x244] ss:$8 sps:$4 sm:$0xff]  }
  0x48   :  { %5837 = vmatpush1.bf16.msra.mxu0 %v7847_v13  ;;  %5305 = vmatprep.subr.bf16.mxu1 %v7852_v14  ;;  %v7936_v13 = vld [vmem:[%s11916_s1 + $0x200] ss:$8 sps:$4 sm:$0xff]   ;;  %v6693_v14 = vcombine.low %v9400_v36, %v9400_v36  ;;  %v7970_v36 = vld [vmem:[%s11916_s1 + $0x254] ss:$8 sps:$4 sm:$0xff]  }
  0x49   :  { %5838 = vmatprep.subr.bf16.mxu0 %v7855_v15  ;;  %v7941_v15 = vld [vmem:[%s11916_s1 + $0xf00] ss:$8 sps:$4 sm:$0xff]  }
  0x4b   :  { %5306 = vmatpush1.bf16.msra.mxu1 %v7850_v16  ;;  %v7946_v16 = vld [vmem:[%s11916_s1 + $0x214] ss:$8 sps:$4 sm:$0xff]  }
  0x4c   :  { %5839 = vmatpush1.bf16.msra.mxu0 %v7853_v17  ;;  %5307 = vmatprep.subr.bf16.mxu1 %v7858_v18  ;;  %v7949_v17 = vld [vmem:[%s11916_s1 + $0xf14] ss:$8 sps:$4 sm:$0xff]  }
  0x4d   :  { %5840 = vmatprep.subr.bf16.mxu0 %v7861_v19  ;;  %v9537_v18 = vld [vmem:[%s11917_s0 + $0x10] sm:$0xff] }
  0x4e   :  { %v6670_v19 = vcombine.high %v9537_v18, %v9537_v18 }
  0x4f   :  { %5308 = vmatpush1.bf16.msra.mxu1 %v7856_v20  ;;  %v9544_v20 = vld [vmem:[%s11917_s0 + $0x78] sm:$0xff] }
  0x50   :  { %5841 = vmatpush1.bf16.msra.mxu0 %v7859_v21  ;;  %5309 = vmatprep.subr.bf16.mxu1 %v7864_v22  ;;  %v7944_v21 = vld [vmem:[%s11916_s1 + $0x210] ss:$8 sps:$4 sm:$0xff]  }
  0x51   :  { %5842 = vmatprep.subr.bf16.mxu0 %v7867_v23  ;;  %v7947_v22 = vld [vmem:[%s11916_s1 + $0xf10] ss:$8 sps:$4 sm:$0xff]   ;;  %v6696_v23 = vcombine.high %v9544_v20, %v9544_v20 }
  0x53   :  { %5310 = vmatpush1.bf16.msra.mxu1 %v7862_v24  ;;  %v7952_v24 = vld [vmem:[%s11916_s1 + $0x224] ss:$8 sps:$4 sm:$0xff]  }
  0x54   :  { %5843 = vmatpush1.bf16.msra.mxu0 %v7865_v25  ;;  %5311 = vmatprep.subr.bf16.mxu1 %v7870_v26  ;;  %v7955_v25 = vld [vmem:[%s11916_s1 + $0xf24] ss:$8 sps:$4 sm:$0xff]   ;;  %v7950_v26 = vld [vmem:[%s11916_s1 + $0x220] ss:$8 sps:$4 sm:$0xff]  }
  0x55   :  { %5844 = vmatprep.subr.bf16.mxu0 %v7873_v27  ;;  %v7953_v27 = vld [vmem:[%s11916_s1 + $0xf20] ss:$8 sps:$4 sm:$0xff]  }
  0x57   :  { %5312 = vmatpush1.bf16.msra.mxu1 %v7868_v28  ;;  %v7958_v28 = vld [vmem:[%s11916_s1 + $0x234] ss:$8 sps:$4 sm:$0xff]  }
  0x58   :  { %5845 = vmatpush1.bf16.msra.mxu0 %v7871_v29  ;;  %5313 = vmatprep.subr.bf16.mxu1 %v7876_v30  ;;  %v7961_v29 = vld [vmem:[%s11916_s1 + $0xf34] ss:$8 sps:$4 sm:$0xff]   ;;  %v7956_v30 = vld [vmem:[%s11916_s1 + $0x230] ss:$8 sps:$4 sm:$0xff]  }
  0x59   :  { %5846 = vmatprep.subr.bf16.mxu0 %v7879_v31  ;;  %v7959_v31 = vld [vmem:[%s11916_s1 + $0xf30] ss:$8 sps:$4 sm:$0xff]  }
  0x5b   :  { %5314 = vmatpush1.bf16.msra.mxu1 %v7874_v33  ;;  %v7967_v33 = vld [vmem:[%s11916_s1 + $0xf44] ss:$8 sps:$4 sm:$0xff]  }
  0x5c   :  { %5847 = vmatpush1.bf16.msra.mxu0 %v7877_v34  ;;  %5315 = vmatprep.subr.bf16.mxu1 %v7882_v37  ;;  %v7962_v34 = vld [vmem:[%s11916_s1 + $0x240] ss:$8 sps:$4 sm:$0xff]   ;;  %v7973_v37 = vld [vmem:[%s11916_s1 + $0xf54] ss:$8 sps:$4 sm:$0xff]  }
  0x5d   :  { %5848 = vmatprep.subr.bf16.mxu0 %v7885_v39  ;;  %v7971_v39 = vld [vmem:[%s11916_s1 + $0xf50] ss:$8 sps:$4 sm:$0xff]  }
  0x5f   :  { %5316 = vmatpush1.bf16.msra.mxu1 %v7880_v40  ;;  %v7976_v40 = vld [vmem:[%s11916_s1 + $0x264] ss:$8 sps:$4 sm:$0xff]  }
  0x60   :  { %5849 = vmatpush1.bf16.msra.mxu0 %v7883_v41  ;;  %5317 = vmatprep.subr.bf16.mxu1 %v7888_v42  ;;  %v7979_v41 = vld [vmem:[%s11916_s1 + $0xf64] ss:$8 sps:$4 sm:$0xff]   ;;  %v7974_v42 = vld [vmem:[%s11916_s1 + $0x260] ss:$8 sps:$4 sm:$0xff]  }
  0x61   :  { %5850 = vmatprep.subr.bf16.mxu0 %v7891_v43  ;;  %v7977_v43 = vld [vmem:[%s11916_s1 + $0xf60] ss:$8 sps:$4 sm:$0xff]  }
  0x63   :  { %5318 = vmatpush1.bf16.msra.mxu1 %v7886_v44  ;;  %v7982_v44 = vld [vmem:[%s11916_s1 + $0x274] ss:$8 sps:$4 sm:$0xff]  }
  0x64   :  { %5851 = vmatpush1.bf16.msra.mxu0 %v7889_v45  ;;  %5319 = vmatprep.subr.bf16.mxu1 %v7894_v46  ;;  %v7985_v45 = vld [vmem:[%s11916_s1 + $0xf74] ss:$8 sps:$4 sm:$0xff]   ;;  %v7980_v46 = vld [vmem:[%s11916_s1 + $0x270] ss:$8 sps:$4 sm:$0xff]  }
  0x65   :  { %5852 = vmatprep.subr.bf16.mxu0 %v7897_v47  ;;  %v7983_v47 = vld [vmem:[%s11916_s1 + $0xf70] ss:$8 sps:$4 sm:$0xff]  }
  0x67   :  { %5320 = vmatpush1.bf16.msra.mxu1 %v7892_v48  ;;  %v7988_v48 = vld [vmem:[%s11916_s1 + $0x284] ss:$8 sps:$4 sm:$0xff]  }
  0x68   :  { %5853 = vmatpush1.bf16.msra.mxu0 %v7895_v49  ;;  %5321 = vmatprep.subr.bf16.mxu1 %v7900_v50  ;;  %v7991_v49 = vld [vmem:[%s11916_s1 + $0xf84] ss:$8 sps:$4 sm:$0xff]   ;;  %v7986_v50 = vld [vmem:[%s11916_s1 + $0x280] ss:$8 sps:$4 sm:$0xff]  }
  0x69   :  { %5854 = vmatprep.subr.bf16.mxu0 %v7903_v51  ;;  %v7989_v51 = vld [vmem:[%s11916_s1 + $0xf80] ss:$8 sps:$4 sm:$0xff]  }
  0x6b   :  { %5322 = vmatpush1.bf16.msra.mxu1 %v7898_v52  ;;  %v7994_v52 = vld [vmem:[%s11916_s1 + $0x294] ss:$8 sps:$4 sm:$0xff]  }
  0x6c   :  { %5855 = vmatpush1.bf16.msra.mxu0 %v7901_v53  ;;  %5323 = vmatprep.subr.bf16.mxu1 %v7906_v54  ;;  %v7997_v53 = vld [vmem:[%s11916_s1 + $0xf94] ss:$8 sps:$4 sm:$0xff]   ;;  %v7992_v54 = vld [vmem:[%s11916_s1 + $0x290] ss:$8 sps:$4 sm:$0xff]  }
  0x6d   :  { %5856 = vmatprep.subr.bf16.mxu0 %v7909_v55  ;;  %v7995_v55 = vld [vmem:[%s11916_s1 + $0xf90] ss:$8 sps:$4 sm:$0xff]  }
  0x6f   :  { %5324 = vmatpush1.bf16.msra.mxu1 %v7904_v56  ;;  %v8000_v56 = vld [vmem:[%s11916_s1 + $0x2a4] ss:$8 sps:$4 sm:$0xff]  }
  0x70   :  { %5857 = vmatpush1.bf16.msra.mxu0 %v7907_v57  ;;  %5325 = vmatprep.subr.bf16.mxu1 %v7912_v58  ;;  %v8003_v57 = vld [vmem:[%s11916_s1 + $0xfa4] ss:$8 sps:$4 sm:$0xff]   ;;  %v7998_v58 = vld [vmem:[%s11916_s1 + $0x2a0] ss:$8 sps:$4 sm:$0xff]  }
  0x71   :  { %5858 = vmatprep.subr.bf16.mxu0 %v7915_v59  ;;  %v8001_v59 = vld [vmem:[%s11916_s1 + $0xfa0] ss:$8 sps:$4 sm:$0xff]  }
  0x73   :  { %5326 = vmatpush1.bf16.msra.mxu1 %v7910_v60  ;;  %v8006_v60 = vld [vmem:[%s11916_s1 + $0x2b4] ss:$8 sps:$4 sm:$0xff]  }
  0x74   :  { %5859 = vmatpush1.bf16.msra.mxu0 %v7913_v61  ;;  %5327 = vmatprep.subr.bf16.mxu1 %v7918_v62  ;;  %v8009_v61 = vld [vmem:[%s11916_s1 + $0xfb4] ss:$8 sps:$4 sm:$0xff]   ;;  %v8004_v62 = vld [vmem:[%s11916_s1 + $0x2b0] ss:$8 sps:$4 sm:$0xff]  }
  0x75   :  { %5860 = vmatprep.subr.bf16.mxu0 %v7921_v63  ;;  %v8007_v63 = vld [vmem:[%s11916_s1 + $0xfb0] ss:$8 sps:$4 sm:$0xff]  }
  0x77   :  { %5328 = vmatpush1.bf16.msra.mxu1 %v7916_v0  ;;  %v8012_v0 = vld [vmem:[%s11916_s1 + $0x2c4] ss:$8 sps:$4 sm:$0xff]  }
  0x78   :  { %5861 = vmatpush1.bf16.msra.mxu0 %v7919_v1  ;;  %5329 = vmatprep.subr.bf16.mxu1 %v7924_v2  ;;  %v8015_v1 = vld [vmem:[%s11916_s1 + $0xfc4] ss:$8 sps:$4 sm:$0xff]   ;;  %v8010_v2 = vld [vmem:[%s11916_s1 + $0x2c0] ss:$8 sps:$4 sm:$0xff]  }
  0x79   :  { %5862 = vmatprep.subr.bf16.mxu0 %v7927_v3  ;;  %v8013_v3 = vld [vmem:[%s11916_s1 + $0xfc0] ss:$8 sps:$4 sm:$0xff]  }
  0x7b   :  { %5330 = vmatpush1.bf16.msra.mxu1 %v7922_v4  ;;  %v8018_v4 = vld [vmem:[%s11916_s1 + $0x2d4] ss:$8 sps:$4 sm:$0xff]  }
  0x7c   :  { %5863 = vmatpush1.bf16.msra.mxu0 %v7925_v5  ;;  %5331 = vmatprep.subr.bf16.mxu1 %v7930_v6  ;;  %v8021_v5 = vld [vmem:[%s11916_s1 + $0xfd4] ss:$8 sps:$4 sm:$0xff]   ;;  %v8016_v6 = vld [vmem:[%s11916_s1 + $0x2d0] ss:$8 sps:$4 sm:$0xff]  }
  0x7d   :  { %5864 = vmatprep.subr.bf16.mxu0 %v7933_v7  ;;  %v8019_v7 = vld [vmem:[%s11916_s1 + $0xfd0] ss:$8 sps:$4 sm:$0xff]  }
  0x7f   :  { %5332 = vmatpush1.bf16.msra.mxu1 %v7928_v8  ;;  %v8024_v8 = vld [vmem:[%s11916_s1 + $0x2e4] ss:$8 sps:$4 sm:$0xff]  }
  0x80   :  { %5865 = vmatpush1.bf16.msra.mxu0 %v7931_v9  ;;  %5342 = vmatprep.subr.bf16.mxu1 %v7938_v10  ;;  %v8027_v9 = vld [vmem:[%s11916_s1 + $0xfe4] ss:$8 sps:$4 sm:$0xff]   ;;  %v8022_v10 = vld [vmem:[%s11916_s1 + $0x2e0] ss:$8 sps:$4 sm:$0xff]  }
  0x81   :  { %5875 = vmatprep.subr.bf16.mxu0 %v7943_v11  ;;  %v8025_v11 = vld [vmem:[%s11916_s1 + $0xfe0] ss:$8 sps:$4 sm:$0xff]  }
  0x82   :  { %5334 = vmatmul.mubr.bf16.vlgmr.msra.gmra.mrb[0].mxu1 %v6667_v12  ;;  %v8030_v12 = vld [vmem:[%s11916_s1 + $0x2f4] ss:$8 sps:$4 sm:$0xff]  }
  0x83   :  { %5867 = vmatmul.mubr.bf16.vlgmr.msra.gmra.mrb[0].mxu0 %v6693_v14  ;;  %5343 = vmatpush1.bf16.msra.mxu1 %v7936_v13  ;;  %v8033_v13 = vld [vmem:[%s11916_s1 + $0xff4] ss:$8 sps:$4 sm:$0xff]   ;;  %v8028_v14 = vld [vmem:[%s11916_s1 + $0x2f0] ss:$8 sps:$4 sm:$0xff]  }
  0x84   :  { %5876 = vmatpush1.bf16.msra.mxu0 %v7941_v15  ;;  %5344 = vmatprep.subr.bf16.mxu1 %v7946_v16  ;;  %v8031_v15 = vld [vmem:[%s11916_s1 + $0xff0] ss:$8 sps:$4 sm:$0xff]   ;;  %v8038_v16 = vld [vmem:[%s11916_s1 + $0x304] ss:$8 sps:$4 sm:$0xff]  }
  0x85   :  { %5877 = vmatprep.subr.bf16.mxu0 %v7949_v17  ;;  %5374 = vmatprep.mubr.bf16.mxu1 %v6670_v19  ;;  %v8043_v17 = vld [vmem:[%s11916_s1 + $0x1004] ss:$8 sps:$4 sm:$0xff]   ;;  %v8036_v19 = vld [vmem:[%s11916_s1 + $0x300] ss:$8 sps:$4 sm:$0xff]  }
  0x86   :  { %5907 = vmatprep.mubr.bf16.mxu0 %v6696_v23  ;;  %v6695_v23 = vcombine.low %v9544_v20, %v9544_v20 }
  0x87   :  { %5345 = vmatpush1.bf16.msra.mxu1 %v7944_v21  ;;  %v8041_v21 = vld [vmem:[%s11916_s1 + $0x1000] ss:$8 sps:$4 sm:$0xff]  }
  0x88   :  { %5878 = vmatpush1.bf16.msra.mxu0 %v7947_v22  ;;  %5346 = vmatprep.subr.bf16.mxu1 %v7952_v24  ;;  %v6669_v22 = vcombine.low %v9537_v18, %v9537_v18  ;;  %v9741_v24 = vld [vmem:[%s11917_s0 + $0x18] sm:$0xff] }
  0x89   :  { %5879 = vmatprep.subr.bf16.mxu0 %v7955_v25  ;;  %v9746_v25 = vld [vmem:[%s11917_s0 + $0x80] sm:$0xff]  ;;  %v8049_v18 = vld [vmem:[%s11916_s1 + $0x1014] ss:$8 sps:$4 sm:$0xff]   ;;  %v6672_v20 = vcombine.high %v9741_v24, %v9741_v24 }
  0x8b   :  { %5347 = vmatpush1.bf16.msra.mxu1 %v7950_v26  ;;  %v8046_v26 = vld [vmem:[%s11916_s1 + $0x314] ss:$8 sps:$4 sm:$0xff]  }
  0x8c   :  { %5880 = vmatpush1.bf16.msra.mxu0 %v7953_v27  ;;  %5348 = vmatprep.subr.bf16.mxu1 %v7958_v28  ;;  %v6698_v27 = vcombine.high %v9746_v25, %v9746_v25  ;;  %v8044_v28 = vld [vmem:[%s11916_s1 + $0x310] ss:$8 sps:$4 sm:$0xff]  }
  0x8d   :  { %5881 = vmatprep.subr.bf16.mxu0 %v7961_v29  ;;  %v8047_v29 = vld [vmem:[%s11916_s1 + $0x1010] ss:$8 sps:$4 sm:$0xff]  }
  0x8f   :  { %5349 = vmatpush1.bf16.msra.mxu1 %v7956_v30  ;;  %v8052_v30 = vld [vmem:[%s11916_s1 + $0x324] ss:$8 sps:$4 sm:$0xff]  }
  0x90   :  { %5882 = vmatpush1.bf16.msra.mxu0 %v7959_v31  ;;  %5350 = vmatprep.subr.bf16.mxu1 %v7964_v32  ;;  %v8055_v31 = vld [vmem:[%s11916_s1 + $0x1024] ss:$8 sps:$4 sm:$0xff]   ;;  %v8050_v32 = vld [vmem:[%s11916_s1 + $0x320] ss:$8 sps:$4 sm:$0xff]  }
  0x91   :  { %5883 = vmatprep.subr.bf16.mxu0 %v7967_v33  ;;  %v8053_v33 = vld [vmem:[%s11916_s1 + $0x1020] ss:$8 sps:$4 sm:$0xff]  }
  0x93   :  { %5351 = vmatpush1.bf16.msra.mxu1 %v7962_v34  ;;  %v8058_v34 = vld [vmem:[%s11916_s1 + $0x334] ss:$8 sps:$4 sm:$0xff]  }
  0x94   :  { %5884 = vmatpush1.bf16.msra.mxu0 %v7965_v35  ;;  %5352 = vmatprep.subr.bf16.mxu1 %v7970_v36  ;;  %v8061_v35 = vld [vmem:[%s11916_s1 + $0x1034] ss:$8 sps:$4 sm:$0xff]   ;;  %v8056_v36 = vld [vmem:[%s11916_s1 + $0x330] ss:$8 sps:$4 sm:$0xff]  }
  0x95   :  { %5885 = vmatprep.subr.bf16.mxu0 %v7973_v37  ;;  %v8059_v37 = vld [vmem:[%s11916_s1 + $0x1030] ss:$8 sps:$4 sm:$0xff]  }
  0x97   :  { %5353 = vmatpush1.bf16.msra.mxu1 %v7968_v38  ;;  %v8064_v38 = vld [vmem:[%s11916_s1 + $0x344] ss:$8 sps:$4 sm:$0xff]  }
  0x98   :  { %5886 = vmatpush1.bf16.msra.mxu0 %v7971_v39  ;;  %5354 = vmatprep.subr.bf16.mxu1 %v7976_v40  ;;  %v8067_v39 = vld [vmem:[%s11916_s1 + $0x1044] ss:$8 sps:$4 sm:$0xff]   ;;  %v8062_v40 = vld [vmem:[%s11916_s1 + $0x340] ss:$8 sps:$4 sm:$0xff]  }
  0x99   :  { %5887 = vmatprep.subr.bf16.mxu0 %v7979_v41  ;;  %v8065_v41 = vld [vmem:[%s11916_s1 + $0x1040] ss:$8 sps:$4 sm:$0xff]  }
  0x9b   :  { %5355 = vmatpush1.bf16.msra.mxu1 %v7974_v42  ;;  %v8070_v42 = vld [vmem:[%s11916_s1 + $0x354] ss:$8 sps:$4 sm:$0xff]  }
  0x9c   :  { %5888 = vmatpush1.bf16.msra.mxu0 %v7977_v43  ;;  %5356 = vmatprep.subr.bf16.mxu1 %v7982_v44  ;;  %v8073_v43 = vld [vmem:[%s11916_s1 + $0x1054] ss:$8 sps:$4 sm:$0xff]   ;;  %v8068_v44 = vld [vmem:[%s11916_s1 + $0x350] ss:$8 sps:$4 sm:$0xff]  }
  0x9d   :  { %5889 = vmatprep.subr.bf16.mxu0 %v7985_v45  ;;  %v8071_v45 = vld [vmem:[%s11916_s1 + $0x1050] ss:$8 sps:$4 sm:$0xff]  }
  0x9f   :  { %5357 = vmatpush1.bf16.msra.mxu1 %v7980_v46  ;;  %v8076_v46 = vld [vmem:[%s11916_s1 + $0x364] ss:$8 sps:$4 sm:$0xff]  }
  0xa0   :  { %5890 = vmatpush1.bf16.msra.mxu0 %v7983_v47  ;;  %5358 = vmatprep.subr.bf16.mxu1 %v7988_v48  ;;  %v8079_v47 = vld [vmem:[%s11916_s1 + $0x1064] ss:$8 sps:$4 sm:$0xff]   ;;  %v8074_v48 = vld [vmem:[%s11916_s1 + $0x360] ss:$8 sps:$4 sm:$0xff]  }
  0xa1   :  { %5891 = vmatprep.subr.bf16.mxu0 %v7991_v49  ;;  %v8077_v49 = vld [vmem:[%s11916_s1 + $0x1060] ss:$8 sps:$4 sm:$0xff]  }
  0xa3   :  { %5359 = vmatpush1.bf16.msra.mxu1 %v7986_v50  ;;  %v8082_v50 = vld [vmem:[%s11916_s1 + $0x374] ss:$8 sps:$4 sm:$0xff]  }
  0xa4   :  { %5892 = vmatpush1.bf16.msra.mxu0 %v7989_v51  ;;  %5360 = vmatprep.subr.bf16.mxu1 %v7994_v52  ;;  %v8085_v51 = vld [vmem:[%s11916_s1 + $0x1074] ss:$8 sps:$4 sm:$0xff]   ;;  %v8080_v52 = vld [vmem:[%s11916_s1 + $0x370] ss:$8 sps:$4 sm:$0xff]  }
  0xa5   :  { %5893 = vmatprep.subr.bf16.mxu0 %v7997_v53  ;;  %v8083_v53 = vld [vmem:[%s11916_s1 + $0x1070] ss:$8 sps:$4 sm:$0xff]  }
  0xa7   :  { %5361 = vmatpush1.bf16.msra.mxu1 %v7992_v54  ;;  %v8088_v54 = vld [vmem:[%s11916_s1 + $0x384] ss:$8 sps:$4 sm:$0xff]  }
  0xa8   :  { %5894 = vmatpush1.bf16.msra.mxu0 %v7995_v55  ;;  %5362 = vmatprep.subr.bf16.mxu1 %v8000_v56  ;;  %v8091_v55 = vld [vmem:[%s11916_s1 + $0x1084] ss:$8 sps:$4 sm:$0xff]   ;;  %v8086_v56 = vld [vmem:[%s11916_s1 + $0x380] ss:$8 sps:$4 sm:$0xff]  }
  0xa9   :  { %5895 = vmatprep.subr.bf16.mxu0 %v8003_v57  ;;  %v8089_v57 = vld [vmem:[%s11916_s1 + $0x1080] ss:$8 sps:$4 sm:$0xff]  }
  0xab   :  { %5363 = vmatpush1.bf16.msra.mxu1 %v7998_v58  ;;  %v8094_v58 = vld [vmem:[%s11916_s1 + $0x394] ss:$8 sps:$4 sm:$0xff]  }
  0xac   :  { %5896 = vmatpush1.bf16.msra.mxu0 %v8001_v59  ;;  %5364 = vmatprep.subr.bf16.mxu1 %v8006_v60  ;;  %v8097_v59 = vld [vmem:[%s11916_s1 + $0x1094] ss:$8 sps:$4 sm:$0xff]   ;;  %v8092_v60 = vld [vmem:[%s11916_s1 + $0x390] ss:$8 sps:$4 sm:$0xff]  }
  0xad   :  { %5897 = vmatprep.subr.bf16.mxu0 %v8009_v61  ;;  %v8095_v61 = vld [vmem:[%s11916_s1 + $0x1090] ss:$8 sps:$4 sm:$0xff]  }
  0xaf   :  { %5365 = vmatpush1.bf16.msra.mxu1 %v8004_v62  ;;  %v8100_v62 = vld [vmem:[%s11916_s1 + $0x3a4] ss:$8 sps:$4 sm:$0xff]  }
  0xb0   :  { %5898 = vmatpush1.bf16.msra.mxu0 %v8007_v63  ;;  %5366 = vmatprep.subr.bf16.mxu1 %v8012_v0  ;;  %v8103_v63 = vld [vmem:[%s11916_s1 + $0x10a4] ss:$8 sps:$4 sm:$0xff]   ;;  %v8098_v0 = vld [vmem:[%s11916_s1 + $0x3a0] ss:$8 sps:$4 sm:$0xff]  }
  0xb1   :  { %5899 = vmatprep.subr.bf16.mxu0 %v8015_v1  ;;  %v8101_v1 = vld [vmem:[%s11916_s1 + $0x10a0] ss:$8 sps:$4 sm:$0xff]  }
  0xb3   :  { %5367 = vmatpush1.bf16.msra.mxu1 %v8010_v2  ;;  %v8106_v2 = vld [vmem:[%s11916_s1 + $0x3b4] ss:$8 sps:$4 sm:$0xff]  }
  0xb4   :  { %5900 = vmatpush1.bf16.msra.mxu0 %v8013_v3  ;;  %5368 = vmatprep.subr.bf16.mxu1 %v8018_v4  ;;  %v8109_v3 = vld [vmem:[%s11916_s1 + $0x10b4] ss:$8 sps:$4 sm:$0xff]   ;;  %v8104_v4 = vld [vmem:[%s11916_s1 + $0x3b0] ss:$8 sps:$4 sm:$0xff]  }
  0xb5   :  { %5901 = vmatprep.subr.bf16.mxu0 %v8021_v5  ;;  %v8107_v5 = vld [vmem:[%s11916_s1 + $0x10b0] ss:$8 sps:$4 sm:$0xff]  }
  0xb7   :  { %5369 = vmatpush1.bf16.msra.mxu1 %v8016_v6  ;;  %v8112_v6 = vld [vmem:[%s11916_s1 + $0x3c4] ss:$8 sps:$4 sm:$0xff]  }
  0xb8   :  { %5902 = vmatpush1.bf16.msra.mxu0 %v8019_v7  ;;  %5370 = vmatprep.subr.bf16.mxu1 %v8024_v8  ;;  %v8115_v7 = vld [vmem:[%s11916_s1 + $0x10c4] ss:$8 sps:$4 sm:$0xff]   ;;  %v8110_v8 = vld [vmem:[%s11916_s1 + $0x3c0] ss:$8 sps:$4 sm:$0xff]  }
  0xb9   :  { %5903 = vmatprep.subr.bf16.mxu0 %v8027_v9  ;;  %v8113_v9 = vld [vmem:[%s11916_s1 + $0x10c0] ss:$8 sps:$4 sm:$0xff]  }
  0xbb   :  { %5371 = vmatpush1.bf16.msra.mxu1 %v8022_v10  ;;  %v8118_v10 = vld [vmem:[%s11916_s1 + $0x3d4] ss:$8 sps:$4 sm:$0xff]  }
  0xbc   :  { %5904 = vmatpush1.bf16.msra.mxu0 %v8025_v11  ;;  %5372 = vmatprep.subr.bf16.mxu1 %v8030_v12  ;;  %v8121_v11 = vld [vmem:[%s11916_s1 + $0x10d4] ss:$8 sps:$4 sm:$0xff]   ;;  %v8116_v12 = vld [vmem:[%s11916_s1 + $0x3d0] ss:$8 sps:$4 sm:$0xff]  }
  0xbd   :  { %5905 = vmatprep.subr.bf16.mxu0 %v8033_v13  ;;  %v8119_v13 = vld [vmem:[%s11916_s1 + $0x10d0] ss:$8 sps:$4 sm:$0xff]  }
  0xbf   :  { %5373 = vmatpush1.bf16.msra.mxu1 %v8028_v14  ;;  %v8124_v14 = vld [vmem:[%s11916_s1 + $0x3e4] ss:$8 sps:$4 sm:$0xff]  }
  0xc0   :  { %5906 = vmatpush1.bf16.msra.mxu0 %v8031_v15  ;;  %5383 = vmatprep.subr.bf16.mxu1 %v8038_v16  ;;  %v8127_v15 = vld [vmem:[%s11916_s1 + $0x10e4] ss:$8 sps:$4 sm:$0xff]   ;;  %v8122_v16 = vld [vmem:[%s11916_s1 + $0x3e0] ss:$8 sps:$4 sm:$0xff]  }
  0xc1   :  { %5916 = vmatprep.subr.bf16.mxu0 %v8043_v17  ;;  %v8125_v17 = vld [vmem:[%s11916_s1 + $0x10e0] ss:$8 sps:$4 sm:$0xff]  }
  0xc2   :  { %5375 = vmatmul.mubr.bf16.vlgmr.msra.gmra.mrb[0].mxu1 %v6669_v22  ;;  %v8128_v22 = vld [vmem:[%s11916_s1 + $0x3f0] ss:$8 sps:$4 sm:$0xff]  }
  0xc3   :  { %5908 = vmatmul.mubr.bf16.vlgmr.msra.gmra.mrb[0].mxu0 %v6695_v23  ;;  %5384 = vmatpush1.bf16.msra.mxu1 %v8036_v19  ;;  %v8130_v19 = vld [vmem:[%s11916_s1 + $0x3f4] ss:$8 sps:$4 sm:$0xff]   ;;  %v8131_v23 = vld [vmem:[%s11916_s1 + $0x10f0] ss:$8 sps:$4 sm:$0xff]  }
  0xc4   :  { %5917 = vmatpush1.bf16.msra.mxu0 %v8041_v21  ;;  %5385 = vmatprep.subr.bf16.mxu1 %v8046_v26  ;;  %v8133_v21 = vld [vmem:[%s11916_s1 + $0x10f4] ss:$8 sps:$4 sm:$0xff]   ;;  %v8138_v26 = vld [vmem:[%s11916_s1 + $0x404] ss:$8 sps:$4 sm:$0xff]  }
  0xc5   :  { %5918 = vmatprep.subr.bf16.mxu0 %v8049_v18  ;;  %5415 = vmatprep.mubr.bf16.mxu1 %v6672_v20  ;;  %v8143_v18 = vld [vmem:[%s11916_s1 + $0x1104] ss:$8 sps:$4 sm:$0xff]  }
  0xc6   :  { %5948 = vmatprep.mubr.bf16.mxu0 %v6698_v27  ;;  %v9941_v20 = vld [vmem:[%s11917_s0 + $0x20] sm:$0xff]  ;;  %v6671_v27 = vcombine.low %v9741_v24, %v9741_v24  ;;  %v8146_v24 = vld [vmem:[%s11916_s1 + $0x414] ss:$8 sps:$4 sm:$0xff]  }
  0xc7   :  { %5386 = vmatpush1.bf16.msra.mxu1 %v8044_v28  ;;  %v6697_v28 = vcombine.low %v9746_v25, %v9746_v25  ;;  %v8149_v25 = vld [vmem:[%s11916_s1 + $0x1114] ss:$8 sps:$4 sm:$0xff]  }
  0xc8   :  { %5919 = vmatpush1.bf16.msra.mxu0 %v8047_v29  ;;  %5387 = vmatprep.subr.bf16.mxu1 %v8052_v30  ;;  %v9950_v29 = vld [vmem:[%s11917_s0 + $0x88] sm:$0xff] }
  0xc9   :  { %5920 = vmatprep.subr.bf16.mxu0 %v8055_v31  ;;  %v8136_v30 = vld [vmem:[%s11916_s1 + $0x400] ss:$8 sps:$4 sm:$0xff]  }
  0xca   :  { %v8141_v31 = vld [vmem:[%s11916_s1 + $0x1100] ss:$8 sps:$4 sm:$0xff]  }
  0xcb   :  { %5388 = vmatpush1.bf16.msra.mxu1 %v8050_v32  ;;  %v6674_v32 = vcombine.high %v9941_v20, %v9941_v20 }
  0xcc   :  { %5921 = vmatpush1.bf16.msra.mxu0 %v8053_v33  ;;  %5389 = vmatprep.subr.bf16.mxu1 %v8058_v34  ;;  %v6700_v33 = vcombine.high %v9950_v29, %v9950_v29  ;;  %v8144_v34 = vld [vmem:[%s11916_s1 + $0x410] ss:$8 sps:$4 sm:$0xff]  }
  0xcd   :  { %5922 = vmatprep.subr.bf16.mxu0 %v8061_v35  ;;  %v8147_v35 = vld [vmem:[%s11916_s1 + $0x1110] ss:$8 sps:$4 sm:$0xff]  }
  0xcf   :  { %5390 = vmatpush1.bf16.msra.mxu1 %v8056_v36  ;;  %v8152_v36 = vld [vmem:[%s11916_s1 + $0x424] ss:$8 sps:$4 sm:$0xff]  }
  0xd0   :  { %5923 = vmatpush1.bf16.msra.mxu0 %v8059_v37  ;;  %5391 = vmatprep.subr.bf16.mxu1 %v8064_v38  ;;  %v8155_v37 = vld [vmem:[%s11916_s1 + $0x1124] ss:$8 sps:$4 sm:$0xff]   ;;  %v8150_v38 = vld [vmem:[%s11916_s1 + $0x420] ss:$8 sps:$4 sm:$0xff]  }
  0xd1   :  { %5924 = vmatprep.subr.bf16.mxu0 %v8067_v39  ;;  %v8153_v39 = vld [vmem:[%s11916_s1 + $0x1120] ss:$8 sps:$4 sm:$0xff]  }
  0xd3   :  { %5392 = vmatpush1.bf16.msra.mxu1 %v8062_v40  ;;  %v8158_v40 = vld [vmem:[%s11916_s1 + $0x434] ss:$8 sps:$4 sm:$0xff]  }
  0xd4   :  { %5925 = vmatpush1.bf16.msra.mxu0 %v8065_v41  ;;  %5393 = vmatprep.subr.bf16.mxu1 %v8070_v42  ;;  %v8161_v41 = vld [vmem:[%s11916_s1 + $0x1134] ss:$8 sps:$4 sm:$0xff]   ;;  %v8156_v42 = vld [vmem:[%s11916_s1 + $0x430] ss:$8 sps:$4 sm:$0xff]  }
  0xd5   :  { %5926 = vmatprep.subr.bf16.mxu0 %v8073_v43  ;;  %v8159_v43 = vld [vmem:[%s11916_s1 + $0x1130] ss:$8 sps:$4 sm:$0xff]  }
  0xd7   :  { %5394 = vmatpush1.bf16.msra.mxu1 %v8068_v44  ;;  %v8164_v44 = vld [vmem:[%s11916_s1 + $0x444] ss:$8 sps:$4 sm:$0xff]  }
  0xd8   :  { %5927 = vmatpush1.bf16.msra.mxu0 %v8071_v45  ;;  %5395 = vmatprep.subr.bf16.mxu1 %v8076_v46  ;;  %v8167_v45 = vld [vmem:[%s11916_s1 + $0x1144] ss:$8 sps:$4 sm:$0xff]   ;;  %v8162_v46 = vld [vmem:[%s11916_s1 + $0x440] ss:$8 sps:$4 sm:$0xff]  }
  0xd9   :  { %5928 = vmatprep.subr.bf16.mxu0 %v8079_v47  ;;  %v8165_v47 = vld [vmem:[%s11916_s1 + $0x1140] ss:$8 sps:$4 sm:$0xff]  }
  0xdb   :  { %5396 = vmatpush1.bf16.msra.mxu1 %v8074_v48  ;;  %v8170_v48 = vld [vmem:[%s11916_s1 + $0x454] ss:$8 sps:$4 sm:$0xff]  }
  0xdc   :  { %5929 = vmatpush1.bf16.msra.mxu0 %v8077_v49  ;;  %5397 = vmatprep.subr.bf16.mxu1 %v8082_v50  ;;  %v8173_v49 = vld [vmem:[%s11916_s1 + $0x1154] ss:$8 sps:$4 sm:$0xff]   ;;  %v8168_v50 = vld [vmem:[%s11916_s1 + $0x450] ss:$8 sps:$4 sm:$0xff]  }
  0xdd   :  { %5930 = vmatprep.subr.bf16.mxu0 %v8085_v51  ;;  %v8171_v51 = vld [vmem:[%s11916_s1 + $0x1150] ss:$8 sps:$4 sm:$0xff]  }
  0xdf   :  { %5398 = vmatpush1.bf16.msra.mxu1 %v8080_v52  ;;  %v8176_v52 = vld [vmem:[%s11916_s1 + $0x464] ss:$8 sps:$4 sm:$0xff]  }
  0xe0   :  { %5931 = vmatpush1.bf16.msra.mxu0 %v8083_v53  ;;  %5399 = vmatprep.subr.bf16.mxu1 %v8088_v54  ;;  %v8179_v53 = vld [vmem:[%s11916_s1 + $0x1164] ss:$8 sps:$4 sm:$0xff]   ;;  %v8174_v54 = vld [vmem:[%s11916_s1 + $0x460] ss:$8 sps:$4 sm:$0xff]  }
  0xe1   :  { %5932 = vmatprep.subr.bf16.mxu0 %v8091_v55  ;;  %v8177_v55 = vld [vmem:[%s11916_s1 + $0x1160] ss:$8 sps:$4 sm:$0xff]  }
  0xe3   :  { %5400 = vmatpush1.bf16.msra.mxu1 %v8086_v56  ;;  %v8182_v56 = vld [vmem:[%s11916_s1 + $0x474] ss:$8 sps:$4 sm:$0xff]  }
  0xe4   :  { %5933 = vmatpush1.bf16.msra.mxu0 %v8089_v57  ;;  %5401 = vmatprep.subr.bf16.mxu1 %v8094_v58  ;;  %v8185_v57 = vld [vmem:[%s11916_s1 + $0x1174] ss:$8 sps:$4 sm:$0xff]   ;;  %v8180_v58 = vld [vmem:[%s11916_s1 + $0x470] ss:$8 sps:$4 sm:$0xff]  }
  0xe5   :  { %5934 = vmatprep.subr.bf16.mxu0 %v8097_v59  ;;  %v8183_v59 = vld [vmem:[%s11916_s1 + $0x1170] ss:$8 sps:$4 sm:$0xff]  }
  0xe7   :  { %5402 = vmatpush1.bf16.msra.mxu1 %v8092_v60  ;;  %v8188_v60 = vld [vmem:[%s11916_s1 + $0x484] ss:$8 sps:$4 sm:$0xff]  }
  0xe8   :  { %5935 = vmatpush1.bf16.msra.mxu0 %v8095_v61  ;;  %5403 = vmatprep.subr.bf16.mxu1 %v8100_v62  ;;  %v8191_v61 = vld [vmem:[%s11916_s1 + $0x1184] ss:$8 sps:$4 sm:$0xff]   ;;  %v8186_v62 = vld [vmem:[%s11916_s1 + $0x480] ss:$8 sps:$4 sm:$0xff]  }
  0xe9   :  { %5936 = vmatprep.subr.bf16.mxu0 %v8103_v63  ;;  %v8189_v63 = vld [vmem:[%s11916_s1 + $0x1180] ss:$8 sps:$4 sm:$0xff]  }
  0xeb   :  { %5404 = vmatpush1.bf16.msra.mxu1 %v8098_v0  ;;  %v8194_v0 = vld [vmem:[%s11916_s1 + $0x494] ss:$8 sps:$4 sm:$0xff]  }
  0xec   :  { %5937 = vmatpush1.bf16.msra.mxu0 %v8101_v1  ;;  %5405 = vmatprep.subr.bf16.mxu1 %v8106_v2  ;;  %v8197_v1 = vld [vmem:[%s11916_s1 + $0x1194] ss:$8 sps:$4 sm:$0xff]   ;;  %v8192_v2 = vld [vmem:[%s11916_s1 + $0x490] ss:$8 sps:$4 sm:$0xff]  }
  0xed   :  { %5938 = vmatprep.subr.bf16.mxu0 %v8109_v3  ;;  %v8195_v3 = vld [vmem:[%s11916_s1 + $0x1190] ss:$8 sps:$4 sm:$0xff]  }
  0xef   :  { %5406 = vmatpush1.bf16.msra.mxu1 %v8104_v4  ;;  %v8200_v4 = vld [vmem:[%s11916_s1 + $0x4a4] ss:$8 sps:$4 sm:$0xff]  }
  0xf0   :  { %5939 = vmatpush1.bf16.msra.mxu0 %v8107_v5  ;;  %5407 = vmatprep.subr.bf16.mxu1 %v8112_v6  ;;  %v8203_v5 = vld [vmem:[%s11916_s1 + $0x11a4] ss:$8 sps:$4 sm:$0xff]   ;;  %v8198_v6 = vld [vmem:[%s11916_s1 + $0x4a0] ss:$8 sps:$4 sm:$0xff]  }
  0xf1   :  { %5940 = vmatprep.subr.bf16.mxu0 %v8115_v7  ;;  %v8201_v7 = vld [vmem:[%s11916_s1 + $0x11a0] ss:$8 sps:$4 sm:$0xff]  }
  0xf3   :  { %5408 = vmatpush1.bf16.msra.mxu1 %v8110_v8  ;;  %v8206_v8 = vld [vmem:[%s11916_s1 + $0x4b4] ss:$8 sps:$4 sm:$0xff]  }
  0xf4   :  { %5941 = vmatpush1.bf16.msra.mxu0 %v8113_v9  ;;  %5409 = vmatprep.subr.bf16.mxu1 %v8118_v10  ;;  %v8209_v9 = vld [vmem:[%s11916_s1 + $0x11b4] ss:$8 sps:$4 sm:$0xff]   ;;  %v8204_v10 = vld [vmem:[%s11916_s1 + $0x4b0] ss:$8 sps:$4 sm:$0xff]  }
  0xf5   :  { %5942 = vmatprep.subr.bf16.mxu0 %v8121_v11  ;;  %v8207_v11 = vld [vmem:[%s11916_s1 + $0x11b0] ss:$8 sps:$4 sm:$0xff]  }
  0xf7   :  { %5410 = vmatpush1.bf16.msra.mxu1 %v8116_v12  ;;  %v8212_v12 = vld [vmem:[%s11916_s1 + $0x4c4] ss:$8 sps:$4 sm:$0xff]  }
  0xf8   :  { %5943 = vmatpush1.bf16.msra.mxu0 %v8119_v13  ;;  %5411 = vmatprep.subr.bf16.mxu1 %v8124_v14  ;;  %v8215_v13 = vld [vmem:[%s11916_s1 + $0x11c4] ss:$8 sps:$4 sm:$0xff]   ;;  %v8210_v14 = vld [vmem:[%s11916_s1 + $0x4c0] ss:$8 sps:$4 sm:$0xff]  }
  0xf9   :  { %5944 = vmatprep.subr.bf16.mxu0 %v8127_v15  ;;  %v8213_v15 = vld [vmem:[%s11916_s1 + $0x11c0] ss:$8 sps:$4 sm:$0xff]  }
  0xfb   :  { %5412 = vmatpush1.bf16.msra.mxu1 %v8122_v16  ;;  %v8218_v16 = vld [vmem:[%s11916_s1 + $0x4d4] ss:$8 sps:$4 sm:$0xff]  }
  0xfc   :  { %5945 = vmatpush1.bf16.msra.mxu0 %v8125_v17  ;;  %5413 = vmatprep.subr.bf16.mxu1 %v8130_v19  ;;  %v8221_v17 = vld [vmem:[%s11916_s1 + $0x11d4] ss:$8 sps:$4 sm:$0xff]   ;;  %v8216_v19 = vld [vmem:[%s11916_s1 + $0x4d0] ss:$8 sps:$4 sm:$0xff]  }
  0xfd   :  { %5946 = vmatprep.subr.bf16.mxu0 %v8133_v21  ;;  %v8219_v21 = vld [vmem:[%s11916_s1 + $0x11d0] ss:$8 sps:$4 sm:$0xff]  }
  0xff   :  { %5414 = vmatpush1.bf16.msra.mxu1 %v8128_v22  ;;  %v8224_v22 = vld [vmem:[%s11916_s1 + $0x4e4] ss:$8 sps:$4 sm:$0xff]  }
 0x100   :  { %5947 = vmatpush1.bf16.msra.mxu0 %v8131_v23  ;;  %5424 = vmatprep.subr.bf16.mxu1 %v8138_v26  ;;  %v8227_v23 = vld [vmem:[%s11916_s1 + $0x11e4] ss:$8 sps:$4 sm:$0xff]   ;;  %v8222_v26 = vld [vmem:[%s11916_s1 + $0x4e0] ss:$8 sps:$4 sm:$0xff]  }
 0x101   :  { %5957 = vmatprep.subr.bf16.mxu0 %v8143_v18  ;;  %v8225_v18 = vld [vmem:[%s11916_s1 + $0x11e0] ss:$8 sps:$4 sm:$0xff]  }
 0x102   :  { %5416 = vmatmul.mubr.bf16.vlgmr.msra.gmra.mrb[0].mxu1 %v6671_v27  ;;  %v8230_v27 = vld [vmem:[%s11916_s1 + $0x4f4] ss:$8 sps:$4 sm:$0xff]  }
 0x103   :  { %5949 = vmatmul.mubr.bf16.vlgmr.msra.gmra.mrb[0].mxu0 %v6697_v28  ;;  %5425 = vmatpush1.bf16.msra.mxu1 %v8136_v30  ;;  %v8233_v28 = vld [vmem:[%s11916_s1 + $0x11f4] ss:$8 sps:$4 sm:$0xff]   ;;  %v8228_v30 = vld [vmem:[%s11916_s1 + $0x4f0] ss:$8 sps:$4 sm:$0xff]  }
 0x104   :  { %5958 = vmatpush1.bf16.msra.mxu0 %v8141_v31  ;;  %5426 = vmatprep.subr.bf16.mxu1 %v8146_v24  ;;  %v8231_v31 = vld [vmem:[%s11916_s1 + $0x11f0] ss:$8 sps:$4 sm:$0xff]   ;;  %v8238_v24 = vld [vmem:[%s11916_s1 + $0x504] ss:$8 sps:$4 sm:$0xff]  }
 0x105   :  { %5959 = vmatprep.subr.bf16.mxu0 %v8149_v25  ;;  %5456 = vmatprep.mubr.bf16.mxu1 %v6674_v32  ;;  %v8243_v25 = vld [vmem:[%s11916_s1 + $0x1204] ss:$8 sps:$4 sm:$0xff]  }
 0x106   :  { %5989 = vmatprep.mubr.bf16.mxu0 %v6700_v33  ;;  %v10151_v32 = vld [vmem:[%s11917_s0 + $0x28] sm:$0xff]  ;;  %v10156_v33 = vld [vmem:[%s11917_s0 + $0x90] sm:$0xff] }
 0x107   :  { %5427 = vmatpush1.bf16.msra.mxu1 %v8144_v34  ;;  %v6673_v34 = vcombine.low %v9941_v20, %v9941_v20  ;;  %v8249_v20 = vld [vmem:[%s11916_s1 + $0x1214] ss:$8 sps:$4 sm:$0xff]  }
 0x108   :  { %5960 = vmatpush1.bf16.msra.mxu0 %v8147_v35  ;;  %5428 = vmatprep.subr.bf16.mxu1 %v8152_v36  ;;  %v6699_v35 = vcombine.low %v9950_v29, %v9950_v29  ;;  %v8236_v36 = vld [vmem:[%s11916_s1 + $0x500] ss:$8 sps:$4 sm:$0xff]   ;;  %v6676_v29 = vcombine.high %v10151_v32, %v10151_v32 }
 0x109   :  { %5961 = vmatprep.subr.bf16.mxu0 %v8155_v37  ;;  %v8241_v37 = vld [vmem:[%s11916_s1 + $0x1200] ss:$8 sps:$4 sm:$0xff]  }
 0x10b   :  { %5429 = vmatpush1.bf16.msra.mxu1 %v8150_v38  ;;  %v8246_v38 = vld [vmem:[%s11916_s1 + $0x514] ss:$8 sps:$4 sm:$0xff]  }
 0x10c   :  { %5962 = vmatpush1.bf16.msra.mxu0 %v8153_v39  ;;  %5430 = vmatprep.subr.bf16.mxu1 %v8158_v40  ;;  %v6702_v39 = vcombine.high %v10156_v33, %v10156_v33  ;;  %v8244_v40 = vld [vmem:[%s11916_s1 + $0x510] ss:$8 sps:$4 sm:$0xff]  }
 0x10d   :  { %5963 = vmatprep.subr.bf16.mxu0 %v8161_v41  ;;  %v8247_v41 = vld [vmem:[%s11916_s1 + $0x1210] ss:$8 sps:$4 sm:$0xff]  }
 0x10f   :  { %5431 = vmatpush1.bf16.msra.mxu1 %v8156_v42  ;;  %v8252_v42 = vld [vmem:[%s11916_s1 + $0x524] ss:$8 sps:$4 sm:$0xff]  }
 0x110   :  { %5964 = vmatpush1.bf16.msra.mxu0 %v8159_v43  ;;  %5432 = vmatprep.subr.bf16.mxu1 %v8164_v44  ;;  %v8255_v43 = vld [vmem:[%s11916_s1 + $0x1224] ss:$8 sps:$4 sm:$0xff]   ;;  %v8250_v44 = vld [vmem:[%s11916_s1 + $0x520] ss:$8 sps:$4 sm:$0xff]  }
 0x111   :  { %5965 = vmatprep.subr.bf16.mxu0 %v8167_v45  ;;  %v8253_v45 = vld [vmem:[%s11916_s1 + $0x1220] ss:$8 sps:$4 sm:$0xff]  }
 0x113   :  { %5433 = vmatpush1.bf16.msra.mxu1 %v8162_v46  ;;  %v8258_v46 = vld [vmem:[%s11916_s1 + $0x534] ss:$8 sps:$4 sm:$0xff]  }
 0x114   :  { %5966 = vmatpush1.bf16.msra.mxu0 %v8165_v47  ;;  %5434 = vmatprep.subr.bf16.mxu1 %v8170_v48  ;;  %v8261_v47 = vld [vmem:[%s11916_s1 + $0x1234] ss:$8 sps:$4 sm:$0xff]   ;;  %v8256_v48 = vld [vmem:[%s11916_s1 + $0x530] ss:$8 sps:$4 sm:$0xff]  }
 0x115   :  { %5967 = vmatprep.subr.bf16.mxu0 %v8173_v49  ;;  %v8259_v49 = vld [vmem:[%s11916_s1 + $0x1230] ss:$8 sps:$4 sm:$0xff]  }
 0x117   :  { %5435 = vmatpush1.bf16.msra.mxu1 %v8168_v50  ;;  %v8264_v50 = vld [vmem:[%s11916_s1 + $0x544] ss:$8 sps:$4 sm:$0xff]  }
 0x118   :  { %5968 = vmatpush1.bf16.msra.mxu0 %v8171_v51  ;;  %5436 = vmatprep.subr.bf16.mxu1 %v8176_v52  ;;  %v8267_v51 = vld [vmem:[%s11916_s1 + $0x1244] ss:$8 sps:$4 sm:$0xff]   ;;  %v8262_v52 = vld [vmem:[%s11916_s1 + $0x540] ss:$8 sps:$4 sm:$0xff]  }
 0x119   :  { %5969 = vmatprep.subr.bf16.mxu0 %v8179_v53  ;;  %v8265_v53 = vld [vmem:[%s11916_s1 + $0x1240] ss:$8 sps:$4 sm:$0xff]  }
 0x11b   :  { %5437 = vmatpush1.bf16.msra.mxu1 %v8174_v54  ;;  %v8270_v54 = vld [vmem:[%s11916_s1 + $0x554] ss:$8 sps:$4 sm:$0xff]  }
 0x11c   :  { %5970 = vmatpush1.bf16.msra.mxu0 %v8177_v55  ;;  %5438 = vmatprep.subr.bf16.mxu1 %v8182_v56  ;;  %v8273_v55 = vld [vmem:[%s11916_s1 + $0x1254] ss:$8 sps:$4 sm:$0xff]   ;;  %v8268_v56 = vld [vmem:[%s11916_s1 + $0x550] ss:$8 sps:$4 sm:$0xff]  }
 0x11d   :  { %5971 = vmatprep.subr.bf16.mxu0 %v8185_v57  ;;  %v8271_v57 = vld [vmem:[%s11916_s1 + $0x1250] ss:$8 sps:$4 sm:$0xff]  }
 0x11f   :  { %5439 = vmatpush1.bf16.msra.mxu1 %v8180_v58  ;;  %v8276_v58 = vld [vmem:[%s11916_s1 + $0x564] ss:$8 sps:$4 sm:$0xff]  }
 0x120   :  { %5972 = vmatpush1.bf16.msra.mxu0 %v8183_v59  ;;  %5440 = vmatprep.subr.bf16.mxu1 %v8188_v60  ;;  %v8279_v59 = vld [vmem:[%s11916_s1 + $0x1264] ss:$8 sps:$4 sm:$0xff]   ;;  %v8274_v60 = vld [vmem:[%s11916_s1 + $0x560] ss:$8 sps:$4 sm:$0xff]  }
 0x121   :  { %5973 = vmatprep.subr.bf16.mxu0 %v8191_v61  ;;  %v8277_v61 = vld [vmem:[%s11916_s1 + $0x1260] ss:$8 sps:$4 sm:$0xff]  }
 0x123   :  { %5441 = vmatpush1.bf16.msra.mxu1 %v8186_v62  ;;  %v8282_v62 = vld [vmem:[%s11916_s1 + $0x574] ss:$8 sps:$4 sm:$0xff]  }
 0x124   :  { %5974 = vmatpush1.bf16.msra.mxu0 %v8189_v63  ;;  %5442 = vmatprep.subr.bf16.mxu1 %v8194_v0  ;;  %v8285_v63 = vld [vmem:[%s11916_s1 + $0x1274] ss:$8 sps:$4 sm:$0xff]   ;;  %v8280_v0 = vld [vmem:[%s11916_s1 + $0x570] ss:$8 sps:$4 sm:$0xff]  }
 0x125   :  { %5975 = vmatprep.subr.bf16.mxu0 %v8197_v1  ;;  %v8283_v1 = vld [vmem:[%s11916_s1 + $0x1270] ss:$8 sps:$4 sm:$0xff]  }
 0x127   :  { %5443 = vmatpush1.bf16.msra.mxu1 %v8192_v2  ;;  %v8288_v2 = vld [vmem:[%s11916_s1 + $0x584] ss:$8 sps:$4 sm:$0xff]  }
 0x128   :  { %5976 = vmatpush1.bf16.msra.mxu0 %v8195_v3  ;;  %5444 = vmatprep.subr.bf16.mxu1 %v8200_v4  ;;  %v8291_v3 = vld [vmem:[%s11916_s1 + $0x1284] ss:$8 sps:$4 sm:$0xff]   ;;  %v8286_v4 = vld [vmem:[%s11916_s1 + $0x580] ss:$8 sps:$4 sm:$0xff]  }
 0x129   :  { %5977 = vmatprep.subr.bf16.mxu0 %v8203_v5  ;;  %v8289_v5 = vld [vmem:[%s11916_s1 + $0x1280] ss:$8 sps:$4 sm:$0xff]  }
 0x12b   :  { %5445 = vmatpush1.bf16.msra.mxu1 %v8198_v6  ;;  %v8294_v6 = vld [vmem:[%s11916_s1 + $0x594] ss:$8 sps:$4 sm:$0xff]  }
 0x12c   :  { %5978 = vmatpush1.bf16.msra.mxu0 %v8201_v7  ;;  %5446 = vmatprep.subr.bf16.mxu1 %v8206_v8  ;;  %v8297_v7 = vld [vmem:[%s11916_s1 + $0x1294] ss:$8 sps:$4 sm:$0xff]   ;;  %v8292_v8 = vld [vmem:[%s11916_s1 + $0x590] ss:$8 sps:$4 sm:$0xff]  }
 0x12d   :  { %5979 = vmatprep.subr.bf16.mxu0 %v8209_v9  ;;  %v8295_v9 = vld [vmem:[%s11916_s1 + $0x1290] ss:$8 sps:$4 sm:$0xff]  }
 0x12f   :  { %5447 = vmatpush1.bf16.msra.mxu1 %v8204_v10  ;;  %v8300_v10 = vld [vmem:[%s11916_s1 + $0x5a4] ss:$8 sps:$4 sm:$0xff]  }
 0x130   :  { %5980 = vmatpush1.bf16.msra.mxu0 %v8207_v11  ;;  %5448 = vmatprep.subr.bf16.mxu1 %v8212_v12  ;;  %v8303_v11 = vld [vmem:[%s11916_s1 + $0x12a4] ss:$8 sps:$4 sm:$0xff]   ;;  %v8298_v12 = vld [vmem:[%s11916_s1 + $0x5a0] ss:$8 sps:$4 sm:$0xff]  }
 0x131   :  { %5981 = vmatprep.subr.bf16.mxu0 %v8215_v13  ;;  %v8301_v13 = vld [vmem:[%s11916_s1 + $0x12a0] ss:$8 sps:$4 sm:$0xff]  }
 0x133   :  { %5449 = vmatpush1.bf16.msra.mxu1 %v8210_v14  ;;  %v8306_v14 = vld [vmem:[%s11916_s1 + $0x5b4] ss:$8 sps:$4 sm:$0xff]  }
 0x134   :  { %5982 = vmatpush1.bf16.msra.mxu0 %v8213_v15  ;;  %5450 = vmatprep.subr.bf16.mxu1 %v8218_v16  ;;  %v8309_v15 = vld [vmem:[%s11916_s1 + $0x12b4] ss:$8 sps:$4 sm:$0xff]   ;;  %v8304_v16 = vld [vmem:[%s11916_s1 + $0x5b0] ss:$8 sps:$4 sm:$0xff]  }
 0x135   :  { %5983 = vmatprep.subr.bf16.mxu0 %v8221_v17  ;;  %v8307_v17 = vld [vmem:[%s11916_s1 + $0x12b0] ss:$8 sps:$4 sm:$0xff]  }
 0x137   :  { %5451 = vmatpush1.bf16.msra.mxu1 %v8216_v19  ;;  %v8312_v19 = vld [vmem:[%s11916_s1 + $0x5c4] ss:$8 sps:$4 sm:$0xff]  }
 0x138   :  { %5984 = vmatpush1.bf16.msra.mxu0 %v8219_v21  ;;  %5452 = vmatprep.subr.bf16.mxu1 %v8224_v22  ;;  %v8315_v21 = vld [vmem:[%s11916_s1 + $0x12c4] ss:$8 sps:$4 sm:$0xff]   ;;  %v8310_v22 = vld [vmem:[%s11916_s1 + $0x5c0] ss:$8 sps:$4 sm:$0xff]  }
 0x139   :  { %5985 = vmatprep.subr.bf16.mxu0 %v8227_v23  ;;  %v8313_v23 = vld [vmem:[%s11916_s1 + $0x12c0] ss:$8 sps:$4 sm:$0xff]  }
 0x13b   :  { %5453 = vmatpush1.bf16.msra.mxu1 %v8222_v26  ;;  %v8318_v26 = vld [vmem:[%s11916_s1 + $0x5d4] ss:$8 sps:$4 sm:$0xff]  }
 0x13c   :  { %5986 = vmatpush1.bf16.msra.mxu0 %v8225_v18  ;;  %5454 = vmatprep.subr.bf16.mxu1 %v8230_v27  ;;  %v8321_v18 = vld [vmem:[%s11916_s1 + $0x12d4] ss:$8 sps:$4 sm:$0xff]   ;;  %v8316_v27 = vld [vmem:[%s11916_s1 + $0x5d0] ss:$8 sps:$4 sm:$0xff]  }
 0x13d   :  { %5987 = vmatprep.subr.bf16.mxu0 %v8233_v28  ;;  %v8319_v28 = vld [vmem:[%s11916_s1 + $0x12d0] ss:$8 sps:$4 sm:$0xff]  }
 0x13f   :  { %5455 = vmatpush1.bf16.msra.mxu1 %v8228_v30  ;;  %v8324_v30 = vld [vmem:[%s11916_s1 + $0x5e4] ss:$8 sps:$4 sm:$0xff]  }
 0x140   :  { %5988 = vmatpush1.bf16.msra.mxu0 %v8231_v31  ;;  %5465 = vmatprep.subr.bf16.mxu1 %v8238_v24  ;;  %v8327_v31 = vld [vmem:[%s11916_s1 + $0x12e4] ss:$8 sps:$4 sm:$0xff]   ;;  %v8322_v24 = vld [vmem:[%s11916_s1 + $0x5e0] ss:$8 sps:$4 sm:$0xff]  }
 0x141   :  { %5998 = vmatprep.subr.bf16.mxu0 %v8243_v25  ;;  %v8325_v25 = vld [vmem:[%s11916_s1 + $0x12e0] ss:$8 sps:$4 sm:$0xff]  }
 0x142   :  { %5457 = vmatmul.mubr.bf16.vlgmr.msra.gmra.mrb[0].mxu1 %v6673_v34  ;;  %v8330_v34 = vld [vmem:[%s11916_s1 + $0x5f4] ss:$8 sps:$4 sm:$0xff]  }
 0x143   :  { %5990 = vmatmul.mubr.bf16.vlgmr.msra.gmra.mrb[0].mxu0 %v6699_v35  ;;  %5466 = vmatpush1.bf16.msra.mxu1 %v8236_v36  ;;  %v8333_v35 = vld [vmem:[%s11916_s1 + $0x12f4] ss:$8 sps:$4 sm:$0xff]   ;;  %v8328_v36 = vld [vmem:[%s11916_s1 + $0x5f0] ss:$8 sps:$4 sm:$0xff]  }
 0x144   :  { %5999 = vmatpush1.bf16.msra.mxu0 %v8241_v37  ;;  %5467 = vmatprep.subr.bf16.mxu1 %v8246_v38  ;;  %v8331_v37 = vld [vmem:[%s11916_s1 + $0x12f0] ss:$8 sps:$4 sm:$0xff]   ;;  %v8338_v38 = vld [vmem:[%s11916_s1 + $0x604] ss:$8 sps:$4 sm:$0xff]  }
 0x145   :  { %6000 = vmatprep.subr.bf16.mxu0 %v8249_v20  ;;  %5497 = vmatprep.mubr.bf16.mxu1 %v6676_v29  ;;  %v8343_v20 = vld [vmem:[%s11916_s1 + $0x1304] ss:$8 sps:$4 sm:$0xff]   ;;  %v10361_v29 = vld [vmem:[%s11917_s0 + $0x30] sm:$0xff] }
 0x146   :  { %6030 = vmatprep.mubr.bf16.mxu0 %v6702_v39  ;;  %v10366_v39 = vld [vmem:[%s11917_s0 + $0x98] sm:$0xff] }
 0x147   :  { %5468 = vmatpush1.bf16.msra.mxu1 %v8244_v40  ;;  %v6675_v40 = vcombine.low %v10151_v32, %v10151_v32  ;;  %v8349_v32 = vld [vmem:[%s11916_s1 + $0x1314] ss:$8 sps:$4 sm:$0xff]  }
 0x148   :  { %6001 = vmatpush1.bf16.msra.mxu0 %v8247_v41  ;;  %5469 = vmatprep.subr.bf16.mxu1 %v8252_v42  ;;  %v6701_v41 = vcombine.low %v10156_v33, %v10156_v33  ;;  %v8336_v42 = vld [vmem:[%s11916_s1 + $0x600] ss:$8 sps:$4 sm:$0xff]   ;;  %v6678_v33 = vcombine.high %v10361_v29, %v10361_v29 }
 0x149   :  { %6002 = vmatprep.subr.bf16.mxu0 %v8255_v43  ;;  %v8341_v43 = vld [vmem:[%s11916_s1 + $0x1300] ss:$8 sps:$4 sm:$0xff]  }
 0x14b   :  { %5470 = vmatpush1.bf16.msra.mxu1 %v8250_v44  ;;  %v8346_v44 = vld [vmem:[%s11916_s1 + $0x614] ss:$8 sps:$4 sm:$0xff]  }
 0x14c   :  { %6003 = vmatpush1.bf16.msra.mxu0 %v8253_v45  ;;  %5471 = vmatprep.subr.bf16.mxu1 %v8258_v46  ;;  %v6704_v45 = vcombine.high %v10366_v39, %v10366_v39  ;;  %v8344_v46 = vld [vmem:[%s11916_s1 + $0x610] ss:$8 sps:$4 sm:$0xff]  }
 0x14d   :  { %6004 = vmatprep.subr.bf16.mxu0 %v8261_v47  ;;  %v8347_v47 = vld [vmem:[%s11916_s1 + $0x1310] ss:$8 sps:$4 sm:$0xff]  }
 0x14f   :  { %5472 = vmatpush1.bf16.msra.mxu1 %v8256_v48  ;;  %v8352_v48 = vld [vmem:[%s11916_s1 + $0x624] ss:$8 sps:$4 sm:$0xff]  }
 0x150   :  { %6005 = vmatpush1.bf16.msra.mxu0 %v8259_v49  ;;  %5473 = vmatprep.subr.bf16.mxu1 %v8264_v50  ;;  %v8355_v49 = vld [vmem:[%s11916_s1 + $0x1324] ss:$8 sps:$4 sm:$0xff]   ;;  %v8350_v50 = vld [vmem:[%s11916_s1 + $0x620] ss:$8 sps:$4 sm:$0xff]  }
 0x151   :  { %6006 = vmatprep.subr.bf16.mxu0 %v8267_v51  ;;  %v8353_v51 = vld [vmem:[%s11916_s1 + $0x1320] ss:$8 sps:$4 sm:$0xff]  }
 0x153   :  { %5474 = vmatpush1.bf16.msra.mxu1 %v8262_v52  ;;  %v8358_v52 = vld [vmem:[%s11916_s1 + $0x634] ss:$8 sps:$4 sm:$0xff]  }
 0x154   :  { %6007 = vmatpush1.bf16.msra.mxu0 %v8265_v53  ;;  %5475 = vmatprep.subr.bf16.mxu1 %v8270_v54  ;;  %v8361_v53 = vld [vmem:[%s11916_s1 + $0x1334] ss:$8 sps:$4 sm:$0xff]   ;;  %v8356_v54 = vld [vmem:[%s11916_s1 + $0x630] ss:$8 sps:$4 sm:$0xff]  }
 0x155   :  { %6008 = vmatprep.subr.bf16.mxu0 %v8273_v55  ;;  %v8359_v55 = vld [vmem:[%s11916_s1 + $0x1330] ss:$8 sps:$4 sm:$0xff]  }
 0x157   :  { %5476 = vmatpush1.bf16.msra.mxu1 %v8268_v56  ;;  %v8364_v56 = vld [vmem:[%s11916_s1 + $0x644] ss:$8 sps:$4 sm:$0xff]  }
 0x158   :  { %6009 = vmatpush1.bf16.msra.mxu0 %v8271_v57  ;;  %5477 = vmatprep.subr.bf16.mxu1 %v8276_v58  ;;  %v8367_v57 = vld [vmem:[%s11916_s1 + $0x1344] ss:$8 sps:$4 sm:$0xff]   ;;  %v8362_v58 = vld [vmem:[%s11916_s1 + $0x640] ss:$8 sps:$4 sm:$0xff]  }
 0x159   :  { %6010 = vmatprep.subr.bf16.mxu0 %v8279_v59  ;;  %v8365_v59 = vld [vmem:[%s11916_s1 + $0x1340] ss:$8 sps:$4 sm:$0xff]  }
 0x15b   :  { %5478 = vmatpush1.bf16.msra.mxu1 %v8274_v60  ;;  %v8370_v60 = vld [vmem:[%s11916_s1 + $0x654] ss:$8 sps:$4 sm:$0xff]  }
 0x15c   :  { %6011 = vmatpush1.bf16.msra.mxu0 %v8277_v61  ;;  %5479 = vmatprep.subr.bf16.mxu1 %v8282_v62  ;;  %v8373_v61 = vld [vmem:[%s11916_s1 + $0x1354] ss:$8 sps:$4 sm:$0xff]   ;;  %v8368_v62 = vld [vmem:[%s11916_s1 + $0x650] ss:$8 sps:$4 sm:$0xff]  }
 0x15d   :  { %6012 = vmatprep.subr.bf16.mxu0 %v8285_v63  ;;  %v8371_v63 = vld [vmem:[%s11916_s1 + $0x1350] ss:$8 sps:$4 sm:$0xff]  }
 0x15f   :  { %5480 = vmatpush1.bf16.msra.mxu1 %v8280_v0  ;;  %v8376_v0 = vld [vmem:[%s11916_s1 + $0x664] ss:$8 sps:$4 sm:$0xff]  }
 0x160   :  { %6013 = vmatpush1.bf16.msra.mxu0 %v8283_v1  ;;  %5481 = vmatprep.subr.bf16.mxu1 %v8288_v2  ;;  %v8379_v1 = vld [vmem:[%s11916_s1 + $0x1364] ss:$8 sps:$4 sm:$0xff]   ;;  %v8374_v2 = vld [vmem:[%s11916_s1 + $0x660] ss:$8 sps:$4 sm:$0xff]  }
 0x161   :  { %6014 = vmatprep.subr.bf16.mxu0 %v8291_v3  ;;  %v8377_v3 = vld [vmem:[%s11916_s1 + $0x1360] ss:$8 sps:$4 sm:$0xff]  }
 0x163   :  { %5482 = vmatpush1.bf16.msra.mxu1 %v8286_v4  ;;  %v8382_v4 = vld [vmem:[%s11916_s1 + $0x674] ss:$8 sps:$4 sm:$0xff]  }
 0x164   :  { %6015 = vmatpush1.bf16.msra.mxu0 %v8289_v5  ;;  %5483 = vmatprep.subr.bf16.mxu1 %v8294_v6  ;;  %v8385_v5 = vld [vmem:[%s11916_s1 + $0x1374] ss:$8 sps:$4 sm:$0xff]   ;;  %v8380_v6 = vld [vmem:[%s11916_s1 + $0x670] ss:$8 sps:$4 sm:$0xff]  }
 0x165   :  { %6016 = vmatprep.subr.bf16.mxu0 %v8297_v7  ;;  %v8383_v7 = vld [vmem:[%s11916_s1 + $0x1370] ss:$8 sps:$4 sm:$0xff]  }
 0x167   :  { %5484 = vmatpush1.bf16.msra.mxu1 %v8292_v8  ;;  %v8388_v8 = vld [vmem:[%s11916_s1 + $0x684] ss:$8 sps:$4 sm:$0xff]  }
 0x168   :  { %6017 = vmatpush1.bf16.msra.mxu0 %v8295_v9  ;;  %5485 = vmatprep.subr.bf16.mxu1 %v8300_v10  ;;  %v8391_v9 = vld [vmem:[%s11916_s1 + $0x1384] ss:$8 sps:$4 sm:$0xff]   ;;  %v8386_v10 = vld [vmem:[%s11916_s1 + $0x680] ss:$8 sps:$4 sm:$0xff]  }
 0x169   :  { %6018 = vmatprep.subr.bf16.mxu0 %v8303_v11  ;;  %v8389_v11 = vld [vmem:[%s11916_s1 + $0x1380] ss:$8 sps:$4 sm:$0xff]  }
 0x16b   :  { %5486 = vmatpush1.bf16.msra.mxu1 %v8298_v12  ;;  %v8394_v12 = vld [vmem:[%s11916_s1 + $0x694] ss:$8 sps:$4 sm:$0xff]  }
 0x16c   :  { %6019 = vmatpush1.bf16.msra.mxu0 %v8301_v13  ;;  %5487 = vmatprep.subr.bf16.mxu1 %v8306_v14  ;;  %v8397_v13 = vld [vmem:[%s11916_s1 + $0x1394] ss:$8 sps:$4 sm:$0xff]   ;;  %v8392_v14 = vld [vmem:[%s11916_s1 + $0x690] ss:$8 sps:$4 sm:$0xff]  }
 0x16d   :  { %6020 = vmatprep.subr.bf16.mxu0 %v8309_v15  ;;  %v8395_v15 = vld [vmem:[%s11916_s1 + $0x1390] ss:$8 sps:$4 sm:$0xff]  }
 0x16f   :  { %5488 = vmatpush1.bf16.msra.mxu1 %v8304_v16  ;;  %v8400_v16 = vld [vmem:[%s11916_s1 + $0x6a4] ss:$8 sps:$4 sm:$0xff]  }
 0x170   :  { %6021 = vmatpush1.bf16.msra.mxu0 %v8307_v17  ;;  %5489 = vmatprep.subr.bf16.mxu1 %v8312_v19  ;;  %v8403_v17 = vld [vmem:[%s11916_s1 + $0x13a4] ss:$8 sps:$4 sm:$0xff]   ;;  %v8398_v19 = vld [vmem:[%s11916_s1 + $0x6a0] ss:$8 sps:$4 sm:$0xff]  }
 0x171   :  { %6022 = vmatprep.subr.bf16.mxu0 %v8315_v21  ;;  %v8401_v21 = vld [vmem:[%s11916_s1 + $0x13a0] ss:$8 sps:$4 sm:$0xff]  }
 0x173   :  { %5490 = vmatpush1.bf16.msra.mxu1 %v8310_v22  ;;  %v8406_v22 = vld [vmem:[%s11916_s1 + $0x6b4] ss:$8 sps:$4 sm:$0xff]  }
 0x174   :  { %6023 = vmatpush1.bf16.msra.mxu0 %v8313_v23  ;;  %5491 = vmatprep.subr.bf16.mxu1 %v8318_v26  ;;  %v8409_v23 = vld [vmem:[%s11916_s1 + $0x13b4] ss:$8 sps:$4 sm:$0xff]   ;;  %v8404_v26 = vld [vmem:[%s11916_s1 + $0x6b0] ss:$8 sps:$4 sm:$0xff]  }
 0x175   :  { %6024 = vmatprep.subr.bf16.mxu0 %v8321_v18  ;;  %v8407_v18 = vld [vmem:[%s11916_s1 + $0x13b0] ss:$8 sps:$4 sm:$0xff]  }
 0x177   :  { %5492 = vmatpush1.bf16.msra.mxu1 %v8316_v27  ;;  %v8412_v27 = vld [vmem:[%s11916_s1 + $0x6c4] ss:$8 sps:$4 sm:$0xff]  }
 0x178   :  { %6025 = vmatpush1.bf16.msra.mxu0 %v8319_v28  ;;  %5493 = vmatprep.subr.bf16.mxu1 %v8324_v30  ;;  %v8415_v28 = vld [vmem:[%s11916_s1 + $0x13c4] ss:$8 sps:$4 sm:$0xff]   ;;  %v8410_v30 = vld [vmem:[%s11916_s1 + $0x6c0] ss:$8 sps:$4 sm:$0xff]  }
 0x179   :  { %6026 = vmatprep.subr.bf16.mxu0 %v8327_v31  ;;  %v8413_v31 = vld [vmem:[%s11916_s1 + $0x13c0] ss:$8 sps:$4 sm:$0xff]  }
 0x17b   :  { %5494 = vmatpush1.bf16.msra.mxu1 %v8322_v24  ;;  %v8418_v24 = vld [vmem:[%s11916_s1 + $0x6d4] ss:$8 sps:$4 sm:$0xff]  }
 0x17c   :  { %6027 = vmatpush1.bf16.msra.mxu0 %v8325_v25  ;;  %5495 = vmatprep.subr.bf16.mxu1 %v8330_v34  ;;  %v8421_v25 = vld [vmem:[%s11916_s1 + $0x13d4] ss:$8 sps:$4 sm:$0xff]   ;;  %v8416_v34 = vld [vmem:[%s11916_s1 + $0x6d0] ss:$8 sps:$4 sm:$0xff]  }
 0x17d   :  { %6028 = vmatprep.subr.bf16.mxu0 %v8333_v35  ;;  %v8419_v35 = vld [vmem:[%s11916_s1 + $0x13d0] ss:$8 sps:$4 sm:$0xff]  }
 0x17f   :  { %5496 = vmatpush1.bf16.msra.mxu1 %v8328_v36  ;;  %v8424_v36 = vld [vmem:[%s11916_s1 + $0x6e4] ss:$8 sps:$4 sm:$0xff]  }
 0x180   :  { %6029 = vmatpush1.bf16.msra.mxu0 %v8331_v37  ;;  %5506 = vmatprep.subr.bf16.mxu1 %v8338_v38  ;;  %v8427_v37 = vld [vmem:[%s11916_s1 + $0x13e4] ss:$8 sps:$4 sm:$0xff]   ;;  %v8422_v38 = vld [vmem:[%s11916_s1 + $0x6e0] ss:$8 sps:$4 sm:$0xff]  }
 0x181   :  { %6039 = vmatprep.subr.bf16.mxu0 %v8343_v20  ;;  %v8425_v20 = vld [vmem:[%s11916_s1 + $0x13e0] ss:$8 sps:$4 sm:$0xff]  }
 0x182   :  { %5498 = vmatmul.mubr.bf16.vlgmr.msra.gmra.mrb[0].mxu1 %v6675_v40  ;;  %v8430_v40 = vld [vmem:[%s11916_s1 + $0x6f4] ss:$8 sps:$4 sm:$0xff]  }
 0x183   :  { %6031 = vmatmul.mubr.bf16.vlgmr.msra.gmra.mrb[0].mxu0 %v6701_v41  ;;  %5507 = vmatpush1.bf16.msra.mxu1 %v8336_v42  ;;  %v8433_v41 = vld [vmem:[%s11916_s1 + $0x13f4] ss:$8 sps:$4 sm:$0xff]   ;;  %v8428_v42 = vld [vmem:[%s11916_s1 + $0x6f0] ss:$8 sps:$4 sm:$0xff]  }
 0x184   :  { %6040 = vmatpush1.bf16.msra.mxu0 %v8341_v43  ;;  %5508 = vmatprep.subr.bf16.mxu1 %v8346_v44  ;;  %v8431_v43 = vld [vmem:[%s11916_s1 + $0x13f0] ss:$8 sps:$4 sm:$0xff]   ;;  %v8438_v44 = vld [vmem:[%s11916_s1 + $0x704] ss:$8 sps:$4 sm:$0xff]  }
 0x185   :  { %6041 = vmatprep.subr.bf16.mxu0 %v8349_v32  ;;  %5538 = vmatprep.mubr.bf16.mxu1 %v6678_v33  ;;  %v8443_v32 = vld [vmem:[%s11916_s1 + $0x1404] ss:$8 sps:$4 sm:$0xff]   ;;  %v10571_v33 = vld [vmem:[%s11917_s0 + $0x38] sm:$0xff] }
 0x186   :  { %6071 = vmatprep.mubr.bf16.mxu0 %v6704_v45  ;;  %v10576_v45 = vld [vmem:[%s11917_s0 + $0xa0] sm:$0xff] }
 0x187   :  { %5509 = vmatpush1.bf16.msra.mxu1 %v8344_v46  ;;  %v6677_v46 = vcombine.low %v10361_v29, %v10361_v29  ;;  %v8449_v29 = vld [vmem:[%s11916_s1 + $0x1414] ss:$8 sps:$4 sm:$0xff]  }
 0x188   :  { %6042 = vmatpush1.bf16.msra.mxu0 %v8347_v47  ;;  %5510 = vmatprep.subr.bf16.mxu1 %v8352_v48  ;;  %v6703_v47 = vcombine.low %v10366_v39, %v10366_v39  ;;  %v8436_v48 = vld [vmem:[%s11916_s1 + $0x700] ss:$8 sps:$4 sm:$0xff]   ;;  %v6680_v39 = vcombine.high %v10571_v33, %v10571_v33 }
 0x189   :  { %6043 = vmatprep.subr.bf16.mxu0 %v8355_v49  ;;  %v8441_v49 = vld [vmem:[%s11916_s1 + $0x1400] ss:$8 sps:$4 sm:$0xff]  }
 0x18b   :  { %5511 = vmatpush1.bf16.msra.mxu1 %v8350_v50  ;;  %v8446_v50 = vld [vmem:[%s11916_s1 + $0x714] ss:$8 sps:$4 sm:$0xff]  }
 0x18c   :  { %6044 = vmatpush1.bf16.msra.mxu0 %v8353_v51  ;;  %5512 = vmatprep.subr.bf16.mxu1 %v8358_v52  ;;  %v6706_v51 = vcombine.high %v10576_v45, %v10576_v45  ;;  %v8444_v52 = vld [vmem:[%s11916_s1 + $0x710] ss:$8 sps:$4 sm:$0xff]  }
 0x18d   :  { %6045 = vmatprep.subr.bf16.mxu0 %v8361_v53  ;;  %v8447_v53 = vld [vmem:[%s11916_s1 + $0x1410] ss:$8 sps:$4 sm:$0xff]  }
 0x18f   :  { %5513 = vmatpush1.bf16.msra.mxu1 %v8356_v54  ;;  %v8452_v54 = vld [vmem:[%s11916_s1 + $0x724] ss:$8 sps:$4 sm:$0xff]  }
 0x190   :  { %6046 = vmatpush1.bf16.msra.mxu0 %v8359_v55  ;;  %5514 = vmatprep.subr.bf16.mxu1 %v8364_v56  ;;  %v8455_v55 = vld [vmem:[%s11916_s1 + $0x1424] ss:$8 sps:$4 sm:$0xff]   ;;  %v8450_v56 = vld [vmem:[%s11916_s1 + $0x720] ss:$8 sps:$4 sm:$0xff]  }
 0x191   :  { %6047 = vmatprep.subr.bf16.mxu0 %v8367_v57  ;;  %v8453_v57 = vld [vmem:[%s11916_s1 + $0x1420] ss:$8 sps:$4 sm:$0xff]  }
 0x193   :  { %5515 = vmatpush1.bf16.msra.mxu1 %v8362_v58  ;;  %v8458_v58 = vld [vmem:[%s11916_s1 + $0x734] ss:$8 sps:$4 sm:$0xff]  }
 0x194   :  { %6048 = vmatpush1.bf16.msra.mxu0 %v8365_v59  ;;  %5516 = vmatprep.subr.bf16.mxu1 %v8370_v60  ;;  %v8461_v59 = vld [vmem:[%s11916_s1 + $0x1434] ss:$8 sps:$4 sm:$0xff]   ;;  %v8456_v60 = vld [vmem:[%s11916_s1 + $0x730] ss:$8 sps:$4 sm:$0xff]  }
 0x195   :  { %6049 = vmatprep.subr.bf16.mxu0 %v8373_v61  ;;  %v8459_v61 = vld [vmem:[%s11916_s1 + $0x1430] ss:$8 sps:$4 sm:$0xff]  }
 0x197   :  { %5517 = vmatpush1.bf16.msra.mxu1 %v8368_v62  ;;  %v8464_v62 = vld [vmem:[%s11916_s1 + $0x744] ss:$8 sps:$4 sm:$0xff]  }
 0x198   :  { %6050 = vmatpush1.bf16.msra.mxu0 %v8371_v63  ;;  %5518 = vmatprep.subr.bf16.mxu1 %v8376_v0  ;;  %v8467_v63 = vld [vmem:[%s11916_s1 + $0x1444] ss:$8 sps:$4 sm:$0xff]   ;;  %v8462_v0 = vld [vmem:[%s11916_s1 + $0x740] ss:$8 sps:$4 sm:$0xff]  }
 0x199   :  { %6051 = vmatprep.subr.bf16.mxu0 %v8379_v1  ;;  %v8465_v1 = vld [vmem:[%s11916_s1 + $0x1440] ss:$8 sps:$4 sm:$0xff]  }
 0x19b   :  { %5519 = vmatpush1.bf16.msra.mxu1 %v8374_v2  ;;  %v8470_v2 = vld [vmem:[%s11916_s1 + $0x754] ss:$8 sps:$4 sm:$0xff]  }
 0x19c   :  { %6052 = vmatpush1.bf16.msra.mxu0 %v8377_v3  ;;  %5520 = vmatprep.subr.bf16.mxu1 %v8382_v4  ;;  %v8473_v3 = vld [vmem:[%s11916_s1 + $0x1454] ss:$8 sps:$4 sm:$0xff]   ;;  %v8468_v4 = vld [vmem:[%s11916_s1 + $0x750] ss:$8 sps:$4 sm:$0xff]  }
 0x19d   :  { %6053 = vmatprep.subr.bf16.mxu0 %v8385_v5  ;;  %v8471_v5 = vld [vmem:[%s11916_s1 + $0x1450] ss:$8 sps:$4 sm:$0xff]  }
 0x19f   :  { %5521 = vmatpush1.bf16.msra.mxu1 %v8380_v6  ;;  %v8476_v6 = vld [vmem:[%s11916_s1 + $0x764] ss:$8 sps:$4 sm:$0xff]  }
 0x1a0   :  { %6054 = vmatpush1.bf16.msra.mxu0 %v8383_v7  ;;  %5522 = vmatprep.subr.bf16.mxu1 %v8388_v8  ;;  %v8479_v7 = vld [vmem:[%s11916_s1 + $0x1464] ss:$8 sps:$4 sm:$0xff]   ;;  %v8474_v8 = vld [vmem:[%s11916_s1 + $0x760] ss:$8 sps:$4 sm:$0xff]  }
 0x1a1   :  { %6055 = vmatprep.subr.bf16.mxu0 %v8391_v9  ;;  %v8477_v9 = vld [vmem:[%s11916_s1 + $0x1460] ss:$8 sps:$4 sm:$0xff]  }
 0x1a3   :  { %5523 = vmatpush1.bf16.msra.mxu1 %v8386_v10  ;;  %v8482_v10 = vld [vmem:[%s11916_s1 + $0x774] ss:$8 sps:$4 sm:$0xff]  }
 0x1a4   :  { %6056 = vmatpush1.bf16.msra.mxu0 %v8389_v11  ;;  %5524 = vmatprep.subr.bf16.mxu1 %v8394_v12  ;;  %v8485_v11 = vld [vmem:[%s11916_s1 + $0x1474] ss:$8 sps:$4 sm:$0xff]   ;;  %v8480_v12 = vld [vmem:[%s11916_s1 + $0x770] ss:$8 sps:$4 sm:$0xff]  }
 0x1a5   :  { %6057 = vmatprep.subr.bf16.mxu0 %v8397_v13  ;;  %v8483_v13 = vld [vmem:[%s11916_s1 + $0x1470] ss:$8 sps:$4 sm:$0xff]  }
 0x1a7   :  { %5525 = vmatpush1.bf16.msra.mxu1 %v8392_v14  ;;  %v8488_v14 = vld [vmem:[%s11916_s1 + $0x784] ss:$8 sps:$4 sm:$0xff]  }
 0x1a8   :  { %6058 = vmatpush1.bf16.msra.mxu0 %v8395_v15  ;;  %5526 = vmatprep.subr.bf16.mxu1 %v8400_v16  ;;  %v8491_v15 = vld [vmem:[%s11916_s1 + $0x1484] ss:$8 sps:$4 sm:$0xff]   ;;  %v8486_v16 = vld [vmem:[%s11916_s1 + $0x780] ss:$8 sps:$4 sm:$0xff]  }
 0x1a9   :  { %6059 = vmatprep.subr.bf16.mxu0 %v8403_v17  ;;  %v8489_v17 = vld [vmem:[%s11916_s1 + $0x1480] ss:$8 sps:$4 sm:$0xff]  }
 0x1ab   :  { %5527 = vmatpush1.bf16.msra.mxu1 %v8398_v19  ;;  %v8494_v19 = vld [vmem:[%s11916_s1 + $0x794] ss:$8 sps:$4 sm:$0xff]  }
 0x1ac   :  { %6060 = vmatpush1.bf16.msra.mxu0 %v8401_v21  ;;  %5528 = vmatprep.subr.bf16.mxu1 %v8406_v22  ;;  %v8497_v21 = vld [vmem:[%s11916_s1 + $0x1494] ss:$8 sps:$4 sm:$0xff]   ;;  %v8492_v22 = vld [vmem:[%s11916_s1 + $0x790] ss:$8 sps:$4 sm:$0xff]  }
 0x1ad   :  { %6061 = vmatprep.subr.bf16.mxu0 %v8409_v23  ;;  %v8495_v23 = vld [vmem:[%s11916_s1 + $0x1490] ss:$8 sps:$4 sm:$0xff]  }
 0x1af   :  { %5529 = vmatpush1.bf16.msra.mxu1 %v8404_v26  ;;  %v8500_v26 = vld [vmem:[%s11916_s1 + $0x7a4] ss:$8 sps:$4 sm:$0xff]  }
 0x1b0   :  { %6062 = vmatpush1.bf16.msra.mxu0 %v8407_v18  ;;  %5530 = vmatprep.subr.bf16.mxu1 %v8412_v27  ;;  %v8503_v18 = vld [vmem:[%s11916_s1 + $0x14a4] ss:$8 sps:$4 sm:$0xff]   ;;  %v8498_v27 = vld [vmem:[%s11916_s1 + $0x7a0] ss:$8 sps:$4 sm:$0xff]  }
 0x1b1   :  { %6063 = vmatprep.subr.bf16.mxu0 %v8415_v28  ;;  %v8501_v28 = vld [vmem:[%s11916_s1 + $0x14a0] ss:$8 sps:$4 sm:$0xff]  }
 0x1b3   :  { %5531 = vmatpush1.bf16.msra.mxu1 %v8410_v30  ;;  %v8506_v30 = vld [vmem:[%s11916_s1 + $0x7b4] ss:$8 sps:$4 sm:$0xff]  }
 0x1b4   :  { %6064 = vmatpush1.bf16.msra.mxu0 %v8413_v31  ;;  %5532 = vmatprep.subr.bf16.mxu1 %v8418_v24  ;;  %v8509_v31 = vld [vmem:[%s11916_s1 + $0x14b4] ss:$8 sps:$4 sm:$0xff]   ;;  %v8504_v24 = vld [vmem:[%s11916_s1 + $0x7b0] ss:$8 sps:$4 sm:$0xff]  }
 0x1b5   :  { %6065 = vmatprep.subr.bf16.mxu0 %v8421_v25  ;;  %v8507_v25 = vld [vmem:[%s11916_s1 + $0x14b0] ss:$8 sps:$4 sm:$0xff]  }
 0x1b7   :  { %5533 = vmatpush1.bf16.msra.mxu1 %v8416_v34  ;;  %v8512_v34 = vld [vmem:[%s11916_s1 + $0x7c4] ss:$8 sps:$4 sm:$0xff]  }
 0x1b8   :  { %6066 = vmatpush1.bf16.msra.mxu0 %v8419_v35  ;;  %5534 = vmatprep.subr.bf16.mxu1 %v8424_v36  ;;  %v8515_v35 = vld [vmem:[%s11916_s1 + $0x14c4] ss:$8 sps:$4 sm:$0xff]   ;;  %v8510_v36 = vld [vmem:[%s11916_s1 + $0x7c0] ss:$8 sps:$4 sm:$0xff]  }
 0x1b9   :  { %6067 = vmatprep.subr.bf16.mxu0 %v8427_v37  ;;  %v8513_v37 = vld [vmem:[%s11916_s1 + $0x14c0] ss:$8 sps:$4 sm:$0xff]  }
 0x1bb   :  { %5535 = vmatpush1.bf16.msra.mxu1 %v8422_v38  ;;  %v8518_v38 = vld [vmem:[%s11916_s1 + $0x7d4] ss:$8 sps:$4 sm:$0xff]  }
 0x1bc   :  { %6068 = vmatpush1.bf16.msra.mxu0 %v8425_v20  ;;  %5536 = vmatprep.subr.bf16.mxu1 %v8430_v40  ;;  %v8521_v20 = vld [vmem:[%s11916_s1 + $0x14d4] ss:$8 sps:$4 sm:$0xff]   ;;  %v8516_v40 = vld [vmem:[%s11916_s1 + $0x7d0] ss:$8 sps:$4 sm:$0xff]  }
 0x1bd   :  { %6069 = vmatprep.subr.bf16.mxu0 %v8433_v41  ;;  %v8519_v41 = vld [vmem:[%s11916_s1 + $0x14d0] ss:$8 sps:$4 sm:$0xff]  }
 0x1bf   :  { %5537 = vmatpush1.bf16.msra.mxu1 %v8428_v42  ;;  %v8524_v42 = vld [vmem:[%s11916_s1 + $0x7e4] ss:$8 sps:$4 sm:$0xff]  }
 0x1c0   :  { %6070 = vmatpush1.bf16.msra.mxu0 %v8431_v43  ;;  %5547 = vmatprep.subr.bf16.mxu1 %v8438_v44  ;;  %v8527_v43 = vld [vmem:[%s11916_s1 + $0x14e4] ss:$8 sps:$4 sm:$0xff]   ;;  %v8522_v44 = vld [vmem:[%s11916_s1 + $0x7e0] ss:$8 sps:$4 sm:$0xff]  }
 0x1c1   :  { %6080 = vmatprep.subr.bf16.mxu0 %v8443_v32  ;;  %v8525_v32 = vld [vmem:[%s11916_s1 + $0x14e0] ss:$8 sps:$4 sm:$0xff]  }
 0x1c2   :  { %5539 = vmatmul.mubr.bf16.vlgmr.msra.gmra.mrb[0].mxu1 %v6677_v46  ;;  %v8530_v46 = vld [vmem:[%s11916_s1 + $0x7f4] ss:$8 sps:$4 sm:$0xff]  }
 0x1c3   :  { %6072 = vmatmul.mubr.bf16.vlgmr.msra.gmra.mrb[0].mxu0 %v6703_v47  ;;  %5548 = vmatpush1.bf16.msra.mxu1 %v8436_v48  ;;  %v8533_v47 = vld [vmem:[%s11916_s1 + $0x14f4] ss:$8 sps:$4 sm:$0xff]   ;;  %v8528_v48 = vld [vmem:[%s11916_s1 + $0x7f0] ss:$8 sps:$4 sm:$0xff]  }
 0x1c4   :  { %6081 = vmatpush1.bf16.msra.mxu0 %v8441_v49  ;;  %5549 = vmatprep.subr.bf16.mxu1 %v8446_v50  ;;  %v8531_v49 = vld [vmem:[%s11916_s1 + $0x14f0] ss:$8 sps:$4 sm:$0xff]   ;;  %v8538_v50 = vld [vmem:[%s11916_s1 + $0x804] ss:$8 sps:$4 sm:$0xff]  }
 0x1c5   :  { %6082 = vmatprep.subr.bf16.mxu0 %v8449_v29  ;;  %5579 = vmatprep.mubr.bf16.mxu1 %v6680_v39  ;;  %v8543_v29 = vld [vmem:[%s11916_s1 + $0x1504] ss:$8 sps:$4 sm:$0xff]   ;;  %v6679_v39 = vcombine.low %v10571_v33, %v10571_v33  ;;  %v8541_v33 = vld [vmem:[%s11916_s1 + $0x1500] ss:$8 sps:$4 sm:$0xff]  }
 0x1c6   :  { %6112 = vmatprep.mubr.bf16.mxu0 %v6706_v51  ;;  %v6705_v51 = vcombine.low %v10576_v45, %v10576_v45  ;;  %v8546_v45 = vld [vmem:[%s11916_s1 + $0x814] ss:$8 sps:$4 sm:$0xff]  }
 0x1c7   :  { %5550 = vmatpush1.bf16.msra.mxu1 %v8444_v52  ;;  %v10785_v52 = vld [vmem:[%s11917_s0 + $0x40] sm:$0xff] }
 0x1c8   :  { %6083 = vmatpush1.bf16.msra.mxu0 %v8447_v53  ;;  %5551 = vmatprep.subr.bf16.mxu1 %v8452_v54  ;;  %v10790_v53 = vld [vmem:[%s11917_s0 + $0xa8] sm:$0xff] }
 0x1c9   :  { %6084 = vmatprep.subr.bf16.mxu0 %v8455_v55  ;;  %v8536_v54 = vld [vmem:[%s11916_s1 + $0x800] ss:$8 sps:$4 sm:$0xff]   ;;  %v8549_v55 = vld [vmem:[%s11916_s1 + $0x1514] ss:$8 sps:$4 sm:$0xff]  }
 0x1cb   :  { %5552 = vmatpush1.bf16.msra.mxu1 %v8450_v56  ;;  %v6682_v56 = vcombine.high %v10785_v52, %v10785_v52 }
 0x1cc   :  { %6085 = vmatpush1.bf16.msra.mxu0 %v8453_v57  ;;  %5553 = vmatprep.subr.bf16.mxu1 %v8458_v58  ;;  %v6708_v57 = vcombine.high %v10790_v53, %v10790_v53  ;;  %v8544_v58 = vld [vmem:[%s11916_s1 + $0x810] ss:$8 sps:$4 sm:$0xff]  }
 0x1cd   :  { %6086 = vmatprep.subr.bf16.mxu0 %v8461_v59  ;;  %v8547_v59 = vld [vmem:[%s11916_s1 + $0x1510] ss:$8 sps:$4 sm:$0xff]  }
 0x1cf   :  { %5554 = vmatpush1.bf16.msra.mxu1 %v8456_v60  ;;  %v8552_v60 = vld [vmem:[%s11916_s1 + $0x824] ss:$8 sps:$4 sm:$0xff]  }
 0x1d0   :  { %6087 = vmatpush1.bf16.msra.mxu0 %v8459_v61  ;;  %5555 = vmatprep.subr.bf16.mxu1 %v8464_v62  ;;  %v8555_v61 = vld [vmem:[%s11916_s1 + $0x1524] ss:$8 sps:$4 sm:$0xff]   ;;  %v8550_v62 = vld [vmem:[%s11916_s1 + $0x820] ss:$8 sps:$4 sm:$0xff]  }
 0x1d1   :  { %6088 = vmatprep.subr.bf16.mxu0 %v8467_v63  ;;  %v8553_v63 = vld [vmem:[%s11916_s1 + $0x1520] ss:$8 sps:$4 sm:$0xff]  }
 0x1d3   :  { %5556 = vmatpush1.bf16.msra.mxu1 %v8462_v0  ;;  %v8558_v0 = vld [vmem:[%s11916_s1 + $0x834] ss:$8 sps:$4 sm:$0xff]  }
 0x1d4   :  { %6089 = vmatpush1.bf16.msra.mxu0 %v8465_v1  ;;  %5557 = vmatprep.subr.bf16.mxu1 %v8470_v2  ;;  %v8561_v1 = vld [vmem:[%s11916_s1 + $0x1534] ss:$8 sps:$4 sm:$0xff]   ;;  %v8556_v2 = vld [vmem:[%s11916_s1 + $0x830] ss:$8 sps:$4 sm:$0xff]  }
 0x1d5   :  { %6090 = vmatprep.subr.bf16.mxu0 %v8473_v3  ;;  %v8559_v3 = vld [vmem:[%s11916_s1 + $0x1530] ss:$8 sps:$4 sm:$0xff]  }
 0x1d7   :  { %5558 = vmatpush1.bf16.msra.mxu1 %v8468_v4  ;;  %v8564_v4 = vld [vmem:[%s11916_s1 + $0x844] ss:$8 sps:$4 sm:$0xff]  }
 0x1d8   :  { %6091 = vmatpush1.bf16.msra.mxu0 %v8471_v5  ;;  %5559 = vmatprep.subr.bf16.mxu1 %v8476_v6  ;;  %v8567_v5 = vld [vmem:[%s11916_s1 + $0x1544] ss:$8 sps:$4 sm:$0xff]   ;;  %v8562_v6 = vld [vmem:[%s11916_s1 + $0x840] ss:$8 sps:$4 sm:$0xff]  }
 0x1d9   :  { %6092 = vmatprep.subr.bf16.mxu0 %v8479_v7  ;;  %v8565_v7 = vld [vmem:[%s11916_s1 + $0x1540] ss:$8 sps:$4 sm:$0xff]  }
 0x1db   :  { %5560 = vmatpush1.bf16.msra.mxu1 %v8474_v8  ;;  %v8570_v8 = vld [vmem:[%s11916_s1 + $0x854] ss:$8 sps:$4 sm:$0xff]  }
 0x1dc   :  { %6093 = vmatpush1.bf16.msra.mxu0 %v8477_v9  ;;  %5561 = vmatprep.subr.bf16.mxu1 %v8482_v10  ;;  %v8573_v9 = vld [vmem:[%s11916_s1 + $0x1554] ss:$8 sps:$4 sm:$0xff]   ;;  %v8568_v10 = vld [vmem:[%s11916_s1 + $0x850] ss:$8 sps:$4 sm:$0xff]  }
 0x1dd   :  { %6094 = vmatprep.subr.bf16.mxu0 %v8485_v11  ;;  %v8571_v11 = vld [vmem:[%s11916_s1 + $0x1550] ss:$8 sps:$4 sm:$0xff]  }
 0x1df   :  { %5562 = vmatpush1.bf16.msra.mxu1 %v8480_v12  ;;  %v8576_v12 = vld [vmem:[%s11916_s1 + $0x864] ss:$8 sps:$4 sm:$0xff]  }
 0x1e0   :  { %6095 = vmatpush1.bf16.msra.mxu0 %v8483_v13  ;;  %5563 = vmatprep.subr.bf16.mxu1 %v8488_v14  ;;  %v8579_v13 = vld [vmem:[%s11916_s1 + $0x1564] ss:$8 sps:$4 sm:$0xff]   ;;  %v8574_v14 = vld [vmem:[%s11916_s1 + $0x860] ss:$8 sps:$4 sm:$0xff]  }
 0x1e1   :  { %6096 = vmatprep.subr.bf16.mxu0 %v8491_v15  ;;  %v8577_v15 = vld [vmem:[%s11916_s1 + $0x1560] ss:$8 sps:$4 sm:$0xff]  }
 0x1e3   :  { %5564 = vmatpush1.bf16.msra.mxu1 %v8486_v16  ;;  %v8582_v16 = vld [vmem:[%s11916_s1 + $0x874] ss:$8 sps:$4 sm:$0xff]  }
 0x1e4   :  { %6097 = vmatpush1.bf16.msra.mxu0 %v8489_v17  ;;  %5565 = vmatprep.subr.bf16.mxu1 %v8494_v19  ;;  %v8585_v17 = vld [vmem:[%s11916_s1 + $0x1574] ss:$8 sps:$4 sm:$0xff]   ;;  %v8580_v19 = vld [vmem:[%s11916_s1 + $0x870] ss:$8 sps:$4 sm:$0xff]  }
 0x1e5   :  { %6098 = vmatprep.subr.bf16.mxu0 %v8497_v21  ;;  %v8583_v21 = vld [vmem:[%s11916_s1 + $0x1570] ss:$8 sps:$4 sm:$0xff]  }
 0x1e7   :  { %5566 = vmatpush1.bf16.msra.mxu1 %v8492_v22  ;;  %v8588_v22 = vld [vmem:[%s11916_s1 + $0x884] ss:$8 sps:$4 sm:$0xff]  }
 0x1e8   :  { %6099 = vmatpush1.bf16.msra.mxu0 %v8495_v23  ;;  %5567 = vmatprep.subr.bf16.mxu1 %v8500_v26  ;;  %v8591_v23 = vld [vmem:[%s11916_s1 + $0x1584] ss:$8 sps:$4 sm:$0xff]   ;;  %v8586_v26 = vld [vmem:[%s11916_s1 + $0x880] ss:$8 sps:$4 sm:$0xff]  }
 0x1e9   :  { %6100 = vmatprep.subr.bf16.mxu0 %v8503_v18  ;;  %v8589_v18 = vld [vmem:[%s11916_s1 + $0x1580] ss:$8 sps:$4 sm:$0xff]  }
 0x1eb   :  { %5568 = vmatpush1.bf16.msra.mxu1 %v8498_v27  ;;  %v8594_v27 = vld [vmem:[%s11916_s1 + $0x894] ss:$8 sps:$4 sm:$0xff]  }
 0x1ec   :  { %6101 = vmatpush1.bf16.msra.mxu0 %v8501_v28  ;;  %5569 = vmatprep.subr.bf16.mxu1 %v8506_v30  ;;  %v8597_v28 = vld [vmem:[%s11916_s1 + $0x1594] ss:$8 sps:$4 sm:$0xff]   ;;  %v8592_v30 = vld [vmem:[%s11916_s1 + $0x890] ss:$8 sps:$4 sm:$0xff]  }
 0x1ed   :  { %6102 = vmatprep.subr.bf16.mxu0 %v8509_v31  ;;  %v8595_v31 = vld [vmem:[%s11916_s1 + $0x1590] ss:$8 sps:$4 sm:$0xff]  }
 0x1ef   :  { %5570 = vmatpush1.bf16.msra.mxu1 %v8504_v24  ;;  %v8600_v24 = vld [vmem:[%s11916_s1 + $0x8a4] ss:$8 sps:$4 sm:$0xff]  }
 0x1f0   :  { %6103 = vmatpush1.bf16.msra.mxu0 %v8507_v25  ;;  %5571 = vmatprep.subr.bf16.mxu1 %v8512_v34  ;;  %v8603_v25 = vld [vmem:[%s11916_s1 + $0x15a4] ss:$8 sps:$4 sm:$0xff]   ;;  %v8598_v34 = vld [vmem:[%s11916_s1 + $0x8a0] ss:$8 sps:$4 sm:$0xff]  }
 0x1f1   :  { %6104 = vmatprep.subr.bf16.mxu0 %v8515_v35  ;;  %v8601_v35 = vld [vmem:[%s11916_s1 + $0x15a0] ss:$8 sps:$4 sm:$0xff]  }
 0x1f3   :  { %5572 = vmatpush1.bf16.msra.mxu1 %v8510_v36  ;;  %v8606_v36 = vld [vmem:[%s11916_s1 + $0x8b4] ss:$8 sps:$4 sm:$0xff]  }
 0x1f4   :  { %6105 = vmatpush1.bf16.msra.mxu0 %v8513_v37  ;;  %5573 = vmatprep.subr.bf16.mxu1 %v8518_v38  ;;  %v8609_v37 = vld [vmem:[%s11916_s1 + $0x15b4] ss:$8 sps:$4 sm:$0xff]   ;;  %v8604_v38 = vld [vmem:[%s11916_s1 + $0x8b0] ss:$8 sps:$4 sm:$0xff]  }
 0x1f5   :  { %6106 = vmatprep.subr.bf16.mxu0 %v8521_v20  ;;  %v8607_v20 = vld [vmem:[%s11916_s1 + $0x15b0] ss:$8 sps:$4 sm:$0xff]  }
 0x1f7   :  { %5574 = vmatpush1.bf16.msra.mxu1 %v8516_v40  ;;  %v8612_v40 = vld [vmem:[%s11916_s1 + $0x8c4] ss:$8 sps:$4 sm:$0xff]  }
 0x1f8   :  { %6107 = vmatpush1.bf16.msra.mxu0 %v8519_v41  ;;  %5575 = vmatprep.subr.bf16.mxu1 %v8524_v42  ;;  %v8615_v41 = vld [vmem:[%s11916_s1 + $0x15c4] ss:$8 sps:$4 sm:$0xff]   ;;  %v8610_v42 = vld [vmem:[%s11916_s1 + $0x8c0] ss:$8 sps:$4 sm:$0xff]  }
 0x1f9   :  { %6108 = vmatprep.subr.bf16.mxu0 %v8527_v43  ;;  %v8613_v43 = vld [vmem:[%s11916_s1 + $0x15c0] ss:$8 sps:$4 sm:$0xff]  }
 0x1fb   :  { %5576 = vmatpush1.bf16.msra.mxu1 %v8522_v44  ;;  %v8618_v44 = vld [vmem:[%s11916_s1 + $0x8d4] ss:$8 sps:$4 sm:$0xff]  }
 0x1fc   :  { %6109 = vmatpush1.bf16.msra.mxu0 %v8525_v32  ;;  %5577 = vmatprep.subr.bf16.mxu1 %v8530_v46  ;;  %v8621_v32 = vld [vmem:[%s11916_s1 + $0x15d4] ss:$8 sps:$4 sm:$0xff]   ;;  %v8616_v46 = vld [vmem:[%s11916_s1 + $0x8d0] ss:$8 sps:$4 sm:$0xff]  }
 0x1fd   :  { %6110 = vmatprep.subr.bf16.mxu0 %v8533_v47  ;;  %v8619_v47 = vld [vmem:[%s11916_s1 + $0x15d0] ss:$8 sps:$4 sm:$0xff]  }
 0x1ff   :  { %5578 = vmatpush1.bf16.msra.mxu1 %v8528_v48  ;;  %v8624_v48 = vld [vmem:[%s11916_s1 + $0x8e4] ss:$8 sps:$4 sm:$0xff]  }
 0x200   :  { %6111 = vmatpush1.bf16.msra.mxu0 %v8531_v49  ;;  %5588 = vmatprep.subr.bf16.mxu1 %v8538_v50  ;;  %v8627_v49 = vld [vmem:[%s11916_s1 + $0x15e4] ss:$8 sps:$4 sm:$0xff]   ;;  %v8622_v50 = vld [vmem:[%s11916_s1 + $0x8e0] ss:$8 sps:$4 sm:$0xff]  }
 0x201   :  { %6121 = vmatprep.subr.bf16.mxu0 %v8543_v29  ;;  %v8625_v29 = vld [vmem:[%s11916_s1 + $0x15e0] ss:$8 sps:$4 sm:$0xff]  }
 0x202   :  { %5580 = vmatmul.mubr.bf16.vlgmr.msra.gmra.mrb[0].mxu1 %v6679_v39  ;;  %v8630_v39 = vld [vmem:[%s11916_s1 + $0x8f4] ss:$8 sps:$4 sm:$0xff]  }
 0x203   :  { %6113 = vmatmul.mubr.bf16.vlgmr.msra.gmra.mrb[0].mxu0 %v6705_v51  ;;  %5589 = vmatpush1.bf16.msra.mxu1 %v8536_v54  ;;  %v8633_v51 = vld [vmem:[%s11916_s1 + $0x15f4] ss:$8 sps:$4 sm:$0xff]   ;;  %v8628_v54 = vld [vmem:[%s11916_s1 + $0x8f0] ss:$8 sps:$4 sm:$0xff]  }
 0x204   :  { %6122 = vmatpush1.bf16.msra.mxu0 %v8541_v33  ;;  %5590 = vmatprep.subr.bf16.mxu1 %v8546_v45  ;;  %v8631_v33 = vld [vmem:[%s11916_s1 + $0x15f0] ss:$8 sps:$4 sm:$0xff]   ;;  %v8638_v45 = vld [vmem:[%s11916_s1 + $0x904] ss:$8 sps:$4 sm:$0xff]  }
 0x205   :  { %6123 = vmatprep.subr.bf16.mxu0 %v8549_v55  ;;  %5620 = vmatprep.mubr.bf16.mxu1 %v6682_v56  ;;  %v8643_v55 = vld [vmem:[%s11916_s1 + $0x1604] ss:$8 sps:$4 sm:$0xff]   ;;  %v6681_v56 = vcombine.low %v10785_v52, %v10785_v52  ;;  %v8641_v52 = vld [vmem:[%s11916_s1 + $0x1600] ss:$8 sps:$4 sm:$0xff]  }
 0x206   :  { %6153 = vmatprep.mubr.bf16.mxu0 %v6708_v57  ;;  %v6707_v57 = vcombine.low %v10790_v53, %v10790_v53  ;;  %v8646_v53 = vld [vmem:[%s11916_s1 + $0x914] ss:$8 sps:$4 sm:$0xff]  }
 0x207   :  { %5591 = vmatpush1.bf16.msra.mxu1 %v8544_v58  ;;  %v10995_v58 = vld [vmem:[%s11917_s0 + $0x48] sm:$0xff] }
 0x208   :  { %6124 = vmatpush1.bf16.msra.mxu0 %v8547_v59  ;;  %5592 = vmatprep.subr.bf16.mxu1 %v8552_v60  ;;  %v11000_v59 = vld [vmem:[%s11917_s0 + $0xb0] sm:$0xff]  ;;  %v8636_v60 = vld [vmem:[%s11916_s1 + $0x900] ss:$8 sps:$4 sm:$0xff]  }
 0x209   :  { %6125 = vmatprep.subr.bf16.mxu0 %v8555_v61  ;;  %v8649_v61 = vld [vmem:[%s11916_s1 + $0x1614] ss:$8 sps:$4 sm:$0xff]  }
 0x20b   :  { %5593 = vmatpush1.bf16.msra.mxu1 %v8550_v62  ;;  %v6684_v62 = vcombine.high %v10995_v58, %v10995_v58 }
 0x20c   :  { %6126 = vmatpush1.bf16.msra.mxu0 %v8553_v63  ;;  %5594 = vmatprep.subr.bf16.mxu1 %v8558_v0  ;;  %v6710_v63 = vcombine.high %v11000_v59, %v11000_v59  ;;  %v8644_v0 = vld [vmem:[%s11916_s1 + $0x910] ss:$8 sps:$4 sm:$0xff]  }
 0x20d   :  { %6127 = vmatprep.subr.bf16.mxu0 %v8561_v1  ;;  %v8647_v1 = vld [vmem:[%s11916_s1 + $0x1610] ss:$8 sps:$4 sm:$0xff]  }
 0x20f   :  { %5595 = vmatpush1.bf16.msra.mxu1 %v8556_v2  ;;  %v8652_v2 = vld [vmem:[%s11916_s1 + $0x924] ss:$8 sps:$4 sm:$0xff]  }
 0x210   :  { %6128 = vmatpush1.bf16.msra.mxu0 %v8559_v3  ;;  %5596 = vmatprep.subr.bf16.mxu1 %v8564_v4  ;;  %v8655_v3 = vld [vmem:[%s11916_s1 + $0x1624] ss:$8 sps:$4 sm:$0xff]   ;;  %v8650_v4 = vld [vmem:[%s11916_s1 + $0x920] ss:$8 sps:$4 sm:$0xff]  }
 0x211   :  { %6129 = vmatprep.subr.bf16.mxu0 %v8567_v5  ;;  %v8653_v5 = vld [vmem:[%s11916_s1 + $0x1620] ss:$8 sps:$4 sm:$0xff]  }
 0x213   :  { %5597 = vmatpush1.bf16.msra.mxu1 %v8562_v6  ;;  %v8658_v6 = vld [vmem:[%s11916_s1 + $0x934] ss:$8 sps:$4 sm:$0xff]  }
 0x214   :  { %6130 = vmatpush1.bf16.msra.mxu0 %v8565_v7  ;;  %5598 = vmatprep.subr.bf16.mxu1 %v8570_v8  ;;  %v8661_v7 = vld [vmem:[%s11916_s1 + $0x1634] ss:$8 sps:$4 sm:$0xff]   ;;  %v8656_v8 = vld [vmem:[%s11916_s1 + $0x930] ss:$8 sps:$4 sm:$0xff]  }
 0x215   :  { %6131 = vmatprep.subr.bf16.mxu0 %v8573_v9  ;;  %v8659_v9 = vld [vmem:[%s11916_s1 + $0x1630] ss:$8 sps:$4 sm:$0xff]  }
 0x217   :  { %5599 = vmatpush1.bf16.msra.mxu1 %v8568_v10  ;;  %v8664_v10 = vld [vmem:[%s11916_s1 + $0x944] ss:$8 sps:$4 sm:$0xff]  }
 0x218   :  { %6132 = vmatpush1.bf16.msra.mxu0 %v8571_v11  ;;  %5600 = vmatprep.subr.bf16.mxu1 %v8576_v12  ;;  %v8667_v11 = vld [vmem:[%s11916_s1 + $0x1644] ss:$8 sps:$4 sm:$0xff]   ;;  %v8662_v12 = vld [vmem:[%s11916_s1 + $0x940] ss:$8 sps:$4 sm:$0xff]  }
 0x219   :  { %6133 = vmatprep.subr.bf16.mxu0 %v8579_v13  ;;  %v8665_v13 = vld [vmem:[%s11916_s1 + $0x1640] ss:$8 sps:$4 sm:$0xff]  }
 0x21b   :  { %5601 = vmatpush1.bf16.msra.mxu1 %v8574_v14  ;;  %v8670_v14 = vld [vmem:[%s11916_s1 + $0x954] ss:$8 sps:$4 sm:$0xff]  }
 0x21c   :  { %6134 = vmatpush1.bf16.msra.mxu0 %v8577_v15  ;;  %5602 = vmatprep.subr.bf16.mxu1 %v8582_v16  ;;  %v8673_v15 = vld [vmem:[%s11916_s1 + $0x1654] ss:$8 sps:$4 sm:$0xff]   ;;  %v8668_v16 = vld [vmem:[%s11916_s1 + $0x950] ss:$8 sps:$4 sm:$0xff]  }
 0x21d   :  { %6135 = vmatprep.subr.bf16.mxu0 %v8585_v17  ;;  %v8671_v17 = vld [vmem:[%s11916_s1 + $0x1650] ss:$8 sps:$4 sm:$0xff]  }
 0x21f   :  { %5603 = vmatpush1.bf16.msra.mxu1 %v8580_v19  ;;  %v8676_v19 = vld [vmem:[%s11916_s1 + $0x964] ss:$8 sps:$4 sm:$0xff]  }
 0x220   :  { %6136 = vmatpush1.bf16.msra.mxu0 %v8583_v21  ;;  %5604 = vmatprep.subr.bf16.mxu1 %v8588_v22  ;;  %v8679_v21 = vld [vmem:[%s11916_s1 + $0x1664] ss:$8 sps:$4 sm:$0xff]   ;;  %v8674_v22 = vld [vmem:[%s11916_s1 + $0x960] ss:$8 sps:$4 sm:$0xff]  }
 0x221   :  { %6137 = vmatprep.subr.bf16.mxu0 %v8591_v23  ;;  %v8677_v23 = vld [vmem:[%s11916_s1 + $0x1660] ss:$8 sps:$4 sm:$0xff]  }
 0x223   :  { %5605 = vmatpush1.bf16.msra.mxu1 %v8586_v26  ;;  %v8682_v26 = vld [vmem:[%s11916_s1 + $0x974] ss:$8 sps:$4 sm:$0xff]  }
 0x224   :  { %6138 = vmatpush1.bf16.msra.mxu0 %v8589_v18  ;;  %5606 = vmatprep.subr.bf16.mxu1 %v8594_v27  ;;  %v8685_v18 = vld [vmem:[%s11916_s1 + $0x1674] ss:$8 sps:$4 sm:$0xff]   ;;  %v8680_v27 = vld [vmem:[%s11916_s1 + $0x970] ss:$8 sps:$4 sm:$0xff]  }
 0x225   :  { %6139 = vmatprep.subr.bf16.mxu0 %v8597_v28  ;;  %v8683_v28 = vld [vmem:[%s11916_s1 + $0x1670] ss:$8 sps:$4 sm:$0xff]  }
 0x227   :  { %5607 = vmatpush1.bf16.msra.mxu1 %v8592_v30  ;;  %v8688_v30 = vld [vmem:[%s11916_s1 + $0x984] ss:$8 sps:$4 sm:$0xff]  }
 0x228   :  { %6140 = vmatpush1.bf16.msra.mxu0 %v8595_v31  ;;  %5608 = vmatprep.subr.bf16.mxu1 %v8600_v24  ;;  %v8691_v31 = vld [vmem:[%s11916_s1 + $0x1684] ss:$8 sps:$4 sm:$0xff]   ;;  %v8686_v24 = vld [vmem:[%s11916_s1 + $0x980] ss:$8 sps:$4 sm:$0xff]  }
 0x229   :  { %6141 = vmatprep.subr.bf16.mxu0 %v8603_v25  ;;  %v8689_v25 = vld [vmem:[%s11916_s1 + $0x1680] ss:$8 sps:$4 sm:$0xff]  }
 0x22b   :  { %5609 = vmatpush1.bf16.msra.mxu1 %v8598_v34  ;;  %v8694_v34 = vld [vmem:[%s11916_s1 + $0x994] ss:$8 sps:$4 sm:$0xff]  }
 0x22c   :  { %6142 = vmatpush1.bf16.msra.mxu0 %v8601_v35  ;;  %5610 = vmatprep.subr.bf16.mxu1 %v8606_v36  ;;  %v8697_v35 = vld [vmem:[%s11916_s1 + $0x1694] ss:$8 sps:$4 sm:$0xff]   ;;  %v8692_v36 = vld [vmem:[%s11916_s1 + $0x990] ss:$8 sps:$4 sm:$0xff]  }
 0x22d   :  { %6143 = vmatprep.subr.bf16.mxu0 %v8609_v37  ;;  %v8695_v37 = vld [vmem:[%s11916_s1 + $0x1690] ss:$8 sps:$4 sm:$0xff]  }
 0x22f   :  { %5611 = vmatpush1.bf16.msra.mxu1 %v8604_v38  ;;  %v8700_v38 = vld [vmem:[%s11916_s1 + $0x9a4] ss:$8 sps:$4 sm:$0xff]  }
 0x230   :  { %6144 = vmatpush1.bf16.msra.mxu0 %v8607_v20  ;;  %5612 = vmatprep.subr.bf16.mxu1 %v8612_v40  ;;  %v8703_v20 = vld [vmem:[%s11916_s1 + $0x16a4] ss:$8 sps:$4 sm:$0xff]   ;;  %v8698_v40 = vld [vmem:[%s11916_s1 + $0x9a0] ss:$8 sps:$4 sm:$0xff]  }
 0x231   :  { %6145 = vmatprep.subr.bf16.mxu0 %v8615_v41  ;;  %v8701_v41 = vld [vmem:[%s11916_s1 + $0x16a0] ss:$8 sps:$4 sm:$0xff]  }
 0x233   :  { %5613 = vmatpush1.bf16.msra.mxu1 %v8610_v42  ;;  %v8706_v42 = vld [vmem:[%s11916_s1 + $0x9b4] ss:$8 sps:$4 sm:$0xff]  }
 0x234   :  { %6146 = vmatpush1.bf16.msra.mxu0 %v8613_v43  ;;  %5614 = vmatprep.subr.bf16.mxu1 %v8618_v44  ;;  %v8709_v43 = vld [vmem:[%s11916_s1 + $0x16b4] ss:$8 sps:$4 sm:$0xff]   ;;  %v8704_v44 = vld [vmem:[%s11916_s1 + $0x9b0] ss:$8 sps:$4 sm:$0xff]  }
 0x235   :  { %6147 = vmatprep.subr.bf16.mxu0 %v8621_v32  ;;  %v8707_v32 = vld [vmem:[%s11916_s1 + $0x16b0] ss:$8 sps:$4 sm:$0xff]  }
 0x237   :  { %5615 = vmatpush1.bf16.msra.mxu1 %v8616_v46  ;;  %v8712_v46 = vld [vmem:[%s11916_s1 + $0x9c4] ss:$8 sps:$4 sm:$0xff]  }
 0x238   :  { %6148 = vmatpush1.bf16.msra.mxu0 %v8619_v47  ;;  %5616 = vmatprep.subr.bf16.mxu1 %v8624_v48  ;;  %v8715_v47 = vld [vmem:[%s11916_s1 + $0x16c4] ss:$8 sps:$4 sm:$0xff]   ;;  %v8710_v48 = vld [vmem:[%s11916_s1 + $0x9c0] ss:$8 sps:$4 sm:$0xff]  }
 0x239   :  { %6149 = vmatprep.subr.bf16.mxu0 %v8627_v49  ;;  %v8713_v49 = vld [vmem:[%s11916_s1 + $0x16c0] ss:$8 sps:$4 sm:$0xff]  }
 0x23b   :  { %5617 = vmatpush1.bf16.msra.mxu1 %v8622_v50  ;;  %v8718_v50 = vld [vmem:[%s11916_s1 + $0x9d4] ss:$8 sps:$4 sm:$0xff]  }
 0x23c   :  { %6150 = vmatpush1.bf16.msra.mxu0 %v8625_v29  ;;  %5618 = vmatprep.subr.bf16.mxu1 %v8630_v39  ;;  %v8721_v29 = vld [vmem:[%s11916_s1 + $0x16d4] ss:$8 sps:$4 sm:$0xff]   ;;  %v8716_v39 = vld [vmem:[%s11916_s1 + $0x9d0] ss:$8 sps:$4 sm:$0xff]  }
 0x23d   :  { %6151 = vmatprep.subr.bf16.mxu0 %v8633_v51  ;;  %v8719_v51 = vld [vmem:[%s11916_s1 + $0x16d0] ss:$8 sps:$4 sm:$0xff]  }
 0x23f   :  { %5619 = vmatpush1.bf16.msra.mxu1 %v8628_v54  ;;  %v8724_v54 = vld [vmem:[%s11916_s1 + $0x9e4] ss:$8 sps:$4 sm:$0xff]  }
 0x240   :  { %6152 = vmatpush1.bf16.msra.mxu0 %v8631_v33  ;;  %5629 = vmatprep.subr.bf16.mxu1 %v8638_v45  ;;  %v8727_v33 = vld [vmem:[%s11916_s1 + $0x16e4] ss:$8 sps:$4 sm:$0xff]   ;;  %v8722_v45 = vld [vmem:[%s11916_s1 + $0x9e0] ss:$8 sps:$4 sm:$0xff]  }
 0x241   :  { %6162 = vmatprep.subr.bf16.mxu0 %v8643_v55  ;;  %v8725_v55 = vld [vmem:[%s11916_s1 + $0x16e0] ss:$8 sps:$4 sm:$0xff]  }
 0x242   :  { %5621 = vmatmul.mubr.bf16.vlgmr.msra.gmra.mrb[0].mxu1 %v6681_v56  ;;  %v8730_v56 = vld [vmem:[%s11916_s1 + $0x9f4] ss:$8 sps:$4 sm:$0xff]  }
 0x243   :  { %6154 = vmatmul.mubr.bf16.vlgmr.msra.gmra.mrb[0].mxu0 %v6707_v57  ;;  %5630 = vmatpush1.bf16.msra.mxu1 %v8636_v60  ;;  %v8733_v57 = vld [vmem:[%s11916_s1 + $0x16f4] ss:$8 sps:$4 sm:$0xff]   ;;  %v8728_v60 = vld [vmem:[%s11916_s1 + $0x9f0] ss:$8 sps:$4 sm:$0xff]  }
 0x244   :  { %6163 = vmatpush1.bf16.msra.mxu0 %v8641_v52  ;;  %5631 = vmatprep.subr.bf16.mxu1 %v8646_v53  ;;  %v8731_v52 = vld [vmem:[%s11916_s1 + $0x16f0] ss:$8 sps:$4 sm:$0xff]   ;;  %v8738_v53 = vld [vmem:[%s11916_s1 + $0xa04] ss:$8 sps:$4 sm:$0xff]  }
 0x245   :  { %6164 = vmatprep.subr.bf16.mxu0 %v8649_v61  ;;  %5661 = vmatprep.mubr.bf16.mxu1 %v6684_v62  ;;  %v8743_v61 = vld [vmem:[%s11916_s1 + $0x1704] ss:$8 sps:$4 sm:$0xff]   ;;  %v6683_v62 = vcombine.low %v10995_v58, %v10995_v58  ;;  %v8741_v58 = vld [vmem:[%s11916_s1 + $0x1700] ss:$8 sps:$4 sm:$0xff]  }
 0x246   :  { %6194 = vmatprep.mubr.bf16.mxu0 %v6710_v63  ;;  %v6709_v63 = vcombine.low %v11000_v59, %v11000_v59  ;;  %v8746_v59 = vld [vmem:[%s11916_s1 + $0xa14] ss:$8 sps:$4 sm:$0xff]  }
 0x247   :  { %5632 = vmatpush1.bf16.msra.mxu1 %v8644_v0  ;;  %v11205_v0 = vld [vmem:[%s11917_s0 + $0x50] sm:$0xff] }
 0x248   :  { %6165 = vmatpush1.bf16.msra.mxu0 %v8647_v1  ;;  %5633 = vmatprep.subr.bf16.mxu1 %v8652_v2  ;;  %v11210_v1 = vld [vmem:[%s11917_s0 + $0xb8] sm:$0xff]  ;;  %v8736_v2 = vld [vmem:[%s11916_s1 + $0xa00] ss:$8 sps:$4 sm:$0xff]  }
 0x249   :  { %6166 = vmatprep.subr.bf16.mxu0 %v8655_v3  ;;  %v8749_v3 = vld [vmem:[%s11916_s1 + $0x1714] ss:$8 sps:$4 sm:$0xff]  }
 0x24b   :  { %5634 = vmatpush1.bf16.msra.mxu1 %v8650_v4  ;;  %v6686_v4 = vcombine.high %v11205_v0, %v11205_v0 }
 0x24c   :  { %6167 = vmatpush1.bf16.msra.mxu0 %v8653_v5  ;;  %5635 = vmatprep.subr.bf16.mxu1 %v8658_v6  ;;  %v6712_v5 = vcombine.high %v11210_v1, %v11210_v1  ;;  %v8744_v6 = vld [vmem:[%s11916_s1 + $0xa10] ss:$8 sps:$4 sm:$0xff]  }
 0x24d   :  { %6168 = vmatprep.subr.bf16.mxu0 %v8661_v7  ;;  %v8747_v7 = vld [vmem:[%s11916_s1 + $0x1710] ss:$8 sps:$4 sm:$0xff]  }
 0x24f   :  { %5636 = vmatpush1.bf16.msra.mxu1 %v8656_v8  ;;  %v8752_v8 = vld [vmem:[%s11916_s1 + $0xa24] ss:$8 sps:$4 sm:$0xff]  }
 0x250   :  { %6169 = vmatpush1.bf16.msra.mxu0 %v8659_v9  ;;  %5637 = vmatprep.subr.bf16.mxu1 %v8664_v10  ;;  %v8755_v9 = vld [vmem:[%s11916_s1 + $0x1724] ss:$8 sps:$4 sm:$0xff]   ;;  %v8750_v10 = vld [vmem:[%s11916_s1 + $0xa20] ss:$8 sps:$4 sm:$0xff]  }
 0x251   :  { %6170 = vmatprep.subr.bf16.mxu0 %v8667_v11  ;;  %v8753_v11 = vld [vmem:[%s11916_s1 + $0x1720] ss:$8 sps:$4 sm:$0xff]  }
 0x253   :  { %5638 = vmatpush1.bf16.msra.mxu1 %v8662_v12  ;;  %v8758_v12 = vld [vmem:[%s11916_s1 + $0xa34] ss:$8 sps:$4 sm:$0xff]  }
 0x254   :  { %6171 = vmatpush1.bf16.msra.mxu0 %v8665_v13  ;;  %5639 = vmatprep.subr.bf16.mxu1 %v8670_v14  ;;  %v8761_v13 = vld [vmem:[%s11916_s1 + $0x1734] ss:$8 sps:$4 sm:$0xff]   ;;  %v8756_v14 = vld [vmem:[%s11916_s1 + $0xa30] ss:$8 sps:$4 sm:$0xff]  }
 0x255   :  { %6172 = vmatprep.subr.bf16.mxu0 %v8673_v15  ;;  %v8759_v15 = vld [vmem:[%s11916_s1 + $0x1730] ss:$8 sps:$4 sm:$0xff]  }
 0x257   :  { %5640 = vmatpush1.bf16.msra.mxu1 %v8668_v16  ;;  %v8764_v16 = vld [vmem:[%s11916_s1 + $0xa44] ss:$8 sps:$4 sm:$0xff]  }
 0x258   :  { %6173 = vmatpush1.bf16.msra.mxu0 %v8671_v17  ;;  %5641 = vmatprep.subr.bf16.mxu1 %v8676_v19  ;;  %v8767_v17 = vld [vmem:[%s11916_s1 + $0x1744] ss:$8 sps:$4 sm:$0xff]   ;;  %v8762_v19 = vld [vmem:[%s11916_s1 + $0xa40] ss:$8 sps:$4 sm:$0xff]  }
 0x259   :  { %6174 = vmatprep.subr.bf16.mxu0 %v8679_v21  ;;  %v8765_v21 = vld [vmem:[%s11916_s1 + $0x1740] ss:$8 sps:$4 sm:$0xff]  }
 0x25b   :  { %5642 = vmatpush1.bf16.msra.mxu1 %v8674_v22  ;;  %v8770_v22 = vld [vmem:[%s11916_s1 + $0xa54] ss:$8 sps:$4 sm:$0xff]  }
 0x25c   :  { %6175 = vmatpush1.bf16.msra.mxu0 %v8677_v23  ;;  %5643 = vmatprep.subr.bf16.mxu1 %v8682_v26  ;;  %v8773_v23 = vld [vmem:[%s11916_s1 + $0x1754] ss:$8 sps:$4 sm:$0xff]   ;;  %v8768_v26 = vld [vmem:[%s11916_s1 + $0xa50] ss:$8 sps:$4 sm:$0xff]  }
 0x25d   :  { %6176 = vmatprep.subr.bf16.mxu0 %v8685_v18  ;;  %v8771_v18 = vld [vmem:[%s11916_s1 + $0x1750] ss:$8 sps:$4 sm:$0xff]  }
 0x25f   :  { %5644 = vmatpush1.bf16.msra.mxu1 %v8680_v27  ;;  %v8776_v27 = vld [vmem:[%s11916_s1 + $0xa64] ss:$8 sps:$4 sm:$0xff]  }
 0x260   :  { %6177 = vmatpush1.bf16.msra.mxu0 %v8683_v28  ;;  %5645 = vmatprep.subr.bf16.mxu1 %v8688_v30  ;;  %v8779_v28 = vld [vmem:[%s11916_s1 + $0x1764] ss:$8 sps:$4 sm:$0xff]   ;;  %v8774_v30 = vld [vmem:[%s11916_s1 + $0xa60] ss:$8 sps:$4 sm:$0xff]  }
 0x261   :  { %6178 = vmatprep.subr.bf16.mxu0 %v8691_v31  ;;  %v8777_v31 = vld [vmem:[%s11916_s1 + $0x1760] ss:$8 sps:$4 sm:$0xff]  }
 0x263   :  { %5646 = vmatpush1.bf16.msra.mxu1 %v8686_v24  ;;  %v8782_v24 = vld [vmem:[%s11916_s1 + $0xa74] ss:$8 sps:$4 sm:$0xff]  }
 0x264   :  { %6179 = vmatpush1.bf16.msra.mxu0 %v8689_v25  ;;  %5647 = vmatprep.subr.bf16.mxu1 %v8694_v34  ;;  %v8785_v25 = vld [vmem:[%s11916_s1 + $0x1774] ss:$8 sps:$4 sm:$0xff]   ;;  %v8780_v34 = vld [vmem:[%s11916_s1 + $0xa70] ss:$8 sps:$4 sm:$0xff]  }
 0x265   :  { %6180 = vmatprep.subr.bf16.mxu0 %v8697_v35  ;;  %v8783_v35 = vld [vmem:[%s11916_s1 + $0x1770] ss:$8 sps:$4 sm:$0xff]  }
 0x267   :  { %5648 = vmatpush1.bf16.msra.mxu1 %v8692_v36  ;;  %v8788_v36 = vld [vmem:[%s11916_s1 + $0xa84] ss:$8 sps:$4 sm:$0xff]  }
 0x268   :  { %6181 = vmatpush1.bf16.msra.mxu0 %v8695_v37  ;;  %5649 = vmatprep.subr.bf16.mxu1 %v8700_v38  ;;  %v8791_v37 = vld [vmem:[%s11916_s1 + $0x1784] ss:$8 sps:$4 sm:$0xff]   ;;  %v8786_v38 = vld [vmem:[%s11916_s1 + $0xa80] ss:$8 sps:$4 sm:$0xff]  }
 0x269   :  { %6182 = vmatprep.subr.bf16.mxu0 %v8703_v20  ;;  %v8789_v20 = vld [vmem:[%s11916_s1 + $0x1780] ss:$8 sps:$4 sm:$0xff]  }
 0x26b   :  { %5650 = vmatpush1.bf16.msra.mxu1 %v8698_v40  ;;  %v8794_v40 = vld [vmem:[%s11916_s1 + $0xa94] ss:$8 sps:$4 sm:$0xff]  }
 0x26c   :  { %6183 = vmatpush1.bf16.msra.mxu0 %v8701_v41  ;;  %5651 = vmatprep.subr.bf16.mxu1 %v8706_v42  ;;  %v8797_v41 = vld [vmem:[%s11916_s1 + $0x1794] ss:$8 sps:$4 sm:$0xff]   ;;  %v8792_v42 = vld [vmem:[%s11916_s1 + $0xa90] ss:$8 sps:$4 sm:$0xff]  }
 0x26d   :  { %6184 = vmatprep.subr.bf16.mxu0 %v8709_v43  ;;  %v8795_v43 = vld [vmem:[%s11916_s1 + $0x1790] ss:$8 sps:$4 sm:$0xff]  }
 0x26f   :  { %5652 = vmatpush1.bf16.msra.mxu1 %v8704_v44  ;;  %v8800_v44 = vld [vmem:[%s11916_s1 + $0xaa4] ss:$8 sps:$4 sm:$0xff]  }
 0x270   :  { %6185 = vmatpush1.bf16.msra.mxu0 %v8707_v32  ;;  %5653 = vmatprep.subr.bf16.mxu1 %v8712_v46  ;;  %v8803_v32 = vld [vmem:[%s11916_s1 + $0x17a4] ss:$8 sps:$4 sm:$0xff]   ;;  %v8798_v46 = vld [vmem:[%s11916_s1 + $0xaa0] ss:$8 sps:$4 sm:$0xff]  }
 0x271   :  { %6186 = vmatprep.subr.bf16.mxu0 %v8715_v47  ;;  %v8801_v47 = vld [vmem:[%s11916_s1 + $0x17a0] ss:$8 sps:$4 sm:$0xff]  }
 0x273   :  { %5654 = vmatpush1.bf16.msra.mxu1 %v8710_v48  ;;  %v8806_v48 = vld [vmem:[%s11916_s1 + $0xab4] ss:$8 sps:$4 sm:$0xff]  }
 0x274   :  { %6187 = vmatpush1.bf16.msra.mxu0 %v8713_v49  ;;  %5655 = vmatprep.subr.bf16.mxu1 %v8718_v50  ;;  %v8809_v49 = vld [vmem:[%s11916_s1 + $0x17b4] ss:$8 sps:$4 sm:$0xff]   ;;  %v8804_v50 = vld [vmem:[%s11916_s1 + $0xab0] ss:$8 sps:$4 sm:$0xff]  }
 0x275   :  { %6188 = vmatprep.subr.bf16.mxu0 %v8721_v29  ;;  %v8807_v29 = vld [vmem:[%s11916_s1 + $0x17b0] ss:$8 sps:$4 sm:$0xff]  }
 0x277   :  { %5656 = vmatpush1.bf16.msra.mxu1 %v8716_v39  ;;  %v8812_v39 = vld [vmem:[%s11916_s1 + $0xac4] ss:$8 sps:$4 sm:$0xff]  }
 0x278   :  { %6189 = vmatpush1.bf16.msra.mxu0 %v8719_v51  ;;  %5657 = vmatprep.subr.bf16.mxu1 %v8724_v54  ;;  %v8815_v51 = vld [vmem:[%s11916_s1 + $0x17c4] ss:$8 sps:$4 sm:$0xff]   ;;  %v8810_v54 = vld [vmem:[%s11916_s1 + $0xac0] ss:$8 sps:$4 sm:$0xff]  }
 0x279   :  { %6190 = vmatprep.subr.bf16.mxu0 %v8727_v33  ;;  %v8813_v33 = vld [vmem:[%s11916_s1 + $0x17c0] ss:$8 sps:$4 sm:$0xff]  }
 0x27b   :  { %5658 = vmatpush1.bf16.msra.mxu1 %v8722_v45  ;;  %v8818_v45 = vld [vmem:[%s11916_s1 + $0xad4] ss:$8 sps:$4 sm:$0xff]  }
 0x27c   :  { %6191 = vmatpush1.bf16.msra.mxu0 %v8725_v55  ;;  %5659 = vmatprep.subr.bf16.mxu1 %v8730_v56  ;;  %v8821_v55 = vld [vmem:[%s11916_s1 + $0x17d4] ss:$8 sps:$4 sm:$0xff]   ;;  %v8816_v56 = vld [vmem:[%s11916_s1 + $0xad0] ss:$8 sps:$4 sm:$0xff]  }
 0x27d   :  { %6192 = vmatprep.subr.bf16.mxu0 %v8733_v57  ;;  %v8819_v57 = vld [vmem:[%s11916_s1 + $0x17d0] ss:$8 sps:$4 sm:$0xff]  }
 0x27f   :  { %5660 = vmatpush1.bf16.msra.mxu1 %v8728_v60  ;;  %v8824_v60 = vld [vmem:[%s11916_s1 + $0xae4] ss:$8 sps:$4 sm:$0xff]  }
 0x280   :  { %6193 = vmatpush1.bf16.msra.mxu0 %v8731_v52  ;;  %5670 = vmatprep.subr.bf16.mxu1 %v8738_v53  ;;  %v8827_v52 = vld [vmem:[%s11916_s1 + $0x17e4] ss:$8 sps:$4 sm:$0xff]   ;;  %v8822_v53 = vld [vmem:[%s11916_s1 + $0xae0] ss:$8 sps:$4 sm:$0xff]  }
 0x281   :  { %6203 = vmatprep.subr.bf16.mxu0 %v8743_v61  ;;  %v8825_v61 = vld [vmem:[%s11916_s1 + $0x17e0] ss:$8 sps:$4 sm:$0xff]  }
 0x282   :  { %5662 = vmatmul.mubr.bf16.vlgmr.msra.gmra.mrb[0].mxu1 %v6683_v62  ;;  %v8830_v62 = vld [vmem:[%s11916_s1 + $0xaf4] ss:$8 sps:$4 sm:$0xff]  }
 0x283   :  { %6195 = vmatmul.mubr.bf16.vlgmr.msra.gmra.mrb[0].mxu0 %v6709_v63  ;;  %5671 = vmatpush1.bf16.msra.mxu1 %v8736_v2  ;;  %v8833_v63 = vld [vmem:[%s11916_s1 + $0x17f4] ss:$8 sps:$4 sm:$0xff]   ;;  %v8828_v2 = vld [vmem:[%s11916_s1 + $0xaf0] ss:$8 sps:$4 sm:$0xff]  }
 0x284   :  { %6204 = vmatpush1.bf16.msra.mxu0 %v8741_v58  ;;  %5672 = vmatprep.subr.bf16.mxu1 %v8746_v59  ;;  %v8831_v58 = vld [vmem:[%s11916_s1 + $0x17f0] ss:$8 sps:$4 sm:$0xff]   ;;  %v8838_v59 = vld [vmem:[%s11916_s1 + $0xb04] ss:$8 sps:$4 sm:$0xff]  }
 0x285   :  { %6205 = vmatprep.subr.bf16.mxu0 %v8749_v3  ;;  %5702 = vmatprep.mubr.bf16.mxu1 %v6686_v4  ;;  %v8843_v3 = vld [vmem:[%s11916_s1 + $0x1804] ss:$8 sps:$4 sm:$0xff]   ;;  %v6685_v4 = vcombine.low %v11205_v0, %v11205_v0  ;;  %v8841_v0 = vld [vmem:[%s11916_s1 + $0x1800] ss:$8 sps:$4 sm:$0xff]  }
 0x286   :  { %6235 = vmatprep.mubr.bf16.mxu0 %v6712_v5  ;;  %v6711_v5 = vcombine.low %v11210_v1, %v11210_v1  ;;  %v8846_v1 = vld [vmem:[%s11916_s1 + $0xb14] ss:$8 sps:$4 sm:$0xff]  }
 0x287   :  { %5673 = vmatpush1.bf16.msra.mxu1 %v8744_v6  ;;  %v11415_v6 = vld [vmem:[%s11917_s0 + $0x58] sm:$0xff] }
 0x288   :  { %6206 = vmatpush1.bf16.msra.mxu0 %v8747_v7  ;;  %5674 = vmatprep.subr.bf16.mxu1 %v8752_v8  ;;  %v11420_v7 = vld [vmem:[%s11917_s0 + $0xc0] sm:$0xff] }
 0x289   :  { %6207 = vmatprep.subr.bf16.mxu0 %v8755_v9  ;;  %v8836_v8 = vld [vmem:[%s11916_s1 + $0xb00] ss:$8 sps:$4 sm:$0xff]   ;;  %v8849_v9 = vld [vmem:[%s11916_s1 + $0x1814] ss:$8 sps:$4 sm:$0xff]  }
 0x28b   :  { %5675 = vmatpush1.bf16.msra.mxu1 %v8750_v10  ;;  %v6688_v10 = vcombine.high %v11415_v6, %v11415_v6 }
 0x28c   :  { %6208 = vmatpush1.bf16.msra.mxu0 %v8753_v11  ;;  %5676 = vmatprep.subr.bf16.mxu1 %v8758_v12  ;;  %v6714_v11 = vcombine.high %v11420_v7, %v11420_v7  ;;  %v8844_v12 = vld [vmem:[%s11916_s1 + $0xb10] ss:$8 sps:$4 sm:$0xff]  }
 0x28d   :  { %6209 = vmatprep.subr.bf16.mxu0 %v8761_v13  ;;  %v8847_v13 = vld [vmem:[%s11916_s1 + $0x1810] ss:$8 sps:$4 sm:$0xff]  }
 0x28f   :  { %5677 = vmatpush1.bf16.msra.mxu1 %v8756_v14  ;;  %v8852_v14 = vld [vmem:[%s11916_s1 + $0xb24] ss:$8 sps:$4 sm:$0xff]  }
 0x290   :  { %6210 = vmatpush1.bf16.msra.mxu0 %v8759_v15  ;;  %5678 = vmatprep.subr.bf16.mxu1 %v8764_v16  ;;  %v8855_v15 = vld [vmem:[%s11916_s1 + $0x1824] ss:$8 sps:$4 sm:$0xff]   ;;  %v8850_v16 = vld [vmem:[%s11916_s1 + $0xb20] ss:$8 sps:$4 sm:$0xff]  }
 0x291   :  { %6211 = vmatprep.subr.bf16.mxu0 %v8767_v17  ;;  %v8853_v17 = vld [vmem:[%s11916_s1 + $0x1820] ss:$8 sps:$4 sm:$0xff]  }
 0x293   :  { %5679 = vmatpush1.bf16.msra.mxu1 %v8762_v19  ;;  %v8858_v19 = vld [vmem:[%s11916_s1 + $0xb34] ss:$8 sps:$4 sm:$0xff]  }
 0x294   :  { %6212 = vmatpush1.bf16.msra.mxu0 %v8765_v21  ;;  %5680 = vmatprep.subr.bf16.mxu1 %v8770_v22  ;;  %v8861_v21 = vld [vmem:[%s11916_s1 + $0x1834] ss:$8 sps:$4 sm:$0xff]   ;;  %v8856_v22 = vld [vmem:[%s11916_s1 + $0xb30] ss:$8 sps:$4 sm:$0xff]  }
 0x295   :  { %6213 = vmatprep.subr.bf16.mxu0 %v8773_v23  ;;  %v8859_v23 = vld [vmem:[%s11916_s1 + $0x1830] ss:$8 sps:$4 sm:$0xff]  }
 0x297   :  { %5681 = vmatpush1.bf16.msra.mxu1 %v8768_v26  ;;  %v8864_v26 = vld [vmem:[%s11916_s1 + $0xb44] ss:$8 sps:$4 sm:$0xff]  }
 0x298   :  { %6214 = vmatpush1.bf16.msra.mxu0 %v8771_v18  ;;  %5682 = vmatprep.subr.bf16.mxu1 %v8776_v27  ;;  %v8867_v18 = vld [vmem:[%s11916_s1 + $0x1844] ss:$8 sps:$4 sm:$0xff]   ;;  %v8862_v27 = vld [vmem:[%s11916_s1 + $0xb40] ss:$8 sps:$4 sm:$0xff]  }
 0x299   :  { %6215 = vmatprep.subr.bf16.mxu0 %v8779_v28  ;;  %v8865_v28 = vld [vmem:[%s11916_s1 + $0x1840] ss:$8 sps:$4 sm:$0xff]  }
 0x29b   :  { %5683 = vmatpush1.bf16.msra.mxu1 %v8774_v30  ;;  %v8870_v30 = vld [vmem:[%s11916_s1 + $0xb54] ss:$8 sps:$4 sm:$0xff]  }
 0x29c   :  { %6216 = vmatpush1.bf16.msra.mxu0 %v8777_v31  ;;  %5684 = vmatprep.subr.bf16.mxu1 %v8782_v24  ;;  %v8873_v31 = vld [vmem:[%s11916_s1 + $0x1854] ss:$8 sps:$4 sm:$0xff]   ;;  %v8868_v24 = vld [vmem:[%s11916_s1 + $0xb50] ss:$8 sps:$4 sm:$0xff]  }
 0x29d   :  { %6217 = vmatprep.subr.bf16.mxu0 %v8785_v25  ;;  %v8871_v25 = vld [vmem:[%s11916_s1 + $0x1850] ss:$8 sps:$4 sm:$0xff]  }
 0x29f   :  { %5685 = vmatpush1.bf16.msra.mxu1 %v8780_v34  ;;  %v8876_v34 = vld [vmem:[%s11916_s1 + $0xb64] ss:$8 sps:$4 sm:$0xff]  }
 0x2a0   :  { %6218 = vmatpush1.bf16.msra.mxu0 %v8783_v35  ;;  %5686 = vmatprep.subr.bf16.mxu1 %v8788_v36  ;;  %v8879_v35 = vld [vmem:[%s11916_s1 + $0x1864] ss:$8 sps:$4 sm:$0xff]   ;;  %v8874_v36 = vld [vmem:[%s11916_s1 + $0xb60] ss:$8 sps:$4 sm:$0xff]  }
 0x2a1   :  { %6219 = vmatprep.subr.bf16.mxu0 %v8791_v37  ;;  %v8877_v37 = vld [vmem:[%s11916_s1 + $0x1860] ss:$8 sps:$4 sm:$0xff]  }
 0x2a3   :  { %5687 = vmatpush1.bf16.msra.mxu1 %v8786_v38  ;;  %v8882_v38 = vld [vmem:[%s11916_s1 + $0xb74] ss:$8 sps:$4 sm:$0xff]  }
 0x2a4   :  { %6220 = vmatpush1.bf16.msra.mxu0 %v8789_v20  ;;  %5688 = vmatprep.subr.bf16.mxu1 %v8794_v40  ;;  %v8885_v20 = vld [vmem:[%s11916_s1 + $0x1874] ss:$8 sps:$4 sm:$0xff]   ;;  %v8880_v40 = vld [vmem:[%s11916_s1 + $0xb70] ss:$8 sps:$4 sm:$0xff]  }
 0x2a5   :  { %6221 = vmatprep.subr.bf16.mxu0 %v8797_v41  ;;  %v8883_v41 = vld [vmem:[%s11916_s1 + $0x1870] ss:$8 sps:$4 sm:$0xff]  }
 0x2a7   :  { %5689 = vmatpush1.bf16.msra.mxu1 %v8792_v42  ;;  %v8888_v42 = vld [vmem:[%s11916_s1 + $0xb84] ss:$8 sps:$4 sm:$0xff]  }
 0x2a8   :  { %6222 = vmatpush1.bf16.msra.mxu0 %v8795_v43  ;;  %5690 = vmatprep.subr.bf16.mxu1 %v8800_v44  ;;  %v8891_v43 = vld [vmem:[%s11916_s1 + $0x1884] ss:$8 sps:$4 sm:$0xff]   ;;  %v8886_v44 = vld [vmem:[%s11916_s1 + $0xb80] ss:$8 sps:$4 sm:$0xff]  }
 0x2a9   :  { %6223 = vmatprep.subr.bf16.mxu0 %v8803_v32  ;;  %v8889_v32 = vld [vmem:[%s11916_s1 + $0x1880] ss:$8 sps:$4 sm:$0xff]  }
 0x2ab   :  { %5691 = vmatpush1.bf16.msra.mxu1 %v8798_v46  ;;  %v8894_v46 = vld [vmem:[%s11916_s1 + $0xb94] ss:$8 sps:$4 sm:$0xff]  }
 0x2ac   :  { %6224 = vmatpush1.bf16.msra.mxu0 %v8801_v47  ;;  %5692 = vmatprep.subr.bf16.mxu1 %v8806_v48  ;;  %v8897_v47 = vld [vmem:[%s11916_s1 + $0x1894] ss:$8 sps:$4 sm:$0xff]   ;;  %v8892_v48 = vld [vmem:[%s11916_s1 + $0xb90] ss:$8 sps:$4 sm:$0xff]  }
 0x2ad   :  { %6225 = vmatprep.subr.bf16.mxu0 %v8809_v49  ;;  %v8895_v49 = vld [vmem:[%s11916_s1 + $0x1890] ss:$8 sps:$4 sm:$0xff]  }
 0x2af   :  { %5693 = vmatpush1.bf16.msra.mxu1 %v8804_v50  ;;  %v8900_v50 = vld [vmem:[%s11916_s1 + $0xba4] ss:$8 sps:$4 sm:$0xff]  }
 0x2b0   :  { %6226 = vmatpush1.bf16.msra.mxu0 %v8807_v29  ;;  %5694 = vmatprep.subr.bf16.mxu1 %v8812_v39  ;;  %v8903_v29 = vld [vmem:[%s11916_s1 + $0x18a4] ss:$8 sps:$4 sm:$0xff]   ;;  %v8898_v39 = vld [vmem:[%s11916_s1 + $0xba0] ss:$8 sps:$4 sm:$0xff]  }
 0x2b1   :  { %6227 = vmatprep.subr.bf16.mxu0 %v8815_v51  ;;  %v8901_v51 = vld [vmem:[%s11916_s1 + $0x18a0] ss:$8 sps:$4 sm:$0xff]  }
 0x2b3   :  { %5695 = vmatpush1.bf16.msra.mxu1 %v8810_v54  ;;  %v8906_v54 = vld [vmem:[%s11916_s1 + $0xbb4] ss:$8 sps:$4 sm:$0xff]  }
 0x2b4   :  { %6228 = vmatpush1.bf16.msra.mxu0 %v8813_v33  ;;  %5696 = vmatprep.subr.bf16.mxu1 %v8818_v45  ;;  %v8909_v33 = vld [vmem:[%s11916_s1 + $0x18b4] ss:$8 sps:$4 sm:$0xff]   ;;  %v8904_v45 = vld [vmem:[%s11916_s1 + $0xbb0] ss:$8 sps:$4 sm:$0xff]  }
 0x2b5   :  { %6229 = vmatprep.subr.bf16.mxu0 %v8821_v55  ;;  %v8907_v55 = vld [vmem:[%s11916_s1 + $0x18b0] ss:$8 sps:$4 sm:$0xff]  }
 0x2b7   :  { %5697 = vmatpush1.bf16.msra.mxu1 %v8816_v56  ;;  %v8912_v56 = vld [vmem:[%s11916_s1 + $0xbc4] ss:$8 sps:$4 sm:$0xff]  }
 0x2b8   :  { %6230 = vmatpush1.bf16.msra.mxu0 %v8819_v57  ;;  %5698 = vmatprep.subr.bf16.mxu1 %v8824_v60  ;;  %v8915_v57 = vld [vmem:[%s11916_s1 + $0x18c4] ss:$8 sps:$4 sm:$0xff]   ;;  %v8910_v60 = vld [vmem:[%s11916_s1 + $0xbc0] ss:$8 sps:$4 sm:$0xff]  }
 0x2b9   :  { %6231 = vmatprep.subr.bf16.mxu0 %v8827_v52  ;;  %v8913_v52 = vld [vmem:[%s11916_s1 + $0x18c0] ss:$8 sps:$4 sm:$0xff]  }
 0x2bb   :  { %5699 = vmatpush1.bf16.msra.mxu1 %v8822_v53  ;;  %v8918_v53 = vld [vmem:[%s11916_s1 + $0xbd4] ss:$8 sps:$4 sm:$0xff]  }
 0x2bc   :  { %6232 = vmatpush1.bf16.msra.mxu0 %v8825_v61  ;;  %5700 = vmatprep.subr.bf16.mxu1 %v8830_v62  ;;  %v8921_v61 = vld [vmem:[%s11916_s1 + $0x18d4] ss:$8 sps:$4 sm:$0xff]   ;;  %v8916_v62 = vld [vmem:[%s11916_s1 + $0xbd0] ss:$8 sps:$4 sm:$0xff]  }
 0x2bd   :  { %6233 = vmatprep.subr.bf16.mxu0 %v8833_v63  ;;  %v8919_v63 = vld [vmem:[%s11916_s1 + $0x18d0] ss:$8 sps:$4 sm:$0xff]  }
 0x2bf   :  { %5701 = vmatpush1.bf16.msra.mxu1 %v8828_v2  ;;  %v8924_v2 = vld [vmem:[%s11916_s1 + $0xbe4] ss:$8 sps:$4 sm:$0xff]  }
 0x2c0   :  { %6234 = vmatpush1.bf16.msra.mxu0 %v8831_v58  ;;  %5711 = vmatprep.subr.bf16.mxu1 %v8838_v59  ;;  %v8927_v58 = vld [vmem:[%s11916_s1 + $0x18e4] ss:$8 sps:$4 sm:$0xff]   ;;  %v8922_v59 = vld [vmem:[%s11916_s1 + $0xbe0] ss:$8 sps:$4 sm:$0xff]  }
 0x2c1   :  { %6244 = vmatprep.subr.bf16.mxu0 %v8843_v3  ;;  %v8925_v3 = vld [vmem:[%s11916_s1 + $0x18e0] ss:$8 sps:$4 sm:$0xff]  }
 0x2c2   :  { %5703 = vmatmul.mubr.bf16.vlgmr.msra.gmra.mrb[0].mxu1 %v6685_v4  ;;  %v8930_v4 = vld [vmem:[%s11916_s1 + $0xbf4] ss:$8 sps:$4 sm:$0xff]  }
 0x2c3   :  { %6236 = vmatmul.mubr.bf16.vlgmr.msra.gmra.mrb[0].mxu0 %v6711_v5  ;;  %5712 = vmatpush1.bf16.msra.mxu1 %v8836_v8  ;;  %v8933_v5 = vld [vmem:[%s11916_s1 + $0x18f4] ss:$8 sps:$4 sm:$0xff]   ;;  %v8928_v8 = vld [vmem:[%s11916_s1 + $0xbf0] ss:$8 sps:$4 sm:$0xff]  }
 0x2c4   :  { %6245 = vmatpush1.bf16.msra.mxu0 %v8841_v0  ;;  %5713 = vmatprep.subr.bf16.mxu1 %v8846_v1  ;;  %v8931_v0 = vld [vmem:[%s11916_s1 + $0x18f0] ss:$8 sps:$4 sm:$0xff]   ;;  %v8938_v1 = vld [vmem:[%s11916_s1 + $0xc04] ss:$8 sps:$4 sm:$0xff]  }
 0x2c5   :  { %6246 = vmatprep.subr.bf16.mxu0 %v8849_v9  ;;  %5743 = vmatprep.mubr.bf16.mxu1 %v6688_v10  ;;  %v8943_v9 = vld [vmem:[%s11916_s1 + $0x1904] ss:$8 sps:$4 sm:$0xff]   ;;  %v6687_v10 = vcombine.low %v11415_v6, %v11415_v6  ;;  %v8941_v6 = vld [vmem:[%s11916_s1 + $0x1900] ss:$8 sps:$4 sm:$0xff]  }
 0x2c6   :  { %6276 = vmatprep.mubr.bf16.mxu0 %v6714_v11  ;;  %v6713_v11 = vcombine.low %v11420_v7, %v11420_v7  ;;  %v8946_v7 = vld [vmem:[%s11916_s1 + $0xc14] ss:$8 sps:$4 sm:$0xff]  }
 0x2c7   :  { %5714 = vmatpush1.bf16.msra.mxu1 %v8844_v12  ;;  %v11625_v12 = vld [vmem:[%s11917_s0 + $0x60] sm:$0xff] }
 0x2c8   :  { %6247 = vmatpush1.bf16.msra.mxu0 %v8847_v13  ;;  %5715 = vmatprep.subr.bf16.mxu1 %v8852_v14  ;;  %v11630_v13 = vld [vmem:[%s11917_s0 + $0xc8] sm:$0xff] }
 0x2c9   :  { %6248 = vmatprep.subr.bf16.mxu0 %v8855_v15  ;;  %v8936_v14 = vld [vmem:[%s11916_s1 + $0xc00] ss:$8 sps:$4 sm:$0xff]   ;;  %v8949_v15 = vld [vmem:[%s11916_s1 + $0x1914] ss:$8 sps:$4 sm:$0xff]  }
 0x2cb   :  { %5716 = vmatpush1.bf16.msra.mxu1 %v8850_v16  ;;  %v6690_v16 = vcombine.high %v11625_v12, %v11625_v12 }
 0x2cc   :  { %6249 = vmatpush1.bf16.msra.mxu0 %v8853_v17  ;;  %5717 = vmatprep.subr.bf16.mxu1 %v8858_v19  ;;  %v6716_v17 = vcombine.high %v11630_v13, %v11630_v13  ;;  %v8944_v19 = vld [vmem:[%s11916_s1 + $0xc10] ss:$8 sps:$4 sm:$0xff]  }
 0x2cd   :  { %6250 = vmatprep.subr.bf16.mxu0 %v8861_v21  ;;  %v8947_v21 = vld [vmem:[%s11916_s1 + $0x1910] ss:$8 sps:$4 sm:$0xff]  }
 0x2cf   :  { %5718 = vmatpush1.bf16.msra.mxu1 %v8856_v22  ;;  %v8952_v22 = vld [vmem:[%s11916_s1 + $0xc24] ss:$8 sps:$4 sm:$0xff]  }
 0x2d0   :  { %6251 = vmatpush1.bf16.msra.mxu0 %v8859_v23  ;;  %5719 = vmatprep.subr.bf16.mxu1 %v8864_v26  ;;  %v8955_v23 = vld [vmem:[%s11916_s1 + $0x1924] ss:$8 sps:$4 sm:$0xff]   ;;  %v8950_v26 = vld [vmem:[%s11916_s1 + $0xc20] ss:$8 sps:$4 sm:$0xff]  }
 0x2d1   :  { %6252 = vmatprep.subr.bf16.mxu0 %v8867_v18  ;;  %v8953_v18 = vld [vmem:[%s11916_s1 + $0x1920] ss:$8 sps:$4 sm:$0xff]  }
 0x2d3   :  { %5720 = vmatpush1.bf16.msra.mxu1 %v8862_v27  ;;  %v8958_v27 = vld [vmem:[%s11916_s1 + $0xc34] ss:$8 sps:$4 sm:$0xff]  }
 0x2d4   :  { %6253 = vmatpush1.bf16.msra.mxu0 %v8865_v28  ;;  %5721 = vmatprep.subr.bf16.mxu1 %v8870_v30  ;;  %v8961_v28 = vld [vmem:[%s11916_s1 + $0x1934] ss:$8 sps:$4 sm:$0xff]   ;;  %v8956_v30 = vld [vmem:[%s11916_s1 + $0xc30] ss:$8 sps:$4 sm:$0xff]  }
 0x2d5   :  { %6254 = vmatprep.subr.bf16.mxu0 %v8873_v31  ;;  %v8959_v31 = vld [vmem:[%s11916_s1 + $0x1930] ss:$8 sps:$4 sm:$0xff]  }
 0x2d7   :  { %5722 = vmatpush1.bf16.msra.mxu1 %v8868_v24  ;;  %v8964_v24 = vld [vmem:[%s11916_s1 + $0xc44] ss:$8 sps:$4 sm:$0xff]  }
 0x2d8   :  { %6255 = vmatpush1.bf16.msra.mxu0 %v8871_v25  ;;  %5723 = vmatprep.subr.bf16.mxu1 %v8876_v34  ;;  %v8967_v25 = vld [vmem:[%s11916_s1 + $0x1944] ss:$8 sps:$4 sm:$0xff]   ;;  %v8962_v34 = vld [vmem:[%s11916_s1 + $0xc40] ss:$8 sps:$4 sm:$0xff]  }
 0x2d9   :  { %6256 = vmatprep.subr.bf16.mxu0 %v8879_v35  ;;  %v8965_v35 = vld [vmem:[%s11916_s1 + $0x1940] ss:$8 sps:$4 sm:$0xff]  }
 0x2db   :  { %5724 = vmatpush1.bf16.msra.mxu1 %v8874_v36  ;;  %v8970_v36 = vld [vmem:[%s11916_s1 + $0xc54] ss:$8 sps:$4 sm:$0xff]  }
 0x2dc   :  { %6257 = vmatpush1.bf16.msra.mxu0 %v8877_v37  ;;  %5725 = vmatprep.subr.bf16.mxu1 %v8882_v38  ;;  %v8973_v37 = vld [vmem:[%s11916_s1 + $0x1954] ss:$8 sps:$4 sm:$0xff]   ;;  %v8968_v38 = vld [vmem:[%s11916_s1 + $0xc50] ss:$8 sps:$4 sm:$0xff]  }
 0x2dd   :  { %6258 = vmatprep.subr.bf16.mxu0 %v8885_v20  ;;  %v8971_v20 = vld [vmem:[%s11916_s1 + $0x1950] ss:$8 sps:$4 sm:$0xff]  }
 0x2df   :  { %5726 = vmatpush1.bf16.msra.mxu1 %v8880_v40  ;;  %v8976_v40 = vld [vmem:[%s11916_s1 + $0xc64] ss:$8 sps:$4 sm:$0xff]  }
 0x2e0   :  { %6259 = vmatpush1.bf16.msra.mxu0 %v8883_v41  ;;  %5727 = vmatprep.subr.bf16.mxu1 %v8888_v42  ;;  %v8979_v41 = vld [vmem:[%s11916_s1 + $0x1964] ss:$8 sps:$4 sm:$0xff]   ;;  %v8974_v42 = vld [vmem:[%s11916_s1 + $0xc60] ss:$8 sps:$4 sm:$0xff]  }
 0x2e1   :  { %6260 = vmatprep.subr.bf16.mxu0 %v8891_v43  ;;  %v8977_v43 = vld [vmem:[%s11916_s1 + $0x1960] ss:$8 sps:$4 sm:$0xff]  }
 0x2e3   :  { %5728 = vmatpush1.bf16.msra.mxu1 %v8886_v44  ;;  %v8982_v44 = vld [vmem:[%s11916_s1 + $0xc74] ss:$8 sps:$4 sm:$0xff]  }
 0x2e4   :  { %6261 = vmatpush1.bf16.msra.mxu0 %v8889_v32  ;;  %5729 = vmatprep.subr.bf16.mxu1 %v8894_v46  ;;  %v8985_v32 = vld [vmem:[%s11916_s1 + $0x1974] ss:$8 sps:$4 sm:$0xff]   ;;  %v8980_v46 = vld [vmem:[%s11916_s1 + $0xc70] ss:$8 sps:$4 sm:$0xff]  }
 0x2e5   :  { %6262 = vmatprep.subr.bf16.mxu0 %v8897_v47  ;;  %v8983_v47 = vld [vmem:[%s11916_s1 + $0x1970] ss:$8 sps:$4 sm:$0xff]  }
 0x2e7   :  { %5730 = vmatpush1.bf16.msra.mxu1 %v8892_v48  ;;  %v8988_v48 = vld [vmem:[%s11916_s1 + $0xc84] ss:$8 sps:$4 sm:$0xff]  }
 0x2e8   :  { %6263 = vmatpush1.bf16.msra.mxu0 %v8895_v49  ;;  %5731 = vmatprep.subr.bf16.mxu1 %v8900_v50  ;;  %v8991_v49 = vld [vmem:[%s11916_s1 + $0x1984] ss:$8 sps:$4 sm:$0xff]   ;;  %v8986_v50 = vld [vmem:[%s11916_s1 + $0xc80] ss:$8 sps:$4 sm:$0xff]  }
 0x2e9   :  { %6264 = vmatprep.subr.bf16.mxu0 %v8903_v29  ;;  %v8989_v29 = vld [vmem:[%s11916_s1 + $0x1980] ss:$8 sps:$4 sm:$0xff]  }
 0x2eb   :  { %5732 = vmatpush1.bf16.msra.mxu1 %v8898_v39  ;;  %v8994_v39 = vld [vmem:[%s11916_s1 + $0xc94] ss:$8 sps:$4 sm:$0xff]  }
 0x2ec   :  { %6265 = vmatpush1.bf16.msra.mxu0 %v8901_v51  ;;  %5733 = vmatprep.subr.bf16.mxu1 %v8906_v54  ;;  %v8997_v51 = vld [vmem:[%s11916_s1 + $0x1994] ss:$8 sps:$4 sm:$0xff]   ;;  %v8992_v54 = vld [vmem:[%s11916_s1 + $0xc90] ss:$8 sps:$4 sm:$0xff]  }
 0x2ed   :  { %6266 = vmatprep.subr.bf16.mxu0 %v8909_v33  ;;  %v8995_v33 = vld [vmem:[%s11916_s1 + $0x1990] ss:$8 sps:$4 sm:$0xff]  }
 0x2ef   :  { %5734 = vmatpush1.bf16.msra.mxu1 %v8904_v45  ;;  %v9000_v45 = vld [vmem:[%s11916_s1 + $0xca4] ss:$8 sps:$4 sm:$0xff]  }
 0x2f0   :  { %6267 = vmatpush1.bf16.msra.mxu0 %v8907_v55  ;;  %5735 = vmatprep.subr.bf16.mxu1 %v8912_v56  ;;  %v9003_v55 = vld [vmem:[%s11916_s1 + $0x19a4] ss:$8 sps:$4 sm:$0xff]   ;;  %v8998_v56 = vld [vmem:[%s11916_s1 + $0xca0] ss:$8 sps:$4 sm:$0xff]  }
 0x2f1   :  { %6268 = vmatprep.subr.bf16.mxu0 %v8915_v57  ;;  %v9001_v57 = vld [vmem:[%s11916_s1 + $0x19a0] ss:$8 sps:$4 sm:$0xff]  }
 0x2f3   :  { %5736 = vmatpush1.bf16.msra.mxu1 %v8910_v60  ;;  %v9006_v60 = vld [vmem:[%s11916_s1 + $0xcb4] ss:$8 sps:$4 sm:$0xff]  }
 0x2f4   :  { %6269 = vmatpush1.bf16.msra.mxu0 %v8913_v52  ;;  %5737 = vmatprep.subr.bf16.mxu1 %v8918_v53  ;;  %v9009_v52 = vld [vmem:[%s11916_s1 + $0x19b4] ss:$8 sps:$4 sm:$0xff]   ;;  %v9004_v53 = vld [vmem:[%s11916_s1 + $0xcb0] ss:$8 sps:$4 sm:$0xff]  }
 0x2f5   :  { %6270 = vmatprep.subr.bf16.mxu0 %v8921_v61  ;;  %v9007_v61 = vld [vmem:[%s11916_s1 + $0x19b0] ss:$8 sps:$4 sm:$0xff]  }
 0x2f7   :  { %5738 = vmatpush1.bf16.msra.mxu1 %v8916_v62  ;;  %v9012_v62 = vld [vmem:[%s11916_s1 + $0xcc4] ss:$8 sps:$4 sm:$0xff]  }
 0x2f8   :  { %6271 = vmatpush1.bf16.msra.mxu0 %v8919_v63  ;;  %5739 = vmatprep.subr.bf16.mxu1 %v8924_v2  ;;  %v9015_v63 = vld [vmem:[%s11916_s1 + $0x19c4] ss:$8 sps:$4 sm:$0xff]   ;;  %v9010_v2 = vld [vmem:[%s11916_s1 + $0xcc0] ss:$8 sps:$4 sm:$0xff]  }
 0x2f9   :  { %6272 = vmatprep.subr.bf16.mxu0 %v8927_v58  ;;  %v9013_v58 = vld [vmem:[%s11916_s1 + $0x19c0] ss:$8 sps:$4 sm:$0xff]  }
 0x2fb   :  { %5740 = vmatpush1.bf16.msra.mxu1 %v8922_v59  ;;  %v9018_v59 = vld [vmem:[%s11916_s1 + $0xcd4] ss:$8 sps:$4 sm:$0xff]  }
 0x2fc   :  { %6273 = vmatpush1.bf16.msra.mxu0 %v8925_v3  ;;  %5741 = vmatprep.subr.bf16.mxu1 %v8930_v4  ;;  %v9021_v3 = vld [vmem:[%s11916_s1 + $0x19d4] ss:$8 sps:$4 sm:$0xff]   ;;  %v9016_v4 = vld [vmem:[%s11916_s1 + $0xcd0] ss:$8 sps:$4 sm:$0xff]  }
 0x2fd   :  { %6274 = vmatprep.subr.bf16.mxu0 %v8933_v5  ;;  %v9019_v5 = vld [vmem:[%s11916_s1 + $0x19d0] ss:$8 sps:$4 sm:$0xff]  }
 0x2ff   :  { %5742 = vmatpush1.bf16.msra.mxu1 %v8928_v8  ;;  %v9024_v8 = vld [vmem:[%s11916_s1 + $0xce4] ss:$8 sps:$4 sm:$0xff]  }
 0x300   :  { %6275 = vmatpush1.bf16.msra.mxu0 %v8931_v0  ;;  %5752 = vmatprep.subr.bf16.mxu1 %v8938_v1  ;;  %v9027_v0 = vld [vmem:[%s11916_s1 + $0x19e4] ss:$8 sps:$4 sm:$0xff]   ;;  %v9022_v1 = vld [vmem:[%s11916_s1 + $0xce0] ss:$8 sps:$4 sm:$0xff]  }
 0x301   :  { %6285 = vmatprep.subr.bf16.mxu0 %v8943_v9  ;;  %v9025_v9 = vld [vmem:[%s11916_s1 + $0x19e0] ss:$8 sps:$4 sm:$0xff]  }
 0x302   :  { %5744 = vmatmul.mubr.bf16.vlgmr.msra.gmra.mrb[0].mxu1 %v6687_v10  ;;  %v9030_v10 = vld [vmem:[%s11916_s1 + $0xcf4] ss:$8 sps:$4 sm:$0xff]  }
 0x303   :  { %6277 = vmatmul.mubr.bf16.vlgmr.msra.gmra.mrb[0].mxu0 %v6713_v11  ;;  %5753 = vmatpush1.bf16.msra.mxu1 %v8936_v14  ;;  %v9033_v11 = vld [vmem:[%s11916_s1 + $0x19f4] ss:$8 sps:$4 sm:$0xff]   ;;  %v886_v14 = vld [vmem:[%s11916_s1 + $0x1a00] sm:$0xff] }
 0x304   :  { %6286 = vmatpush1.bf16.msra.mxu0 %v8941_v6  ;;  %5754 = vmatprep.subr.bf16.mxu1 %v8946_v7  ;;  %v9028_v6 = vld [vmem:[%s11916_s1 + $0xcf0] ss:$8 sps:$4 sm:$0xff]  }
 0x305   :  { %6287 = vmatprep.subr.bf16.mxu0 %v8949_v15  ;;  %5784 = vmatprep.mubr.bf16.mxu1 %v6690_v16  ;;  %v9031_v7 = vld [vmem:[%s11916_s1 + $0x19f0] ss:$8 sps:$4 sm:$0xff]   ;;  %v7551_v15 = vcombine.high %v886_v14, %v886_v14  ;;  %v7550_v16 = vcombine.low %v886_v14, %v886_v14 }
 0x306   :  { %6317 = vmatprep.mubr.bf16.mxu0 %v6716_v17  ;;  %v6689_v17 = vcombine.low %v11625_v12, %v11625_v12  ;;  %v9040_v12 = vld [vmem:[%s11917_s0 + $0xd0] ss:$0 sps:$4 sm:$0xff]  }
 0x307   :  { %5755 = vmatpush1.bf16.msra.mxu1 %v8944_v19  ;;  %v6715_v19 = vcombine.low %v11630_v13, %v11630_v13  ;;  %v9042_v13 = vld [vmem:[%s11918_s3] sm:$0xff]  }
 0x308   :  { %6288 = vmatpush1.bf16.msra.mxu0 %v8947_v21  ;;  %5756 = vmatprep.subr.bf16.mxu1 %v8952_v22  ;;  %v5255_v21 = vsel %vm5253_vm0, %v7550_v16, 0  ;;  %v9041_v22 = vld [vmem:[%s11918_s3 + $0x40] sm:$0xff]  }
 0x309   :  { %6289 = vmatprep.subr.bf16.mxu0 %v8955_v23  ;;  %v9065_v23 = vmov 0  }
 0x30b   :  { %5757 = vmatpush1.bf16.msra.mxu1 %v8950_v26  ;;  %v9043_v26 = vld [vmem:[%s11918_s3 + $0x48] sm:$0xff]  }
 0x30c   :  { %6290 = vmatpush1.bf16.msra.mxu0 %v8953_v18  ;;  %5758 = vmatprep.subr.bf16.mxu1 %v8958_v27  ;;  %v9044_v18 = vld [vmem:[%s11918_s3 + $0x8] sm:$0xff]   ;;  %v9045_v27 = vld [vmem:[%s11918_s3 + $0x50] sm:$0xff]  }
 0x30d   :  { %6291 = vmatprep.subr.bf16.mxu0 %v8961_v28  ;;  %v9046_v28 = vld [vmem:[%s11918_s3 + $0x10] sm:$0xff]  }
 0x30f   :  { %5759 = vmatpush1.bf16.msra.mxu1 %v8956_v30  ;;  %v9047_v30 = vld [vmem:[%s11918_s3 + $0x58] sm:$0xff]  }
 0x310   :  { %6292 = vmatpush1.bf16.msra.mxu0 %v8959_v31  ;;  %5760 = vmatprep.subr.bf16.mxu1 %v8964_v24  ;;  %v9048_v31 = vld [vmem:[%s11918_s3 + $0x18] sm:$0xff]   ;;  %v9049_v24 = vld [vmem:[%s11918_s3 + $0x60] sm:$0xff]  }
 0x311   :  { %6293 = vmatprep.subr.bf16.mxu0 %v8967_v25  ;;  %v9050_v25 = vld [vmem:[%s11918_s3 + $0x20] sm:$0xff]  }
 0x313   :  { %5761 = vmatpush1.bf16.msra.mxu1 %v8962_v34  ;;  %v9051_v34 = vld [vmem:[%s11918_s3 + $0x68] sm:$0xff]  }
 0x314   :  { %6294 = vmatpush1.bf16.msra.mxu0 %v8965_v35  ;;  %5762 = vmatprep.subr.bf16.mxu1 %v8970_v36  ;;  %v9052_v35 = vld [vmem:[%s11918_s3 + $0x28] sm:$0xff]   ;;  %v9053_v36 = vld [vmem:[%s11918_s3 + $0x70] sm:$0xff]  }
 0x315   :  { %6295 = vmatprep.subr.bf16.mxu0 %v8973_v37  ;;  %v9054_v37 = vld [vmem:[%s11918_s3 + $0x30] sm:$0xff]  }
 0x317   :  { %5763 = vmatpush1.bf16.msra.mxu1 %v8968_v38  ;;  %v9055_v38 = vld [vmem:[%s11918_s3 + $0x78] sm:$0xff]  }
 0x318   :  { %6296 = vmatpush1.bf16.msra.mxu0 %v8971_v20  ;;  %5764 = vmatprep.subr.bf16.mxu1 %v8976_v40  ;;  %v9056_v20 = vld [vmem:[%s11918_s3 + $0x38] sm:$0xff]   ;;  %v9066_v40 = vmov 0.0  }
 0x319   :  { %6297 = vmatprep.subr.bf16.mxu0 %v8979_v41  ;;  %v9057_v41 = vld [vmem:[%s11919_s5] sm:$0xff]  }
 0x31b   :  { %5765 = vmatpush1.bf16.msra.mxu1 %v8974_v42  ;;  %v9058_v42 = vld [vmem:[%s11919_s5 + $0x8] sm:$0xff]  }
 0x31c   :  { %6298 = vmatpush1.bf16.msra.mxu0 %v8977_v43  ;;  %5766 = vmatprep.subr.bf16.mxu1 %v8982_v44  ;;  %v9059_v43 = vld [vmem:[%s11919_s5 + $0x10] sm:$0xff]   ;;  %v9060_v44 = vld [vmem:[%s11919_s5 + $0x18] sm:$0xff]  }
 0x31d   :  { %6299 = vmatprep.subr.bf16.mxu0 %v8985_v32  ;;  %v9061_v32 = vld [vmem:[%s11919_s5 + $0x20] sm:$0xff]  }
 0x31f   :  { %5767 = vmatpush1.bf16.msra.mxu1 %v8980_v46  ;;  %v9062_v46 = vld [vmem:[%s11919_s5 + $0x28] sm:$0xff]  }
 0x320   :  { %6300 = vmatpush1.bf16.msra.mxu0 %v8983_v47  ;;  %5768 = vmatprep.subr.bf16.mxu1 %v8988_v48  ;;  %v889_v47 = vlaneseq }
 0x321   :  { %6301 = vmatprep.subr.bf16.mxu0 %v8991_v49 }
 0x322   :  { %v890_v48 = vshrl.u32 %v889_v47, 7 }
 0x323   :  { %5769 = vmatpush1.bf16.msra.mxu1 %v8986_v50 }
 0x324   :  { %6302 = vmatpush1.bf16.msra.mxu0 %v8989_v29  ;;  %5770 = vmatprep.subr.bf16.mxu1 %v8994_v39  ;;  %v891_v39 = vsub.s32 0, %v890_v48 }
 0x325   :  { %6303 = vmatprep.subr.bf16.mxu0 %v8997_v51 }
 0x327   :  { %5771 = vmatpush1.bf16.msra.mxu1 %v8992_v54  ;;  %v887_v54 = vld [vmem:[%s11920_s2] sm:$0x3] }
 0x328   :  { %6304 = vmatpush1.bf16.msra.mxu0 %v8995_v33  ;;  %5772 = vmatprep.subr.bf16.mxu1 %v9000_v45  ;;  %v895_v33 = vsub.s32 1, %v890_v48  ;;  %v892_v45 = vrot.slane %v887_v54, %v891_v39 }
 0x329   :  { %6305 = vmatprep.subr.bf16.mxu0 %v9003_v55 }
 0x32a   :  { %v896_v55 = vrot.slane %v887_v54, %v895_v33 }
 0x32b   :  { %5773 = vmatpush1.bf16.msra.mxu1 %v8998_v56 }
 0x32c   :  { %6306 = vmatpush1.bf16.msra.mxu0 %v9001_v57  ;;  %5774 = vmatprep.subr.bf16.mxu1 %v9006_v60 }
 0x32d   :  { %6307 = vmatprep.subr.bf16.mxu0 %v9009_v52 }
 0x32f   :  { %5775 = vmatpush1.bf16.msra.mxu1 %v9004_v53 }
 0x330   :  { %6308 = vmatpush1.bf16.msra.mxu0 %v9007_v61  ;;  %5776 = vmatprep.subr.bf16.mxu1 %v9012_v62 }
 0x331   :  { %6309 = vmatprep.subr.bf16.mxu0 %v9015_v63 }
 0x333   :  { %5777 = vmatpush1.bf16.msra.mxu1 %v9010_v2 }
 0x334   :  { %6310 = vmatpush1.bf16.msra.mxu0 %v9013_v58  ;;  %5778 = vmatprep.subr.bf16.mxu1 %v9018_v59 }
 0x335   :  { %6311 = vmatprep.subr.bf16.mxu0 %v9021_v3 }
 0x337   :  { %5779 = vmatpush1.bf16.msra.mxu1 %v9016_v4  ;;  %v9063_v4 = vld [vmem:[%s11919_s5 + $0x30] sm:$0xff]  }
 0x338   :  { %6312 = vmatpush1.bf16.msra.mxu0 %v9019_v5  ;;  %5780 = vmatprep.subr.bf16.mxu1 %v9024_v8  ;;  %v9064_v5 = vld [vmem:[%s11919_s5 + $0x38] sm:$0xff]  }
 0x339   :  { %6313 = vmatprep.subr.bf16.mxu0 %v9027_v0  ;;  %v7554_v0 = vld [vmem:[%s11921_s4] ss:$0 sm:$0xff] }
 0x33b   :  { %5781 = vmatpush1.bf16.msra.mxu1 %v9022_v1 }
 0x33c   :  { %6314 = vmatpush1.bf16.msra.mxu0 %v9025_v9  ;;  %5782 = vmatprep.subr.bf16.mxu1 %v9030_v10 }
 0x33d   :  { %6315 = vmatprep.subr.bf16.mxu0 %v9033_v11 }
 0x33f   :  { %5783 = vmatpush1.bf16.msra.mxu1 %v9028_v6 }
 0x340   :  { %6316 = vmatpush1.bf16.msra.mxu0 %v9031_v7  ;;  %7611 = vmatprep.subr.bf16.mxu1 %v9066_v40 }
 0x341   :  { %7552 = vmatprep.subr.msk.bf16.mxu0 %vm5253_vm0, %v7551_v15  ;;  %v7571_v15 = vld [vmem:[%s11922_s6] ss:$0 sm:$0xff] }
 0x342   :  { %5785 = vmatmul.mubr.bf16.vlgmr.msra.gmra.mrb[0].mxu1 %v6689_v17 }
 0x343   :  { %6318 = vmatmul.mubr.bf16.vlgmr.msra.gmra.mrb[0].mxu0 %v6715_v19  ;;  %7612 = vmatpush3.bf16.msra.mxu1 %v9057_v41 }
 0x344   :  { %6327 = vmatpush1.bf16.msra.mxu0 %v5255_v21  ;;  %6358 = vmatprep.mubr.bf16.mxu0 %v9065_v23 }
 0x345   :  { %7580 = vmatprep.subr.bf16.mxu0 %v9041_v22  ;;  %7613 = vmatprep.subr.bf16.mxu1 %v9066_v40 }
 0x346   :  { %7627 = vmatprep.mubr.msk.bf16.mxu1 %vm9067_vm2, %v9066_v40 }
 0x347   :  { %7614 = vmatpush3.bf16.msra.mxu1 %v9058_v42 }
 0x348   :  { %7615 = vmatprep.subr.bf16.mxu1 %v9066_v40 }
 0x34b   :  { %7616 = vmatpush3.bf16.msra.mxu1 %v9059_v43 }
 0x34c   :  { %7617 = vmatprep.subr.bf16.mxu1 %v9066_v40 }
 0x34f   :  { %7553 = vmatmul.mubr.msk.bf16.vlgmr.msra.gmra.mrb[0].mxu0 %vm5249_vm1, %v9040_v12  ;;  %7618 = vmatpush3.bf16.msra.mxu1 %v9060_v44 }
 0x350   :  { %7581 = vmatpush3.bf16.msra.mxu0 %v9042_v13  ;;  %7619 = vmatprep.subr.bf16.mxu1 %v9066_v40 }
 0x351   :  { %7582 = vmatprep.subr.bf16.mxu0 %v9043_v26 }
 0x353   :  { %7620 = vmatpush3.bf16.msra.mxu1 %v9061_v32 }
 0x354   :  { %7583 = vmatpush3.bf16.msra.mxu0 %v9044_v18  ;;  %7621 = vmatprep.subr.bf16.mxu1 %v9066_v40 }
 0x355   :  { %7584 = vmatprep.subr.bf16.mxu0 %v9045_v27 }
 0x357   :  { %7622 = vmatpush3.bf16.msra.mxu1 %v9062_v46 }
 0x358   :  { %7585 = vmatpush3.bf16.msra.mxu0 %v9046_v28  ;;  %7623 = vmatprep.subr.bf16.mxu1 %v9066_v40 }
 0x359   :  { %7586 = vmatprep.subr.bf16.mxu0 %v9047_v30 }
 0x35b   :  { %7624 = vmatpush3.bf16.msra.mxu1 %v9063_v4 }
 0x35c   :  { %7587 = vmatpush3.bf16.msra.mxu0 %v9048_v31  ;;  %7625 = vmatprep.subr.bf16.mxu1 %v9066_v40 }
 0x35d   :  { %7588 = vmatprep.subr.bf16.mxu0 %v9049_v24 }
 0x35f   :  { %7626 = vmatpush3.bf16.msra.mxu1 %v9064_v5 }
 0x360   :  { %7589 = vmatpush3.bf16.msra.mxu0 %v9050_v25 }
 0x361   :  { %7590 = vmatprep.subr.bf16.mxu0 %v9051_v34 }
 0x364   :  { %7591 = vmatpush3.bf16.msra.mxu0 %v9052_v35 }
 0x365   :  { %7592 = vmatprep.subr.bf16.mxu0 %v9053_v36 }
 0x368   :  { %7593 = vmatpush3.bf16.msra.mxu0 %v9054_v37 }
 0x369   :  { %7594 = vmatprep.subr.bf16.mxu0 %v9055_v38 }
 0x36c   :  { %7595 = vmatpush3.bf16.msra.mxu0 %v9056_v20 }
 0x415   :  { %v5786_v49 = vpop.f32.mrb[0].mxu1 }
 0x416   :  { %v5788_v50 = vpop.f32.mrb[1].mxu1  ;;  %v7631_v56 = vadd.f32 %v5786_v49, %v892_v45 }
 0x417   :  { %v5790_v29 = vpop.f32.mrb[2].mxu1  ;;  %v7633_v57 = vadd.f32 %v5788_v50, %v896_v55 }
 0x418   :  { %v5791_v51 = vpop.f32.mrb[3].mxu1 }
 0x422   :  { %v6360_v60 = vpop.f32.mrb[0].mxu0 }
 0x423   :  { %v7632_v52 = vadd.f32 %v7631_v56, %v6360_v60  ;;  %v6362_v53 = vpop.f32.mrb[1].mxu0 }
 0x424   :  { %v7634_v61 = vadd.f32 %v7633_v57, %v6362_v53  ;;  %v6364_v62 = vpop.f32.mrb[2].mxu0 }
 0x425   :  { %v6367_v63 = vmax.f32 %v7632_v52, 0.0  ;;  %v6365_v2 = vpop.f32.mrb[3].mxu0 }
 0x426   :  { %v6368_v58 = vmax.f32 %v7634_v61, 0.0 }
 0x427   :  { %v6369_v3 = vpack.c.bf16 %v6367_v63, %v6367_v63 }
 0x428   :  { %v6370_v59 = vpack.c.bf16 %v6368_v58, %v6368_v58 }
 0x42a   :  { %6538 = vmatprep.mubr.bf16.mxu0 %v6370_v59 }
 0x42b   :  { %6539 = vmatmul.mubr.bf16.vlgmr.msra.gmra.mrb[4].mxu0 %v6369_v3 }
 0x4fe   :  { %v7596_v8 = vpop.f32.mrb[4].mxu0 }
 0x4ff   :  { %v7597_v1 = vpop.f32.mrb[5].mxu0 }
 0x500   :  { %v7598_v9 = vadd.f32 %v7597_v1, %v7596_v8  ;;  %v7599_v10 = vpop.f32.mrb[6].mxu0 }
 0x501   :  { %v7600_v11 = vpop.f32.mrb[7].mxu0 }
 0x502   :  { %v6541_v14 = vadd.f32 %v7598_v9, %v7554_v0 }
 0x504   :  { %v6546_v6 = vmax.f32 %v6541_v14, 0.0 }
 0x506   :  { %v6547_v7 = vpack.c.bf16 %v6546_v6, %v6546_v6 }
 0x508   :  { %7628 = vmatmul.mubr.bf16.vlgmr.msra.gmra.mrb[4].mxu1 %v6547_v7 }
 0x5db   :  { %v6653_v16 = vpop.f32.mrb[4].mxu1 }
 0x5dc   :  { %v6654_v17 = vadd.f32 %v7571_v15, %v6653_v16  ;;  %v7629_v19 = vpop.f32.mrb[5].mxu1 }
 0x5dd   :  { %v6656_v21 = vpop.f32.mrb[6].mxu1 }
 0x5de   :  { %6660 = vst.msk [vmem:[%s11923_s7] sm:$0xff] %vm6659_vm3, %v6654_v17  ;;  %v7630_v22 = vpop.f32.mrb[7].mxu1 }

</bundles_post_ra>
